<compile_context>
chip_gen: v7x
topology: tpu7x:2x2x1
jax: 0.10.0
libtpu: 0.0.40
codegen_flags: <defaults>
</compile_context>

<pallas_src>
import math
import functools

import jax
import jax.numpy as jnp
from jax.experimental import pallas as pl
from jax.experimental.pallas import tpu as pltpu

N_EMBD = 384          # n_embd from the module
NUM_HEADS = 6
HEAD_SIZE = N_EMBD // NUM_HEADS   # 64
BLOCK_SIZE = 256      # causal-mask capacity (T <= BLOCK_SIZE)


def _mha_kernel(x_ref, wq_ref, wk_ref, wv_ref, wp_ref, b_ref, o_ref,
                *, num_heads, head_size, scale):
    # x_ref : (1, T, C)   one batch element
    # wq/wk/wv_ref : (C, C)  pre-transposed (in, H*hs); columns h*hs:(h+1)*hs = head h
    # wp_ref: (C, C)       pre-transposed output projection (in, out)
    # b_ref : (1, C)       projection bias
    # o_ref : (1, T, C)    final output for batch element b (lane-dense, C = 3*128)
    x = x_ref[0]                                                    # (T, C)

    # Full-width QKV projections: K=N=384 keeps the MXU well fed on every generation.
    q = jnp.dot(x, wq_ref[...], preferred_element_type=jnp.float32)   # (T, C)
    k = jnp.dot(x, wk_ref[...], preferred_element_type=jnp.float32)   # (T, C)
    v = jnp.dot(x, wv_ref[...], preferred_element_type=jnp.float32)   # (T, C)

    T = x.shape[0]
    row = jax.lax.broadcasted_iota(jnp.int32, (T, T), 0)
    col = jax.lax.broadcasted_iota(jnp.int32, (T, T), 1)
    causal = col <= row                                             # tril mask (built once)

    # Per-head attention; static Python unroll (num_heads = 6).
    head_outs = []
    for h in range(num_heads):
        lo = h * head_size
        hi = lo + head_size
        qh = q[:, lo:hi]                                            # (T, hs)
        kh = k[:, lo:hi]
        vh = v[:, lo:hi]

        # q @ k.T without an explicit transpose: contract last dims of both operands.
        s = jax.lax.dot_general(
            qh, kh, (((1,), (1,)), ((), ())),
            preferred_element_type=jnp.float32) * scale             # (T, T)

        # Large finite negative instead of -inf (same softmax result, NaN-safe).
        s = jnp.where(causal, s, -1e30)
        p = jax.nn.softmax(s, axis=-1)                              # (T, T), f32
        # TODO(synk): attention-weight dropout omitted (inference-mode identity).

        head_outs.append(
            jnp.dot(p, vh, preferred_element_type=jnp.float32))     # (T, hs)

    cat = jnp.concatenate(head_outs, axis=-1)                       # (T, C) in VMEM

    # Fused output projection + bias (no intermediate HBM write/read).
    out = jnp.dot(cat, wp_ref[...], preferred_element_type=jnp.float32) + b_ref[...]
    # TODO(synk): output dropout omitted (inference-mode identity).
    o_ref[...] = out.astype(o_ref.dtype)[None, :, :]


def multi_head_attention(x, wq, wk, wv, w_proj, b_proj):
    """x: (B, T, C);  wq/wk/wv: (H, hs, C) PyTorch Linear layout;  w_proj: (C, C);  b_proj: (C,)"""
    B, T, C = x.shape
    H, hs, _ = wq.shape
    scale = C ** (-0.5)   # note: scaled by n_embd (C), matching the reference module

    # Pre-transpose weights once (outside the kernel): (H, hs, C) -> (C, H*hs),
    # so q[:, h*hs:(h+1)*hs] == x @ wq[h].T.  Projection: (out, in) -> (in, out).
    wq_t = jnp.transpose(wq, (2, 0, 1)).reshape(C, H * hs)
    wk_t = jnp.transpose(wk, (2, 0, 1)).reshape(C, H * hs)
    wv_t = jnp.transpose(wv, (2, 0, 1)).reshape(C, H * hs)
    wp_t = jnp.transpose(w_proj)                                    # (C, C)
    b2d = b_proj.reshape(1, C)

    kernel = functools.partial(
        _mha_kernel, num_heads=H, head_size=hs, scale=scale)

    # One grid step per batch element; weights have constant index_maps so they stay
    # resident in VMEM across the (parallel) batch axis.
    return pl.pallas_call(
        kernel,
        out_shape=jax.ShapeDtypeStruct((B, T, C), x.dtype),
        grid_spec=pltpu.PrefetchScalarGridSpec(
            num_scalar_prefetch=0,
            grid=(B,),
            in_specs=[
                pl.BlockSpec((1, T, C), lambda b: (b, 0, 0)),
                pl.BlockSpec((C, H * hs), lambda b: (0, 0)),
                pl.BlockSpec((C, H * hs), lambda b: (0, 0)),
                pl.BlockSpec((C, H * hs), lambda b: (0, 0)),
                pl.BlockSpec((C, C), lambda b: (0, 0)),
                pl.BlockSpec((1, C), lambda b: (0, 0)),
            ],
            out_specs=pl.BlockSpec((1, T, C), lambda b: (b, 0, 0)),
        ),
        compiler_params=pltpu.CompilerParams(
            dimension_semantics=("parallel",),
            vmem_limit_bytes=64 * 1024 * 1024,
        ),
    )(x, wq_t, wk_t, wv_t, wp_t, b2d)


def _reference(x, wq, wk, wv, w_proj, b_proj):
    """Pure-JAX reference mirroring the PyTorch forward (dropout = identity)."""
    B, T, C = x.shape
    H, hs, _ = wq.shape
    outs = []
    for h in range(H):
        q = x @ wq[h].T
        k = x @ wk[h].T
        v = x @ wv[h].T
        s = (q @ jnp.swapaxes(k, -2, -1)) * (C ** -0.5)
        mask = jnp.tril(jnp.ones((T, T), dtype=bool))
        s = jnp.where(mask, s, -jnp.inf)
        p = jax.nn.softmax(s, axis=-1)
        outs.append(p @ v)
    cat = jnp.concatenate(outs, axis=-1)
    return cat @ w_proj.T + b_proj


if __name__ == "__main__":
    key = jax.random.PRNGKey(0)
    B, T = 2, 128   # T <= block_size (256)

    k_x, k_q, k_k, k_v, k_p, k_b = jax.random.split(key, 6)
    x = jax.random.normal(k_x, (B, T, N_EMBD), dtype=jnp.float32)

    # Deterministic synthetic parameters (PyTorch Linear layout: (out_features, in_features)).
    w_scale = 1.0 / math.sqrt(N_EMBD)
    wq = jax.random.normal(k_q, (NUM_HEADS, HEAD_SIZE, N_EMBD), jnp.float32) * w_scale
    wk = jax.random.normal(k_k, (NUM_HEADS, HEAD_SIZE, N_EMBD), jnp.float32) * w_scale
    wv = jax.random.normal(k_v, (NUM_HEADS, HEAD_SIZE, N_EMBD), jnp.float32) * w_scale
    w_proj = jax.random.normal(k_p, (N_EMBD, N_EMBD), jnp.float32) * w_scale
    b_proj = jax.random.normal(k_b, (N_EMBD,), jnp.float32) * 0.01

    out = multi_head_attention(x, wq, wk, wv, w_proj, b_proj)
    out = jax.block_until_ready(out)

    ref = _reference(x, wq, wk, wv, w_proj, b_proj)
    assert out.shape == (B, T, N_EMBD)
    assert jnp.allclose(out, ref, atol=2e-4, rtol=2e-4), "mismatch vs reference"

    print("KERNEL_OK")
</pallas_src>

<mosaic_0001>
module attributes {stable_mosaic.version = 11 : i64} {
  func.func @_mha_kernel(%arg0: i32, %arg1: memref<1x128x384xf32, #tpu.memory_space<vmem>>, %arg2: memref<384x384xf32, #tpu.memory_space<vmem>>, %arg3: memref<384x384xf32, #tpu.memory_space<vmem>>, %arg4: memref<384x384xf32, #tpu.memory_space<vmem>>, %arg5: memref<384x384xf32, #tpu.memory_space<vmem>>, %arg6: memref<1x384xf32, #tpu.memory_space<vmem>>, %arg7: memref<1x128x384xf32, #tpu.memory_space<vmem>>) attributes {dimension_semantics = [#tpu.dimension_semantics<parallel>], iteration_bounds = array<i64: 2>, scalar_prefetch = 0 : i64, scratch_operands = 0 : i64, tpu.core_type = #tpu.core_type<tc>, window_params = [{transform_indices = @transform_0, window_bounds = array<i64: 1, 128, 384>}, {pipeline_mode = #tpu.pipeline_mode<synchronous>, transform_indices = @transform_1, window_bounds = array<i64: 384, 384>}, {pipeline_mode = #tpu.pipeline_mode<synchronous>, transform_indices = @transform_2, window_bounds = array<i64: 384, 384>}, {pipeline_mode = #tpu.pipeline_mode<synchronous>, transform_indices = @transform_3, window_bounds = array<i64: 384, 384>}, {pipeline_mode = #tpu.pipeline_mode<synchronous>, transform_indices = @transform_4, window_bounds = array<i64: 384, 384>}, {pipeline_mode = #tpu.pipeline_mode<synchronous>, transform_indices = @transform_5, window_bounds = array<i64: 1, 384>}, {transform_indices = @transform_6, window_bounds = array<i64: 1, 128, 384>}]} {
    %c0 = arith.constant 0 : index
    %c0_0 = arith.constant 0 : index
    %c0_1 = arith.constant 0 : index
    %0 = vector.load %arg1[%c0, %c0_0, %c0_1] : memref<1x128x384xf32, #tpu.memory_space<vmem>>, vector<1x128x384xf32>
    %1 = vector.shape_cast %0 : vector<1x128x384xf32> to vector<128x384xf32>
    %c0_2 = arith.constant 0 : index
    %c0_3 = arith.constant 0 : index
    %2 = vector.load %arg2[%c0_2, %c0_3] : memref<384x384xf32, #tpu.memory_space<vmem>>, vector<384x384xf32>
    %cst = arith.constant dense<0.000000e+00> : vector<128x384xf32>
    %3 = tpu.matmul %1, %2, %cst {dimension_numbers = #tpu.dot_dimension_numbers<[1], [0], [0], [1], [0, 0, 1, 1], [], []>} : vector<128x384xf32>, vector<384x384xf32>, vector<128x384xf32> -> vector<128x384xf32>
    %c0_4 = arith.constant 0 : index
    %c0_5 = arith.constant 0 : index
    %4 = vector.load %arg3[%c0_4, %c0_5] : memref<384x384xf32, #tpu.memory_space<vmem>>, vector<384x384xf32>
    %cst_6 = arith.constant dense<0.000000e+00> : vector<128x384xf32>
    %5 = tpu.matmul %1, %4, %cst_6 {dimension_numbers = #tpu.dot_dimension_numbers<[1], [0], [0], [1], [0, 0, 1, 1], [], []>} : vector<128x384xf32>, vector<384x384xf32>, vector<128x384xf32> -> vector<128x384xf32>
    %c0_7 = arith.constant 0 : index
    %c0_8 = arith.constant 0 : index
    %6 = vector.load %arg4[%c0_7, %c0_8] : memref<384x384xf32, #tpu.memory_space<vmem>>, vector<384x384xf32>
    %cst_9 = arith.constant dense<0.000000e+00> : vector<128x384xf32>
    %7 = tpu.matmul %1, %6, %cst_9 {dimension_numbers = #tpu.dot_dimension_numbers<[1], [0], [0], [1], [0, 0, 1, 1], [], []>} : vector<128x384xf32>, vector<384x384xf32>, vector<128x384xf32> -> vector<128x384xf32>
    %8 = tpu.iota {dimensions = array<i32: 0>} : vector<128x128xi32>
    %9 = tpu.iota {dimensions = array<i32: 1>} : vector<128x128xi32>
    %10 = arith.cmpi sle, %9, %8 : vector<128x128xi32>
    %11 = vector.extract_strided_slice %3 {offsets = [0, 0], sizes = [128, 64], strides = [1, 1]} : vector<128x384xf32> to vector<128x64xf32>
    %12 = vector.extract_strided_slice %5 {offsets = [0, 0], sizes = [128, 64], strides = [1, 1]} : vector<128x384xf32> to vector<128x64xf32>
    %13 = vector.extract_strided_slice %7 {offsets = [0, 0], sizes = [128, 64], strides = [1, 1]} : vector<128x384xf32> to vector<128x64xf32>
    %cst_10 = arith.constant dense<0.000000e+00> : vector<128x128xf32>
    %14 = tpu.matmul %11, %12, %cst_10 {dimension_numbers = #tpu.dot_dimension_numbers<[1], [1], [0], [0], [0, 0, 1, 0], [], []>} : vector<128x64xf32>, vector<128x64xf32>, vector<128x128xf32> -> vector<128x128xf32>
    %cst_11 = arith.constant 0.0510310382 : f32
    %15 = vector.broadcast %cst_11 : f32 to vector<128x128xf32>
    %16 = arith.mulf %14, %15 : vector<128x128xf32>
    %cst_12 = arith.constant -1.000000e+30 : f32
    %17 = vector.broadcast %cst_12 : f32 to vector<128x128xf32>
    %18 = arith.select %10, %16, %17 : vector<128x128xi1>, vector<128x128xf32>
    %cst_13 = arith.constant dense<0xFF800000> : vector<128xf32>
    %19 = vector.multi_reduction <maximumf>, %18, %cst_13 [1] : vector<128x128xf32> to vector<128xf32>
    %cst_14 = arith.constant 0xFF800000 : f32
    %20 = vector.broadcast %cst_14 : f32 to vector<128xf32>
    %21 = arith.maximumf %20, %19 : vector<128xf32>
    %22 = vector.shape_cast %21 : vector<128xf32> to vector<128x1xf32>
    %23 = vector.broadcast %22 : vector<128x1xf32> to vector<128x128xf32>
    %24 = arith.subf %18, %23 : vector<128x128xf32>
    %25 = math.exp %24 : vector<128x128xf32>
    %cst_15 = arith.constant dense<0.000000e+00> : vector<128xf32>
    %26 = vector.multi_reduction <add>, %25, %cst_15 [1] : vector<128x128xf32> to vector<128xf32>
    %27 = vector.shape_cast %26 : vector<128xf32> to vector<128x1xf32>
    %28 = vector.broadcast %27 : vector<128x1xf32> to vector<128x128xf32>
    %29 = arith.divf %25, %28 : vector<128x128xf32>
    %cst_16 = arith.constant dense<0.000000e+00> : vector<128x64xf32>
    %30 = tpu.matmul %29, %13, %cst_16 {dimension_numbers = #tpu.dot_dimension_numbers<[1], [0], [0], [1], [0, 0, 1, 1], [], []>} : vector<128x128xf32>, vector<128x64xf32>, vector<128x64xf32> -> vector<128x64xf32>
    %31 = vector.extract_strided_slice %3 {offsets = [0, 64], sizes = [128, 64], strides = [1, 1]} : vector<128x384xf32> to vector<128x64xf32>
    %32 = vector.extract_strided_slice %5 {offsets = [0, 64], sizes = [128, 64], strides = [1, 1]} : vector<128x384xf32> to vector<128x64xf32>
    %33 = vector.extract_strided_slice %7 {offsets = [0, 64], sizes = [128, 64], strides = [1, 1]} : vector<128x384xf32> to vector<128x64xf32>
    %cst_17 = arith.constant dense<0.000000e+00> : vector<128x128xf32>
    %34 = tpu.matmul %31, %32, %cst_17 {dimension_numbers = #tpu.dot_dimension_numbers<[1], [1], [0], [0], [0, 0, 1, 0], [], []>} : vector<128x64xf32>, vector<128x64xf32>, vector<128x128xf32> -> vector<128x128xf32>
    %cst_18 = arith.constant 0.0510310382 : f32
    %35 = vector.broadcast %cst_18 : f32 to vector<128x128xf32>
    %36 = arith.mulf %34, %35 : vector<128x128xf32>
    %cst_19 = arith.constant -1.000000e+30 : f32
    %37 = vector.broadcast %cst_19 : f32 to vector<128x128xf32>
    %38 = arith.select %10, %36, %37 : vector<128x128xi1>, vector<128x128xf32>
    %cst_20 = arith.constant dense<0xFF800000> : vector<128xf32>
    %39 = vector.multi_reduction <maximumf>, %38, %cst_20 [1] : vector<128x128xf32> to vector<128xf32>
    %cst_21 = arith.constant 0xFF800000 : f32
    %40 = vector.broadcast %cst_21 : f32 to vector<128xf32>
    %41 = arith.maximumf %40, %39 : vector<128xf32>
    %42 = vector.shape_cast %41 : vector<128xf32> to vector<128x1xf32>
    %43 = vector.broadcast %42 : vector<128x1xf32> to vector<128x128xf32>
    %44 = arith.subf %38, %43 : vector<128x128xf32>
    %45 = math.exp %44 : vector<128x128xf32>
    %cst_22 = arith.constant dense<0.000000e+00> : vector<128xf32>
    %46 = vector.multi_reduction <add>, %45, %cst_22 [1] : vector<128x128xf32> to vector<128xf32>
    %47 = vector.shape_cast %46 : vector<128xf32> to vector<128x1xf32>
    %48 = vector.broadcast %47 : vector<128x1xf32> to vector<128x128xf32>
    %49 = arith.divf %45, %48 : vector<128x128xf32>
    %cst_23 = arith.constant dense<0.000000e+00> : vector<128x64xf32>
    %50 = tpu.matmul %49, %33, %cst_23 {dimension_numbers = #tpu.dot_dimension_numbers<[1], [0], [0], [1], [0, 0, 1, 1], [], []>} : vector<128x128xf32>, vector<128x64xf32>, vector<128x64xf32> -> vector<128x64xf32>
    %51 = vector.extract_strided_slice %3 {offsets = [0, 128], sizes = [128, 64], strides = [1, 1]} : vector<128x384xf32> to vector<128x64xf32>
    %52 = vector.extract_strided_slice %5 {offsets = [0, 128], sizes = [128, 64], strides = [1, 1]} : vector<128x384xf32> to vector<128x64xf32>
    %53 = vector.extract_strided_slice %7 {offsets = [0, 128], sizes = [128, 64], strides = [1, 1]} : vector<128x384xf32> to vector<128x64xf32>
    %cst_24 = arith.constant dense<0.000000e+00> : vector<128x128xf32>
    %54 = tpu.matmul %51, %52, %cst_24 {dimension_numbers = #tpu.dot_dimension_numbers<[1], [1], [0], [0], [0, 0, 1, 0], [], []>} : vector<128x64xf32>, vector<128x64xf32>, vector<128x128xf32> -> vector<128x128xf32>
    %cst_25 = arith.constant 0.0510310382 : f32
    %55 = vector.broadcast %cst_25 : f32 to vector<128x128xf32>
    %56 = arith.mulf %54, %55 : vector<128x128xf32>
    %cst_26 = arith.constant -1.000000e+30 : f32
    %57 = vector.broadcast %cst_26 : f32 to vector<128x128xf32>
    %58 = arith.select %10, %56, %57 : vector<128x128xi1>, vector<128x128xf32>
    %cst_27 = arith.constant dense<0xFF800000> : vector<128xf32>
    %59 = vector.multi_reduction <maximumf>, %58, %cst_27 [1] : vector<128x128xf32> to vector<128xf32>
    %cst_28 = arith.constant 0xFF800000 : f32
    %60 = vector.broadcast %cst_28 : f32 to vector<128xf32>
    %61 = arith.maximumf %60, %59 : vector<128xf32>
    %62 = vector.shape_cast %61 : vector<128xf32> to vector<128x1xf32>
    %63 = vector.broadcast %62 : vector<128x1xf32> to vector<128x128xf32>
    %64 = arith.subf %58, %63 : vector<128x128xf32>
    %65 = math.exp %64 : vector<128x128xf32>
    %cst_29 = arith.constant dense<0.000000e+00> : vector<128xf32>
    %66 = vector.multi_reduction <add>, %65, %cst_29 [1] : vector<128x128xf32> to vector<128xf32>
    %67 = vector.shape_cast %66 : vector<128xf32> to vector<128x1xf32>
    %68 = vector.broadcast %67 : vector<128x1xf32> to vector<128x128xf32>
    %69 = arith.divf %65, %68 : vector<128x128xf32>
    %cst_30 = arith.constant dense<0.000000e+00> : vector<128x64xf32>
    %70 = tpu.matmul %69, %53, %cst_30 {dimension_numbers = #tpu.dot_dimension_numbers<[1], [0], [0], [1], [0, 0, 1, 1], [], []>} : vector<128x128xf32>, vector<128x64xf32>, vector<128x64xf32> -> vector<128x64xf32>
    %71 = vector.extract_strided_slice %3 {offsets = [0, 192], sizes = [128, 64], strides = [1, 1]} : vector<128x384xf32> to vector<128x64xf32>
    %72 = vector.extract_strided_slice %5 {offsets = [0, 192], sizes = [128, 64], strides = [1, 1]} : vector<128x384xf32> to vector<128x64xf32>
    %73 = vector.extract_strided_slice %7 {offsets = [0, 192], sizes = [128, 64], strides = [1, 1]} : vector<128x384xf32> to vector<128x64xf32>
    %cst_31 = arith.constant dense<0.000000e+00> : vector<128x128xf32>
    %74 = tpu.matmul %71, %72, %cst_31 {dimension_numbers = #tpu.dot_dimension_numbers<[1], [1], [0], [0], [0, 0, 1, 0], [], []>} : vector<128x64xf32>, vector<128x64xf32>, vector<128x128xf32> -> vector<128x128xf32>
    %cst_32 = arith.constant 0.0510310382 : f32
    %75 = vector.broadcast %cst_32 : f32 to vector<128x128xf32>
    %76 = arith.mulf %74, %75 : vector<128x128xf32>
    %cst_33 = arith.constant -1.000000e+30 : f32
    %77 = vector.broadcast %cst_33 : f32 to vector<128x128xf32>
    %78 = arith.select %10, %76, %77 : vector<128x128xi1>, vector<128x128xf32>
    %cst_34 = arith.constant dense<0xFF800000> : vector<128xf32>
    %79 = vector.multi_reduction <maximumf>, %78, %cst_34 [1] : vector<128x128xf32> to vector<128xf32>
    %cst_35 = arith.constant 0xFF800000 : f32
    %80 = vector.broadcast %cst_35 : f32 to vector<128xf32>
    %81 = arith.maximumf %80, %79 : vector<128xf32>
    %82 = vector.shape_cast %81 : vector<128xf32> to vector<128x1xf32>
    %83 = vector.broadcast %82 : vector<128x1xf32> to vector<128x128xf32>
    %84 = arith.subf %78, %83 : vector<128x128xf32>
    %85 = math.exp %84 : vector<128x128xf32>
    %cst_36 = arith.constant dense<0.000000e+00> : vector<128xf32>
    %86 = vector.multi_reduction <add>, %85, %cst_36 [1] : vector<128x128xf32> to vector<128xf32>
    %87 = vector.shape_cast %86 : vector<128xf32> to vector<128x1xf32>
    %88 = vector.broadcast %87 : vector<128x1xf32> to vector<128x128xf32>
    %89 = arith.divf %85, %88 : vector<128x128xf32>
    %cst_37 = arith.constant dense<0.000000e+00> : vector<128x64xf32>
    %90 = tpu.matmul %89, %73, %cst_37 {dimension_numbers = #tpu.dot_dimension_numbers<[1], [0], [0], [1], [0, 0, 1, 1], [], []>} : vector<128x128xf32>, vector<128x64xf32>, vector<128x64xf32> -> vector<128x64xf32>
    %91 = vector.extract_strided_slice %3 {offsets = [0, 256], sizes = [128, 64], strides = [1, 1]} : vector<128x384xf32> to vector<128x64xf32>
    %92 = vector.extract_strided_slice %5 {offsets = [0, 256], sizes = [128, 64], strides = [1, 1]} : vector<128x384xf32> to vector<128x64xf32>
    %93 = vector.extract_strided_slice %7 {offsets = [0, 256], sizes = [128, 64], strides = [1, 1]} : vector<128x384xf32> to vector<128x64xf32>
    %cst_38 = arith.constant dense<0.000000e+00> : vector<128x128xf32>
    %94 = tpu.matmul %91, %92, %cst_38 {dimension_numbers = #tpu.dot_dimension_numbers<[1], [1], [0], [0], [0, 0, 1, 0], [], []>} : vector<128x64xf32>, vector<128x64xf32>, vector<128x128xf32> -> vector<128x128xf32>
    %cst_39 = arith.constant 0.0510310382 : f32
    %95 = vector.broadcast %cst_39 : f32 to vector<128x128xf32>
    %96 = arith.mulf %94, %95 : vector<128x128xf32>
    %cst_40 = arith.constant -1.000000e+30 : f32
    %97 = vector.broadcast %cst_40 : f32 to vector<128x128xf32>
    %98 = arith.select %10, %96, %97 : vector<128x128xi1>, vector<128x128xf32>
    %cst_41 = arith.constant dense<0xFF800000> : vector<128xf32>
    %99 = vector.multi_reduction <maximumf>, %98, %cst_41 [1] : vector<128x128xf32> to vector<128xf32>
    %cst_42 = arith.constant 0xFF800000 : f32
    %100 = vector.broadcast %cst_42 : f32 to vector<128xf32>
    %101 = arith.maximumf %100, %99 : vector<128xf32>
    %102 = vector.shape_cast %101 : vector<128xf32> to vector<128x1xf32>
    %103 = vector.broadcast %102 : vector<128x1xf32> to vector<128x128xf32>
    %104 = arith.subf %98, %103 : vector<128x128xf32>
    %105 = math.exp %104 : vector<128x128xf32>
    %cst_43 = arith.constant dense<0.000000e+00> : vector<128xf32>
    %106 = vector.multi_reduction <add>, %105, %cst_43 [1] : vector<128x128xf32> to vector<128xf32>
    %107 = vector.shape_cast %106 : vector<128xf32> to vector<128x1xf32>
    %108 = vector.broadcast %107 : vector<128x1xf32> to vector<128x128xf32>
    %109 = arith.divf %105, %108 : vector<128x128xf32>
    %cst_44 = arith.constant dense<0.000000e+00> : vector<128x64xf32>
    %110 = tpu.matmul %109, %93, %cst_44 {dimension_numbers = #tpu.dot_dimension_numbers<[1], [0], [0], [1], [0, 0, 1, 1], [], []>} : vector<128x128xf32>, vector<128x64xf32>, vector<128x64xf32> -> vector<128x64xf32>
    %111 = vector.extract_strided_slice %3 {offsets = [0, 320], sizes = [128, 64], strides = [1, 1]} : vector<128x384xf32> to vector<128x64xf32>
    %112 = vector.extract_strided_slice %5 {offsets = [0, 320], sizes = [128, 64], strides = [1, 1]} : vector<128x384xf32> to vector<128x64xf32>
    %113 = vector.extract_strided_slice %7 {offsets = [0, 320], sizes = [128, 64], strides = [1, 1]} : vector<128x384xf32> to vector<128x64xf32>
    %cst_45 = arith.constant dense<0.000000e+00> : vector<128x128xf32>
    %114 = tpu.matmul %111, %112, %cst_45 {dimension_numbers = #tpu.dot_dimension_numbers<[1], [1], [0], [0], [0, 0, 1, 0], [], []>} : vector<128x64xf32>, vector<128x64xf32>, vector<128x128xf32> -> vector<128x128xf32>
    %cst_46 = arith.constant 0.0510310382 : f32
    %115 = vector.broadcast %cst_46 : f32 to vector<128x128xf32>
    %116 = arith.mulf %114, %115 : vector<128x128xf32>
    %cst_47 = arith.constant -1.000000e+30 : f32
    %117 = vector.broadcast %cst_47 : f32 to vector<128x128xf32>
    %118 = arith.select %10, %116, %117 : vector<128x128xi1>, vector<128x128xf32>
    %cst_48 = arith.constant dense<0xFF800000> : vector<128xf32>
    %119 = vector.multi_reduction <maximumf>, %118, %cst_48 [1] : vector<128x128xf32> to vector<128xf32>
    %cst_49 = arith.constant 0xFF800000 : f32
    %120 = vector.broadcast %cst_49 : f32 to vector<128xf32>
    %121 = arith.maximumf %120, %119 : vector<128xf32>
    %122 = vector.shape_cast %121 : vector<128xf32> to vector<128x1xf32>
    %123 = vector.broadcast %122 : vector<128x1xf32> to vector<128x128xf32>
    %124 = arith.subf %118, %123 : vector<128x128xf32>
    %125 = math.exp %124 : vector<128x128xf32>
    %cst_50 = arith.constant dense<0.000000e+00> : vector<128xf32>
    %126 = vector.multi_reduction <add>, %125, %cst_50 [1] : vector<128x128xf32> to vector<128xf32>
    %127 = vector.shape_cast %126 : vector<128xf32> to vector<128x1xf32>
    %128 = vector.broadcast %127 : vector<128x1xf32> to vector<128x128xf32>
    %129 = arith.divf %125, %128 : vector<128x128xf32>
    %cst_51 = arith.constant dense<0.000000e+00> : vector<128x64xf32>
    %130 = tpu.matmul %129, %113, %cst_51 {dimension_numbers = #tpu.dot_dimension_numbers<[1], [0], [0], [1], [0, 0, 1, 1], [], []>} : vector<128x128xf32>, vector<128x64xf32>, vector<128x64xf32> -> vector<128x64xf32>
    %131 = tpu.concatenate %30, %50, %70, %90, %110, %130 in 1 : vector<128x64xf32>, vector<128x64xf32>, vector<128x64xf32>, vector<128x64xf32>, vector<128x64xf32>, vector<128x64xf32> -> vector<128x384xf32>
    %c0_52 = arith.constant 0 : index
    %c0_53 = arith.constant 0 : index
    %132 = vector.load %arg5[%c0_52, %c0_53] : memref<384x384xf32, #tpu.memory_space<vmem>>, vector<384x384xf32>
    %cst_54 = arith.constant dense<0.000000e+00> : vector<128x384xf32>
    %133 = tpu.matmul %131, %132, %cst_54 {dimension_numbers = #tpu.dot_dimension_numbers<[1], [0], [0], [1], [0, 0, 1, 1], [], []>} : vector<128x384xf32>, vector<384x384xf32>, vector<128x384xf32> -> vector<128x384xf32>
    %c0_55 = arith.constant 0 : index
    %c0_56 = arith.constant 0 : index
    %134 = vector.load %arg6[%c0_55, %c0_56] : memref<1x384xf32, #tpu.memory_space<vmem>>, vector<1x384xf32>
    %135 = vector.broadcast %134 : vector<1x384xf32> to vector<128x384xf32>
    %136 = arith.addf %133, %135 : vector<128x384xf32>
    %137 = vector.shape_cast %136 : vector<128x384xf32> to vector<1x128x384xf32>
    %c0_57 = arith.constant 0 : index
    %c0_58 = arith.constant 0 : index
    %c0_59 = arith.constant 0 : index
    %138 = vector.load %arg7[%c0_57, %c0_58, %c0_59] : memref<1x128x384xf32, #tpu.memory_space<vmem>>, vector<1x128x384xf32>
    tpu.vector_store %arg7[%c0_57, %c0_58, %c0_59], %137 {strides = array<i32>} : memref<1x128x384xf32, #tpu.memory_space<vmem>>, vector<1x128x384xf32>,
    return
  }
  func.func @transform_0(%arg0: i32) -> (i32, i32, i32) {
    %c0_i32 = arith.constant 0 : i32
    %c0_i32_0 = arith.constant 0 : i32
    %c0_i32_1 = arith.constant 0 : i32
    return %arg0, %c0_i32, %c0_i32_0 : i32, i32, i32
  }
  func.func @transform_1(%arg0: i32) -> (i32, i32) {
    %c0_i32 = arith.constant 0 : i32
    %c0_i32_0 = arith.constant 0 : i32
    %c0_i32_1 = arith.constant 0 : i32
    return %c0_i32, %c0_i32_0 : i32, i32
  }
  func.func @transform_2(%arg0: i32) -> (i32, i32) {
    %c0_i32 = arith.constant 0 : i32
    %c0_i32_0 = arith.constant 0 : i32
    %c0_i32_1 = arith.constant 0 : i32
    return %c0_i32, %c0_i32_0 : i32, i32
  }
  func.func @transform_3(%arg0: i32) -> (i32, i32) {
    %c0_i32 = arith.constant 0 : i32
    %c0_i32_0 = arith.constant 0 : i32
    %c0_i32_1 = arith.constant 0 : i32
    return %c0_i32, %c0_i32_0 : i32, i32
  }
  func.func @transform_4(%arg0: i32) -> (i32, i32) {
    %c0_i32 = arith.constant 0 : i32
    %c0_i32_0 = arith.constant 0 : i32
    %c0_i32_1 = arith.constant 0 : i32
    return %c0_i32, %c0_i32_0 : i32, i32
  }
  func.func @transform_5(%arg0: i32) -> (i32, i32) {
    %c0_i32 = arith.constant 0 : i32
    %c0_i32_0 = arith.constant 0 : i32
    %c0_i32_1 = arith.constant 0 : i32
    return %c0_i32, %c0_i32_0 : i32, i32
  }
  func.func @transform_6(%arg0: i32) -> (i32, i32, i32) {
    %c0_i32 = arith.constant 0 : i32
    %c0_i32_0 = arith.constant 0 : i32
    %c0_i32_1 = arith.constant 0 : i32
    return %arg0, %c0_i32, %c0_i32_0 : i32, i32, i32
  }
}

</mosaic_0001>

<bundles_post_ra>
// kernel: tpu_custom_call.1
= control target key start
LH: loop header
LB: loop body
LE: loop exit
PB: predicated region body
PF: predicated region fallthrough
CT: control target
= control target key end

     0   :  { %11 = vsyncpa [#allocation3], 0  ;;  %s15760_s0 = inlined_call_operand.hbm [shape: f32[2,128,384], index: 0, kind: input, shape index: {}]   ;;  %s15761_s1 = inlined_call_operand.hbm [shape: f32[384,384], index: 1, kind: input, shape index: {}]   ;;  %s15762_s2 = inlined_call_operand.hbm [shape: f32[384,384], index: 2, kind: input, shape index: {}]   ;;  %s15763_s3 = inlined_call_operand.hbm [shape: f32[384,384], index: 3, kind: input, shape index: {}]   ;;  %s15764_s4 = inlined_call_operand.hbm [shape: f32[384,384], index: 4, kind: input, shape index: {}]   ;;  %s15765_s5 = inlined_call_operand.hbm [shape: f32[1,384], index: 5, kind: input, shape index: {}]   ;;  %s15766_s6 = inlined_call_operand.hbm [shape: f32[2,128,384], index: 6, kind: output, shape index: {}]  }
   0x1   :  { %13 = vsyncpa [#allocation3 + $0x1], 0 }
   0x2   :  { %14 = vsyncpa [#allocation6], 0 }
   0x3   :  { %15 = vsyncpa [#allocation9], 0 }
   0x4   :  { %16 = vsyncpa [#allocation12], 0 }
   0x5   :  { %17 = vsyncpa [#allocation4], 0 }
   0x6   :  { %19 = vsyncpa [#allocation4 + $0x1], 0  ;;  %s11924_s21 = smov 0   ;;  %s11926_s22 = smov 0  }
   0x7   :  { %s11928_s23 = smov 0   ;;  %s11930_s24 = smov 0  }
   0x8 LB: > { %s11876_s25 = smov [#allocation5]   ;;  %s11945_s27 = sadd.s32 4294967295, %s11874_s24   ;;  %s11874_s24 = sphi %s11930_s24, %s16738_s24   ;;  %s11870_s23 = sphi %s11928_s23, %s16737_s23   ;;  %s11866_s22 = sphi %s11926_s22, %s16736_s22   ;;  %s11862_s21 = sphi %s11924_s21, %s16735_s21  }
   0x9   : > { %s199_s26 = sshll.u32 %s11876_s25, 4  ;;  %p7550_p0 = scmp.ge.s32.totalorder %s11874_s24, 1  ;;  %s11950_s26 = int_to_ptr.vmem [resolvable:$true] %s199_s26 }
   0xa   : > { %p15767_p1 = scmp.eq.s32.totalorder %s11945_s27, 0  ;;  %p187_p2 = scmp.lt.s32.totalorder %s11874_s24, 3 }
   0xb   : > { %s11877_s29 = smov [#allocation8]   ;;  %s11878_s8 = smov [#allocation7]  }
   0xc   : > { %p11952_p3 = pnand %p7550_p0, %p187_p2  ;;  %s225_s30 = sshll.u32 %s11877_s29, 4  ;;  %s11965_s30 = int_to_ptr.vmem [resolvable:$true] %s225_s30 }
   0xd   : > { %s212_s9 = sshll.u32 %s11878_s8, 4  ;;  %s11626_s12 = scalar_lea.hbm %s15761_s1, 18432  ;;  %s11967_s9 = int_to_ptr.vmem [resolvable:$true] %s212_s9 }
   0xe   : > { %s16028_s28 = scalar_select %p11952_p3, 1, 0 }
   0xf   : > { %p10795_p5 = pneg %p11952_p3  ;;  %p11627_p7 = scmp.ne.s32.totalorder %s15761_s1, %s11626_s12 }
  0x10   : > { %p11633_p11 = scmp.lt.u32.totalorder %s11626_s12, %s15761_s1 }
  0x11   : > { %p11961_p6 = pnand %p10795_p5, %p15767_p1 }
  0x13   : > { %p11977_p8 = pneg %p11961_p6 }
  0x15   : > { %p11629_p9 = pnand %p11977_p8, %p11627_p7 }
  0x17   : > { %p11630_p10 = pneg %p11629_p9 }
  0x19   : > { %p11635_p12 = pnand %p11633_p11, %p11630_p10 }
  0x1b   : > { %11638 = shalt.err (!%p11635_p12)
}
  0x1c   : > { %s11639_s18 = scalar_lea.vmem %s11950_s26, 18432  ;;  %p11647_p5 = scmp.lt.s32.totalorder %s11950_s26, %s11950_s26 }
  0x1d   : > { %p11640_p13 = scmp.ne.s32.totalorder %s11950_s26, %s11639_s18  ;;  %p11648_p4 = scmp.lt.s32.totalorder %s11639_s18, %s11639_s18 }
  0x1f   : > { %p11642_p0 = pnand %p11640_p13, %p11977_p8  ;;  %p11649_p7 = por %p11648_p4, %p11647_p5 }
  0x21   : > { %p11643_p2 = pneg %p11642_p0 }
  0x23   : > { %p11650_p9 = pnand %p11649_p7, %p11643_p2 }
  0x25   : > { %11653 = shalt.err (!%p11650_p9)
}
  0x26   : > { %s15769_s19 = smov 384   ;;  %s15770_s20 = smov 24  }
  0x27   : > { %10798 = dma.hbm_to_vmem [thread:$0]  (!%p11961_p6), %s15761_s1, 18432, %s11950_s26, [#allocation6], %s15769_s19, %s15769_s19, %s15770_s20  }
  0x28   : > { %s11654_s11 = scalar_lea.hbm %s15763_s3, 18432 }
  0x29   : > { %p11655_p4 = scmp.ne.s32.totalorder %s15763_s3, %s11654_s11  ;;  %p11661_p12 = scmp.lt.u32.totalorder %s11654_s11, %s15763_s3 }
  0x2b   : > { %p11657_p10 = pnand %p11655_p4, %p11977_p8 }
  0x2d   : > { %p11658_p11 = pneg %p11657_p10 }
  0x2f   : > { %p11663_p13 = pnand %p11661_p12, %p11658_p11 }
  0x31   : > { %11666 = shalt.err (!%p11663_p13)
}
  0x32   : > { %s11667_s26 = scalar_lea.vmem %s11965_s30, 18432  ;;  %p11675_p7 = scmp.lt.s32.totalorder %s11965_s30, %s11965_s30 }
  0x33   : > { %p11668_p0 = scmp.ne.s32.totalorder %s11965_s30, %s11667_s26  ;;  %p11676_p9 = scmp.lt.s32.totalorder %s11667_s26, %s11667_s26 }
  0x35   : > { %p11670_p2 = pnand %p11668_p0, %p11977_p8  ;;  %p11677_p4 = por %p11676_p9, %p11675_p7 }
  0x37   : > { %p11671_p5 = pneg %p11670_p2 }
  0x39   : > { %p11678_p10 = pnand %p11677_p4, %p11671_p5 }
  0x3b   : > { %11681 = shalt.err (!%p11678_p10)
}
  0x3c   : > { %10804 = dma.hbm_to_vmem [thread:$0]  (!%p11961_p6), %s15763_s3, 18432, %s11965_s30, [#allocation9], %s15769_s19, %s15769_s19, %s15770_s20  }
  0x3d   : > { %s11682_s8 = scalar_lea.hbm %s15762_s2, 18432 }
  0x3e   : > { %p11683_p11 = scmp.ne.s32.totalorder %s15762_s2, %s11682_s8  ;;  %p11689_p0 = scmp.lt.u32.totalorder %s11682_s8, %s15762_s2 }
  0x40   : > { %p11685_p12 = pnand %p11683_p11, %p11977_p8 }
  0x42   : > { %p11686_p13 = pneg %p11685_p12 }
  0x44   : > { %p11691_p2 = pnand %p11689_p0, %p11686_p13 }
  0x46   : > { %11694 = shalt.err (!%p11691_p2)
}
  0x47   : > { %s11695_s30 = scalar_lea.vmem %s11967_s9, 18432  ;;  %p11703_p4 = scmp.lt.s32.totalorder %s11967_s9, %s11967_s9 }
  0x48   : > { %p11696_p5 = scmp.ne.s32.totalorder %s11967_s9, %s11695_s30  ;;  %p11704_p10 = scmp.lt.s32.totalorder %s11695_s30, %s11695_s30 }
  0x4a   : > { %p11698_p7 = pnand %p11696_p5, %p11977_p8  ;;  %p11705_p11 = por %p11704_p10, %p11703_p4 }
  0x4c   : > { %p11699_p9 = pneg %p11698_p7 }
  0x4e   : > { %p11706_p12 = pnand %p11705_p11, %p11699_p9 }
  0x50   : > { %11709 = shalt.err (!%p11706_p12)
}
  0x51   : > { %10801 = dma.hbm_to_vmem [thread:$0]  (!%p11961_p6), %s15762_s2, 18432, %s11967_s9, [#allocation6], %s15769_s19, %s15769_s19, %s15770_s20  }
  0x52   : > { %s11881_s26 = smov [#allocation10]   ;;  %s11882_s18 = smov [#allocation11]  }
  0x53   : > { %s238_s17 = sshll.u32 %s11881_s26, 4  ;;  %s252_s25 = sshll.u32 %s11882_s18, 4  ;;  %s239_s17 = int_to_ptr.vmem [resolvable:$true] %s238_s17  ;;  %s253_s25 = int_to_ptr.vmem [resolvable:$true] %s252_s25 }
  0x54   : > { %s11710_s10 = scalar_lea.hbm %s15764_s4, 18432 }
  0x55   : > { %p11711_p13 = scmp.ne.s32.totalorder %s15764_s4, %s11710_s10  ;;  %p11717_p5 = scmp.lt.u32.totalorder %s11710_s10, %s15764_s4 }
  0x57   : > { %p11713_p0 = pnand %p11711_p13, %p11977_p8 }
  0x59   : > { %p11714_p2 = pneg %p11713_p0 }
  0x5b   : > { %p11719_p7 = pnand %p11717_p5, %p11714_p2 }
  0x5d   : > { %11722 = shalt.err (!%p11719_p7)
}
  0x5e   : > { %s11723_s9 = scalar_lea.vmem %s239_s17, 18432  ;;  %p11731_p11 = scmp.lt.s32.totalorder %s239_s17, %s239_s17 }
  0x5f   : > { %p11724_p9 = scmp.ne.s32.totalorder %s239_s17, %s11723_s9  ;;  %p11732_p12 = scmp.lt.s32.totalorder %s11723_s9, %s11723_s9 }
  0x61   : > { %p11726_p4 = pnand %p11724_p9, %p11977_p8  ;;  %p11733_p1 = por %p11732_p12, %p11731_p11 }
  0x63   : > { %p11727_p10 = pneg %p11726_p4 }
  0x65   : > { %p11734_p3 = pnand %p11733_p1, %p11727_p10 }
  0x67   : > { %11737 = shalt.err (!%p11734_p3)
}
  0x68   : > { %10807 = dma.hbm_to_vmem [thread:$0]  (!%p11961_p6), %s15764_s4, 18432, %s239_s17, [#allocation9], %s15769_s19, %s15769_s19, %s15770_s20  }
  0x69   : > { %s11738_s29 = scalar_lea.hbm %s15765_s5, 48 }
  0x6a   : > { %p11739_p1 = scmp.ne.s32.totalorder %s15765_s5, %s11738_s29  ;;  %p11745_p0 = scmp.lt.u32.totalorder %s11738_s29, %s15765_s5 }
  0x6c   : > { %p11741_p3 = pnand %p11739_p1, %p11977_p8 }
  0x6e   : > { %p11742_p13 = pneg %p11741_p3 }
  0x70   : > { %p11747_p2 = pnand %p11745_p0, %p11742_p13 }
  0x72   : > { %11750 = shalt.err (!%p11747_p2)
}
  0x73   : > { %s11751_s13 = scalar_lea.vmem %s253_s25, 48  ;;  %s11758_s17 = scalar_lea.vmem %s253_s25, 64 }
  0x74   : > { %p11752_p5 = scmp.ne.s32.totalorder %s253_s25, %s11751_s13  ;;  %p11759_p4 = scmp.lt.s32.totalorder %s253_s25, %s253_s25 }
  0x75   : > { %p11760_p10 = scmp.lt.s32.totalorder %s11758_s17, %s11751_s13 }
  0x76   : > { %p11754_p7 = pnand %p11752_p5, %p11977_p8 }
  0x77   : > { %p11761_p11 = por %p11760_p10, %p11759_p4 }
  0x78   : > { %p11755_p9 = pneg %p11754_p7 }
  0x7a   : > { %p11762_p12 = pnand %p11761_p11, %p11755_p9 }
  0x7c   : > { %11765 = shalt.err (!%p11762_p12)
}
  0x7d   : > { %10810 = dma.hbm_to_vmem [thread:$0]  (!%p11961_p6), %s15765_s5, 48, %s253_s25, [#allocation12]  }
  0x7e   : > { %s7549_s15 = sadd.s32 4294967294, %s11874_s24   ;;  %s12094_s7 = sadd.s32 1, %s11874_s24  }
  0x7f   : > { %s32_s14 = sadd.s32 1, %s11870_s23  ;;  %s29_s16 = ssub.s32 %s11874_s24, %s12094_s7 }
  0x80   : > { %p39_p8 = scmp.ne.s32.totalorder %s11870_s23, %s11866_s22  ;;  %p30_p1 = scmp.eq.s32.totalorder %s29_s16, 0 }
  0x81   : > { %p40_p3 = scmp.eq.s32.totalorder %s11874_s24, 0  ;;  %p45_p13 = scmp.ne.s32.totalorder %s11866_s22, %s11862_s21 }
  0x82   : > { %p174_p0 = scmp.eq.s32.totalorder %s11945_s27, 1  ;;  %p16031_p5 = scmp.eq.s32.totalorder %s11945_s27, 0 }
  0x83   : > { %s12106_s26 = scalar_select %p30_p1, %s11870_s23, %s32_s14  }
  0x84   : > { %p41_p2 = por %p40_p3, %p39_p8  ;;  %p12110_p7 = por %p16031_p5, %p45_p13 }
  0x85   : > { %p12114_p6 = por %p174_p0, %p39_p8  ;;  %p180_p9 = scmp.eq.s32.totalorder %s7549_s15, 1 }
  0x86   : > { %p10824_p4 = scmp.lt.s32.totalorder %s11874_s24, 2  ;;  %s263_s29 = sand.u32 1, %s11870_s23  }
  0x87   : > { %s16033_s25 = scalar_select %p12114_p6, 1, 0 }
  0x88   : > { %p12120_p10 = por %p180_p9, %p45_p13  ;;  %s10767_s10 = smul.u32 384, %s263_s29 }
  0x89   : > { %p12124_p11 = pnand %p10824_p4, %p41_p2  ;;  %s10768_s12 = smul.u32 6144, %s11874_s24 }
  0x8a   : > { %s16034_s8 = scalar_select %p12120_p10, 1, 0 }
  0x8b   : > { %s12132_s30 = scalar_lea.hbm %s15760_s0, %s10768_s12  ;;  %s267_s9 = scalar_lea.vmem [#allocation2], %s10767_s10 }
  0x8c   : > { %s274_s15 = sshll.u32 %s267_s9, 4  ;;  %s12136_s14 = scalar_lea.sflag [#allocation3], %s263_s29  ;;  %s12134_s15 = int_to_ptr.vmem [resolvable:$true] %s274_s15 }
  0x8d   : > { %s11766_s16 = scalar_lea.hbm %s12132_s30, 6144  ;;  %p11768_p8 = pneg %p12124_p11 }
  0x8e   : > { %p11767_p12 = scmp.ne.s32.totalorder %s12132_s30, %s11766_s16  ;;  %s11771_s17 = scalar_lea.hbm %s15760_s0, 12288 }
  0x8f   : > { %p11772_p13 = scmp.lt.u32.totalorder %s12132_s30, %s15760_s0  ;;  %p11773_p0 = scmp.lt.u32.totalorder %s11771_s17, %s11766_s16 }
  0x90   : > { %p11769_p1 = pnand %p11768_p8, %p11767_p12  ;;  %p11775_p5 = scmp.lt.u32.totalorder %s11766_s16, %s12132_s30 }
  0x91   : > { %p11774_p2 = por %p11773_p0, %p11772_p13 }
  0x92   : > { %p11770_p3 = pneg %p11769_p1 }
  0x93   : > { %p11776_p9 = por %p11775_p5, %p11774_p2 }
  0x95   : > { %p11777_p4 = pnand %p11776_p9, %p11770_p3 }
  0x97   : > { %11780 = shalt.err (!%p11777_p4)
}
  0x98   : > { %s11781_s29 = scalar_lea.vmem %s12134_s15, 6144  ;;  %s11883_s10 = smov [#allocation2]  }
  0x99   : > { %p11782_p12 = scmp.ne.s32.totalorder %s12134_s15, %s11781_s29  ;;  %s11786_s9 = sshll.u32 %s11883_s10, 4  ;;  %s11787_s9 = int_to_ptr.vmem [resolvable:$false] %s11786_s9 }
  0x9a   : > { %s11788_s19 = scalar_lea.vmem %s11787_s9, 12288  ;;  %p11789_p6 = scmp.lt.s32.totalorder %s12134_s15, %s11787_s9 }
  0x9b   : > { %p11784_p1 = pnand %p11782_p12, %p11768_p8  ;;  %p11790_p13 = scmp.lt.s32.totalorder %s11788_s19, %s11781_s29 }
  0x9d   : > { %p11785_p10 = pneg %p11784_p1  ;;  %p11791_p0 = por %p11790_p13, %p11789_p6 }
  0x9f   : > { %p11792_p2 = pnand %p11791_p0, %p11785_p10 }
  0xa1   : > { %11795 = shalt.err (!%p11792_p2)
}
  0xa2   : > { %s16036_s20 = smov 24   ;;  %s16037_s16 = smov 384  }
  0xa3   : > { %10814 = dma.hbm_to_vmem [thread:$0]  (!%p12124_p11), %s12132_s30, 6144, %s12134_s15, %s12136_s14, %s16037_s16, %s16037_s16, %s16036_s20  }
  0xa4   : > { %p16038_p8 = scmp.ne.s32.totalorder %s16028_s28, 0 }
  0xa6   : > { %286 = sbr.rel (%p16038_p8) target bundleno = 4504 (0x1198), region = 44 }
  0xad   : > { %s12170_s12 = sand.u32 1, %s11866_s22  }
  0xae   : > { %s10769_s13 = smul.u32 384, %s12170_s12  ;;  %s289_s17 = scalar_lea.sflag [#allocation3], %s12170_s12 }
  0xb0   : > { %s12176_s11 = scalar_lea.vmem [#allocation2], %s10769_s13 }
  0xb1   : > { %11841 = dma.done.wait (%p12110_p7), %s289_s17, 6144  }
  0xb2   : > { %11843 = vsyncadd (%p12110_p7), %s289_s17, 4294961152  ;;  %p16039_p6 = scmp.eq.s32.totalorder %s11945_s27, 0 }
  0xb4   : > { %11845 = dma.done.wait (%p16039_p6), [#allocation6], 36864   ;;  %p16040_p10 = pmov %p16039_p6 }
  0xb5   : > { %p16041_p11 = pmov %p16039_p6 }
  0xb6   : > { %11847 = vsyncadd (%p16040_p10), [#allocation6], 4294930432 }
  0xb7   : > { %11849 = dma.done.wait (%p16041_p11), [#allocation9], 36864   ;;  %p16042_p3 = pmov %p16039_p6 }
  0xb9   : > { %11851 = vsyncadd (%p16042_p3), [#allocation9], 4294930432  ;;  %p16043_p5 = pmov %p16042_p3 }
  0xba   : > { %p16044_p9 = pmov %p16042_p3 }
  0xbb   : > { %11853 = dma.done.wait (%p16043_p5), [#allocation12], 48  }
  0xbc   : > { %11855 = vsyncadd (%p16044_p9), [#allocation12], 4294967248  ;;  %v390_v0 = vld [vmem:[#allocation5 + $0x8] sm:$0xff]  ;;  %v393_v1 = vld [vmem:[#allocation5 + $0x20] sm:$0xff]  ;;  %vm15923_vm0 = vcmask 523264   ;;  %s11885_s28 = smov 64  }
  0xbd   : > { %v439_v2 = vld [vmem:[#allocation5 + $0x190] sm:$0xff]  ;;  %v9487_v3 = vpack.c.bf16 %v393_v1, %v390_v0  ;;  %v442_v4 = vld [vmem:[#allocation5 + $0x1a8] sm:$0xff]  ;;  %v389_v5 = vld [vmem:[#allocation5] sm:$0xff]  ;;  %s15605_s18 = scalar_lea.vmem [#allocation13], %s10769_s13  ;;  %s10770_s30 = smul.u32 6144, %s11945_s27 }
  0xbe   : > { %v392_v6 = vld [vmem:[#allocation5 + $0x18] sm:$0xff]  ;;  %v9583_v7 = vpack.c.bf16 %v442_v4, %v439_v2  ;;  %v391_v9 = vld [vmem:[#allocation5 + $0x10] sm:$0xff]  ;;  %v394_v10 = vld [vmem:[#allocation5 + $0x28] sm:$0xff]  ;;  %s7428_s15 = sshll.u32 %s15605_s18, 4  ;;  %s7415_s27 = scalar_lea.sflag [#allocation4], %s12170_s12  ;;  %s15713_s15 = int_to_ptr.vmem [resolvable:$true] %s7428_s15 }
  0xbf   : > { %v9489_v8 = vpack.c.bf16 %v392_v6, %v389_v5  ;;  %v396_v11 = vld [vmem:[#allocation5 + $0x38] sm:$0xff]  ;;  %9488 = vmatprep.subr.bf16.mxu0 %v9487_v3  ;;  %v9585_v12 = vpack.c.bf16 %v394_v10, %v391_v9  ;;  %v399_v13 = vld [vmem:[#allocation5 + $0x50] sm:$0xff]  ;;  %v445_v14 = vld [vmem:[#allocation5 + $0x1c0] sm:$0xff]  ;;  %s15711_s10 = scalar_lea.hbm %s15766_s6, %s10770_s30  ;;  %s11796_s9 = scalar_lea.vmem %s15713_s15, 6144 }
  0xc0   : > { %v448_v15 = vld [vmem:[#allocation5 + $0x1d8] sm:$0xff]  ;;  %9584 = vmatprep.subr.bf16.mxu1 %v9583_v7  ;;  %v9491_v16 = vpack.c.bf16 %v399_v13, %v396_v11  ;;  %v395_v18 = vld [vmem:[#allocation5 + $0x30] sm:$0xff]  ;;  %v398_v19 = vld [vmem:[#allocation5 + $0x48] sm:$0xff]  ;;  %p11797_p7 = scmp.ne.s32.totalorder %s15713_s15, %s11796_s9  ;;  %p16732_p4 = scmp.ne.s32.totalorder %s16033_s25, 0 }
  0xc1   : > { %9490 = vmatpush1.bf16.msra.mxu0 %v9489_v8  ;;  %v9587_v17 = vpack.c.bf16 %v448_v15, %v445_v14  ;;  %v397_v20 = vld [vmem:[#allocation5 + $0x40] sm:$0xff]  ;;  %9586 = vmatpush3.bf16.msra.mxu1 %v9585_v12  ;;  %v9493_v21 = vpack.c.bf16 %v398_v19, %v395_v18  ;;  %v400_v22 = vld [vmem:[#allocation5 + $0x58] sm:$0xff]  ;;  %v402_v23 = vld [vmem:[#allocation5 + $0x68] sm:$0xff]  ;;  %s11886_s19 = smov [#allocation13]  }
  0xc2   : > { %v405_v24 = vld [vmem:[#allocation5 + $0x80] sm:$0xff]  ;;  %9492 = vmatprep.subr.bf16.mxu0 %v9491_v16  ;;  %v9589_v25 = vpack.c.bf16 %v400_v22, %v397_v20  ;;  %v451_v27 = vld [vmem:[#allocation5 + $0x1f0] sm:$0xff]  ;;  %v454_v28 = vld [vmem:[#allocation5 + $0x208] sm:$0xff]  ;;  %p11798_p12 = pnand %p11797_p7, %p16732_p4  ;;  %s11800_s20 = sshll.u32 %s11886_s19, 4  ;;  %s11801_s20 = int_to_ptr.vmem [resolvable:$false] %s11800_s20 }
  0xc3   : > { %9588 = vmatprep.subr.bf16.mxu1 %v9587_v17  ;;  %v9495_v26 = vpack.c.bf16 %v405_v24, %v402_v23  ;;  %v401_v29 = vld [vmem:[#allocation5 + $0x60] sm:$0xff]  ;;  %v9591_v30 = vpack.c.bf16 %v454_v28, %v451_v27  ;;  %v404_v31 = vld [vmem:[#allocation5 + $0x78] sm:$0xff]  ;;  %v403_v32 = vld [vmem:[#allocation5 + $0x70] sm:$0xff]  ;;  %s11802_s16 = scalar_lea.vmem %s11801_s20, 12288  ;;  %p11803_p13 = scmp.lt.s32.totalorder %s15713_s15, %s11801_s20 }
  0xc4   : > { %v406_v33 = vld [vmem:[#allocation5 + $0x88] sm:$0xff]  ;;  %v9497_v34 = vpack.c.bf16 %v404_v31, %v401_v29  ;;  %v408_v35 = vld [vmem:[#allocation5 + $0x98] sm:$0xff]  ;;  %v411_v36 = vld [vmem:[#allocation5 + $0xb0] sm:$0xff]  ;;  %p11799_p1 = pneg %p11798_p12  ;;  %p11804_p0 = scmp.lt.s32.totalorder %s11802_s16, %s11796_s9 }
  0xc5   : > { %9494 = vmatpush1.bf16.msra.mxu0 %v9493_v21  ;;  %v457_v37 = vld [vmem:[#allocation5 + $0x220] sm:$0xff]  ;;  %9590 = vmatpush3.bf16.msra.mxu1 %v9589_v25  ;;  %v9593_v38 = vpack.c.bf16 %v406_v33, %v403_v32  ;;  %v9499_v39 = vpack.c.bf16 %v411_v36, %v408_v35  ;;  %v460_v40 = vld [vmem:[#allocation5 + $0x238] sm:$0xff]  ;;  %v407_v41 = vld [vmem:[#allocation5 + $0x90] sm:$0xff] }
  0xc6   : > { %9496 = vmatprep.subr.bf16.mxu0 %v9495_v26  ;;  %v410_v42 = vld [vmem:[#allocation5 + $0xa8] sm:$0xff]  ;;  %9592 = vmatprep.subr.bf16.mxu1 %v9591_v30  ;;  %v9595_v43 = vpack.c.bf16 %v460_v40, %v457_v37  ;;  %v409_v44 = vld [vmem:[#allocation5 + $0xa0] sm:$0xff]  ;;  %v412_v45 = vld [vmem:[#allocation5 + $0xb8] sm:$0xff]  ;;  %p11805_p2 = por %p11804_p0, %p11803_p13 }
  0xc7   : > { %v414_v46 = vld [vmem:[#allocation5 + $0xc8] sm:$0xff]  ;;  %v417_v47 = vld [vmem:[#allocation5 + $0xe0] sm:$0xff]  ;;  %v463_v48 = vld [vmem:[#allocation5 + $0x250] sm:$0xff]  ;;  %v9501_v50 = vpack.c.bf16 %v410_v42, %v407_v41  ;;  %v9597_v51 = vpack.c.bf16 %v412_v45, %v409_v44 }
  0xc8   : > { %v466_v49 = vld [vmem:[#allocation5 + $0x268] sm:$0xff]  ;;  %v9503_v52 = vpack.c.bf16 %v417_v47, %v414_v46  ;;  %v413_v53 = vld [vmem:[#allocation5 + $0xc0] sm:$0xff]  ;;  %v416_v54 = vld [vmem:[#allocation5 + $0xd8] sm:$0xff]  ;;  %p11806_p8 = pnand %p11805_p2, %p11799_p1 }
  0xc9   : > { %9498 = vmatpush1.bf16.msra.mxu0 %v9497_v34  ;;  %9594 = vmatpush3.bf16.msra.mxu1 %v9593_v38  ;;  %v415_v55 = vld [vmem:[#allocation5 + $0xd0] sm:$0xff]  ;;  %v9599_v56 = vpack.c.bf16 %v466_v49, %v463_v48  ;;  %v418_v57 = vld [vmem:[#allocation5 + $0xe8] sm:$0xff]  ;;  %v420_v58 = vld [vmem:[#allocation5 + $0xf8] sm:$0xff]  ;;  %v9505_v62 = vpack.c.bf16 %v416_v54, %v413_v53 }
  0xca   : > { %9500 = vmatprep.subr.bf16.mxu0 %v9499_v39  ;;  %9596 = vmatprep.subr.bf16.mxu1 %v9595_v43  ;;  %v423_v59 = vld [vmem:[#allocation5 + $0x110] sm:$0xff]  ;;  %v469_v60 = vld [vmem:[#allocation5 + $0x280] sm:$0xff]  ;;  %v472_v61 = vld [vmem:[#allocation5 + $0x298] sm:$0xff]  ;;  %v9601_v63 = vpack.c.bf16 %v418_v57, %v415_v55 }
  0xcb   : > { %v9507_v0 = vpack.c.bf16 %v423_v59, %v420_v58  ;;  %v419_v1 = vld [vmem:[#allocation5 + $0xf0] sm:$0xff]  ;;  %v422_v2 = vld [vmem:[#allocation5 + $0x108] sm:$0xff]  ;;  %v421_v3 = vld [vmem:[#allocation5 + $0x100] sm:$0xff]  ;;  %v9603_v4 = vpack.c.bf16 %v472_v61, %v469_v60 }
  0xcc   : > { %v424_v5 = vld [vmem:[#allocation5 + $0x118] sm:$0xff]  ;;  %v426_v6 = vld [vmem:[#allocation5 + $0x128] sm:$0xff]  ;;  %v429_v7 = vld [vmem:[#allocation5 + $0x140] sm:$0xff]  ;;  %v9509_v10 = vpack.c.bf16 %v422_v2, %v419_v1 }
  0xcd   : > { %9502 = vmatpush1.bf16.msra.mxu0 %v9501_v50  ;;  %9598 = vmatpush3.bf16.msra.mxu1 %v9597_v51  ;;  %v475_v8 = vld [vmem:[#allocation5 + $0x2b0] sm:$0xff]  ;;  %v478_v9 = vld [vmem:[#allocation5 + $0x2c8] sm:$0xff]  ;;  %v425_v11 = vld [vmem:[#allocation5 + $0x120] sm:$0xff]  ;;  %v9605_v12 = vpack.c.bf16 %v424_v5, %v421_v3  ;;  %v9511_v13 = vpack.c.bf16 %v429_v7, %v426_v6 }
  0xce   : > { %9504 = vmatprep.subr.bf16.mxu0 %v9503_v52  ;;  %9600 = vmatprep.subr.bf16.mxu1 %v9599_v56  ;;  %v428_v14 = vld [vmem:[#allocation5 + $0x138] sm:$0xff]  ;;  %v427_v15 = vld [vmem:[#allocation5 + $0x130] sm:$0xff]  ;;  %v12195_v16 = vld [vmem:[%s12176_s11 + $0x8] sm:$0xff]  ;;  %v9607_v17 = vpack.c.bf16 %v478_v9, %v475_v8 }
  0xcf   : > { %v430_v18 = vld [vmem:[#allocation5 + $0x148] sm:$0xff]  ;;  %v432_v19 = vld [vmem:[#allocation5 + $0x158] sm:$0xff]  ;;  %v435_v20 = vld [vmem:[#allocation5 + $0x170] sm:$0xff]  ;;  %919 = vmatprep.mubr.f32.mxu1 %v12195_v16  ;;  %597 = vmatprep.mubr.f32.mxu0 %v12195_v16  ;;  %v9513_v23 = vpack.c.bf16 %v428_v14, %v425_v11 }
  0xd0   : > { %v481_v21 = vld [vmem:[#allocation5 + $0x2e0] sm:$0xff]  ;;  %v484_v22 = vld [vmem:[#allocation5 + $0x2f8] sm:$0xff]  ;;  %v9609_v24 = vpack.c.bf16 %v430_v18, %v427_v15  ;;  %v9515_v25 = vpack.c.bf16 %v435_v20, %v432_v19  ;;  %v431_v26 = vld [vmem:[#allocation5 + $0x150] sm:$0xff] }
  0xd1   : > { %9506 = vmatpush1.bf16.msra.mxu0 %v9505_v62  ;;  %9602 = vmatpush3.bf16.msra.mxu1 %v9601_v63  ;;  %v434_v27 = vld [vmem:[#allocation5 + $0x168] sm:$0xff]  ;;  %v433_v28 = vld [vmem:[#allocation5 + $0x160] sm:$0xff]  ;;  %v9611_v29 = vpack.c.bf16 %v484_v22, %v481_v21  ;;  %v436_v30 = vld [vmem:[#allocation5 + $0x178] sm:$0xff] }
  0xd2   : > { %9508 = vmatprep.subr.bf16.mxu0 %v9507_v0  ;;  %9604 = vmatprep.subr.bf16.mxu1 %v9603_v4  ;;  %v438_v31 = vld [vmem:[#allocation5 + $0x188] sm:$0xff]  ;;  %v441_v32 = vld [vmem:[#allocation5 + $0x1a0] sm:$0xff]  ;;  %v487_v33 = vld [vmem:[#allocation5 + $0x310] sm:$0xff]  ;;  %v9517_v35 = vpack.c.bf16 %v434_v27, %v431_v26  ;;  %v9613_v36 = vpack.c.bf16 %v436_v30, %v433_v28 }
  0xd3   : > { %v490_v34 = vld [vmem:[#allocation5 + $0x328] sm:$0xff]  ;;  %v9519_v37 = vpack.c.bf16 %v441_v32, %v438_v31  ;;  %v437_v38 = vld [vmem:[#allocation5 + $0x180] sm:$0xff]  ;;  %v440_v39 = vld [vmem:[#allocation5 + $0x198] sm:$0xff] }
  0xd4   : > { %v9615_v40 = vpack.c.bf16 %v490_v34, %v487_v33  ;;  %v444_v41 = vld [vmem:[#allocation5 + $0x1b8] sm:$0xff]  ;;  %v447_v42 = vld [vmem:[#allocation5 + $0x1d0] sm:$0xff]  ;;  %v493_v43 = vld [vmem:[#allocation5 + $0x340] sm:$0xff]  ;;  %v9521_v45 = vpack.c.bf16 %v440_v39, %v437_v38 }
  0xd5   : > { %9510 = vmatpush1.bf16.msra.mxu0 %v9509_v10  ;;  %9606 = vmatpush3.bf16.msra.mxu1 %v9605_v12  ;;  %v496_v44 = vld [vmem:[#allocation5 + $0x358] sm:$0xff]  ;;  %v12200_v46 = vld [vmem:[%s12176_s11] sm:$0xff]  ;;  %v443_v47 = vld [vmem:[#allocation5 + $0x1b0] sm:$0xff]  ;;  %v9523_v50 = vpack.c.bf16 %v447_v42, %v444_v41 }
  0xd6   : > { %9512 = vmatprep.subr.bf16.mxu0 %v9511_v13  ;;  %9608 = vmatprep.subr.bf16.mxu1 %v9607_v17  ;;  %v446_v48 = vld [vmem:[#allocation5 + $0x1c8] sm:$0xff]  ;;  %v12203_v49 = vld [vmem:[%s12176_s11 + $0x20] sm:$0xff]  ;;  %v9619_v53 = vpack.c.bf16 %v496_v44, %v493_v43  ;;  %v499_v55 = vld [vmem:[#allocation5 + $0x370] sm:$0xff] }
  0xd7   : > { %v450_v51 = vld [vmem:[#allocation5 + $0x1e8] sm:$0xff]  ;;  %v453_v52 = vld [vmem:[#allocation5 + $0x200] sm:$0xff]  ;;  %v9525_v54 = vpack.c.bf16 %v446_v48, %v443_v47  ;;  %v12208_v57 = vld [vmem:[%s12176_s11 + $0x18] sm:$0xff] }
  0xd8   : > { %v502_v56 = vld [vmem:[#allocation5 + $0x388] sm:$0xff]  ;;  %v9527_v58 = vpack.c.bf16 %v453_v52, %v450_v51  ;;  %v449_v59 = vld [vmem:[#allocation5 + $0x1e0] sm:$0xff]  ;;  %v452_v60 = vld [vmem:[#allocation5 + $0x1f8] sm:$0xff] }
  0xd9   : > { %9514 = vmatpush1.bf16.msra.mxu0 %v9513_v23  ;;  %9610 = vmatpush3.bf16.msra.mxu1 %v9609_v24  ;;  %v12211_v61 = vld [vmem:[%s12176_s11 + $0x38] sm:$0xff]  ;;  %v459_v63 = vld [vmem:[#allocation5 + $0x230] sm:$0xff]  ;;  %v9623_v0 = vpack.c.bf16 %v502_v56, %v499_v55  ;;  %v9529_v1 = vpack.c.bf16 %v452_v60, %v449_v59  ;;  %v505_v2 = vld [vmem:[#allocation5 + $0x3a0] sm:$0xff] }
  0xda   : > { %9516 = vmatprep.subr.bf16.mxu0 %v9515_v25  ;;  %9612 = vmatprep.subr.bf16.mxu1 %v9611_v29  ;;  %v456_v62 = vld [vmem:[#allocation5 + $0x218] sm:$0xff]  ;;  %v12216_v4 = vld [vmem:[%s12176_s11 + $0x30] sm:$0xff]  ;;  %v458_v7 = vld [vmem:[#allocation5 + $0x228] sm:$0xff] }
  0xdb   : > { %v508_v3 = vld [vmem:[#allocation5 + $0x3b8] sm:$0xff]  ;;  %v9531_v5 = vpack.c.bf16 %v459_v63, %v456_v62  ;;  %v455_v6 = vld [vmem:[#allocation5 + $0x210] sm:$0xff]  ;;  %v462_v9 = vld [vmem:[#allocation5 + $0x248] sm:$0xff] }
  0xdc   : > { %v12219_v8 = vld [vmem:[%s12176_s11 + $0x50] sm:$0xff]  ;;  %v465_v10 = vld [vmem:[#allocation5 + $0x260] sm:$0xff]  ;;  %v9627_v11 = vpack.c.bf16 %v508_v3, %v505_v2  ;;  %v9533_v12 = vpack.c.bf16 %v458_v7, %v455_v6  ;;  %v514_v14 = vld [vmem:[#allocation5 + $0x3e8] sm:$0xff] }
  0xdd   : > { %9518 = vmatpush1.bf16.msra.mxu0 %v9517_v35  ;;  %9614 = vmatpush3.bf16.msra.mxu1 %v9613_v36  ;;  %v511_v13 = vld [vmem:[#allocation5 + $0x3d0] sm:$0xff]  ;;  %v12224_v15 = vld [vmem:[%s12176_s11 + $0x48] sm:$0xff]  ;;  %v9535_v17 = vpack.c.bf16 %v465_v10, %v462_v9  ;;  %v461_v18 = vld [vmem:[#allocation5 + $0x240] sm:$0xff] }
  0xde   : > { %9520 = vmatprep.subr.bf16.mxu0 %v9519_v37  ;;  %9616 = vmatprep.subr.bf16.mxu1 %v9615_v40  ;;  %v464_v19 = vld [vmem:[#allocation5 + $0x258] sm:$0xff]  ;;  %v12227_v20 = vld [vmem:[%s12176_s11 + $0x68] sm:$0xff]  ;;  %v471_v22 = vld [vmem:[#allocation5 + $0x290] sm:$0xff]  ;;  %v9631_v23 = vpack.c.bf16 %v514_v14, %v511_v13 }
  0xdf   : > { %v468_v21 = vld [vmem:[#allocation5 + $0x278] sm:$0xff]  ;;  %v9537_v24 = vpack.c.bf16 %v464_v19, %v461_v18  ;;  %v517_v25 = vld [vmem:[#allocation5 + $0x400] sm:$0xff]  ;;  %v467_v29 = vld [vmem:[#allocation5 + $0x270] sm:$0xff] }
  0xe0   : > { %920 = vmatmul.mubr.f32.vlgmr.msra.gmra.mrb[0].mxu1 %v12200_v46  ;;  %v520_v26 = vld [vmem:[#allocation5 + $0x418] sm:$0xff]  ;;  %v12232_v27 = vld [vmem:[%s12176_s11 + $0x60] sm:$0xff]  ;;  %v9539_v28 = vpack.c.bf16 %v471_v22, %v468_v21  ;;  %v470_v30 = vld [vmem:[#allocation5 + $0x288] sm:$0xff] }
  0xe1   : > { %9522 = vmatpush1.bf16.msra.mxu0 %v9521_v45  ;;  %9618 = vmatpush3.bf16.msra.mxu1 %v9615_v40  ;;  %v12235_v31 = vld [vmem:[%s12176_s11 + $0x80] sm:$0xff]  ;;  %v474_v32 = vld [vmem:[#allocation5 + $0x2a8] sm:$0xff]  ;;  %v9635_v34 = vpack.c.bf16 %v520_v26, %v517_v25  ;;  %v9541_v35 = vpack.c.bf16 %v470_v30, %v467_v29  ;;  %v523_v36 = vld [vmem:[#allocation5 + $0x430] sm:$0xff] }
  0xe2   : > { %924 = vmatprep.mubr.f32.mxu1 %v12203_v49  ;;  %9524 = vmatprep.subr.bf16.mxu0 %v9523_v50  ;;  %v477_v33 = vld [vmem:[#allocation5 + $0x2c0] sm:$0xff]  ;;  %v526_v37 = vld [vmem:[#allocation5 + $0x448] sm:$0xff]  ;;  %v12240_v38 = vld [vmem:[%s12176_s11 + $0x78] sm:$0xff] }
  0xe3   : > { %9620 = vmatprep.subr.bf16.mxu1 %v9619_v53  ;;  %v9543_v39 = vpack.c.bf16 %v477_v33, %v474_v32  ;;  %v473_v40 = vld [vmem:[#allocation5 + $0x2a0] sm:$0xff]  ;;  %v476_v41 = vld [vmem:[#allocation5 + $0x2b8] sm:$0xff]  ;;  %v483_v44 = vld [vmem:[#allocation5 + $0x2f0] sm:$0xff]  ;;  %v9639_v45 = vpack.c.bf16 %v526_v37, %v523_v36 }
  0xe4   : > { %925 = vmatmul.mubr.f32.gmra.mrb[2].mxu1 %v12208_v57  ;;  %v12243_v42 = vld [vmem:[%s12176_s11 + $0x98] sm:$0xff]  ;;  %v9545_v47 = vpack.c.bf16 %v476_v41, %v473_v40  ;;  %v529_v48 = vld [vmem:[#allocation5 + $0x460] sm:$0xff]  ;;  %v12248_v51 = vld [vmem:[%s12176_s11 + $0x90] sm:$0xff] }
  0xe5   : > { %9526 = vmatpush1.bf16.msra.mxu0 %v9525_v54  ;;  %929 = vmatprep.mubr.f32.mxu1 %v12211_v61  ;;  %v480_v43 = vld [vmem:[#allocation5 + $0x2d8] sm:$0xff]  ;;  %v482_v54 = vld [vmem:[#allocation5 + $0x2e8] sm:$0xff]  ;;  %v12251_v55 = vld [vmem:[%s12176_s11 + $0xb0] sm:$0xff] }
  0xe6   : > { %9528 = vmatprep.subr.bf16.mxu0 %v9527_v58  ;;  %9622 = vmatpush3.bf16.msra.mxu1 %v9619_v53  ;;  %v532_v50 = vld [vmem:[#allocation5 + $0x478] sm:$0xff]  ;;  %v9547_v52 = vpack.c.bf16 %v483_v44, %v480_v43  ;;  %v479_v53 = vld [vmem:[#allocation5 + $0x2d0] sm:$0xff]  ;;  %v486_v56 = vld [vmem:[#allocation5 + $0x308] sm:$0xff] }
  0xe7   : > { %9624 = vmatprep.subr.bf16.mxu1 %v9623_v0  ;;  %v489_v58 = vld [vmem:[#allocation5 + $0x320] sm:$0xff]  ;;  %v9643_v59 = vpack.c.bf16 %v532_v50, %v529_v48  ;;  %v9549_v60 = vpack.c.bf16 %v482_v54, %v479_v53  ;;  %v1146_v62 = vld [vmem:[#allocation7 + $0x8] sm:$0xff]  ;;  %v492_v7 = vld [vmem:[#allocation5 + $0x338] sm:$0xff] }
  0xe8   : > { %930 = vmatmul.mubr.f32.gmra.mrb[4].mxu1 %v12216_v4  ;;  %v1149_v63 = vld [vmem:[#allocation7 + $0x20] sm:$0xff]  ;;  %v12259_v2 = vld [vmem:[%s12176_s11 + $0xc8] sm:$0xff]  ;;  %v495_v9 = vld [vmem:[#allocation5 + $0x350] sm:$0xff] }
  0xe9   : > { %9530 = vmatpush1.bf16.msra.mxu0 %v9529_v1  ;;  %934 = vmatprep.mubr.f32.mxu1 %v12219_v8  ;;  %v9551_v1 = vpack.c.bf16 %v489_v58, %v486_v56  ;;  %v485_v3 = vld [vmem:[#allocation5 + $0x300] sm:$0xff]  ;;  %v9647_v6 = vpack.c.bf16 %v1149_v63, %v1146_v62  ;;  %v9555_v13 = vpack.c.bf16 %v495_v9, %v492_v7  ;;  %v491_v14 = vld [vmem:[#allocation5 + $0x330] sm:$0xff]  ;;  %v498_v18 = vld [vmem:[#allocation5 + $0x368] sm:$0xff] }
  0xea   : > { %9532 = vmatprep.subr.bf16.mxu0 %v9531_v5  ;;  %9626 = vmatpush3.bf16.msra.mxu1 %v9623_v0  ;;  %v12256_v0 = vld [vmem:[%s12176_s11 + $0xa8] sm:$0xff]  ;;  %v488_v5 = vld [vmem:[#allocation5 + $0x318] sm:$0xff]  ;;  %v12264_v10 = vld [vmem:[%s12176_s11 + $0xc0] sm:$0xff] }
  0xeb   : > { %9628 = vmatprep.subr.bf16.mxu1 %v9627_v11  ;;  %v501_v19 = vld [vmem:[#allocation5 + $0x380] sm:$0xff]  ;;  %v12274_v21 = vld [vmem:[%s12176_s11 + $0xd8] sm:$0xff]  ;;  %v507_v29 = vld [vmem:[#allocation5 + $0x3b0] sm:$0xff] }
  0xec   : > { %935 = vmatmul.mubr.f32.gmra.mrb[6].mxu1 %v12224_v15  ;;  %v497_v25 = vld [vmem:[#allocation5 + $0x360] sm:$0xff]  ;;  %v500_v26 = vld [vmem:[#allocation5 + $0x378] sm:$0xff]  ;;  %v12284_v30 = vld [vmem:[%s12176_s11 + $0xf0] sm:$0xff] }
  0xed   : > { %9534 = vmatpush1.bf16.msra.mxu0 %v9533_v12  ;;  %939 = vmatprep.mubr.f32.mxu1 %v12227_v20  ;;  %v12267_v12 = vld [vmem:[%s12176_s11 + $0xe0] sm:$0xff]  ;;  %v9561_v32 = vpack.c.bf16 %v500_v26, %v497_v25  ;;  %v12287_v33 = vld [vmem:[%s12176_s11 + $0x110] sm:$0xff]  ;;  %v506_v36 = vld [vmem:[#allocation5 + $0x3a8] sm:$0xff] }
  0xee   : > { %9536 = vmatprep.subr.bf16.mxu0 %v9535_v17  ;;  %9630 = vmatpush3.bf16.msra.mxu1 %v9627_v11  ;;  %v9553_v11 = vpack.c.bf16 %v488_v5, %v485_v3  ;;  %v494_v17 = vld [vmem:[#allocation5 + $0x348] sm:$0xff]  ;;  %v516_v48 = vld [vmem:[#allocation5 + $0x3f8] sm:$0xff]  ;;  %v519_v50 = vld [vmem:[#allocation5 + $0x410] sm:$0xff] }
  0xef   : > { %9632 = vmatprep.subr.bf16.mxu1 %v9631_v23  ;;  %v9557_v22 = vpack.c.bf16 %v494_v17, %v491_v14  ;;  %v510_v37 = vld [vmem:[#allocation5 + $0x3c8] sm:$0xff]  ;;  %v12307_v54 = vld [vmem:[%s12176_s11 + $0x140] sm:$0xff]  ;;  %v9571_v56 = vpack.c.bf16 %v519_v50, %v516_v48  ;;  %v515_v58 = vld [vmem:[#allocation5 + $0x3f0] sm:$0xff] }
  0xf0   : > { %940 = vmatmul.mubr.f32.gmra.mrb[8].mxu1 %v12232_v27  ;;  %v12294_v40 = vld [vmem:[%s12176_s11 + $0x108] sm:$0xff]  ;;  %16046 = vst [vmem:[#allocation20_spill] sm:$0xff] %v12307_v54  ;;  %v525_v62 = vld [vmem:[#allocation5 + $0x440] sm:$0xff]  ;;  %v12314_v63 = vld [vmem:[%s12176_s11 + $0x138] sm:$0xff] }
  0xf1   : > { %9538 = vmatpush1.bf16.msra.mxu0 %v9537_v24  ;;  %944 = vmatprep.mubr.f32.mxu1 %v12235_v31  ;;  %v9559_v24 = vpack.c.bf16 %v501_v19, %v498_v18  ;;  %v12297_v43 = vld [vmem:[%s12176_s11 + $0x128] sm:$0xff]  ;;  %16047 = vst [vmem:[#allocation21_spill] sm:$0xff] %v12314_v63  ;;  %v12317_v3 = vld [vmem:[%s12176_s11 + $0x158] sm:$0xff]  ;;  %v12327_v17 = vld [vmem:[%s12176_s11 + $0x170] sm:$0xff] }
  0xf2   : > { %9540 = vmatprep.subr.bf16.mxu0 %v9539_v28  ;;  %9634 = vmatpush3.bf16.msra.mxu1 %v9631_v23  ;;  %v12277_v23 = vld [vmem:[%s12176_s11 + $0xf8] sm:$0xff]  ;;  %16048 = vst [vmem:[#allocation22_spill] sm:$0xff] %v12317_v3  ;;  %16050 = vst [vmem:[#allocation24_spill] sm:$0xff] %v12327_v17  ;;  %v527_v19 = vld [vmem:[#allocation5 + $0x450] sm:$0xff] }
  0xf3   : > { %9636 = vmatprep.subr.bf16.mxu1 %v9635_v34  ;;  %v504_v28 = vld [vmem:[#allocation5 + $0x398] sm:$0xff]  ;;  %v1198_v25 = vld [vmem:[#allocation7 + $0x1a8] sm:$0xff]  ;;  %vm12990_vm1 = vmpackc.low %vm15923_vm0, %vm15923_vm0 }
  0xf4   : > { %945 = vmatmul.mubr.f32.gmra.mrb[10].mxu1 %v12240_v38  ;;  %v524_v7 = vld [vmem:[#allocation5 + $0x438] sm:$0xff]  ;;  %v12334_v26 = vld [vmem:[%s12176_s11 + $0x168] sm:$0xff] }
  0xf5   : > { %9542 = vmatpush1.bf16.msra.mxu0 %v9541_v35  ;;  %949 = vmatprep.mubr.f32.mxu1 %v12243_v42  ;;  %v503_v35 = vld [vmem:[#allocation5 + $0x390] sm:$0xff]  ;;  %v528_v9 = vld [vmem:[#allocation5 + $0x458] sm:$0xff]  ;;  %16051 = vst [vmem:[#allocation25_spill] sm:$0xff] %v12334_v26  ;;  %v1154_v48 = vld [vmem:[#allocation7 + $0x48] sm:$0xff] }
  0xf6   : > { %9544 = vmatprep.subr.bf16.mxu0 %v9543_v39  ;;  %9638 = vmatpush3.bf16.msra.mxu1 %v9635_v34  ;;  %v9563_v34 = vpack.c.bf16 %v507_v29, %v504_v28  ;;  %v513_v39 = vld [vmem:[#allocation5 + $0x3e0] sm:$0xff]  ;;  %v9565_v41 = vpack.c.bf16 %v506_v36, %v503_v35  ;;  %v12337_v29 = vld [vmem:[%s12176_s11 + $0x10] sm:$0xff]  ;;  %v1152_v36 = vld [vmem:[#allocation7 + $0x38] sm:$0xff] }
  0xf7   : > { %9640 = vmatprep.subr.bf16.mxu1 %v9639_v45  ;;  %v9567_v44 = vpack.c.bf16 %v513_v39, %v510_v37  ;;  %16052 = vst [vmem:[#allocation26_spill] sm:$0xff] %v12337_v29  ;;  %v1155_v37 = vld [vmem:[#allocation7 + $0x50] sm:$0xff]  ;;  %v12344_v39 = vld [vmem:[%s12176_s11 + $0x28] sm:$0xff] }
  0xf8   : > { %950 = vmatmul.mubr.f32.gmra.mrb[12].mxu1 %v12248_v51  ;;  %v1158_v50 = vld [vmem:[#allocation7 + $0x68] sm:$0xff] }
  0xf9   : > { %9546 = vmatpush1.bf16.msra.mxu0 %v9545_v47  ;;  %954 = vmatprep.mubr.f32.mxu1 %v12251_v55  ;;  %v512_v47 = vld [vmem:[#allocation5 + $0x3d8] sm:$0xff] }
  0xfa   : > { %9548 = vmatprep.subr.bf16.mxu0 %v9547_v52  ;;  %9642 = vmatpush3.bf16.msra.mxu1 %v9639_v45  ;;  %v509_v45 = vld [vmem:[#allocation5 + $0x3c0] sm:$0xff] }
  0xfb   : > { %9644 = vmatprep.subr.bf16.mxu1 %v9643_v59  ;;  %v12304_v52 = vld [vmem:[%s12176_s11 + $0x120] sm:$0xff]  ;;  %v9569_v53 = vpack.c.bf16 %v512_v47, %v509_v45  ;;  %v9651_v45 = vpack.c.bf16 %v1155_v37, %v1152_v36  ;;  %v1151_v47 = vld [vmem:[#allocation7 + $0x30] sm:$0xff]  ;;  %v1172_v36 = vld [vmem:[#allocation7 + $0xd8] sm:$0xff] }
  0xfc   : > { %955 = vmatmul.mubr.f32.gmra.mrb[14].mxu1 %v12256_v0  ;;  %16045 = vst [vmem:[#allocation19_spill] sm:$0xff] %v12304_v52  ;;  %v1176_v37 = vld [vmem:[#allocation7 + $0xf8] sm:$0xff] }
  0xfd   : > { %9550 = vmatpush1.bf16.msra.mxu0 %v9549_v60  ;;  %959 = vmatprep.mubr.f32.mxu1 %v12259_v2  ;;  %v522_v60 = vld [vmem:[#allocation5 + $0x428] sm:$0xff] }
  0xfe   : > { %9552 = vmatprep.subr.bf16.mxu0 %v9551_v1  ;;  %9646 = vmatpush3.bf16.msra.mxu1 %v9643_v59  ;;  %v518_v59 = vld [vmem:[#allocation5 + $0x408] sm:$0xff]  ;;  %v9575_v5 = vpack.c.bf16 %v525_v62, %v522_v60  ;;  %v1157_v62 = vld [vmem:[#allocation7 + $0x60] sm:$0xff] }
  0xff   : > { %9648 = vmatprep.subr.bf16.mxu1 %v9647_v6  ;;  %v9573_v1 = vpack.c.bf16 %v518_v59, %v515_v58  ;;  %v521_v6 = vld [vmem:[#allocation5 + $0x420] sm:$0xff]  ;;  %v9653_v58 = vpack.c.bf16 %v1154_v48, %v1151_v47  ;;  %v12357_v59 = vld [vmem:[%s12176_s11 + $0x70] sm:$0xff] }
 0x100   : > { %598 = vmatmul.mubr.f32.vlgmr.msra.gmra.mrb[0].mxu0 %v12200_v46  ;;  %960 = vmatmul.mubr.f32.gmra.mrb[16].mxu1 %v12264_v10  ;;  %v9577_v14 = vpack.c.bf16 %v524_v7, %v521_v6  ;;  %v1167_v6 = vld [vmem:[#allocation7 + $0xb0] sm:$0xff]  ;;  %v12364_v7 = vld [vmem:[%s12176_s11 + $0x88] sm:$0xff]  ;;  %v12387_v48 = vld [vmem:[%s12176_s11 + $0x100] sm:$0xff] }
 0x101   : > { %603 = vmatprep.mubr.f32.mxu0 %v12203_v49  ;;  %964 = vmatprep.mubr.f32.mxu1 %v12267_v12 }
 0x102   : > { %9554 = vmatpush1.bf16.msra.mxu0 %v9553_v11  ;;  %v531_v11 = vld [vmem:[#allocation5 + $0x470] sm:$0xff] }
 0x103   : > { %9556 = vmatprep.subr.bf16.mxu0 %v9555_v13  ;;  %v12324_v13 = vld [vmem:[%s12176_s11 + $0x150] sm:$0xff]  ;;  %v9579_v18 = vpack.c.bf16 %v531_v11, %v528_v9  ;;  %v12367_v11 = vld [vmem:[%s12176_s11 + $0xa0] sm:$0xff] }
 0x104   : > { %604 = vmatmul.mubr.f32.gmra.mrb[2].mxu0 %v12208_v57  ;;  %965 = vmatmul.mubr.f32.gmra.mrb[18].mxu1 %v12274_v21  ;;  %16049 = vst [vmem:[#allocation23_spill] sm:$0xff] %v12324_v13 }
 0x105   : > { %609 = vmatprep.mubr.f32.mxu0 %v12211_v61  ;;  %969 = vmatprep.mubr.f32.mxu1 %v12277_v23 }
 0x106   : > { %9558 = vmatpush1.bf16.msra.mxu0 %v9557_v22  ;;  %v530_v22 = vld [vmem:[#allocation5 + $0x468] sm:$0xff] }
 0x107   : > { %9560 = vmatprep.subr.bf16.mxu0 %v9559_v24  ;;  %v1195_v24 = vld [vmem:[#allocation7 + $0x190] sm:$0xff]  ;;  %v9581_v28 = vpack.c.bf16 %v530_v22, %v527_v19  ;;  %v1166_v19 = vld [vmem:[#allocation7 + $0xa8] sm:$0xff] }
 0x108   : > { %610 = vmatmul.mubr.f32.gmra.mrb[4].mxu0 %v12216_v4  ;;  %970 = vmatmul.mubr.f32.gmra.mrb[20].mxu1 %v12284_v30  ;;  %v9743_v35 = vpack.c.bf16 %v1198_v25, %v1195_v24  ;;  %v1170_v22 = vld [vmem:[#allocation7 + $0xc8] sm:$0xff]  ;;  %v1173_v24 = vld [vmem:[#allocation7 + $0xe0] sm:$0xff]  ;;  %v12374_v25 = vld [vmem:[%s12176_s11 + $0xb8] sm:$0xff] }
 0x109   : > { %615 = vmatprep.mubr.f32.mxu0 %v12219_v8  ;;  %974 = vmatprep.mubr.f32.mxu1 %v12287_v33 }
 0x10a   : > { %9562 = vmatpush1.bf16.msra.mxu0 %v9561_v32  ;;  %v1145_v32 = vld [vmem:[#allocation7] sm:$0xff] }
 0x10b   : > { %9564 = vmatprep.subr.bf16.mxu0 %v9563_v34  ;;  %v1148_v34 = vld [vmem:[#allocation7 + $0x18] sm:$0xff] }
 0x10c   : > { %616 = vmatmul.mubr.f32.gmra.mrb[6].mxu0 %v12224_v15  ;;  %975 = vmatmul.mubr.f32.gmra.mrb[22].mxu1 %v12294_v40 }
 0x10d   : > { %621 = vmatprep.mubr.f32.mxu0 %v12227_v20  ;;  %979 = vmatprep.mubr.f32.mxu1 %v12297_v43 }
 0x10e   : > { %9566 = vmatpush1.bf16.msra.mxu0 %v9565_v41  ;;  %v9649_v41 = vpack.c.bf16 %v1148_v34, %v1145_v32  ;;  %v12377_v32 = vld [vmem:[%s12176_s11 + $0xd0] sm:$0xff]  ;;  %v9663_v34 = vpack.c.bf16 %v1173_v24, %v1170_v22  ;;  %v12404_v24 = vld [vmem:[%s12176_s11 + $0x148] sm:$0xff] }
 0x10f   : > { %9568 = vmatprep.subr.bf16.mxu0 %v9567_v44  ;;  %v12347_v44 = vld [vmem:[%s12176_s11 + $0x40] sm:$0xff]  ;;  %v1191_v22 = vld [vmem:[#allocation7 + $0x170] sm:$0xff] }
 0x110   : > { %622 = vmatmul.mubr.f32.gmra.mrb[8].mxu0 %v12232_v27  ;;  %980 = vmatmul.mubr.f32.gmra.mrb[24].mxu1 %v12304_v52 }
 0x111   : > { %627 = vmatprep.mubr.f32.mxu0 %v12235_v31  ;;  %984 = vmatprep.mubr.f32.mxu1 %v12307_v54 }
 0x112   : > { %9570 = vmatpush1.bf16.msra.mxu0 %v9569_v53  ;;  %v1161_v53 = vld [vmem:[#allocation7 + $0x80] sm:$0xff] }
 0x113   : > { %9572 = vmatprep.subr.bf16.mxu0 %v9571_v56  ;;  %v12354_v56 = vld [vmem:[%s12176_s11 + $0x58] sm:$0xff]  ;;  %v9655_v60 = vpack.c.bf16 %v1161_v53, %v1158_v50  ;;  %v1175_v53 = vld [vmem:[#allocation7 + $0xf0] sm:$0xff] }
 0x114   : > { %628 = vmatmul.mubr.f32.gmra.mrb[10].mxu0 %v12240_v38  ;;  %985 = vmatmul.mubr.f32.gmra.mrb[26].mxu1 %v12314_v63 }
 0x115   : > { %633 = vmatprep.mubr.f32.mxu0 %v12243_v42  ;;  %989 = vmatprep.mubr.f32.mxu1 %v12317_v3 }
 0x116   : > { %9574 = vmatpush1.bf16.msra.mxu0 %v9573_v1  ;;  %v1160_v1 = vld [vmem:[#allocation7 + $0x78] sm:$0xff] }
 0x117   : > { %9576 = vmatprep.subr.bf16.mxu0 %v9575_v5  ;;  %v1164_v5 = vld [vmem:[#allocation7 + $0x98] sm:$0xff]  ;;  %v9657_v9 = vpack.c.bf16 %v1160_v1, %v1157_v62  ;;  %v1185_v62 = vld [vmem:[#allocation7 + $0x140] sm:$0xff] }
 0x118   : > { %634 = vmatmul.mubr.f32.gmra.mrb[12].mxu0 %v12248_v51  ;;  %990 = vmatmul.mubr.f32.gmra.mrb[28].mxu1 %v12324_v13  ;;  %v12394_v1 = vld [vmem:[%s12176_s11 + $0x118] sm:$0xff] }
 0x119   : > { %639 = vmatprep.mubr.f32.mxu0 %v12251_v55  ;;  %994 = vmatprep.mubr.f32.mxu1 %v12327_v17 }
 0x11a   : > { %9578 = vmatpush1.bf16.msra.mxu0 %v9577_v14  ;;  %v9659_v14 = vpack.c.bf16 %v1167_v6, %v1164_v5  ;;  %v12397_v6 = vld [vmem:[%s12176_s11 + $0x130] sm:$0xff] }
 0x11b   : > { %9580 = vmatprep.subr.bf16.mxu0 %v9579_v18  ;;  %v1163_v18 = vld [vmem:[#allocation7 + $0x90] sm:$0xff] }
 0x11c   : > { %640 = vmatmul.mubr.f32.gmra.mrb[14].mxu0 %v12256_v0  ;;  %995 = vmatmul.mubr.f32.gmra.mrb[30].mxu1 %v12334_v26 }
 0x11d   : > { %645 = vmatprep.mubr.f32.mxu0 %v12259_v2  ;;  %8623 = vmatprep.mubr.f32.mxu1 %v12337_v29 }
 0x11e   : > { %9582 = vmatpush1.bf16.msra.mxu0 %v9581_v28  ;;  %v9661_v28 = vpack.c.bf16 %v1166_v19, %v1163_v18  ;;  %v1184_v18 = vld [vmem:[#allocation7 + $0x138] sm:$0xff] }
 0x11f   : > { %9744 = vmatprep.subr.bf16.mxu0 %v9743_v35  ;;  %v1169_v35 = vld [vmem:[#allocation7 + $0xc0] sm:$0xff]  ;;  %v1188_v19 = vld [vmem:[#allocation7 + $0x158] sm:$0xff] }
 0x120   : > { %646 = vmatmul.mubr.f32.gmra.mrb[16].mxu0 %v12264_v10  ;;  %8624 = vmatmul.mubr.f32.vlgmr.msra.gmra.mrb[32].mxu1 %v12344_v39  ;;  %v9665_v47 = vpack.c.bf16 %v1172_v36, %v1169_v35  ;;  %v9675_v35 = vpack.c.bf16 %v1191_v22, %v1188_v19  ;;  %v1187_v36 = vld [vmem:[#allocation7 + $0x150] sm:$0xff]  ;;  %v1200_v19 = vld [vmem:[#allocation7 + $0x1b8] sm:$0xff] }
 0x121   : > { %651 = vmatprep.mubr.f32.mxu0 %v12267_v12  ;;  %9650 = vmatpush1.bf16.msra.mxu1 %v9649_v41  ;;  %v1179_v41 = vld [vmem:[#allocation7 + $0x110] sm:$0xff] }
 0x122   : > { %8626 = vmatprep.mubr.f32.mxu1 %v12347_v44  ;;  %9652 = vmatprep.subr.bf16.mxu1 %v9651_v45  ;;  %v12384_v45 = vld [vmem:[%s12176_s11 + $0xe8] sm:$0xff]  ;;  %v9667_v50 = vpack.c.bf16 %v1179_v41, %v1176_v37  ;;  %v1203_v22 = vld [vmem:[#allocation7 + $0x1d0] sm:$0xff] }
 0x123   : > { %v1190_v37 = vld [vmem:[#allocation7 + $0x168] sm:$0xff] }
 0x124   : > { %652 = vmatmul.mubr.f32.gmra.mrb[18].mxu0 %v12274_v21  ;;  %8627 = vmatmul.mubr.f32.gmra.mrb[34].mxu1 %v12354_v56  ;;  %v1194_v41 = vld [vmem:[#allocation7 + $0x188] sm:$0xff] }
 0x125   : > { %657 = vmatprep.mubr.f32.mxu0 %v12277_v23  ;;  %9654 = vmatpush1.bf16.msra.mxu1 %v9653_v58  ;;  %v1178_v58 = vld [vmem:[#allocation7 + $0x108] sm:$0xff] }
 0x126   : > { %8629 = vmatprep.mubr.f32.mxu1 %v12357_v59  ;;  %9656 = vmatprep.subr.bf16.mxu1 %v9655_v60  ;;  %v1182_v60 = vld [vmem:[#allocation7 + $0x128] sm:$0xff]  ;;  %v9669_v5 = vpack.c.bf16 %v1178_v58, %v1175_v53  ;;  %v9677_v53 = vpack.c.bf16 %v1190_v37, %v1187_v36  ;;  %v1193_v58 = vld [vmem:[#allocation7 + $0x180] sm:$0xff]  ;;  %v1199_v37 = vld [vmem:[#allocation7 + $0x1b0] sm:$0xff] }
 0x128   : > { %658 = vmatmul.mubr.f32.gmra.mrb[20].mxu0 %v12284_v30  ;;  %8630 = vmatmul.mubr.f32.gmra.mrb[36].mxu1 %v12364_v7 }
 0x129   : > { %663 = vmatprep.mubr.f32.mxu0 %v12287_v33  ;;  %9658 = vmatpush1.bf16.msra.mxu1 %v9657_v9  ;;  %v9671_v9 = vpack.c.bf16 %v1185_v62, %v1182_v60  ;;  %v1147_v60 = vld [vmem:[#allocation7 + $0x10] sm:$0xff]  ;;  %v1150_v62 = vld [vmem:[#allocation7 + $0x28] sm:$0xff] }
 0x12a   : > { %8632 = vmatprep.mubr.f32.mxu1 %v12367_v11  ;;  %9660 = vmatprep.subr.bf16.mxu1 %v9659_v14  ;;  %v1181_v14 = vld [vmem:[#allocation7 + $0x120] sm:$0xff] }
 0x12c   : > { %664 = vmatmul.mubr.f32.gmra.mrb[22].mxu0 %v12294_v40  ;;  %8633 = vmatmul.mubr.f32.gmra.mrb[38].mxu1 %v12374_v25 }
 0x12d   : > { %669 = vmatprep.mubr.f32.mxu0 %v12297_v43  ;;  %9662 = vmatpush1.bf16.msra.mxu1 %v9661_v28  ;;  %v9673_v28 = vpack.c.bf16 %v1184_v18, %v1181_v14  ;;  %v1201_v14 = vld [vmem:[#allocation7 + $0x1c0] sm:$0xff]  ;;  %v1204_v18 = vld [vmem:[#allocation7 + $0x1d8] sm:$0xff] }
 0x12e   : > { %8635 = vmatprep.mubr.f32.mxu1 %v12377_v32  ;;  %9664 = vmatprep.subr.bf16.mxu1 %v9663_v34  ;;  %v12407_v34 = vld [vmem:[%s12176_s11 + $0x160] sm:$0xff] }
 0x130   : > { %670 = vmatmul.mubr.f32.gmra.mrb[24].mxu0 %v12304_v52  ;;  %8636 = vmatmul.mubr.f32.gmra.mrb[40].mxu1 %v12384_v45  ;;  %v1209_v52 = vld [vmem:[#allocation7 + $0x200] sm:$0xff] }
 0x131   : > { %675 = vmatprep.mubr.f32.mxu0 %v12307_v54  ;;  %9666 = vmatpush1.bf16.msra.mxu1 %v9665_v47  ;;  %v1197_v47 = vld [vmem:[#allocation7 + $0x1a0] sm:$0xff]  ;;  %v1206_v54 = vld [vmem:[#allocation7 + $0x1e8] sm:$0xff] }
 0x132   : > { %8638 = vmatprep.mubr.f32.mxu1 %v12387_v48  ;;  %9668 = vmatprep.subr.bf16.mxu1 %v9667_v50  ;;  %v12413_v50 = vld [vmem:[%s12176_s11 + $0x178] sm:$0xff] }
 0x134   : > { %676 = vmatmul.mubr.f32.gmra.mrb[26].mxu0 %v12314_v63  ;;  %8639 = vmatmul.mubr.f32.gmra.mrb[42].mxu1 %v12394_v1  ;;  %v1210_v63 = vld [vmem:[#allocation7 + $0x208] sm:$0xff] }
 0x135   : > { %681 = vmatprep.mubr.f32.mxu0 %v12317_v3  ;;  %9670 = vmatpush1.bf16.msra.mxu1 %v9669_v5  ;;  %v9679_v5 = vpack.c.bf16 %v1197_v47, %v1194_v41  ;;  %v1153_v41 = vld [vmem:[#allocation7 + $0x40] sm:$0xff]  ;;  %v1156_v47 = vld [vmem:[#allocation7 + $0x58] sm:$0xff]  ;;  %v1202_v3 = vld [vmem:[#allocation7 + $0x1c8] sm:$0xff] }
 0x136   : > { %8641 = vmatprep.mubr.f32.mxu1 %v12397_v6  ;;  %9672 = vmatprep.subr.bf16.mxu1 %v9671_v9  ;;  %v1196_v9 = vld [vmem:[#allocation7 + $0x198] sm:$0xff] }
 0x137   : > { %v9681_v36 = vpack.c.bf16 %v1196_v9, %v1193_v58  ;;  %v9685_v58 = vpack.c.bf16 %v1202_v3, %v1199_v37  ;;  %v1162_v9 = vld [vmem:[#allocation7 + $0x88] sm:$0xff]  ;;  %v1168_v37 = vld [vmem:[#allocation7 + $0xb8] sm:$0xff] }
 0x138   : > { %682 = vmatmul.mubr.f32.gmra.mrb[28].mxu0 %v12324_v13  ;;  %8642 = vmatmul.mubr.f32.gmra.mrb[44].mxu1 %v12404_v24  ;;  %v9683_v13 = vpack.c.bf16 %v1203_v22, %v1200_v19  ;;  %v1216_v19 = vld [vmem:[#allocation7 + $0x238] sm:$0xff] }
 0x139   : > { %687 = vmatprep.mubr.f32.mxu0 %v12327_v17  ;;  %9674 = vmatpush1.bf16.msra.mxu1 %v9673_v28  ;;  %v15780_v17 = vmov 0.0   ;;  %v9745_v28 = vpack.c.bf16 %v1150_v62, %v1147_v60  ;;  %v1205_v60 = vld [vmem:[#allocation7 + $0x1e0] sm:$0xff]  ;;  %v1159_v62 = vld [vmem:[#allocation7 + $0x70] sm:$0xff]  ;;  %v1212_v22 = vld [vmem:[#allocation7 + $0x218] sm:$0xff] }
 0x13a   : > { %8644 = vmatprep.mubr.f32.mxu1 %v12407_v34  ;;  %9676 = vmatprep.subr.bf16.mxu1 %v9675_v35  ;;  %v9747_v35 = vpack.c.bf16 %v1204_v18, %v1201_v14  ;;  %v1208_v14 = vld [vmem:[#allocation7 + $0x1f8] sm:$0xff]  ;;  %v1213_v18 = vld [vmem:[#allocation7 + $0x220] sm:$0xff] }
 0x13b   : > { %v9689_v3 = vpack.c.bf16 %v1208_v14, %v1205_v60  ;;  %v1217_v60 = vld [vmem:[#allocation7 + $0x240] sm:$0xff] }
 0x13c   : > { %688 = vmatmul.mubr.f32.gmra.mrb[30].mxu0 %v12334_v26  ;;  %8645 = vmatmul.mubr.f32.gmra.mrb[46].mxu1 %v12413_v50  ;;  %v1207_v26 = vld [vmem:[#allocation7 + $0x1f0] sm:$0xff]  ;;  %v1225_v14 = vld [vmem:[#allocation7 + $0x280] sm:$0xff] }
 0x13d   : > { %758 = vmatprep.mubr.f32.mxu0 %v15780_v17  ;;  %9678 = vmatpush1.bf16.msra.mxu1 %v9677_v53  ;;  %v9749_v53 = vpack.c.bf16 %v1156_v47, %v1153_v41  ;;  %v1218_v41 = vld [vmem:[#allocation7 + $0x248] sm:$0xff]  ;;  %v1221_v47 = vld [vmem:[#allocation7 + $0x260] sm:$0xff] }
 0x13e   : > { %1353 = vmatprep.mubr.f32.mxu1 %v12195_v16  ;;  %9680 = vmatprep.subr.bf16.mxu1 %v9679_v5  ;;  %v9751_v16 = vpack.c.bf16 %v1210_v63, %v1207_v26  ;;  %v9687_v5 = vpack.c.bf16 %v1209_v52, %v1206_v54  ;;  %v9755_v63 = vpack.c.bf16 %v1216_v19, %v1213_v18  ;;  %v1165_v26 = vld [vmem:[#allocation7 + $0xa0] sm:$0xff]  ;;  %v1214_v54 = vld [vmem:[#allocation7 + $0x228] sm:$0xff]  ;;  %v1228_v18 = vld [vmem:[#allocation7 + $0x298] sm:$0xff] }
 0x13f   : > { %v1224_v19 = vld [vmem:[#allocation7 + $0x278] sm:$0xff] }
 0x140   : > { %759 = vmatmul.mubr.f32.vlgmr.msra.gmra.mrb[0].mxu0 %v12337_v29  ;;  %v1215_v29 = vld [vmem:[#allocation7 + $0x230] sm:$0xff] }
 0x141   : > { %764 = vmatprep.mubr.f32.mxu0 %v15780_v17  ;;  %9746 = vmatpush3.bf16.msra.mxu0 %v9745_v28  ;;  %v9753_v28 = vpack.c.bf16 %v1162_v9, %v1159_v62  ;;  %v9691_v52 = vpack.c.bf16 %v1215_v29, %v1212_v22  ;;  %v1171_v62 = vld [vmem:[#allocation7 + $0xd0] sm:$0xff]  ;;  %v1174_v9 = vld [vmem:[#allocation7 + $0xe8] sm:$0xff]  ;;  %v9695_v29 = vpack.c.bf16 %v1221_v47, %v1218_v41  ;;  %v1233_v47 = vld [vmem:[#allocation7 + $0x2c0] sm:$0xff] }
 0x142   : > { %9682 = vmatpush1.bf16.msra.mxu1 %v9681_v36  ;;  %9748 = vmatprep.subr.bf16.mxu0 %v9747_v35  ;;  %v1211_v36 = vld [vmem:[#allocation7 + $0x210] sm:$0xff]  ;;  %v1222_v35 = vld [vmem:[#allocation7 + $0x268] sm:$0xff] }
 0x143   : > { %9684 = vmatprep.subr.bf16.mxu1 %v9683_v13  ;;  %v1219_v13 = vld [vmem:[#allocation7 + $0x250] sm:$0xff]  ;;  %v1230_v41 = vld [vmem:[#allocation7 + $0x2a8] sm:$0xff] }
 0x144   : > { %765 = vmatmul.mubr.f32.gmra.mrb[2].mxu0 %v12344_v39  ;;  %v1227_v22 = vld [vmem:[#allocation7 + $0x290] sm:$0xff] }
 0x145   : > { %770 = vmatprep.mubr.f32.mxu0 %v15780_v17  ;;  %9750 = vmatpush3.bf16.msra.mxu0 %v9749_v53  ;;  %v9757_v53 = vpack.c.bf16 %v1168_v37, %v1165_v26  ;;  %v1177_v26 = vld [vmem:[#allocation7 + $0x100] sm:$0xff]  ;;  %v1180_v37 = vld [vmem:[#allocation7 + $0x118] sm:$0xff] }
 0x146   : > { %9686 = vmatpush1.bf16.msra.mxu1 %v9685_v58  ;;  %9752 = vmatprep.subr.bf16.mxu0 %v9751_v16  ;;  %v9693_v58 = vpack.c.bf16 %v1214_v54, %v1211_v36  ;;  %v9759_v16 = vpack.c.bf16 %v1222_v35, %v1219_v13  ;;  %v1223_v36 = vld [vmem:[#allocation7 + $0x270] sm:$0xff]  ;;  %v1226_v54 = vld [vmem:[#allocation7 + $0x288] sm:$0xff] }
 0x147   : > { %9688 = vmatprep.subr.bf16.mxu1 %v9687_v5  ;;  %v1220_v5 = vld [vmem:[#allocation7 + $0x258] sm:$0xff]  ;;  %v1231_v13 = vld [vmem:[#allocation7 + $0x2b0] sm:$0xff]  ;;  %v1234_v35 = vld [vmem:[#allocation7 + $0x2c8] sm:$0xff] }
 0x148   : > { %771 = vmatmul.mubr.f32.gmra.mrb[4].mxu0 %v12347_v44 }
 0x149   : > { %776 = vmatprep.mubr.f32.mxu0 %v15780_v17  ;;  %9754 = vmatpush3.bf16.msra.mxu0 %v9753_v28  ;;  %v9761_v28 = vpack.c.bf16 %v1174_v9, %v1171_v62  ;;  %v1183_v62 = vld [vmem:[#allocation7 + $0x130] sm:$0xff]  ;;  %v1186_v9 = vld [vmem:[#allocation7 + $0x148] sm:$0xff] }
 0x14a   : > { %9690 = vmatpush1.bf16.msra.mxu1 %v9689_v3  ;;  %9756 = vmatprep.subr.bf16.mxu0 %v9755_v63  ;;  %v9697_v3 = vpack.c.bf16 %v1220_v5, %v1217_v60  ;;  %v9763_v63 = vpack.c.bf16 %v1228_v18, %v1225_v14  ;;  %v1229_v60 = vld [vmem:[#allocation7 + $0x2a0] sm:$0xff]  ;;  %v1232_v5 = vld [vmem:[#allocation7 + $0x2b8] sm:$0xff] }
 0x14b   : > { %9692 = vmatprep.subr.bf16.mxu1 %v9691_v52  ;;  %v9699_v52 = vpack.c.bf16 %v1227_v22, %v1224_v19  ;;  %v1237_v14 = vld [vmem:[#allocation7 + $0x2e0] sm:$0xff]  ;;  %v1240_v18 = vld [vmem:[#allocation7 + $0x2f8] sm:$0xff]  ;;  %v1239_v22 = vld [vmem:[#allocation7 + $0x2f0] sm:$0xff] }
 0x14c   : > { %777 = vmatmul.mubr.f32.gmra.mrb[6].mxu0 %v12354_v56  ;;  %v1236_v19 = vld [vmem:[#allocation7 + $0x2d8] sm:$0xff] }
 0x14d   : > { %782 = vmatprep.mubr.f32.mxu0 %v15780_v17  ;;  %9758 = vmatpush3.bf16.msra.mxu0 %v9757_v53  ;;  %v9765_v53 = vpack.c.bf16 %v1180_v37, %v1177_v26  ;;  %v1189_v26 = vld [vmem:[#allocation7 + $0x160] sm:$0xff]  ;;  %v1192_v37 = vld [vmem:[#allocation7 + $0x178] sm:$0xff] }
 0x14e   : > { %9694 = vmatpush1.bf16.msra.mxu1 %v9693_v58  ;;  %9760 = vmatprep.subr.bf16.mxu0 %v9759_v16  ;;  %v9701_v58 = vpack.c.bf16 %v1226_v54, %v1223_v36  ;;  %v9767_v16 = vpack.c.bf16 %v1234_v35, %v1231_v13  ;;  %v1235_v36 = vld [vmem:[#allocation7 + $0x2d0] sm:$0xff]  ;;  %v1238_v54 = vld [vmem:[#allocation7 + $0x2e8] sm:$0xff] }
 0x14f   : > { %9696 = vmatprep.subr.bf16.mxu1 %v9695_v29  ;;  %v9703_v29 = vpack.c.bf16 %v1233_v47, %v1230_v41  ;;  %v1243_v13 = vld [vmem:[#allocation7 + $0x310] sm:$0xff]  ;;  %v1246_v35 = vld [vmem:[#allocation7 + $0x328] sm:$0xff]  ;;  %v1245_v47 = vld [vmem:[#allocation7 + $0x320] sm:$0xff] }
 0x150   : > { %783 = vmatmul.mubr.f32.gmra.mrb[8].mxu0 %v12357_v59  ;;  %v1242_v41 = vld [vmem:[#allocation7 + $0x308] sm:$0xff] }
 0x151   : > { %788 = vmatprep.mubr.f32.mxu0 %v15780_v17  ;;  %9762 = vmatpush3.bf16.msra.mxu0 %v9761_v28  ;;  %v9769_v28 = vpack.c.bf16 %v1186_v9, %v1183_v62  ;;  %v1241_v62 = vld [vmem:[#allocation7 + $0x300] sm:$0xff]  ;;  %v1244_v9 = vld [vmem:[#allocation7 + $0x318] sm:$0xff] }
 0x152   : > { %9698 = vmatpush1.bf16.msra.mxu1 %v9697_v3  ;;  %9764 = vmatprep.subr.bf16.mxu0 %v9763_v63  ;;  %v9705_v3 = vpack.c.bf16 %v1232_v5, %v1229_v60  ;;  %v9771_v63 = vpack.c.bf16 %v1240_v18, %v1237_v14  ;;  %v12434_v60 = vpack.c.bf16 %v1246_v35, %v1243_v13  ;;  %v1251_v5 = vld [vmem:[#allocation7 + $0x350] sm:$0xff]  ;;  %v1262_v35 = vld [vmem:[#allocation7 + $0x3a8] sm:$0xff] }
 0x153   : > { %9700 = vmatprep.subr.bf16.mxu1 %v9699_v52  ;;  %v9707_v52 = vpack.c.bf16 %v1239_v22, %v1236_v19  ;;  %v9713_v14 = vpack.c.bf16 %v1244_v9, %v1241_v62  ;;  %v1247_v19 = vld [vmem:[#allocation7 + $0x330] sm:$0xff]  ;;  %v1250_v22 = vld [vmem:[#allocation7 + $0x348] sm:$0xff] }
 0x154   : > { %789 = vmatmul.mubr.f32.gmra.mrb[10].mxu0 %v12364_v7  ;;  %v1274_v62 = vld [vmem:[#allocation7 + $0x408] sm:$0xff] }
 0x155   : > { %794 = vmatprep.mubr.f32.mxu0 %v15780_v17  ;;  %9766 = vmatpush3.bf16.msra.mxu0 %v9765_v53  ;;  %v9773_v53 = vpack.c.bf16 %v1192_v37, %v1189_v26  ;;  %v1253_v26 = vld [vmem:[#allocation7 + $0x360] sm:$0xff]  ;;  %v1256_v37 = vld [vmem:[#allocation7 + $0x378] sm:$0xff]  ;;  %v1278_v9 = vld [vmem:[#allocation7 + $0x428] sm:$0xff] }
 0x156   : > { %9702 = vmatpush1.bf16.msra.mxu1 %v9701_v58  ;;  %9768 = vmatprep.subr.bf16.mxu0 %v9767_v16  ;;  %v9709_v58 = vpack.c.bf16 %v1238_v54, %v1235_v36  ;;  %v9711_v16 = vpack.c.bf16 %v1245_v47, %v1242_v41  ;;  %v9717_v36 = vpack.c.bf16 %v1250_v22, %v1247_v19  ;;  %v1263_v54 = vld [vmem:[#allocation7 + $0x3b0] sm:$0xff]  ;;  %v1266_v41 = vld [vmem:[#allocation7 + $0x3c8] sm:$0xff]  ;;  %v1269_v47 = vld [vmem:[#allocation7 + $0x3e0] sm:$0xff] }
 0x157   : > { %9704 = vmatprep.subr.bf16.mxu1 %v9703_v29  ;;  %v1248_v29 = vld [vmem:[#allocation7 + $0x338] sm:$0xff]  ;;  %v1286_v19 = vld [vmem:[#allocation7 + $0x468] sm:$0xff] }
 0x158   : > { %795 = vmatmul.mubr.f32.gmra.mrb[12].mxu0 %v12367_v11  ;;  %v9715_v18 = vpack.c.bf16 %v1251_v5, %v1248_v29  ;;  %v1281_v29 = vld [vmem:[#allocation7 + $0x440] sm:$0xff]  ;;  %v1280_v5 = vld [vmem:[#allocation7 + $0x438] sm:$0xff]  ;;  %v1902_v22 = vld [vmem:[#allocation8 + $0x8] sm:$0xff] }
 0x159   : > { %800 = vmatprep.mubr.f32.mxu0 %v15780_v17  ;;  %9770 = vmatpush3.bf16.msra.mxu0 %v9769_v28  ;;  %v1254_v28 = vld [vmem:[#allocation7 + $0x368] sm:$0xff] }
 0x15a   : > { %9706 = vmatpush1.bf16.msra.mxu1 %v9705_v3  ;;  %9772 = vmatprep.subr.bf16.mxu0 %v9771_v63  ;;  %v1257_v3 = vld [vmem:[#allocation7 + $0x380] sm:$0xff] }
 0x15b   : > { %9708 = vmatprep.subr.bf16.mxu1 %v9707_v52  ;;  %v9719_v63 = vpack.c.bf16 %v1257_v3, %v1254_v28  ;;  %v1260_v52 = vld [vmem:[#allocation7 + $0x398] sm:$0xff]  ;;  %v1905_v28 = vld [vmem:[#allocation8 + $0x20] sm:$0xff] }
 0x15c   : > { %801 = vmatmul.mubr.f32.gmra.mrb[14].mxu0 %v12374_v25  ;;  %v9723_v13 = vpack.c.bf16 %v1263_v54, %v1260_v52  ;;  %v1252_v3 = vld [vmem:[#allocation7 + $0x358] sm:$0xff]  ;;  %v1267_v52 = vld [vmem:[#allocation7 + $0x3d0] sm:$0xff]  ;;  %v1270_v54 = vld [vmem:[#allocation7 + $0x3e8] sm:$0xff] }
 0x15d   : > { %806 = vmatprep.mubr.f32.mxu0 %v15780_v17  ;;  %9774 = vmatpush3.bf16.msra.mxu0 %v9773_v53  ;;  %v1268_v53 = vld [vmem:[#allocation7 + $0x3d8] sm:$0xff] }
 0x15e   : > { %9710 = vmatpush1.bf16.msra.mxu1 %v9709_v58  ;;  %9776 = vmatprep.subr.bf16.mxu0 %v12434_v60  ;;  %v1272_v58 = vld [vmem:[#allocation7 + $0x3f8] sm:$0xff] }
 0x15f   : > { %9712 = vmatprep.subr.bf16.mxu1 %v9711_v16  ;;  %v1275_v16 = vld [vmem:[#allocation7 + $0x410] sm:$0xff] }
 0x160   : > { %807 = vmatmul.mubr.f32.gmra.mrb[16].mxu0 %v12377_v32 }
 0x161   : > { %1354 = vmatmul.mubr.f32.vlgmr.msra.gmra.mrb[48].mxu1 %v12200_v46  ;;  %812 = vmatprep.mubr.f32.mxu0 %v15780_v17  ;;  %v9721_v46 = vpack.c.bf16 %v1256_v37, %v1253_v26  ;;  %v1261_v26 = vld [vmem:[#allocation7 + $0x3a0] sm:$0xff]  ;;  %v1264_v37 = vld [vmem:[#allocation7 + $0x3b8] sm:$0xff] }
 0x162   : > { %9714 = vmatpush1.bf16.msra.mxu1 %v9713_v14  ;;  %1359 = vmatprep.mubr.f32.mxu1 %v12203_v49  ;;  %v1259_v49 = vld [vmem:[#allocation7 + $0x390] sm:$0xff]  ;;  %v1284_v14 = vld [vmem:[#allocation7 + $0x458] sm:$0xff] }
 0x163   : > { %9716 = vmatprep.subr.bf16.mxu1 %v9715_v18  ;;  %v1287_v18 = vld [vmem:[#allocation7 + $0x470] sm:$0xff] }
 0x164   : > { %813 = vmatmul.mubr.f32.gmra.mrb[18].mxu0 %v12384_v45  ;;  %v1265_v45 = vld [vmem:[#allocation7 + $0x3c0] sm:$0xff] }
 0x165   : > { %1360 = vmatmul.mubr.f32.gmra.mrb[50].mxu1 %v12208_v57  ;;  %818 = vmatprep.mubr.f32.mxu0 %v15780_v17  ;;  %v9725_v57 = vpack.c.bf16 %v1262_v35, %v1259_v49  ;;  %v1276_v49 = vld [vmem:[#allocation7 + $0x418] sm:$0xff]  ;;  %v12516_v35 = vld [vmem:[%s12176_s11 + $0x60] sm:$0xff] }
 0x166   : > { %1365 = vmatprep.mubr.f32.mxu1 %v12211_v61  ;;  %9718 = vmatpush1.bf16.msra.mxu1 %v9717_v36  ;;  %v9727_v61 = vpack.c.bf16 %v1269_v47, %v1266_v41  ;;  %v1258_v36 = vld [vmem:[#allocation7 + $0x388] sm:$0xff]  ;;  %v1279_v41 = vld [vmem:[#allocation7 + $0x430] sm:$0xff] }
 0x167   : > { %9720 = vmatprep.subr.bf16.mxu1 %v9719_v63  ;;  %v12486_v63 = vld [vmem:[%s12176_s11 + $0x18] sm:$0xff]  ;;  %v1282_v47 = vld [vmem:[#allocation7 + $0x448] sm:$0xff] }
 0x168   : > { %819 = vmatmul.mubr.f32.gmra.mrb[20].mxu0 %v12387_v48  ;;  %v1271_v48 = vld [vmem:[#allocation7 + $0x3f0] sm:$0xff] }
 0x169   : > { %1366 = vmatmul.mubr.f32.gmra.mrb[52].mxu1 %v12216_v4  ;;  %824 = vmatprep.mubr.f32.mxu0 %v15780_v17  ;;  %v9729_v4 = vpack.c.bf16 %v1268_v53, %v1265_v45  ;;  %v12526_v45 = vld [vmem:[%s12176_s11 + $0x78] sm:$0xff]  ;;  %v1285_v53 = vld [vmem:[#allocation7 + $0x460] sm:$0xff] }
 0x16a   : > { %1371 = vmatprep.mubr.f32.mxu1 %v12219_v8  ;;  %9722 = vmatpush1.bf16.msra.mxu1 %v9721_v46  ;;  %v9731_v8 = vpack.c.bf16 %v1275_v16, %v1272_v58  ;;  %v12506_v46 = vld [vmem:[%s12176_s11 + $0x48] sm:$0xff]  ;;  %v1288_v58 = vld [vmem:[#allocation7 + $0x478] sm:$0xff] }
 0x16b   : > { %9724 = vmatprep.subr.bf16.mxu1 %v9723_v13  ;;  %v1273_v13 = vld [vmem:[#allocation7 + $0x400] sm:$0xff]  ;;  %v16055_v16 = vld [vmem:[#allocation21_spill] sm:$0xff] }
 0x16c   : > { %825 = vmatmul.mubr.f32.gmra.mrb[22].mxu0 %v12394_v1  ;;  %v1277_v1 = vld [vmem:[#allocation7 + $0x420] sm:$0xff] }
 0x16d   : > { %1372 = vmatmul.mubr.f32.gmra.mrb[54].mxu1 %v12224_v15  ;;  %830 = vmatprep.mubr.f32.mxu0 %v15780_v17  ;;  %v9733_v15 = vpack.c.bf16 %v1274_v62, %v1271_v48  ;;  %v9803_v48 = vpack.c.bf16 %v1288_v58, %v1285_v53  ;;  %v12536_v62 = vld [vmem:[%s12176_s11 + $0x90] sm:$0xff]  ;;  %v1929_v53 = vld [vmem:[#allocation8 + $0xe0] sm:$0xff] }
 0x16e   : > { %1377 = vmatprep.mubr.f32.mxu1 %v12227_v20  ;;  %9726 = vmatpush1.bf16.msra.mxu1 %v9725_v57  ;;  %v9735_v20 = vpack.c.bf16 %v1281_v29, %v1278_v9  ;;  %v16053_v57 = vld [vmem:[#allocation19_spill] sm:$0xff]  ;;  %v1951_v9 = vld [vmem:[#allocation8 + $0x190] sm:$0xff] }
 0x16f   : > { %9728 = vmatprep.subr.bf16.mxu1 %v9727_v61  ;;  %v16054_v61 = vld [vmem:[#allocation20_spill] sm:$0xff] }
 0x170   : > { %831 = vmatmul.mubr.f32.gmra.mrb[24].mxu0 %v12397_v6  ;;  %v1283_v6 = vld [vmem:[#allocation7 + $0x450] sm:$0xff]  ;;  %v1954_v29 = vld [vmem:[#allocation8 + $0x1a8] sm:$0xff] }
 0x171   : > { %1378 = vmatmul.mubr.f32.gmra.mrb[56].mxu1 %v12232_v27  ;;  %836 = vmatprep.mubr.f32.mxu0 %v15780_v17  ;;  %v9737_v27 = vpack.c.bf16 %v1280_v5, %v1277_v1  ;;  %v16058_v1 = vld [vmem:[#allocation24_spill] sm:$0xff]  ;;  %v9903_v5 = vpack.c.bf16 %v1954_v29, %v1951_v9  ;;  %v1932_v29 = vld [vmem:[#allocation8 + $0xf8] sm:$0xff] }
 0x172   : > { %1383 = vmatprep.mubr.f32.mxu1 %v12235_v31  ;;  %9730 = vmatpush1.bf16.msra.mxu1 %v9729_v4  ;;  %v9739_v31 = vpack.c.bf16 %v1287_v18, %v1284_v14  ;;  %v12531_v4 = vld [vmem:[%s12176_s11 + $0x98] sm:$0xff]  ;;  %v1901_v14 = vld [vmem:[#allocation8] sm:$0xff]  ;;  %v12586_v9 = vld [vmem:[%s12176_s11 + $0x108] sm:$0xff] }
 0x173   : > { %9732 = vmatprep.subr.bf16.mxu1 %v9731_v8  ;;  %v16056_v8 = vld [vmem:[#allocation22_spill] sm:$0xff] }
 0x174   : > { %837 = vmatmul.mubr.f32.gmra.mrb[26].mxu0 %v12404_v24  ;;  %v1249_v24 = vld [vmem:[#allocation7 + $0x340] sm:$0xff]  ;;  %v1904_v18 = vld [vmem:[#allocation8 + $0x18] sm:$0xff] }
 0x175   : > { %1384 = vmatmul.mubr.f32.gmra.mrb[58].mxu1 %v12240_v38  ;;  %842 = vmatprep.mubr.f32.mxu0 %v15780_v17  ;;  %v9741_v38 = vpack.c.bf16 %v1286_v19, %v1283_v6  ;;  %v1911_v6 = vld [vmem:[#allocation8 + $0x50] sm:$0xff] }
 0x176   : > { %1389 = vmatprep.mubr.f32.mxu1 %v12243_v42  ;;  %9734 = vmatpush1.bf16.msra.mxu1 %v9733_v15  ;;  %v9807_v42 = vpack.c.bf16 %v1905_v28, %v1902_v22  ;;  %v16057_v15 = vld [vmem:[#allocation23_spill] sm:$0xff]  ;;  %v16059_v19 = vld [vmem:[#allocation25_spill] sm:$0xff]  ;;  %v9809_v28 = vpack.c.bf16 %v1904_v18, %v1901_v14 }
 0x177   : > { %9736 = vmatprep.subr.bf16.mxu1 %v9735_v20  ;;  %v12541_v20 = vld [vmem:[%s12176_s11 + $0xb0] sm:$0xff]  ;;  %v12551_v22 = vld [vmem:[%s12176_s11 + $0xc8] sm:$0xff] }
 0x178   : > { %843 = vmatmul.mubr.f32.gmra.mrb[28].mxu0 %v12407_v34  ;;  %v12470_v34 = vld [vmem:[%s12176_s11 + $0x8] sm:$0xff]  ;;  %v1931_v14 = vld [vmem:[#allocation8 + $0xf0] sm:$0xff] }
 0x179   : > { %1390 = vmatmul.mubr.f32.gmra.mrb[60].mxu1 %v12248_v51  ;;  %848 = vmatprep.mubr.f32.mxu0 %v15780_v17  ;;  %v9779_v51 = vpack.c.bf16 %v1252_v3, %v1249_v24  ;;  %v1910_v24 = vld [vmem:[#allocation8 + $0x48] sm:$0xff]  ;;  %v12556_v3 = vld [vmem:[%s12176_s11 + $0xc0] sm:$0xff] }
 0x17a   : > { %1395 = vmatprep.mubr.f32.mxu1 %v12251_v55  ;;  %9738 = vmatpush1.bf16.msra.mxu1 %v9737_v27  ;;  %v12475_v55 = vld [vmem:[%s12176_s11] sm:$0xff]  ;;  %v12546_v27 = vld [vmem:[%s12176_s11 + $0xa8] sm:$0xff] }
 0x17b   : > { %9740 = vmatprep.subr.bf16.mxu1 %v9739_v31  ;;  %v1908_v31 = vld [vmem:[#allocation8 + $0x38] sm:$0xff]  ;;  %v1934_v18 = vld [vmem:[#allocation8 + $0x108] sm:$0xff] }
 0x17c   : > { %849 = vmatmul.mubr.f32.gmra.mrb[30].mxu0 %v12413_v50  ;;  %v1255_v50 = vld [vmem:[#allocation7 + $0x370] sm:$0xff] }
 0x17d   : > { %1396 = vmatmul.mubr.f32.gmra.mrb[62].mxu1 %v12256_v0  ;;  %1675 = vmatprep.mubr.f32.mxu0 %v12470_v34  ;;  %v12480_v0 = vld [vmem:[%s12176_s11 + $0x20] sm:$0xff] }
 0x17e   : > { %1401 = vmatprep.mubr.f32.mxu1 %v12259_v2  ;;  %9742 = vmatpush1.bf16.msra.mxu1 %v9741_v38  ;;  %v9783_v2 = vpack.c.bf16 %v1258_v36, %v1255_v50  ;;  %v9811_v38 = vpack.c.bf16 %v1911_v6, %v1908_v31  ;;  %v1917_v50 = vld [vmem:[#allocation8 + $0x80] sm:$0xff]  ;;  %v1938_v6 = vld [vmem:[#allocation8 + $0x128] sm:$0xff] }
 0x17f   : > { %9808 = vmatprep.subr.bf16.mxu1 %v9807_v42  ;;  %v1907_v42 = vld [vmem:[#allocation8 + $0x30] sm:$0xff]  ;;  %v16060_v36 = vld [vmem:[#allocation26_spill] sm:$0xff] }
 0x180   : > { %1676 = vmatmul.mubr.f32.vlgmr.msra.gmra.mrb[32].mxu0 %v12475_v55  ;;  %v12596_v31 = vld [vmem:[%s12176_s11 + $0x120] sm:$0xff] }
 0x181   : > { %1402 = vmatmul.mubr.f32.gmra.mrb[64].mxu1 %v12264_v10  ;;  %1680 = vmatprep.mubr.f32.mxu0 %v12480_v0  ;;  %v12491_v10 = vld [vmem:[%s12176_s11 + $0x38] sm:$0xff] }
 0x182   : > { %1407 = vmatprep.mubr.f32.mxu1 %v12267_v12  ;;  %9778 = vmatpush3.bf16.msra.mxu0 %v12434_v60  ;;  %v9787_v12 = vpack.c.bf16 %v1264_v37, %v1261_v26  ;;  %v12496_v60 = vld [vmem:[%s12176_s11 + $0x30] sm:$0xff]  ;;  %v9813_v26 = vpack.c.bf16 %v1910_v24, %v1907_v42  ;;  %v1937_v42 = vld [vmem:[#allocation8 + $0x120] sm:$0xff]  ;;  %v1940_v24 = vld [vmem:[#allocation8 + $0x138] sm:$0xff] }
 0x183   : > { %9780 = vmatprep.subr.bf16.mxu0 %v9779_v51 }
 0x184   : > { %1681 = vmatmul.mubr.f32.gmra.mrb[34].mxu0 %v12486_v63 }
 0x185   : > { %1408 = vmatmul.mubr.f32.gmra.mrb[66].mxu1 %v12274_v21  ;;  %1685 = vmatprep.mubr.f32.mxu0 %v12491_v10  ;;  %v12501_v21 = vld [vmem:[%s12176_s11 + $0x50] sm:$0xff] }
 0x186   : > { %1413 = vmatprep.mubr.f32.mxu1 %v12277_v23  ;;  %9782 = vmatpush3.bf16.msra.mxu0 %v9779_v51  ;;  %v9791_v23 = vpack.c.bf16 %v1270_v54, %v1267_v52  ;;  %v1914_v51 = vld [vmem:[#allocation8 + $0x68] sm:$0xff]  ;;  %v1916_v52 = vld [vmem:[#allocation8 + $0x78] sm:$0xff] }
 0x187   : > { %9784 = vmatprep.subr.bf16.mxu0 %v9783_v2  ;;  %v9815_v37 = vpack.c.bf16 %v1917_v50, %v1914_v51  ;;  %v12566_v54 = vld [vmem:[%s12176_s11 + $0xd8] sm:$0xff] }
 0x188   : > { %1686 = vmatmul.mubr.f32.gmra.mrb[36].mxu0 %v12496_v60  ;;  %v12606_v50 = vld [vmem:[%s12176_s11 + $0x138] sm:$0xff] }
 0x189   : > { %1414 = vmatmul.mubr.f32.gmra.mrb[68].mxu1 %v12284_v30  ;;  %1690 = vmatprep.mubr.f32.mxu0 %v12501_v21  ;;  %v12511_v30 = vld [vmem:[%s12176_s11 + $0x68] sm:$0xff] }
 0x18a   : > { %1419 = vmatprep.mubr.f32.mxu1 %v12287_v33  ;;  %9786 = vmatpush3.bf16.msra.mxu0 %v9783_v2  ;;  %v9795_v33 = vpack.c.bf16 %v1276_v49, %v1273_v13  ;;  %v12561_v2 = vld [vmem:[%s12176_s11 + $0xe0] sm:$0xff]  ;;  %v1923_v13 = vld [vmem:[#allocation8 + $0xb0] sm:$0xff]  ;;  %v12571_v49 = vld [vmem:[%s12176_s11 + $0xf8] sm:$0xff] }
 0x18b   : > { %9788 = vmatprep.subr.bf16.mxu0 %v9787_v12 }
 0x18c   : > { %1691 = vmatmul.mubr.f32.gmra.mrb[38].mxu0 %v12506_v46 }
 0x18d   : > { %1420 = vmatmul.mubr.f32.gmra.mrb[70].mxu1 %v12294_v40  ;;  %1695 = vmatprep.mubr.f32.mxu0 %v12511_v30  ;;  %v12521_v40 = vld [vmem:[%s12176_s11 + $0x80] sm:$0xff] }
 0x18e   : > { %1425 = vmatprep.mubr.f32.mxu1 %v12297_v43  ;;  %9790 = vmatpush3.bf16.msra.mxu0 %v9787_v12  ;;  %v9799_v43 = vpack.c.bf16 %v1282_v47, %v1279_v41  ;;  %v1913_v12 = vld [vmem:[#allocation8 + $0x60] sm:$0xff]  ;;  %v1919_v47 = vld [vmem:[#allocation8 + $0x90] sm:$0xff] }
 0x18f   : > { %9792 = vmatprep.subr.bf16.mxu0 %v9791_v23 }
 0x190   : > { %1696 = vmatmul.mubr.f32.gmra.mrb[40].mxu0 %v12516_v35 }
 0x191   : > { %1426 = vmatmul.mubr.f32.gmra.mrb[72].mxu1 %v16053_v57  ;;  %1700 = vmatprep.mubr.f32.mxu0 %v12521_v40  ;;  %v1922_v57 = vld [vmem:[#allocation8 + $0xa8] sm:$0xff] }
 0x192   : > { %1431 = vmatprep.mubr.f32.mxu1 %v16054_v61  ;;  %9794 = vmatpush3.bf16.msra.mxu0 %v9791_v23  ;;  %v1920_v23 = vld [vmem:[#allocation8 + $0x98] sm:$0xff]  ;;  %v12576_v61 = vld [vmem:[%s12176_s11 + $0xf0] sm:$0xff]  ;;  %v9821_v58 = vpack.c.bf16 %v1922_v57, %v1919_v47  ;;  %v1953_v57 = vld [vmem:[#allocation8 + $0x1a0] sm:$0xff] }
 0x193   : > { %9796 = vmatprep.subr.bf16.mxu0 %v9795_v33  ;;  %v9819_v41 = vpack.c.bf16 %v1923_v13, %v1920_v23  ;;  %v1943_v13 = vld [vmem:[#allocation8 + $0x150] sm:$0xff] }
 0x194   : > { %1701 = vmatmul.mubr.f32.gmra.mrb[42].mxu0 %v12526_v45  ;;  %v12618_v47 = vld [vmem:[%s12176_s11 + $0x150] sm:$0xff] }
 0x195   : > { %1432 = vmatmul.mubr.f32.gmra.mrb[74].mxu1 %v16055_v16  ;;  %1705 = vmatprep.mubr.f32.mxu0 %v12531_v4 }
 0x196   : > { %1437 = vmatprep.mubr.f32.mxu1 %v16056_v8  ;;  %9798 = vmatpush3.bf16.msra.mxu0 %v9795_v33  ;;  %v9817_v33 = vpack.c.bf16 %v1916_v52, %v1913_v12  ;;  %v1925_v8 = vld [vmem:[#allocation8 + $0xc0] sm:$0xff]  ;;  %v9833_v52 = vpack.c.bf16 %v1940_v24, %v1937_v42  ;;  %v1959_v42 = vld [vmem:[#allocation8 + $0x1d0] sm:$0xff] }
 0x197   : > { %9800 = vmatprep.subr.bf16.mxu0 %v9799_v43 }
 0x198   : > { %1706 = vmatmul.mubr.f32.gmra.mrb[44].mxu0 %v12536_v62 }
 0x199   : > { %1438 = vmatmul.mubr.f32.gmra.mrb[76].mxu1 %v16057_v15  ;;  %1710 = vmatprep.mubr.f32.mxu0 %v12541_v20  ;;  %v1935_v15 = vld [vmem:[#allocation8 + $0x110] sm:$0xff] }
 0x19a   : > { %1443 = vmatprep.mubr.f32.mxu1 %v16058_v1  ;;  %9802 = vmatpush3.bf16.msra.mxu0 %v9799_v43  ;;  %v1926_v43 = vld [vmem:[#allocation8 + $0xc8] sm:$0xff] }
 0x19b   : > { %9804 = vmatprep.subr.bf16.mxu0 %v9803_v48  ;;  %v9823_v16 = vpack.c.bf16 %v1929_v53, %v1926_v43  ;;  %v12623_v53 = vld [vmem:[%s12176_s11 + $0x170] sm:$0xff] }
 0x19c   : > { %1711 = vmatmul.mubr.f32.gmra.mrb[46].mxu0 %v12546_v27  ;;  %16061 = vst [vmem:[#allocation19_spill] sm:$0xff] %v12623_v53 }
 0x19d   : > { %1444 = vmatmul.mubr.f32.gmra.mrb[78].mxu1 %v16059_v19  ;;  %1715 = vmatprep.mubr.f32.mxu0 %v12551_v22  ;;  %v1941_v19 = vld [vmem:[#allocation8 + $0x140] sm:$0xff] }
 0x19e   : > { %1514 = vmatprep.mubr.f32.mxu1 %v15780_v17  ;;  %9806 = vmatpush3.bf16.msra.mxu0 %v9803_v48  ;;  %v1928_v48 = vld [vmem:[#allocation8 + $0xd8] sm:$0xff] }
 0x19f   : > { %9904 = vmatprep.subr.bf16.mxu0 %v9903_v5  ;;  %v9825_v1 = vpack.c.bf16 %v1928_v48, %v1925_v8  ;;  %v9827_v5 = vpack.c.bf16 %v1935_v15, %v1932_v29  ;;  %v1906_v8 = vld [vmem:[#allocation8 + $0x28] sm:$0xff]  ;;  %v1957_v29 = vld [vmem:[#allocation8 + $0x1c0] sm:$0xff] }
 0x1a0   : > { %1716 = vmatmul.mubr.f32.gmra.mrb[48].mxu0 %v12556_v3 }
 0x1a1   : > { %1515 = vmatmul.mubr.f32.vlgmr.msra.gmra.mrb[48].mxu1 %v16060_v36  ;;  %1720 = vmatprep.mubr.f32.mxu0 %v12561_v2  ;;  %v1947_v36 = vld [vmem:[#allocation8 + $0x170] sm:$0xff] }
 0x1a2   : > { %1520 = vmatprep.mubr.f32.mxu1 %v15780_v17  ;;  %9810 = vmatpush1.bf16.msra.mxu1 %v9809_v28  ;;  %v9829_v28 = vpack.c.bf16 %v1934_v18, %v1931_v14  ;;  %v1949_v14 = vld [vmem:[#allocation8 + $0x180] sm:$0xff]  ;;  %v1952_v18 = vld [vmem:[#allocation8 + $0x198] sm:$0xff] }
 0x1a3   : > { %9812 = vmatprep.subr.bf16.mxu1 %v9811_v38  ;;  %v9831_v38 = vpack.c.bf16 %v1941_v19, %v1938_v6  ;;  %v12635_v19 = vld [vmem:[%s12176_s11 + $0x10] sm:$0xff] }
 0x1a4   : > { %1721 = vmatmul.mubr.f32.gmra.mrb[50].mxu0 %v12566_v54  ;;  %16063 = vst [vmem:[#allocation21_spill] sm:$0xff] %v12635_v19 }
 0x1a5   : > { %1521 = vmatmul.mubr.f32.gmra.mrb[50].mxu1 %v12344_v39  ;;  %1725 = vmatprep.mubr.f32.mxu0 %v12571_v49  ;;  %v12581_v39 = vld [vmem:[%s12176_s11 + $0x110] sm:$0xff] }
 0x1a6   : > { %1526 = vmatprep.mubr.f32.mxu1 %v15780_v17  ;;  %9814 = vmatpush1.bf16.msra.mxu1 %v9813_v26 }
 0x1a7   : > { %9816 = vmatprep.subr.bf16.mxu1 %v9815_v37  ;;  %v12611_v37 = vld [vmem:[%s12176_s11 + $0x158] sm:$0xff] }
 0x1a8   : > { %1726 = vmatmul.mubr.f32.gmra.mrb[52].mxu0 %v12576_v61 }
 0x1a9   : > { %1527 = vmatmul.mubr.f32.gmra.mrb[52].mxu1 %v12347_v44  ;;  %1730 = vmatprep.mubr.f32.mxu0 %v12581_v39  ;;  %v12591_v44 = vld [vmem:[%s12176_s11 + $0x128] sm:$0xff] }
 0x1aa   : > { %1532 = vmatprep.mubr.f32.mxu1 %v15780_v17  ;;  %9818 = vmatpush1.bf16.msra.mxu1 %v9817_v33  ;;  %v1946_v33 = vld [vmem:[#allocation8 + $0x168] sm:$0xff] }
 0x1ab   : > { %9820 = vmatprep.subr.bf16.mxu1 %v9819_v41  ;;  %v9837_v48 = vpack.c.bf16 %v1946_v33, %v1943_v13  ;;  %v1966_v13 = vld [vmem:[#allocation8 + $0x208] sm:$0xff] }
 0x1ac   : > { %1731 = vmatmul.mubr.f32.gmra.mrb[54].mxu0 %v12586_v9 }
 0x1ad   : > { %1533 = vmatmul.mubr.f32.gmra.mrb[54].mxu1 %v12354_v56  ;;  %1735 = vmatprep.mubr.f32.mxu0 %v12591_v44  ;;  %v12601_v56 = vld [vmem:[%s12176_s11 + $0x140] sm:$0xff] }
 0x1ae   : > { %1538 = vmatprep.mubr.f32.mxu1 %v15780_v17  ;;  %9822 = vmatpush1.bf16.msra.mxu1 %v9821_v58 }
 0x1af   : > { %9824 = vmatprep.subr.bf16.mxu1 %v9823_v16  ;;  %v1903_v16 = vld [vmem:[#allocation8 + $0x10] sm:$0xff] }
 0x1b0   : > { %1736 = vmatmul.mubr.f32.gmra.mrb[56].mxu0 %v12596_v31 }
 0x1b1   : > { %1539 = vmatmul.mubr.f32.gmra.mrb[56].mxu1 %v12357_v59  ;;  %1740 = vmatprep.mubr.f32.mxu0 %v12601_v56  ;;  %v1944_v59 = vld [vmem:[#allocation8 + $0x158] sm:$0xff] }
 0x1b2   : > { %1544 = vmatprep.mubr.f32.mxu1 %v15780_v17  ;;  %9826 = vmatpush1.bf16.msra.mxu1 %v9825_v1  ;;  %v9835_v23 = vpack.c.bf16 %v1947_v36, %v1944_v59  ;;  %v1912_v59 = vld [vmem:[#allocation8 + $0x58] sm:$0xff] }
 0x1b3   : > { %9828 = vmatprep.subr.bf16.mxu1 %v9827_v5  ;;  %v7791_v51 = vpop.f32.mrb[0].mxu1  ;;  %v12630_v5 = vld [vmem:[%s12176_s11 + $0x168] sm:$0xff] }
 0x1b4   : > { %1741 = vmatmul.mubr.f32.gmra.mrb[58].mxu0 %v12606_v50  ;;  %v7792_v26 = vpop.f32.mrb[1].mxu1  ;;  %16062 = vst [vmem:[#allocation20_spill] sm:$0xff] %v12630_v5 }
 0x1b5   : > { %1545 = vmatmul.mubr.f32.gmra.mrb[58].mxu1 %v12364_v7  ;;  %1745 = vmatprep.mubr.f32.mxu0 %v12611_v37  ;;  %v12614_v12 = vadd.f32 %v7792_v26, %v7791_v51  ;;  %v1950_v7 = vld [vmem:[#allocation8 + $0x188] sm:$0xff]  ;;  %v1909_v51 = vld [vmem:[#allocation8 + $0x40] sm:$0xff]  ;;  %v1963_v26 = vld [vmem:[#allocation8 + $0x1f0] sm:$0xff] }
 0x1b6   : > { %1550 = vmatprep.mubr.f32.mxu1 %v15780_v17  ;;  %9830 = vmatpush1.bf16.msra.mxu1 %v9829_v28  ;;  %v9839_v15 = vpack.c.bf16 %v1953_v57, %v1950_v7  ;;  %v9905_v28 = vpack.c.bf16 %v1906_v8, %v1903_v16  ;;  %v1958_v7 = vld [vmem:[#allocation8 + $0x1c8] sm:$0xff]  ;;  %v1965_v8 = vld [vmem:[#allocation8 + $0x200] sm:$0xff] }
 0x1b7   : > { %9832 = vmatprep.subr.bf16.mxu1 %v9831_v38  ;;  %v7794_v41 = vpop.f32.mrb[2].mxu1  ;;  %v1956_v38 = vld [vmem:[#allocation8 + $0x1b8] sm:$0xff]  ;;  %v1962_v16 = vld [vmem:[#allocation8 + $0x1e8] sm:$0xff] }
 0x1b8   : > { %1746 = vmatmul.mubr.f32.gmra.mrb[60].mxu0 %v12618_v47  ;;  %v7795_v43 = vpop.f32.mrb[3].mxu1  ;;  %v9843_v33 = vpack.c.bf16 %v1959_v42, %v1956_v38  ;;  %v9847_v38 = vpack.c.bf16 %v1965_v8, %v1962_v16  ;;  %v1961_v42 = vld [vmem:[#allocation8 + $0x1e0] sm:$0xff]  ;;  %v1975_v16 = vld [vmem:[#allocation8 + $0x250] sm:$0xff] }
 0x1b9   : > { %1551 = vmatmul.mubr.f32.gmra.mrb[60].mxu1 %v12367_v11  ;;  %1750 = vmatprep.mubr.f32.mxu0 %v12623_v53  ;;  %v12626_v58 = vadd.f32 %v7795_v43, %v7794_v41  ;;  %v1960_v11 = vld [vmem:[#allocation8 + $0x1d8] sm:$0xff]  ;;  %v1955_v41 = vld [vmem:[#allocation8 + $0x1b0] sm:$0xff]  ;;  %v9909_v43 = vpack.c.bf16 %v1912_v59, %v1909_v51  ;;  %v12658_v59 = vld [vmem:[%s12176_s11 + $0xe8] sm:$0xff] }
 0x1ba   : > { %1556 = vmatprep.mubr.f32.mxu1 %v15780_v17  ;;  %9834 = vmatpush1.bf16.msra.mxu1 %v9833_v52  ;;  %v9907_v36 = vpack.c.bf16 %v1960_v11, %v1957_v29  ;;  %v12650_v29 = vld [vmem:[%s12176_s11 + $0x40] sm:$0xff]  ;;  %v9911_v11 = vpack.c.bf16 %v1966_v13, %v1963_v26  ;;  %v1964_v51 = vld [vmem:[#allocation8 + $0x1f8] sm:$0xff]  ;;  %16067 = vst [vmem:[#allocation25_spill] sm:$0xff] %v12658_v59 }
 0x1bb   : > { %9836 = vmatprep.subr.bf16.mxu1 %v9835_v23  ;;  %v7797_v1 = vpop.f32.mrb[4].mxu1  ;;  %v12642_v23 = vld [vmem:[%s12176_s11 + $0x28] sm:$0xff]  ;;  %16065 = vst [vmem:[#allocation23_spill] sm:$0xff] %v12650_v29 }
 0x1bc   : > { %1751 = vmatmul.mubr.f32.gmra.mrb[62].mxu0 %v12630_v5  ;;  %v7798_v6 = vpop.f32.mrb[5].mxu1  ;;  %16064 = vst [vmem:[#allocation22_spill] sm:$0xff] %v12642_v23  ;;  %v12700_v5 = vld [vmem:[%s12176_s11 + $0x130] sm:$0xff] }
 0x1bd   : > { %1557 = vmatmul.mubr.f32.gmra.mrb[62].mxu1 %v12374_v25  ;;  %8679 = vmatprep.mubr.f32.mxu0 %v12635_v19  ;;  %v12638_v24 = vadd.f32 %v7798_v6, %v7797_v1  ;;  %v9841_v25 = vpack.c.bf16 %v1952_v18, %v1949_v14  ;;  %v1918_v1 = vld [vmem:[#allocation8 + $0x88] sm:$0xff]  ;;  %v9845_v14 = vpack.c.bf16 %v1958_v7, %v1955_v41  ;;  %v12654_v6 = vld [vmem:[%s12176_s11 + $0x58] sm:$0xff]  ;;  %v12665_v41 = vld [vmem:[%s12176_s11 + $0x70] sm:$0xff] }
 0x1be   : > { %1562 = vmatprep.mubr.f32.mxu1 %v15780_v17  ;;  %9838 = vmatpush1.bf16.msra.mxu1 %v9837_v48  ;;  %16066 = vst [vmem:[#allocation24_spill] sm:$0xff] %v12654_v6  ;;  %16068 = vst [vmem:[#allocation26_spill] sm:$0xff] %v12665_v41  ;;  %v1924_v7 = vld [vmem:[#allocation8 + $0xb8] sm:$0xff] }
 0x1bf   : > { %9840 = vmatprep.subr.bf16.mxu1 %v9839_v15  ;;  %v7800_v52 = vpop.f32.mrb[6].mxu1  ;;  %v1915_v15 = vld [vmem:[#allocation8 + $0x70] sm:$0xff]  ;;  %16076 = vst [vmem:[#allocation33_spill] sm:$0xff] %v12700_v5 }
 0x1c0   : > { %8680 = vmatmul.mubr.f32.vlgmr.msra.gmra.mrb[64].mxu0 %v12642_v23  ;;  %v7801_v57 = vpop.f32.mrb[7].mxu1  ;;  %v9913_v26 = vpack.c.bf16 %v1918_v1, %v1915_v15  ;;  %v12669_v15 = vld [vmem:[%s12176_s11 + $0x88] sm:$0xff]  ;;  %v1976_v23 = vld [vmem:[#allocation8 + $0x258] sm:$0xff] }
 0x1c1   : > { %1563 = vmatmul.mubr.f32.gmra.mrb[64].mxu1 %v12377_v32  ;;  %9906 = vmatpush3.bf16.msra.mxu0 %v9905_v28  ;;  %v12646_v48 = vadd.f32 %v7801_v57, %v7800_v52  ;;  %v1969_v32 = vld [vmem:[#allocation8 + $0x220] sm:$0xff]  ;;  %v1972_v28 = vld [vmem:[#allocation8 + $0x238] sm:$0xff]  ;;  %v1971_v52 = vld [vmem:[#allocation8 + $0x230] sm:$0xff]  ;;  %16069 = vst [vmem:[#allocation27_spill] sm:$0xff] %v12669_v15 }
 0x1c2   : > { %1568 = vmatprep.mubr.f32.mxu1 %v15780_v17  ;;  %8682 = vmatprep.mubr.f32.mxu0 %v12650_v29  ;;  %v9915_v57 = vpack.c.bf16 %v1972_v28, %v1969_v32  ;;  %v1978_v1 = vld [vmem:[#allocation8 + $0x268] sm:$0xff]  ;;  %v1977_v28 = vld [vmem:[#allocation8 + $0x260] sm:$0xff] }
 0x1c3   : > { %9908 = vmatprep.subr.bf16.mxu0 %v9907_v36  ;;  %9842 = vmatpush1.bf16.msra.mxu1 %v9841_v25  ;;  %v7803_v18 = vpop.f32.mrb[8].mxu1  ;;  %v1968_v25 = vld [vmem:[#allocation8 + $0x218] sm:$0xff] }
 0x1c4   : > { %8683 = vmatmul.mubr.f32.gmra.mrb[66].mxu0 %v12654_v6  ;;  %9844 = vmatprep.subr.bf16.mxu1 %v9843_v33  ;;  %v7804_v36 = vpop.f32.mrb[9].mxu1  ;;  %v1921_v33 = vld [vmem:[#allocation8 + $0xa0] sm:$0xff] }
 0x1c5   : > { %1569 = vmatmul.mubr.f32.gmra.mrb[66].mxu1 %v12658_v59  ;;  %9910 = vmatpush3.bf16.msra.mxu0 %v9909_v43  ;;  %v12661_v13 = vadd.f32 %v7804_v36, %v7803_v18  ;;  %v9849_v43 = vpack.c.bf16 %v1964_v51, %v1961_v42  ;;  %v9851_v18 = vpack.c.bf16 %v1971_v52, %v1968_v25  ;;  %v1967_v36 = vld [vmem:[#allocation8 + $0x210] sm:$0xff]  ;;  %v16071_v51 = vmov 0.0   ;;  %v1930_v25 = vld [vmem:[#allocation8 + $0xe8] sm:$0xff]  ;;  %v1981_v6 = vld [vmem:[#allocation8 + $0x280] sm:$0xff] }
 0x1c6   : > { %1574 = vmatprep.mubr.f32.mxu1 %v15780_v17  ;;  %8685 = vmatprep.mubr.f32.mxu0 %v12665_v41  ;;  %v1970_v17 = vld [vmem:[#allocation8 + $0x228] sm:$0xff]  ;;  %v12673_v41 = vld [vmem:[%s12176_s11 + $0x100] sm:$0xff]  ;;  %v9917_v32 = vpack.c.bf16 %v1924_v7, %v1921_v33  ;;  %v9919_v52 = vpack.c.bf16 %v1978_v1, %v1975_v16  ;;  %v12684_v33 = vld [vmem:[%s12176_s11 + $0xb8] sm:$0xff] }
 0x1c7   : > { %9912 = vmatprep.subr.bf16.mxu0 %v9911_v11  ;;  %9846 = vmatpush1.bf16.msra.mxu1 %v9845_v14  ;;  %v7806_v8 = vpop.f32.mrb[10].mxu1  ;;  %16070 = vst [vmem:[#allocation28_spill] sm:$0xff] %v12673_v41  ;;  %v1974_v14 = vld [vmem:[#allocation8 + $0x248] sm:$0xff]  ;;  %16073 = vst [vmem:[#allocation30_spill] sm:$0xff] %v12684_v33  ;;  %v1984_v7 = vld [vmem:[#allocation8 + $0x298] sm:$0xff] }
 0x1c8   : > { %8686 = vmatmul.mubr.f32.gmra.mrb[68].mxu0 %v12669_v15  ;;  %9848 = vmatprep.subr.bf16.mxu1 %v9847_v38  ;;  %v7807_v11 = vpop.f32.mrb[11].mxu1  ;;  %v12680_v15 = vld [vmem:[%s12176_s11 + $0xa0] sm:$0xff]  ;;  %v1927_v38 = vld [vmem:[#allocation8 + $0xd0] sm:$0xff] }
 0x1c9   : > { %1575 = vmatmul.mubr.f32.gmra.mrb[68].mxu1 %v12673_v41  ;;  %9914 = vmatpush3.bf16.msra.mxu0 %v9913_v26  ;;  %v12676_v42 = vadd.f32 %v7807_v11, %v7806_v8  ;;  %16072 = vst [vmem:[#allocation29_spill] sm:$0xff] %v12680_v15  ;;  %v9853_v26 = vpack.c.bf16 %v1970_v17, %v1967_v36  ;;  %v1973_v11 = vld [vmem:[#allocation8 + $0x240] sm:$0xff]  ;;  %v1983_v17 = vld [vmem:[#allocation8 + $0x290] sm:$0xff] }
 0x1ca   : > { %1580 = vmatprep.mubr.f32.mxu1 %v16071_v51  ;;  %8688 = vmatprep.mubr.f32.mxu0 %v12680_v15  ;;  %v9855_v8 = vpack.c.bf16 %v1977_v28, %v1974_v14  ;;  %v12688_v15 = vld [vmem:[%s12176_s11 + $0x118] sm:$0xff]  ;;  %v9921_v16 = vpack.c.bf16 %v1930_v25, %v1927_v38  ;;  %v12695_v36 = vld [vmem:[%s12176_s11 + $0xd0] sm:$0xff]  ;;  %v9923_v28 = vpack.c.bf16 %v1984_v7, %v1981_v6  ;;  %v1990_v38 = vld [vmem:[#allocation8 + $0x2c8] sm:$0xff] }
 0x1cb   : > { %9916 = vmatprep.subr.bf16.mxu0 %v9915_v57  ;;  %9850 = vmatpush1.bf16.msra.mxu1 %v9849_v43  ;;  %v7809_v29 = vpop.f32.mrb[12].mxu1  ;;  %16074 = vst [vmem:[#allocation31_spill] sm:$0xff] %v12688_v15  ;;  %v1980_v43 = vld [vmem:[#allocation8 + $0x278] sm:$0xff]  ;;  %16075 = vst [vmem:[#allocation32_spill] sm:$0xff] %v12695_v36  ;;  %v9857_v19 = vpack.c.bf16 %v1976_v23, %v1973_v11  ;;  %v1979_v25 = vld [vmem:[#allocation8 + $0x270] sm:$0xff] }
 0x1cc   : > { %8689 = vmatmul.mubr.f32.gmra.mrb[70].mxu0 %v12684_v33  ;;  %9852 = vmatprep.subr.bf16.mxu1 %v9851_v18  ;;  %v7810_v57 = vpop.f32.mrb[13].mxu1  ;;  %v1933_v18 = vld [vmem:[#allocation8 + $0x100] sm:$0xff]  ;;  %v1936_v14 = vld [vmem:[#allocation8 + $0x118] sm:$0xff]  ;;  %v1987_v33 = vld [vmem:[#allocation8 + $0x2b0] sm:$0xff] }
 0x1cd   : > { %1581 = vmatmul.mubr.f32.gmra.mrb[70].mxu1 %v12688_v15  ;;  %9918 = vmatpush3.bf16.msra.mxu0 %v9917_v32  ;;  %v12691_v1 = vadd.f32 %v7810_v57, %v7809_v29  ;;  %v9859_v29 = vpack.c.bf16 %v1983_v17, %v1980_v43  ;;  %v1982_v57 = vld [vmem:[#allocation8 + $0x288] sm:$0xff]  ;;  %v9925_v53 = vpack.c.bf16 %v1936_v14, %v1933_v18  ;;  %v1989_v6 = vld [vmem:[#allocation8 + $0x2c0] sm:$0xff]  ;;  %v1939_v23 = vld [vmem:[#allocation8 + $0x130] sm:$0xff] }
 0x1ce   : > { %1586 = vmatprep.mubr.f32.mxu1 %v16071_v51  ;;  %8691 = vmatprep.mubr.f32.mxu0 %v12695_v36  ;;  %v1993_v11 = vld [vmem:[#allocation8 + $0x2e0] sm:$0xff]  ;;  %v9861_v43 = vpack.c.bf16 %v1982_v57, %v1979_v25  ;;  %v1988_v14 = vld [vmem:[#allocation8 + $0x2b8] sm:$0xff]  ;;  %v1999_v57 = vld [vmem:[#allocation8 + $0x310] sm:$0xff] }
 0x1cf   : > { %9920 = vmatprep.subr.bf16.mxu0 %v9919_v52  ;;  %9854 = vmatpush1.bf16.msra.mxu1 %v9853_v26  ;;  %v7812_v32 = vpop.f32.mrb[14].mxu1  ;;  %v1986_v52 = vld [vmem:[#allocation8 + $0x2a8] sm:$0xff] }
 0x1d0   : > { %8692 = vmatmul.mubr.f32.gmra.mrb[72].mxu0 %v12658_v59  ;;  %9856 = vmatprep.subr.bf16.mxu1 %v9855_v8  ;;  %v7813_v36 = vpop.f32.mrb[15].mxu1  ;;  %v1942_v26 = vld [vmem:[#allocation8 + $0x148] sm:$0xff]  ;;  %v9927_v8 = vpack.c.bf16 %v1990_v38, %v1987_v33  ;;  %v9863_v18 = vpack.c.bf16 %v1989_v6, %v1986_v52  ;;  %v1995_v33 = vld [vmem:[#allocation8 + $0x2f0] sm:$0xff] }
 0x1d1   : > { %1587 = vmatmul.mubr.f32.gmra.mrb[72].mxu1 %v12700_v5  ;;  %9922 = vmatpush3.bf16.msra.mxu0 %v9921_v16  ;;  %v12703_v7 = vadd.f32 %v7813_v36, %v7812_v32  ;;  %v1996_v16 = vld [vmem:[#allocation8 + $0x2f8] sm:$0xff]  ;;  %v1985_v36 = vld [vmem:[#allocation8 + $0x2a0] sm:$0xff]  ;;  %v12709_v32 = vld [vmem:[%s12176_s11 + $0x148] sm:$0xff]  ;;  %v9929_v59 = vpack.c.bf16 %v1942_v26, %v1939_v23 }
 0x1d2   : > { %1592 = vmatprep.mubr.f32.mxu1 %v16071_v51  ;;  %8694 = vmatprep.mubr.f32.mxu0 %v12673_v41  ;;  %v9931_v25 = vpack.c.bf16 %v1996_v16, %v1993_v11  ;;  %v2002_v52 = vld [vmem:[#allocation8 + $0x328] sm:$0xff]  ;;  %v9865_v6 = vpack.c.bf16 %v1988_v14, %v1985_v36  ;;  %v12718_v26 = vld [vmem:[%s12176_s11 + $0x160] sm:$0xff]  ;;  %v2008_v36 = vld [vmem:[#allocation8 + $0x358] sm:$0xff] }
 0x1d3   : > { %9924 = vmatprep.subr.bf16.mxu0 %v9923_v28  ;;  %9858 = vmatpush1.bf16.msra.mxu1 %v9857_v19  ;;  %v7815_v17 = vpop.f32.mrb[16].mxu1  ;;  %v1992_v28 = vld [vmem:[#allocation8 + $0x2d8] sm:$0xff]  ;;  %v1945_v19 = vld [vmem:[#allocation8 + $0x160] sm:$0xff]  ;;  %v1994_v23 = vld [vmem:[#allocation8 + $0x2e8] sm:$0xff] }
 0x1d4   : > { %8695 = vmatmul.mubr.f32.gmra.mrb[74].mxu0 %v12688_v15  ;;  %9860 = vmatprep.subr.bf16.mxu1 %v9859_v29  ;;  %v7816_v41 = vpop.f32.mrb[17].mxu1  ;;  %v1948_v29 = vld [vmem:[#allocation8 + $0x178] sm:$0xff]  ;;  %v1998_v11 = vld [vmem:[#allocation8 + $0x308] sm:$0xff]  ;;  %v2001_v16 = vld [vmem:[#allocation8 + $0x320] sm:$0xff] }
 0x1d5   : > { %1593 = vmatmul.mubr.f32.gmra.mrb[74].mxu1 %v12709_v32  ;;  %9926 = vmatpush3.bf16.msra.mxu0 %v9925_v53  ;;  %v12712_v38 = vadd.f32 %v7816_v41, %v7815_v17  ;;  %v9867_v53 = vpack.c.bf16 %v1995_v33, %v1992_v28  ;;  %v1991_v41 = vld [vmem:[#allocation8 + $0x2d0] sm:$0xff]  ;;  %v12726_v33 = vld [vmem:[%s12176_s11 + $0x178] sm:$0xff] }
 0x1d6   : > { %1598 = vmatprep.mubr.f32.mxu1 %v16071_v51  ;;  %8697 = vmatprep.mubr.f32.mxu0 %v12700_v5  ;;  %v9869_v14 = vpack.c.bf16 %v1994_v23, %v1991_v41  ;;  %16077 = vst [vmem:[#allocation34_spill] sm:$0xff] %v12726_v33  ;;  %v2014_v41 = vld [vmem:[#allocation8 + $0x388] sm:$0xff] }
 0x1d7   : > { %9928 = vmatprep.subr.bf16.mxu0 %v9927_v8  ;;  %9862 = vmatpush1.bf16.msra.mxu1 %v9861_v43  ;;  %v7818_v15 = vpop.f32.mrb[18].mxu1  ;;  %v9933_v8 = vpack.c.bf16 %v1948_v29, %v1945_v19  ;;  %v9935_v43 = vpack.c.bf16 %v2002_v52, %v1999_v57  ;;  %v1997_v19 = vld [vmem:[#allocation8 + $0x300] sm:$0xff]  ;;  %v2007_v57 = vld [vmem:[#allocation8 + $0x350] sm:$0xff] }
 0x1d8   : > { %8698 = vmatmul.mubr.f32.gmra.mrb[76].mxu0 %v12709_v32  ;;  %9864 = vmatprep.subr.bf16.mxu1 %v9863_v18  ;;  %v7819_v17 = vpop.f32.mrb[19].mxu1  ;;  %v2005_v18 = vld [vmem:[#allocation8 + $0x340] sm:$0xff] }
 0x1d9   : > { %1599 = vmatmul.mubr.f32.gmra.mrb[76].mxu1 %v12718_v26  ;;  %9930 = vmatpush3.bf16.msra.mxu0 %v9929_v59  ;;  %v12721_v5 = vadd.f32 %v7819_v17, %v7818_v15  ;;  %v9871_v59 = vpack.c.bf16 %v2001_v16, %v1998_v11  ;;  %v2000_v15 = vld [vmem:[#allocation8 + $0x318] sm:$0xff]  ;;  %v9939_v52 = vpack.c.bf16 %v2008_v36, %v2005_v18  ;;  %v2006_v16 = vld [vmem:[#allocation8 + $0x348] sm:$0xff] }
 0x1da   : > { %1604 = vmatprep.mubr.f32.mxu1 %v16071_v51  ;;  %8700 = vmatprep.mubr.f32.mxu0 %v12718_v26  ;;  %v2004_v17 = vld [vmem:[#allocation8 + $0x338] sm:$0xff] }
 0x1db   : > { %9932 = vmatprep.subr.bf16.mxu0 %v9931_v25  ;;  %9866 = vmatpush1.bf16.msra.mxu1 %v9865_v6  ;;  %v7821_v28 = vpop.f32.mrb[20].mxu1  ;;  %v2011_v6 = vld [vmem:[#allocation8 + $0x370] sm:$0xff]  ;;  %v9875_v11 = vpack.c.bf16 %v2007_v57, %v2004_v17  ;;  %v2012_v17 = vld [vmem:[#allocation8 + $0x378] sm:$0xff] }
 0x1dc   : > { %8701 = vmatmul.mubr.f32.gmra.mrb[78].mxu0 %v12726_v33  ;;  %9868 = vmatprep.subr.bf16.mxu1 %v9867_v53  ;;  %v7822_v29 = vpop.f32.mrb[21].mxu1  ;;  %v9873_v53 = vpack.c.bf16 %v2000_v15, %v1997_v19  ;;  %v9943_v36 = vpack.c.bf16 %v2014_v41, %v2011_v6  ;;  %v2019_v6 = vld [vmem:[#allocation8 + $0x3b0] sm:$0xff] }
 0x1dd   : > { %1605 = vmatmul.mubr.f32.gmra.mrb[78].mxu1 %v12726_v33  ;;  %9934 = vmatpush3.bf16.msra.mxu0 %v9933_v8  ;;  %v12730_v25 = vadd.f32 %v7822_v29, %v7821_v28  ;;  %v2003_v8 = vld [vmem:[#allocation8 + $0x330] sm:$0xff]  ;;  %v2010_v28 = vld [vmem:[#allocation8 + $0x368] sm:$0xff]  ;;  %v2013_v29 = vld [vmem:[#allocation8 + $0x380] sm:$0xff] }
 0x1de   : > { %2431 = vmatprep.mubr.f32.mxu0 %v12470_v34  ;;  %9936 = vmatprep.subr.bf16.mxu0 %v9935_v43  ;;  %v9879_v15 = vpack.c.bf16 %v2013_v29, %v2010_v28  ;;  %v2022_v29 = vld [vmem:[#allocation8 + $0x3c8] sm:$0xff] }
 0x1df   : > { %9870 = vmatpush1.bf16.msra.mxu1 %v9869_v14  ;;  %2109 = vmatprep.mubr.f32.mxu1 %v12470_v34  ;;  %v7824_v23 = vpop.f32.mrb[22].mxu1  ;;  %v2017_v34 = vld [vmem:[#allocation8 + $0x3a0] sm:$0xff]  ;;  %v2020_v14 = vld [vmem:[#allocation8 + $0x3b8] sm:$0xff] }
 0x1e0   : > { %2432 = vmatmul.mubr.f32.vlgmr.msra.gmra.mrb[80].mxu0 %v12475_v55  ;;  %9872 = vmatprep.subr.bf16.mxu1 %v9871_v59  ;;  %v7825_v33 = vpop.f32.mrb[23].mxu1  ;;  %v9877_v59 = vpack.c.bf16 %v2006_v16, %v2003_v8  ;;  %v9947_v41 = vpack.c.bf16 %v2020_v14, %v2017_v34  ;;  %v2018_v16 = vld [vmem:[#allocation8 + $0x3a8] sm:$0xff]  ;;  %v2025_v34 = vld [vmem:[#allocation8 + $0x3e0] sm:$0xff] }
 0x1e1   : > { %2436 = vmatprep.mubr.f32.mxu0 %v12480_v0  ;;  %9938 = vmatpush3.bf16.msra.mxu0 %v9935_v43  ;;  %v12736_v18 = vadd.f32 %v7825_v33, %v7824_v23  ;;  %v2009_v43 = vld [vmem:[#allocation8 + $0x360] sm:$0xff]  ;;  %v2016_v33 = vld [vmem:[#allocation8 + $0x398] sm:$0xff] }
 0x1e2   : > { %9940 = vmatprep.subr.bf16.mxu0 %v9939_v52  ;;  %2110 = vmatmul.mubr.f32.vlgmr.msra.gmra.mrb[80].mxu1 %v12475_v55  ;;  %v9881_v23 = vpack.c.bf16 %v2012_v17, %v2009_v43  ;;  %v9883_v8 = vpack.c.bf16 %v2019_v6, %v2016_v33  ;;  %v9887_v43 = vpack.c.bf16 %v2025_v34, %v2022_v29  ;;  %v2024_v17 = vld [vmem:[#allocation8 + $0x3d8] sm:$0xff]  ;;  %v2031_v6 = vld [vmem:[#allocation8 + $0x410] sm:$0xff]  ;;  %v2037_v29 = vld [vmem:[#allocation8 + $0x440] sm:$0xff] }
 0x1e3   : > { %2115 = vmatprep.mubr.f32.mxu1 %v12480_v0  ;;  %9874 = vmatpush1.bf16.msra.mxu1 %v9873_v53  ;;  %v7827_v19 = vpop.f32.mrb[24].mxu1  ;;  %v2023_v0 = vld [vmem:[#allocation8 + $0x3d0] sm:$0xff]  ;;  %v2026_v53 = vld [vmem:[#allocation8 + $0x3e8] sm:$0xff]  ;;  %v2028_v33 = vld [vmem:[#allocation8 + $0x3f8] sm:$0xff] }
 0x1e4   : > { %2437 = vmatmul.mubr.f32.gmra.mrb[82].mxu0 %v12486_v63  ;;  %9876 = vmatprep.subr.bf16.mxu1 %v9875_v11  ;;  %v7828_v57 = vpop.f32.mrb[25].mxu1  ;;  %v9951_v14 = vpack.c.bf16 %v2026_v53, %v2023_v0  ;;  %v2038_v53 = vld [vmem:[#allocation8 + $0x448] sm:$0xff] }
 0x1e5   : > { %2441 = vmatprep.mubr.f32.mxu0 %v12491_v10  ;;  %9942 = vmatpush3.bf16.msra.mxu0 %v9939_v52  ;;  %v12742_v55 = vadd.f32 %v7828_v57, %v7827_v19  ;;  %v2015_v52 = vld [vmem:[#allocation8 + $0x390] sm:$0xff] }
 0x1e6   : > { %9944 = vmatprep.subr.bf16.mxu0 %v9943_v36  ;;  %2116 = vmatmul.mubr.f32.gmra.mrb[82].mxu1 %v12486_v63  ;;  %v9885_v19 = vpack.c.bf16 %v2018_v16, %v2015_v52  ;;  %v2030_v52 = vld [vmem:[#allocation8 + $0x408] sm:$0xff] }
 0x1e7   : > { %2121 = vmatprep.mubr.f32.mxu1 %v12491_v10  ;;  %9878 = vmatpush1.bf16.msra.mxu1 %v9877_v59  ;;  %v7830_v11 = vpop.f32.mrb[26].mxu1  ;;  %v2029_v10 = vld [vmem:[#allocation8 + $0x400] sm:$0xff]  ;;  %v2032_v59 = vld [vmem:[#allocation8 + $0x418] sm:$0xff] }
 0x1e8   : > { %2442 = vmatmul.mubr.f32.gmra.mrb[84].mxu0 %v12496_v60  ;;  %9880 = vmatprep.subr.bf16.mxu1 %v9879_v15  ;;  %v7831_v28 = vpop.f32.mrb[27].mxu1  ;;  %v9955_v0 = vpack.c.bf16 %v2032_v59, %v2029_v10  ;;  %v2044_v10 = vld [vmem:[#allocation8 + $0x478] sm:$0xff] }
 0x1e9   : > { %2446 = vmatprep.mubr.f32.mxu0 %v12501_v21  ;;  %9946 = vmatpush3.bf16.msra.mxu0 %v9943_v36  ;;  %v12748_v63 = vadd.f32 %v7831_v28, %v7830_v11  ;;  %v2021_v36 = vld [vmem:[#allocation8 + $0x3c0] sm:$0xff]  ;;  %v2034_v28 = vld [vmem:[#allocation8 + $0x428] sm:$0xff] }
 0x1ea   : > { %9948 = vmatprep.subr.bf16.mxu0 %v9947_v41  ;;  %2122 = vmatmul.mubr.f32.gmra.mrb[84].mxu1 %v12496_v60 }
 0x1eb   : > { %2127 = vmatprep.mubr.f32.mxu1 %v12501_v21  ;;  %9882 = vmatpush1.bf16.msra.mxu1 %v9881_v23  ;;  %v7833_v15 = vpop.f32.mrb[28].mxu1  ;;  %v2035_v21 = vld [vmem:[#allocation8 + $0x430] sm:$0xff]  ;;  %v9889_v23 = vpack.c.bf16 %v2024_v17, %v2021_v36 }
 0x1ec   : > { %2447 = vmatmul.mubr.f32.gmra.mrb[86].mxu0 %v12506_v46  ;;  %9884 = vmatprep.subr.bf16.mxu1 %v9883_v8  ;;  %v7834_v57 = vpop.f32.mrb[29].mxu1  ;;  %v9891_v8 = vpack.c.bf16 %v2031_v6, %v2028_v33  ;;  %v9959_v34 = vpack.c.bf16 %v2038_v53, %v2035_v21  ;;  %v2039_v53 = vld [vmem:[#allocation8 + $0x450] sm:$0xff] }
 0x1ed   : > { %2451 = vmatprep.mubr.f32.mxu0 %v12511_v30  ;;  %9950 = vmatpush3.bf16.msra.mxu0 %v9947_v41  ;;  %v12754_v60 = vadd.f32 %v7834_v57, %v7833_v15  ;;  %v2027_v41 = vld [vmem:[#allocation8 + $0x3f0] sm:$0xff]  ;;  %v9895_v15 = vpack.c.bf16 %v2037_v29, %v2034_v28  ;;  %v16100_v28 = vld [vmem:[#allocation22_spill] sm:$0xff] }
 0x1ee   : > { %9952 = vmatprep.subr.bf16.mxu0 %v9951_v14  ;;  %2128 = vmatmul.mubr.f32.gmra.mrb[86].mxu1 %v12506_v46  ;;  %v9893_v59 = vpack.c.bf16 %v2030_v52, %v2027_v41  ;;  %v2043_v57 = vld [vmem:[#allocation8 + $0x470] sm:$0xff] }
 0x1ef   : > { %2133 = vmatprep.mubr.f32.mxu1 %v12511_v30  ;;  %9886 = vmatpush1.bf16.msra.mxu1 %v9885_v19  ;;  %v7836_v11 = vpop.f32.mrb[30].mxu1  ;;  %v2041_v30 = vld [vmem:[#allocation8 + $0x460] sm:$0xff]  ;;  %v16097_v52 = vld [vmem:[#allocation20_spill] sm:$0xff] }
 0x1f0   : > { %2452 = vmatmul.mubr.f32.gmra.mrb[88].mxu0 %v12516_v35  ;;  %9888 = vmatprep.subr.bf16.mxu1 %v9887_v43  ;;  %v7837_v16 = vpop.f32.mrb[31].mxu1  ;;  %v2036_v43 = vld [vmem:[#allocation8 + $0x438] sm:$0xff]  ;;  %v9963_v33 = vpack.c.bf16 %v2044_v10, %v2041_v30 }
 0x1f1   : > { %2456 = vmatprep.mubr.f32.mxu0 %v12521_v40  ;;  %9954 = vmatpush3.bf16.msra.mxu0 %v9951_v14  ;;  %v12760_v46 = vadd.f32 %v7837_v16, %v7836_v11  ;;  %v2033_v14 = vld [vmem:[#allocation8 + $0x420] sm:$0xff] }
 0x1f2   : > { %9956 = vmatprep.subr.bf16.mxu0 %v9955_v0  ;;  %2134 = vmatmul.mubr.f32.gmra.mrb[88].mxu1 %v12516_v35  ;;  %v2040_v35 = vld [vmem:[#allocation8 + $0x458] sm:$0xff]  ;;  %v9897_v6 = vpack.c.bf16 %v2036_v43, %v2033_v14 }
 0x1f3   : > { %2139 = vmatprep.mubr.f32.mxu1 %v12521_v40  ;;  %9890 = vmatpush1.bf16.msra.mxu1 %v9889_v23  ;;  %v8625_v19 = vpop.f32.mrb[32].mxu1  ;;  %v16105_v10 = vld [vmem:[#allocation26_spill] sm:$0xff]  ;;  %v16108_v14 = vld [vmem:[#allocation29_spill] sm:$0xff] }
 0x1f4   : > { %2457 = vmatmul.mubr.f32.gmra.mrb[90].mxu0 %v12526_v45  ;;  %9892 = vmatprep.subr.bf16.mxu1 %v9891_v8  ;;  %v12766_v36 = vadd.f32 %v8625_v19, %v12626_v58  ;;  %v1066_v17 = vpop.f32.mrb[33].mxu1  ;;  %v9899_v58 = vpack.c.bf16 %v2043_v57, %v2040_v35  ;;  %v16106_v19 = vld [vmem:[#allocation27_spill] sm:$0xff]  ;;  %v16111_v57 = vld [vmem:[#allocation32_spill] sm:$0xff] }
 0x1f5   : > { %2461 = vmatprep.mubr.f32.mxu0 %v12531_v4  ;;  %9958 = vmatpush3.bf16.msra.mxu0 %v9955_v0  ;;  %v12770_v40 = vadd.f32 %v12614_v12, %v1066_v17  ;;  %v2042_v0 = vld [vmem:[#allocation8 + $0x468] sm:$0xff]  ;;  %v16109_v17 = vld [vmem:[#allocation30_spill] sm:$0xff] }
 0x1f6   : > { %16078 = vst [vmem:[#allocation35_spill] sm:$0xff] %v12766_v36  ;;  %9960 = vmatprep.subr.bf16.mxu0 %v9959_v34  ;;  %2140 = vmatmul.mubr.f32.gmra.mrb[90].mxu1 %v12526_v45 }
 0x1f7   : > { %16079 = vst [vmem:[#allocation36_spill] sm:$0xff] %v12770_v40  ;;  %2145 = vmatprep.mubr.f32.mxu1 %v12531_v4  ;;  %9894 = vmatpush1.bf16.msra.mxu1 %v9893_v59  ;;  %v8628_v21 = vpop.f32.mrb[34].mxu1  ;;  %v9901_v4 = vpack.c.bf16 %v2042_v0, %v2039_v53  ;;  %v16115_v0 = vld [vmem:[#allocation31_spill] sm:$0xff] }
 0x1f8   : > { %2462 = vmatmul.mubr.f32.gmra.mrb[92].mxu0 %v12536_v62  ;;  %9896 = vmatprep.subr.bf16.mxu1 %v9895_v15  ;;  %v12776_v23 = vadd.f32 %v8628_v21, %v12646_v48  ;;  %v1076_v12 = vpop.f32.mrb[35].mxu1 }
 0x1f9   : > { %2466 = vmatprep.mubr.f32.mxu0 %v12541_v20  ;;  %9962 = vmatpush3.bf16.msra.mxu0 %v9959_v34  ;;  %v12780_v45 = vadd.f32 %v12638_v24, %v1076_v12  ;;  %v16103_v34 = vld [vmem:[#allocation24_spill] sm:$0xff] }
 0x1fa   : > { %16080 = vst [vmem:[#allocation37_spill] sm:$0xff] %v12776_v23  ;;  %9964 = vmatprep.subr.bf16.mxu0 %v9963_v33  ;;  %2146 = vmatmul.mubr.f32.gmra.mrb[92].mxu1 %v12536_v62 }
 0x1fb   : > { %16081 = vst [vmem:[#allocation38_spill] sm:$0xff] %v12780_v45  ;;  %2151 = vmatprep.mubr.f32.mxu1 %v12541_v20  ;;  %9898 = vmatpush1.bf16.msra.mxu1 %v9897_v6  ;;  %v8631_v11 = vpop.f32.mrb[36].mxu1  ;;  %v16112_v6 = vld [vmem:[#allocation25_spill] sm:$0xff] }
 0x1fc   : > { %2467 = vmatmul.mubr.f32.gmra.mrb[94].mxu0 %v12546_v27  ;;  %9900 = vmatprep.subr.bf16.mxu1 %v9899_v58  ;;  %v12786_v48 = vadd.f32 %v8631_v11, %v12676_v42  ;;  %v1086_v8 = vpop.f32.mrb[37].mxu1  ;;  %v16114_v58 = vld [vmem:[#allocation28_spill] sm:$0xff] }
 0x1fd   : > { %2471 = vmatprep.mubr.f32.mxu0 %v12551_v22  ;;  %9966 = vmatpush3.bf16.msra.mxu0 %v9963_v33  ;;  %v12790_v24 = vadd.f32 %v12661_v13, %v1086_v8 }
 0x1fe   : > { %16082 = vst [vmem:[#allocation39_spill] sm:$0xff] %v12786_v48  ;;  %2152 = vmatmul.mubr.f32.gmra.mrb[94].mxu1 %v12546_v27 }
 0x1ff   : > { %16083 = vst [vmem:[#allocation40_spill] sm:$0xff] %v12790_v24  ;;  %2157 = vmatprep.mubr.f32.mxu1 %v12551_v22  ;;  %9902 = vmatpush1.bf16.msra.mxu1 %v9901_v4  ;;  %v8634_v62 = vpop.f32.mrb[38].mxu1  ;;  %v16117_v4 = vld [vmem:[#allocation33_spill] sm:$0xff] }
 0x200   : > { %2472 = vmatmul.mubr.f32.gmra.mrb[96].mxu0 %v12556_v3  ;;  %v12796_v20 = vadd.f32 %v8634_v62, %v12703_v7  ;;  %v1096_v42 = vpop.f32.mrb[39].mxu1 }
 0x201   : > { %2476 = vmatprep.mubr.f32.mxu0 %v12561_v2  ;;  %v12800_v41 = vadd.f32 %v12691_v1, %v1096_v42  ;;  %v16119_v42 = vld [vmem:[#allocation34_spill] sm:$0xff] }
 0x202   : > { %16084 = vst [vmem:[#allocation41_spill] sm:$0xff] %v12796_v20  ;;  %2158 = vmatmul.mubr.f32.gmra.mrb[96].mxu1 %v12556_v3 }
 0x203   : > { %16085 = vst [vmem:[#allocation42_spill] sm:$0xff] %v12800_v41  ;;  %2163 = vmatprep.mubr.f32.mxu1 %v12561_v2  ;;  %v8637_v27 = vpop.f32.mrb[40].mxu1 }
 0x204   : > { %2477 = vmatmul.mubr.f32.gmra.mrb[98].mxu0 %v12566_v54  ;;  %v12806_v22 = vadd.f32 %v8637_v27, %v12721_v5  ;;  %v1106_v13 = vpop.f32.mrb[41].mxu1 }
 0x205   : > { %2481 = vmatprep.mubr.f32.mxu0 %v12571_v49  ;;  %v12810_v7 = vadd.f32 %v12712_v38, %v1106_v13 }
 0x206   : > { %16086 = vst [vmem:[#allocation43_spill] sm:$0xff] %v12806_v22  ;;  %2164 = vmatmul.mubr.f32.gmra.mrb[98].mxu1 %v12566_v54 }
 0x207   : > { %16087 = vst [vmem:[#allocation44_spill] sm:$0xff] %v12810_v7  ;;  %2169 = vmatprep.mubr.f32.mxu1 %v12571_v49  ;;  %v8640_v1 = vpop.f32.mrb[42].mxu1 }
 0x208   : > { %2482 = vmatmul.mubr.f32.gmra.mrb[100].mxu0 %v12576_v61  ;;  %v12816_v3 = vadd.f32 %v8640_v1, %v12736_v18  ;;  %v1116_v2 = vpop.f32.mrb[43].mxu1 }
 0x209   : > { %2486 = vmatprep.mubr.f32.mxu0 %v12581_v39  ;;  %v12820_v5 = vadd.f32 %v12730_v25, %v1116_v2 }
 0x20a   : > { %16088 = vst [vmem:[#allocation45_spill] sm:$0xff] %v12816_v3  ;;  %2170 = vmatmul.mubr.f32.gmra.mrb[100].mxu1 %v12576_v61 }
 0x20b   : > { %16089 = vst [vmem:[#allocation46_spill] sm:$0xff] %v12820_v5  ;;  %2175 = vmatprep.mubr.f32.mxu1 %v12581_v39  ;;  %v8643_v38 = vpop.f32.mrb[44].mxu1 }
 0x20c   : > { %2487 = vmatmul.mubr.f32.gmra.mrb[102].mxu0 %v12586_v9  ;;  %v12826_v54 = vadd.f32 %v8643_v38, %v12748_v63  ;;  %v1126_v49 = vpop.f32.mrb[45].mxu1 }
 0x20d   : > { %2491 = vmatprep.mubr.f32.mxu0 %v12591_v44  ;;  %v12830_v18 = vadd.f32 %v12742_v55, %v1126_v49 }
 0x20e   : > { %16090 = vst [vmem:[#allocation47_spill] sm:$0xff] %v12826_v54  ;;  %2176 = vmatmul.mubr.f32.gmra.mrb[102].mxu1 %v12586_v9 }
 0x20f   : > { %16091 = vst [vmem:[#allocation48_spill] sm:$0xff] %v12830_v18  ;;  %2181 = vmatprep.mubr.f32.mxu1 %v12591_v44  ;;  %v8646_v25 = vpop.f32.mrb[46].mxu1 }
 0x210   : > { %2492 = vmatmul.mubr.f32.gmra.mrb[104].mxu0 %v12596_v31  ;;  %v12836_v61 = vadd.f32 %v8646_v25, %v12760_v46  ;;  %v1136_v39 = vpop.f32.mrb[47].mxu1 }
 0x211   : > { %2496 = vmatprep.mubr.f32.mxu0 %v12601_v56  ;;  %v12840_v63 = vadd.f32 %v12754_v60, %v1136_v39 }
 0x212   : > { %16092 = vst [vmem:[#allocation49_spill] sm:$0xff] %v12836_v61  ;;  %2182 = vmatmul.mubr.f32.gmra.mrb[104].mxu1 %v12596_v31  ;;  %v16096_v31 = vld [vmem:[#allocation19_spill] sm:$0xff] }
 0x213   : > { %16093 = vst [vmem:[#allocation50_spill] sm:$0xff] %v12840_v63  ;;  %v12843_v55 = vpop.f32.mrb[0].mxu0  ;;  %2187 = vmatprep.mubr.f32.mxu1 %v12601_v56 }
 0x214   : > { %2497 = vmatmul.mubr.f32.gmra.mrb[106].mxu0 %v12606_v50  ;;  %v12847_v9 = vpop.f32.mrb[1].mxu0 }
 0x215   : > { %16094 = vst [vmem:[#allocation51_spill] sm:$0xff] %v12847_v9  ;;  %2501 = vmatprep.mubr.f32.mxu0 %v12611_v37 }
 0x216   : > { %2188 = vmatmul.mubr.f32.gmra.mrb[106].mxu1 %v12606_v50  ;;  %v16099_v50 = vld [vmem:[#allocation21_spill] sm:$0xff] }
 0x217   : > { %v12851_v44 = vpop.f32.mrb[2].mxu0  ;;  %2193 = vmatprep.mubr.f32.mxu1 %v12611_v37 }
 0x218   : > { %2502 = vmatmul.mubr.f32.gmra.mrb[108].mxu0 %v12618_v47  ;;  %v12855_v60 = vpop.f32.mrb[3].mxu0 }
 0x219   : > { %16095 = vst [vmem:[#allocation52_spill] sm:$0xff] %v12855_v60  ;;  %2506 = vmatprep.mubr.f32.mxu0 %v16096_v31 }
 0x21a   : > { %2194 = vmatmul.mubr.f32.gmra.mrb[108].mxu1 %v12618_v47  ;;  %v16102_v47 = vld [vmem:[#allocation23_spill] sm:$0xff] }
 0x21b   : > { %v12859_v56 = vpop.f32.mrb[4].mxu0  ;;  %2199 = vmatprep.mubr.f32.mxu1 %v16096_v31 }
 0x21c   : > { %2507 = vmatmul.mubr.f32.gmra.mrb[110].mxu0 %v16097_v52  ;;  %v12863_v16 = vpop.f32.mrb[5].mxu0 }
 0x21d   : > { %16098 = vst [vmem:[#allocation19_spill] sm:$0xff] %v12863_v16  ;;  %8735 = vmatprep.mubr.f32.mxu0 %v16099_v50  ;;  %v16245_v16 = vmov 0 }
 0x21e   : > { %2200 = vmatmul.mubr.f32.gmra.mrb[110].mxu1 %v16097_v52 }
 0x21f   : > { %v12867_v37 = vpop.f32.mrb[6].mxu0  ;;  %2270 = vmatprep.mubr.f32.mxu1 %v16071_v51 }
 0x220   : > { %8736 = vmatmul.mubr.f32.vlgmr.msra.gmra.mrb[112].mxu0 %v16100_v28  ;;  %v12871_v29 = vpop.f32.mrb[7].mxu0 }
 0x221   : > { %16101 = vst [vmem:[#allocation20_spill] sm:$0xff] %v12871_v29  ;;  %8738 = vmatprep.mubr.f32.mxu0 %v16102_v47 }
 0x222   : > { %2271 = vmatmul.mubr.f32.vlgmr.msra.gmra.mrb[80].mxu1 %v16099_v50 }
 0x223   : > { %v12875_v46 = vpop.f32.mrb[8].mxu0  ;;  %2276 = vmatprep.mubr.f32.mxu1 %v16071_v51 }
 0x224   : > { %8739 = vmatmul.mubr.f32.gmra.mrb[114].mxu0 %v16103_v34  ;;  %v12879_v30 = vpop.f32.mrb[9].mxu0 }
 0x225   : > { %16104 = vst [vmem:[#allocation21_spill] sm:$0xff] %v12879_v30  ;;  %8741 = vmatprep.mubr.f32.mxu0 %v16105_v10 }
 0x226   : > { %2277 = vmatmul.mubr.f32.gmra.mrb[82].mxu1 %v16100_v28 }
 0x227   : > { %v12883_v59 = vpop.f32.mrb[10].mxu0  ;;  %2282 = vmatprep.mubr.f32.mxu1 %v16071_v51 }
 0x228   : > { %8742 = vmatmul.mubr.f32.gmra.mrb[116].mxu0 %v16106_v19  ;;  %v12887_v15 = vpop.f32.mrb[11].mxu0 }
 0x229   : > { %16107 = vst [vmem:[#allocation22_spill] sm:$0xff] %v12887_v15  ;;  %8744 = vmatprep.mubr.f32.mxu0 %v16108_v14 }
 0x22a   : > { %2283 = vmatmul.mubr.f32.gmra.mrb[84].mxu1 %v16102_v47 }
 0x22b   : > { %v12891_v43 = vpop.f32.mrb[12].mxu0  ;;  %2288 = vmatprep.mubr.f32.mxu1 %v16071_v51 }
 0x22c   : > { %8745 = vmatmul.mubr.f32.gmra.mrb[118].mxu0 %v16109_v17  ;;  %v12895_v35 = vpop.f32.mrb[13].mxu0 }
 0x22d   : > { %16110 = vst [vmem:[#allocation23_spill] sm:$0xff] %v12895_v35  ;;  %8747 = vmatprep.mubr.f32.mxu0 %v16111_v57 }
 0x22e   : > { %2289 = vmatmul.mubr.f32.gmra.mrb[86].mxu1 %v16103_v34 }
 0x22f   : > { %v12899_v33 = vpop.f32.mrb[14].mxu0  ;;  %2294 = vmatprep.mubr.f32.mxu1 %v16071_v51 }
 0x230   : > { %8748 = vmatmul.mubr.f32.gmra.mrb[120].mxu0 %v16112_v6  ;;  %v12903_v21 = vpop.f32.mrb[15].mxu0 }
 0x231   : > { %16113 = vst [vmem:[#allocation24_spill] sm:$0xff] %v12903_v21  ;;  %8750 = vmatprep.mubr.f32.mxu0 %v16114_v58 }
 0x232   : > { %2295 = vmatmul.mubr.f32.gmra.mrb[88].mxu1 %v16105_v10 }
 0x233   : > { %v12907_v53 = vpop.f32.mrb[16].mxu0  ;;  %2300 = vmatprep.mubr.f32.mxu1 %v16071_v51 }
 0x234   : > { %8751 = vmatmul.mubr.f32.gmra.mrb[122].mxu0 %v16115_v0  ;;  %v12911_v12 = vpop.f32.mrb[17].mxu0 }
 0x235   : > { %16116 = vst [vmem:[#allocation26_spill] sm:$0xff] %v12911_v12  ;;  %8753 = vmatprep.mubr.f32.mxu0 %v16117_v4 }
 0x236   : > { %2301 = vmatmul.mubr.f32.gmra.mrb[90].mxu1 %v16106_v19 }
 0x237   : > { %v12915_v11 = vpop.f32.mrb[18].mxu0  ;;  %2306 = vmatprep.mubr.f32.mxu1 %v16071_v51 }
 0x238   : > { %8754 = vmatmul.mubr.f32.gmra.mrb[124].mxu0 %v12709_v32  ;;  %v12919_v8 = vpop.f32.mrb[19].mxu0 }
 0x239   : > { %16118 = vst [vmem:[#allocation27_spill] sm:$0xff] %v12919_v8  ;;  %8756 = vmatprep.mubr.f32.mxu0 %v12718_v26 }
 0x23a   : > { %2307 = vmatmul.mubr.f32.gmra.mrb[92].mxu1 %v16108_v14 }
 0x23b   : > { %v12923_v62 = vpop.f32.mrb[20].mxu0  ;;  %2312 = vmatprep.mubr.f32.mxu1 %v16071_v51 }
 0x23c   : > { %8757 = vmatmul.mubr.f32.gmra.mrb[126].mxu0 %v16119_v42  ;;  %v12927_v27 = vpop.f32.mrb[21].mxu0 }
 0x23d   : > { %16120 = vst [vmem:[#allocation29_spill] sm:$0xff] %v12927_v27  ;;  %8791 = vmatprep.mubr.msk.f32.mxu0 %vm15923_vm0, %v12843_v55 }
 0x23e   : > { %2313 = vmatmul.mubr.f32.gmra.mrb[94].mxu1 %v16109_v17 }
 0x23f   : > { %v12932_v13 = vpop.f32.mrb[22].mxu0  ;;  %2318 = vmatprep.mubr.f32.mxu1 %v16071_v51 }
 0x240   : > { %v12935_v1 = vpop.f32.mrb[23].mxu0 }
 0x241   : > { %16121 = vst [vmem:[#allocation30_spill] sm:$0xff] %v12935_v1 }
 0x242   : > { %2319 = vmatmul.mubr.f32.gmra.mrb[96].mxu1 %v16111_v57 }
 0x243   : > { %v12938_v2 = vpop.f32.mrb[24].mxu0  ;;  %2324 = vmatprep.mubr.f32.mxu1 %v16071_v51 }
 0x244   : > { %v12941_v38 = vpop.f32.mrb[25].mxu0 }
 0x245   : > { %16122 = vst [vmem:[#allocation32_spill] sm:$0xff] %v12941_v38 }
 0x246   : > { %2325 = vmatmul.mubr.f32.gmra.mrb[98].mxu1 %v16112_v6 }
 0x247   : > { %v12944_v49 = vpop.f32.mrb[26].mxu0  ;;  %2330 = vmatprep.mubr.f32.mxu1 %v16071_v51 }
 0x248   : > { %v12947_v25 = vpop.f32.mrb[27].mxu0 }
 0x249   : > { %16123 = vst [vmem:[#allocation25_spill] sm:$0xff] %v12947_v25 }
 0x24a   : > { %2331 = vmatmul.mubr.f32.gmra.mrb[100].mxu1 %v16114_v58 }
 0x24b   : > { %v12950_v39 = vpop.f32.mrb[28].mxu0  ;;  %2336 = vmatprep.mubr.f32.mxu1 %v16071_v51 }
 0x24c   : > { %v12953_v31 = vpop.f32.mrb[29].mxu0 }
 0x24d   : > { %16124 = vst [vmem:[#allocation28_spill] sm:$0xff] %v12953_v31 }
 0x24e   : > { %2337 = vmatmul.mubr.f32.gmra.mrb[102].mxu1 %v16115_v0 }
 0x24f   : > { %v12956_v52 = vpop.f32.mrb[30].mxu0  ;;  %2342 = vmatprep.mubr.f32.mxu1 %v16071_v51 }
 0x250   : > { %v12959_v50 = vpop.f32.mrb[31].mxu0 }
 0x251   : > { %16125 = vst [vmem:[#allocation31_spill] sm:$0xff] %v12959_v50 }
 0x252   : > { %2343 = vmatmul.mubr.f32.gmra.mrb[104].mxu1 %v16117_v4 }
 0x253   : > { %2348 = vmatprep.mubr.f32.mxu1 %v16071_v51  ;;  %v7903_v28 = vpop.f32.mrb[32].mxu0 }
 0x254   : > { %v7904_v47 = vpop.f32.mrb[33].mxu0 }
 0x255   : > { %v12963_v34 = vadd.f32 %v7904_v47, %v7903_v28 }
 0x256   : > { %2349 = vmatmul.mubr.f32.gmra.mrb[106].mxu1 %v12709_v32 }
 0x257   : > { %2354 = vmatprep.mubr.f32.mxu1 %v16071_v51  ;;  %v7906_v10 = vpop.f32.mrb[34].mxu0 }
 0x258   : > { %v7907_v19 = vpop.f32.mrb[35].mxu0 }
 0x259   : > { %v12967_v14 = vadd.f32 %v7907_v19, %v7906_v10 }
 0x25a   : > { %2355 = vmatmul.mubr.f32.gmra.mrb[108].mxu1 %v12718_v26 }
 0x25b   : > { %2360 = vmatprep.mubr.f32.mxu1 %v16071_v51  ;;  %v7909_v17 = vpop.f32.mrb[36].mxu0 }
 0x25c   : > { %v7910_v57 = vpop.f32.mrb[37].mxu0 }
 0x25d   : > { %v12971_v6 = vadd.f32 %v7910_v57, %v7909_v17 }
 0x25e   : > { %2361 = vmatmul.mubr.f32.gmra.mrb[110].mxu1 %v16119_v42 }
 0x25f   : > { %v7912_v58 = vpop.f32.mrb[38].mxu0 }
 0x260   : > { %v7913_v0 = vpop.f32.mrb[39].mxu0 }
 0x261   : > { %v12974_v4 = vadd.f32 %v7913_v0, %v7912_v58 }
 0x263   : > { %v7915_v32 = vpop.f32.mrb[40].mxu0 }
 0x264   : > { %v7916_v28 = vpop.f32.mrb[41].mxu0 }
 0x265   : > { %v12976_v47 = vadd.f32 %v7916_v28, %v7915_v32 }
 0x267   : > { %v7918_v10 = vpop.f32.mrb[42].mxu0 }
 0x268   : > { %v7919_v19 = vpop.f32.mrb[43].mxu0 }
 0x269   : > { %v12978_v61 = vadd.f32 %v7919_v19, %v7918_v10  ;;  %v16126_v10 = vmov 0 }
 0x26a   : > { %v16127_v10 = vsel %vm12990_vm1, 4294967295, %v16126_v10 }
 0x26b   : > { %v7921_v26 = vpop.f32.mrb[44].mxu0  ;;  %16128 = vst [vmem:[#allocation33_spill] sm:$0xff] %v16127_v10 }
 0x26c   : > { %v7922_v51 = vpop.f32.mrb[45].mxu0 }
 0x26d   : > { %v12980_v63 = vadd.f32 %v7922_v51, %v7921_v26 }
 0x26f   : > { %v7924_v17 = vpop.f32.mrb[46].mxu0 }
 0x270   : > { %v7925_v57 = vpop.f32.mrb[47].mxu0 }
 0x271   : > { %v12982_v54 = vadd.f32 %v7925_v57, %v7924_v17 }
 0x273   : > { %v7927_v42 = vpop.f32.mrb[48].mxu0 }
 0x274   : > { %v1516_v18 = vpop.f32.mrb[48].mxu1  ;;  %v7928_v58 = vpop.f32.mrb[49].mxu0 }
 0x275   : > { %v12984_v0 = vpop.f32.mrb[49].mxu1  ;;  %v12986_v3 = vadd.f32 %v7928_v58, %v7927_v42 }
 0x277   : > { %v7930_v32 = vpop.f32.mrb[50].mxu0 }
 0x278   : > { %v1522_v28 = vpop.f32.mrb[50].mxu1  ;;  %v7931_v51 = vpop.f32.mrb[51].mxu0 }
 0x279   : > { %v9967_v19 = vpack.c.bf16 %v1522_v28, %v1516_v18  ;;  %v12994_v26 = vpop.f32.mrb[51].mxu1  ;;  %v10874_v17 = vpack.i.bf16 %v1522_v28, %v1516_v18  ;;  %v12996_v57 = vadd.f32 %v7931_v51, %v7930_v32 }
 0x27a   : > { %v13002_v42 = vpack.c.bf16 %v12994_v26, %v12984_v0 }
 0x27b   : > { %10875 = vrot.lane.b32.xlu0 %v10874_v17, %s11885_s28  ;;  %9969 = vmatprep.subr.msk.bf16.mxu0 %vm12990_vm1, %v9967_v19  ;;  %v7933_v58 = vpop.f32.mrb[52].mxu0 }
 0x27c   : > { %16129 = vst [vmem:[#allocation34_spill] sm:$0xff] %v13002_v42  ;;  %v1528_v22 = vpop.f32.mrb[52].mxu1  ;;  %9972 = vmatpush3.bf16.xpose.msk.msra.mxu0 %vm12990_vm1, %v9967_v19  ;;  %v7934_v18 = vpop.f32.mrb[53].mxu0 }
 0x27d   : > { %v13009_v32 = vpop.f32.mrb[53].mxu1  ;;  %v13011_v28 = vadd.f32 %v7934_v18, %v7933_v58 }
 0x27e   : > { %16130 = vst [vmem:[#allocation53_spill] sm:$0xff] %v13009_v32 }
 0x27f   : > { %v7936_v51 = vpop.f32.mrb[54].mxu0 }
 0x280   : > { %v1534_v5 = vpop.f32.mrb[54].mxu1  ;;  %v7937_v7 = vpop.f32.mrb[55].mxu0 }
 0x281   : > { %v10879_v20 = vpack.i.bf16 %v1534_v5, %v1528_v22  ;;  %v9973_v41 = vpack.c.bf16 %v1534_v5, %v1528_v22  ;;  %v13013_v48 = vpop.f32.mrb[55].mxu1  ;;  %v13015_v17 = vadd.f32 %v7937_v7, %v7936_v51 }
 0x282   : > { %16131 = vst [vmem:[#allocation54_spill] sm:$0xff] %v13013_v48  ;;  %v13021_v19 = vpack.c.bf16 %v13013_v48, %v13009_v32 }
 0x283   : > { %10880 = vrot.lane.b32.xlu0 %v10879_v20, %s11885_s28  ;;  %9975 = vmatprep.subr.msk.bf16.mxu0 %vm12990_vm1, %v9973_v41  ;;  %v7939_v58 = vpop.f32.mrb[56].mxu0 }
 0x284   : > { %16132 = vst [vmem:[#allocation55_spill] sm:$0xff] %v13021_v19  ;;  %v1540_v18 = vpop.f32.mrb[56].mxu1  ;;  %9978 = vmatpush3.bf16.xpose.msk.msra.mxu0 %vm12990_vm1, %v9973_v41  ;;  %v7940_v22 = vpop.f32.mrb[57].mxu0 }
 0x285   : > { %v13028_v7 = vpop.f32.mrb[57].mxu1  ;;  %v13030_v5 = vadd.f32 %v7940_v22, %v7939_v58 }
 0x287   : > { %v7942_v51 = vpop.f32.mrb[58].mxu0 }
 0x288   : > { %v1546_v24 = vpop.f32.mrb[58].mxu1  ;;  %v7943_v23 = vpop.f32.mrb[59].mxu0 }
 0x289   : > { %v9979_v45 = vpack.c.bf16 %v1546_v24, %v1540_v18  ;;  %v13032_v36 = vpop.f32.mrb[59].mxu1  ;;  %v10884_v20 = vpack.i.bf16 %v1546_v24, %v1540_v18  ;;  %v13034_v40 = vadd.f32 %v7943_v23, %v7942_v51 }
 0x28a   : > { %v13040_v41 = vpack.c.bf16 %v13032_v36, %v13028_v7 }
 0x28b   : > { %10885 = vrot.lane.b32.xlu1 %v10884_v20, %s11885_s28  ;;  %9981 = vmatprep.subr.msk.bf16.mxu0 %vm12990_vm1, %v9979_v45  ;;  %v7945_v58 = vpop.f32.mrb[60].mxu0 }
 0x28c   : > { %16133 = vst [vmem:[#allocation56_spill] sm:$0xff] %v13040_v41  ;;  %v1552_v22 = vpop.f32.mrb[60].mxu1  ;;  %9984 = vmatpush3.bf16.xpose.msk.msra.mxu0 %vm12990_vm1, %v9979_v45  ;;  %v7946_v24 = vpop.f32.mrb[61].mxu0 }
 0x28d   : > { %v13047_v23 = vpop.f32.mrb[61].mxu1  ;;  %v13049_v18 = vadd.f32 %v7946_v24, %v7945_v58 }
 0x28f   : > { %v7948_v51 = vpop.f32.mrb[62].mxu0 }
 0x290   : > { %v1558_v32 = vpop.f32.mrb[62].mxu1  ;;  %v7949_v48 = vpop.f32.mrb[63].mxu0 }
 0x291   : > { %v10889_v50 = vpack.i.bf16 %v1558_v32, %v1552_v22  ;;  %v9985_v31 = vpack.c.bf16 %v1558_v32, %v1552_v22  ;;  %v13051_v25 = vpop.f32.mrb[63].mxu1  ;;  %v13053_v20 = vadd.f32 %v7949_v48, %v7948_v51 }
 0x292   : > { %v13059_v45 = vpack.c.bf16 %v13051_v25, %v13047_v23 }
 0x293   : > { %10890 = vrot.lane.b32.xlu1 %v10889_v50, %s11885_s28  ;;  %9987 = vmatprep.subr.msk.bf16.mxu0 %vm12990_vm1, %v9985_v31  ;;  %v8681_v58 = vpop.f32.mrb[64].mxu0 }
 0x294   : > { %16134 = vst [vmem:[#allocation57_spill] sm:$0xff] %v13059_v45  ;;  %v1564_v24 = vpop.f32.mrb[64].mxu1  ;;  %9990 = vmatpush3.bf16.xpose.msk.msra.mxu0 %vm12990_vm1, %v9985_v31  ;;  %v13067_v48 = vadd.f32 %v8681_v58, %v12967_v14  ;;  %v1822_v32 = vpop.f32.mrb[65].mxu0 }
 0x295   : > { %v13069_v22 = vpop.f32.mrb[65].mxu1  ;;  %v13072_v51 = vadd.f32 %v12963_v34, %v1822_v32 }
 0x296   : > { %16135 = vst [vmem:[#allocation58_spill] sm:$0xff] %v13067_v48  ;;  %16136 = vst [vmem:[#allocation59_spill] sm:$0xff] %v13069_v22 }
 0x297   : > { %16137 = vst [vmem:[#allocation60_spill] sm:$0xff] %v13072_v51  ;;  %v13078_v38 = vpack.c.bf16 %v13067_v48, %v13072_v51  ;;  %v8684_v1 = vpop.f32.mrb[66].mxu0 }
 0x298   : > { %v1570_v27 = vpop.f32.mrb[66].mxu1  ;;  %v13081_v31 = vadd.f32 %v8684_v1, %v12974_v4  ;;  %v1832_v14 = vpop.f32.mrb[67].mxu0 }
 0x299   : > { %16138 = vst [vmem:[#allocation61_spill] sm:$0xff] %v13078_v38  ;;  %v10894_v58 = vpack.i.bf16 %v1570_v27, %v1564_v24  ;;  %v9991_v8 = vpack.c.bf16 %v1570_v27, %v1564_v24  ;;  %v13083_v12 = vpop.f32.mrb[67].mxu1  ;;  %v13086_v34 = vadd.f32 %v12971_v6, %v1832_v14 }
 0x29a   : > { %16139 = vst [vmem:[#allocation62_spill] sm:$0xff] %v13081_v31  ;;  %16140 = vst [vmem:[#allocation63_spill] sm:$0xff] %v13083_v12  ;;  %v13092_v50 = vpack.c.bf16 %v13083_v12, %v13069_v22 }
 0x29b   : > { %16141 = vst [vmem:[#allocation64_spill] sm:$0xff] %v13086_v34  ;;  %10895 = vrot.lane.b32.xlu0 %v10894_v58, %s11885_s28  ;;  %9993 = vmatprep.subr.msk.bf16.mxu0 %vm12990_vm1, %v9991_v8  ;;  %v13101_v1 = vpack.c.bf16 %v13081_v31, %v13086_v34  ;;  %v8687_v6 = vpop.f32.mrb[68].mxu0 }
 0x29c   : > { %16142 = vst [vmem:[#allocation65_spill] sm:$0xff] %v13092_v50  ;;  %v1576_v4 = vpop.f32.mrb[68].mxu1  ;;  %9996 = vmatpush3.bf16.xpose.msk.msra.mxu0 %vm12990_vm1, %v9991_v8  ;;  %v13106_v24 = vadd.f32 %v8687_v6, %v12978_v61  ;;  %v1842_v14 = vpop.f32.mrb[69].mxu0 }
 0x29d   : > { %16143 = vst [vmem:[#allocation66_spill] sm:$0xff] %v13101_v1  ;;  %v13108_v58 = vpop.f32.mrb[69].mxu1  ;;  %v13111_v32 = vadd.f32 %v12976_v47, %v1842_v14 }
 0x29e   : > { %16144 = vst [vmem:[#allocation67_spill] sm:$0xff] %v13106_v24  ;;  %16145 = vst [vmem:[#allocation68_spill] sm:$0xff] %v13108_v58 }
 0x29f   : > { %16146 = vst [vmem:[#allocation69_spill] sm:$0xff] %v13111_v32  ;;  %v13117_v34 = vpack.c.bf16 %v13106_v24, %v13111_v32  ;;  %v8690_v31 = vpop.f32.mrb[70].mxu0 }
 0x2a0   : > { %v1582_v1 = vpop.f32.mrb[70].mxu1  ;;  %v13120_v8 = vadd.f32 %v8690_v31, %v12982_v54  ;;  %v1852_v61 = vpop.f32.mrb[71].mxu0 }
 0x2a1   : > { %16147 = vst [vmem:[#allocation70_spill] sm:$0xff] %v13117_v34  ;;  %v10899_v6 = vpack.i.bf16 %v1582_v1, %v1576_v4  ;;  %v9997_v38 = vpack.c.bf16 %v1582_v1, %v1576_v4  ;;  %v13122_v51 = vpop.f32.mrb[71].mxu1  ;;  %v13125_v47 = vadd.f32 %v12980_v63, %v1852_v61 }
 0x2a2   : > { %16148 = vst [vmem:[#allocation71_spill] sm:$0xff] %v13120_v8  ;;  %16149 = vst [vmem:[#allocation72_spill] sm:$0xff] %v13122_v51  ;;  %v13131_v27 = vpack.c.bf16 %v13122_v51, %v13108_v58 }
 0x2a3   : > { %16150 = vst [vmem:[#allocation73_spill] sm:$0xff] %v13125_v47  ;;  %10900 = vrot.lane.b32.xlu1 %v10899_v6, %s11885_s28  ;;  %9999 = vmatprep.subr.msk.bf16.mxu0 %vm12990_vm1, %v9997_v38  ;;  %v13140_v31 = vpack.c.bf16 %v13120_v8, %v13125_v47  ;;  %v8693_v63 = vpop.f32.mrb[72].mxu0 }
 0x2a4   : > { %16151 = vst [vmem:[#allocation74_spill] sm:$0xff] %v13131_v27  ;;  %v1588_v1 = vpop.f32.mrb[72].mxu1  ;;  %10002 = vmatpush3.bf16.xpose.msk.msra.mxu0 %vm12990_vm1, %v9997_v38  ;;  %v13145_v4 = vadd.f32 %v8693_v63, %v12996_v57  ;;  %v1862_v61 = vpop.f32.mrb[73].mxu0 }
 0x2a5   : > { %16152 = vst [vmem:[#allocation75_spill] sm:$0xff] %v13140_v31  ;;  %v13147_v6 = vpop.f32.mrb[73].mxu1  ;;  %v13150_v14 = vadd.f32 %v12986_v3, %v1862_v61 }
 0x2a6   : > { %16153 = vst [vmem:[#allocation76_spill] sm:$0xff] %v13145_v4  ;;  %16154 = vst [vmem:[#allocation77_spill] sm:$0xff] %v13147_v6 }
 0x2a7   : > { %16155 = vst [vmem:[#allocation78_spill] sm:$0xff] %v13150_v14  ;;  %v13156_v31 = vpack.c.bf16 %v13145_v4, %v13150_v14  ;;  %v8696_v34 = vpop.f32.mrb[74].mxu0 }
 0x2a8   : > { %v1594_v47 = vpop.f32.mrb[74].mxu1  ;;  %v13159_v38 = vadd.f32 %v8696_v34, %v13015_v17  ;;  %v1872_v57 = vpop.f32.mrb[75].mxu0 }
 0x2a9   : > { %16156 = vst [vmem:[#allocation79_spill] sm:$0xff] %v13156_v31  ;;  %v10904_v63 = vpack.i.bf16 %v1594_v47, %v1588_v1  ;;  %v10003_v8 = vpack.c.bf16 %v1594_v47, %v1588_v1  ;;  %v13161_v32 = vpop.f32.mrb[75].mxu1  ;;  %v13164_v3 = vadd.f32 %v13011_v28, %v1872_v57 }
 0x2aa   : > { %16157 = vst [vmem:[#allocation80_spill] sm:$0xff] %v13159_v38  ;;  %16158 = vst [vmem:[#allocation81_spill] sm:$0xff] %v13161_v32  ;;  %v13170_v54 = vpack.c.bf16 %v13161_v32, %v13147_v6  ;;  %v16233_v32 = vmov 0 }
 0x2ab   : > { %16159 = vst [vmem:[#allocation82_spill] sm:$0xff] %v13164_v3  ;;  %10905 = vrot.lane.b32.xlu0 %v10904_v63, %s11885_s28  ;;  %10005 = vmatprep.subr.msk.bf16.mxu0 %vm12990_vm1, %v10003_v8  ;;  %v13179_v34 = vpack.c.bf16 %v13159_v38, %v13164_v3  ;;  %v8699_v28 = vpop.f32.mrb[76].mxu0 }
 0x2ac   : > { %16160 = vst [vmem:[#allocation83_spill] sm:$0xff] %v13170_v54  ;;  %v1600_v47 = vpop.f32.mrb[76].mxu1  ;;  %10008 = vmatpush3.bf16.xpose.msk.msra.mxu0 %vm12990_vm1, %v10003_v8  ;;  %v13184_v1 = vadd.f32 %v8699_v28, %v13034_v40  ;;  %v1882_v57 = vpop.f32.mrb[77].mxu0  ;;  %v16251_v54 = vmov 0 }
 0x2ad   : > { %16161 = vst [vmem:[#allocation84_spill] sm:$0xff] %v13179_v34  ;;  %v13186_v63 = vpop.f32.mrb[77].mxu1  ;;  %v13189_v61 = vadd.f32 %v13030_v5, %v1882_v57 }
 0x2ae   : > { %16162 = vst [vmem:[#allocation85_spill] sm:$0xff] %v13184_v1  ;;  %16163 = vst [vmem:[#allocation86_spill] sm:$0xff] %v13186_v63 }
 0x2af   : > { %16164 = vst [vmem:[#allocation87_spill] sm:$0xff] %v13189_v61  ;;  %3255 = vrot.lane.b32.xlu0 %v12843_v55, %s11885_s28  ;;  %v13197_v14 = vpack.c.bf16 %v13184_v1, %v13189_v61  ;;  %v8702_v8 = vpop.f32.mrb[78].mxu0 }
 0x2b0   : > { %v1606_v4 = vpop.f32.mrb[78].mxu1  ;;  %v13200_v40 = vadd.f32 %v8702_v8, %v13053_v20  ;;  %v1892_v28 = vpop.f32.mrb[79].mxu0 }
 0x2b1   : > { %16165 = vst [vmem:[#allocation88_spill] sm:$0xff] %v13197_v14  ;;  %v10909_v3 = vpack.i.bf16 %v1606_v4, %v1600_v47  ;;  %v10009_v38 = vpack.c.bf16 %v1606_v4, %v1600_v47  ;;  %v13202_v5 = vpop.f32.mrb[79].mxu1  ;;  %v13205_v57 = vadd.f32 %v13049_v18, %v1892_v28 }
 0x2b2   : > { %16166 = vst [vmem:[#allocation89_spill] sm:$0xff] %v13200_v40  ;;  %16167 = vst [vmem:[#allocation90_spill] sm:$0xff] %v13202_v5  ;;  %v13211_v17 = vpack.c.bf16 %v13202_v5, %v13186_v63 }
 0x2b3   : > { %16168 = vst [vmem:[#allocation91_spill] sm:$0xff] %v13205_v57  ;;  %10910 = vrot.lane.b32.xlu1 %v10909_v3, %s11885_s28  ;;  %10011 = vmatprep.subr.msk.bf16.mxu0 %vm12990_vm1, %v10009_v38  ;;  %v13220_v4 = vpack.c.bf16 %v13200_v40, %v13205_v57  ;;  %v8015_v18 = vpop.f32.mrb[80].mxu0 }
 0x2b4   : > { %16169 = vst [vmem:[#allocation92_spill] sm:$0xff] %v13211_v17  ;;  %3259 = vrot.lane.b32.xlu0 %v12859_v56, %s11885_s28  ;;  %10014 = vmatpush3.bf16.xpose.msk.msra.mxu0 %vm12990_vm1, %v10009_v38  ;;  %v8016_v47 = vpop.f32.mrb[81].mxu0 }
 0x2b5   : > { %16170 = vst [vmem:[#allocation93_spill] sm:$0xff] %v13220_v4  ;;  %v13226_v8 = vadd.f32 %v8016_v47, %v8015_v18 }
 0x2b7   : > { %3257 = vrot.lane.b32.xlu1 %v12851_v44, %s11885_s28  ;;  %v8018_v3 = vpop.f32.mrb[82].mxu0 }
 0x2b8   : > { %3263 = vrot.lane.b32.xlu0 %v12875_v46, %s11885_s28  ;;  %v8019_v28 = vpop.f32.mrb[83].mxu0 }
 0x2b9   : > { %v13232_v20 = vadd.f32 %v8019_v28, %v8018_v3 }
 0x2bb   : > { %8792 = vmatmul.mubr.msk.f32.vlgmr.msra.gmra.mrb[128].mxu0 %vm15923_vm0, %v12851_v44  ;;  %3261 = vrot.lane.b32.xlu1 %v12867_v37, %s11885_s28  ;;  %v8021_v38 = vpop.f32.mrb[84].mxu0 }
 0x2bc   : > { %3267 = vrot.lane.b32.xlu0 %v12891_v43, %s11885_s28  ;;  %8794 = vmatprep.mubr.msk.f32.mxu0 %vm15923_vm0, %v12859_v56  ;;  %v8022_v18 = vpop.f32.mrb[85].mxu0 }
 0x2bd   : > { %v13242_v47 = vadd.f32 %v8022_v18, %v8021_v38 }
 0x2bf   : > { %8795 = vmatmul.mubr.msk.f32.gmra.mrb[130].mxu0 %vm15923_vm0, %v12867_v37  ;;  %3265 = vrot.lane.b32.xlu1 %v12883_v59, %s11885_s28  ;;  %v8024_v44 = vpop.f32.mrb[86].mxu0 }
 0x2c0   : > { %3271 = vrot.lane.b32.xlu0 %v12907_v53, %s11885_s28  ;;  %8797 = vmatprep.mubr.msk.f32.mxu0 %vm15923_vm0, %v12875_v46  ;;  %v8025_v3 = vpop.f32.mrb[87].mxu0 }
 0x2c1   : > { %v13252_v28 = vadd.f32 %v8025_v3, %v8024_v44 }
 0x2c3   : > { %8798 = vmatmul.mubr.msk.f32.gmra.mrb[132].mxu0 %vm15923_vm0, %v12883_v59  ;;  %3269 = vrot.lane.b32.xlu1 %v12899_v33, %s11885_s28  ;;  %v8027_v56 = vpop.f32.mrb[88].mxu0 }
 0x2c4   : > { %3275 = vrot.lane.b32.xlu0 %v12923_v62, %s11885_s28  ;;  %8800 = vmatprep.mubr.msk.f32.mxu0 %vm15923_vm0, %v12891_v43  ;;  %v8028_v37 = vpop.f32.mrb[89].mxu0 }
 0x2c5   : > { %v13262_v38 = vadd.f32 %v8028_v37, %v8027_v56 }
 0x2c7   : > { %8801 = vmatmul.mubr.msk.f32.gmra.mrb[134].mxu0 %vm15923_vm0, %v12899_v33  ;;  %3273 = vrot.lane.b32.xlu1 %v12915_v11, %s11885_s28  ;;  %v8030_v46 = vpop.f32.mrb[90].mxu0 }
 0x2c8   : > { %3279 = vrot.lane.b32.xlu0 %v12938_v2, %s11885_s28  ;;  %8803 = vmatprep.mubr.msk.f32.mxu0 %vm15923_vm0, %v12907_v53  ;;  %v8031_v59 = vpop.f32.mrb[91].mxu0 }
 0x2c9   : > { %v13272_v18 = vadd.f32 %v8031_v59, %v8030_v46 }
 0x2cb   : > { %8804 = vmatmul.mubr.msk.f32.gmra.mrb[136].mxu0 %vm15923_vm0, %v12915_v11  ;;  %3277 = vrot.lane.b32.xlu1 %v12932_v13, %s11885_s28  ;;  %v8033_v43 = vpop.f32.mrb[92].mxu0 }
 0x2cc   : > { %3283 = vrot.lane.b32.xlu0 %v12950_v39, %s11885_s28  ;;  %8806 = vmatprep.mubr.msk.f32.mxu0 %vm15923_vm0, %v12923_v62  ;;  %v8034_v33 = vpop.f32.mrb[93].mxu0 }
 0x2cd   : > { %v13282_v44 = vadd.f32 %v8034_v33, %v8033_v43 }
 0x2cf   : > { %8807 = vmatmul.mubr.msk.f32.gmra.mrb[138].mxu0 %vm15923_vm0, %v12932_v13  ;;  %3281 = vrot.lane.b32.xlu1 %v12944_v49, %s11885_s28  ;;  %v8036_v53 = vpop.f32.mrb[94].mxu0 }
 0x2d0   : > { %8809 = vmatprep.mubr.msk.f32.mxu0 %vm15923_vm0, %v12938_v2  ;;  %v8037_v11 = vpop.f32.mrb[95].mxu0 }
 0x2d1   : > { %v13290_v3 = vadd.f32 %v8037_v11, %v8036_v53 }
 0x2d3   : > { %8810 = vmatmul.mubr.msk.f32.gmra.mrb[140].mxu0 %vm15923_vm0, %v12944_v49  ;;  %3285 = vrot.lane.b32.xlu1 %v12956_v52, %s11885_s28  ;;  %v8039_v62 = vpop.f32.mrb[96].mxu0 }
 0x2d4   : > { %8812 = vmatprep.mubr.msk.f32.mxu0 %vm15923_vm0, %v12950_v39  ;;  %v8040_v13 = vpop.f32.mrb[97].mxu0 }
 0x2d5   : > { %v13298_v56 = vadd.f32 %v8040_v13, %v8039_v62 }
 0x2d7   : > { %8813 = vmatmul.mubr.msk.f32.gmra.mrb[142].mxu0 %vm15923_vm0, %v12956_v52  ;;  %v8042_v2 = vpop.f32.mrb[98].mxu0 }
 0x2d8   : > { %v8043_v37 = vpop.f32.mrb[99].mxu0 }
 0x2d9   : > { %v13302_v46 = vadd.f32 %v8043_v37, %v8042_v2 }
 0x2db   : > { %v8045_v59 = vpop.f32.mrb[100].mxu0 }
 0x2dc   : > { %v8046_v43 = vpop.f32.mrb[101].mxu0 }
 0x2dd   : > { %v13304_v49 = vadd.f32 %v8046_v43, %v8045_v59 }
 0x2df   : > { %v8048_v33 = vpop.f32.mrb[102].mxu0 }
 0x2e0   : > { %v8049_v53 = vpop.f32.mrb[103].mxu0 }
 0x2e1   : > { %v13306_v11 = vadd.f32 %v8049_v53, %v8048_v33 }
 0x2e3   : > { %v8051_v55 = vpop.f32.mrb[104].mxu0 }
 0x2e4   : > { %v8052_v39 = vpop.f32.mrb[105].mxu0 }
 0x2e5   : > { %v13308_v57 = vadd.f32 %v8052_v39, %v8051_v55 }
 0x2e7   : > { %v8054_v62 = vpop.f32.mrb[106].mxu0 }
 0x2e8   : > { %v8055_v13 = vpop.f32.mrb[107].mxu0 }
 0x2e9   : > { %v13310_v40 = vadd.f32 %v8055_v13, %v8054_v62 }
 0x2eb   : > { %v8057_v52 = vpop.f32.mrb[108].mxu0 }
 0x2ec   : > { %v8058_v61 = vpop.f32.mrb[109].mxu0 }
 0x2ed   : > { %v10876_v2 = vpop.permute.xlu0 %10875  ;;  %v13312_v37 = vadd.f32 %v8058_v61, %v8057_v52 }
 0x2ee   : > { %v10878_v1 = vunpack.i.h.bf16 %v10876_v2  ;;  %v10877_v59 = vunpack.i.l.bf16 %v10876_v2 }
 0x2ef   : > { %v8060_v43 = vpop.f32.mrb[110].mxu0 }
 0x2f0   : > { %v10047_v4 = vpack.c.bf16 %v10878_v1, %v10877_v59  ;;  %v8061_v14 = vpop.f32.mrb[111].mxu0 }
 0x2f1   : > { %v13314_v33 = vadd.f32 %v8061_v14, %v8060_v43 }
 0x2f2   : > { %10049 = vmatprep.subr.msk.bf16.mxu0 %vm12990_vm1, %v10047_v4 }
 0x2f3   : > { %10052 = vmatpush3.bf16.xpose.msk.msra.mxu0 %vm12990_vm1, %v10047_v4  ;;  %v8737_v55 = vpop.f32.mrb[112].mxu0 }
 0x2f4   : > { %v13321_v53 = vadd.f32 %v8737_v55, %v13232_v20  ;;  %v2578_v39 = vpop.f32.mrb[113].mxu0 }
 0x2f5   : > { %v10881_v61 = vpop.permute.xlu0 %10880  ;;  %v13324_v62 = vadd.f32 %v13226_v8, %v2578_v39  ;;  %v2272_v13 = vpop.f32.mrb[80].mxu1 }
 0x2f6   : > { %16171 = vst [vmem:[#allocation94_spill] sm:$0xff] %v13321_v53  ;;  %v10883_v1 = vunpack.i.h.bf16 %v10881_v61  ;;  %v10882_v52 = vunpack.i.l.bf16 %v10881_v61  ;;  %v13326_v14 = vpop.f32.mrb[81].mxu1 }
 0x2f7   : > { %16172 = vst [vmem:[#allocation95_spill] sm:$0xff] %v13324_v62  ;;  %16173 = vst [vmem:[#allocation96_spill] sm:$0xff] %v13326_v14  ;;  %v13332_v4 = vpack.c.bf16 %v13321_v53, %v13324_v62  ;;  %v8740_v59 = vpop.f32.mrb[114].mxu0 }
 0x2f8   : > { %v10053_v20 = vpack.c.bf16 %v10883_v1, %v10882_v52  ;;  %v13335_v43 = vadd.f32 %v8740_v59, %v13252_v28  ;;  %v2588_v55 = vpop.f32.mrb[115].mxu0 }
 0x2f9   : > { %16174 = vst [vmem:[#allocation97_spill] sm:$0xff] %v13332_v4  ;;  %v13338_v8 = vadd.f32 %v13242_v47, %v2588_v55  ;;  %v2278_v39 = vpop.f32.mrb[82].mxu1 }
 0x2fa   : > { %16175 = vst [vmem:[#allocation98_spill] sm:$0xff] %v13335_v43  ;;  %10055 = vmatprep.subr.msk.bf16.mxu0 %vm12990_vm1, %v10053_v20  ;;  %v10914_v61 = vpack.i.bf16 %v2278_v39, %v2272_v13  ;;  %v10015_v34 = vpack.c.bf16 %v2278_v39, %v2272_v13  ;;  %v13342_v2 = vpop.f32.mrb[83].mxu1 }
 0x2fb   : > { %16176 = vst [vmem:[#allocation99_spill] sm:$0xff] %v13338_v8  ;;  %16177 = vst [vmem:[#allocation100_spill] sm:$0xff] %v13342_v2  ;;  %10058 = vmatpush3.bf16.xpose.msk.msra.mxu0 %vm12990_vm1, %v10053_v20  ;;  %v13350_v28 = vpack.c.bf16 %v13335_v43, %v13338_v8  ;;  %v8743_v47 = vpop.f32.mrb[116].mxu0  ;;  %v13356_v59 = vpack.c.bf16 %v13342_v2, %v13326_v14 }
 0x2fc   : > { %v13359_v13 = vadd.f32 %v8743_v47, %v13272_v18  ;;  %v2598_v55 = vpop.f32.mrb[117].mxu0  ;;  %10016 = vmatprep.subr.bf16.mxu1 %v10015_v34  ;;  %10915 = vrot.lane.b32.xlu0 %v10914_v61, %s11885_s28 }
 0x2fd   : > { %16178 = vst [vmem:[#allocation101_spill] sm:$0xff] %v13350_v28  ;;  %v10886_v20 = vpop.permute.xlu1 %10885  ;;  %v13363_v39 = vadd.f32 %v13262_v38, %v2598_v55  ;;  %10018 = vmatpush3.bf16.msra.mxu1 %v10015_v34  ;;  %v2284_v1 = vpop.f32.mrb[84].mxu1 }
 0x2fe   : > { %16179 = vst [vmem:[#allocation102_spill] sm:$0xff] %v13359_v13  ;;  %v10888_v8 = vunpack.i.h.bf16 %v10886_v20  ;;  %v10887_v43 = vunpack.i.l.bf16 %v10886_v20  ;;  %v13365_v52 = vpop.f32.mrb[85].mxu1 }
 0x2ff   : > { %16180 = vst [vmem:[#allocation103_spill] sm:$0xff] %v13363_v39  ;;  %16181 = vst [vmem:[#allocation104_spill] sm:$0xff] %v13365_v52  ;;  %v13371_v18 = vpack.c.bf16 %v13359_v13, %v13363_v39  ;;  %v8746_v47 = vpop.f32.mrb[118].mxu0 }
 0x300   : > { %v10059_v53 = vpack.c.bf16 %v10888_v8, %v10887_v43  ;;  %v13374_v61 = vadd.f32 %v8746_v47, %v13290_v3  ;;  %v2608_v38 = vpop.f32.mrb[119].mxu0 }
 0x301   : > { %16182 = vst [vmem:[#allocation105_spill] sm:$0xff] %v13371_v18  ;;  %v13377_v34 = vadd.f32 %v13282_v44, %v2608_v38  ;;  %v2290_v55 = vpop.f32.mrb[86].mxu1 }
 0x302   : > { %16183 = vst [vmem:[#allocation106_spill] sm:$0xff] %v13374_v61  ;;  %10061 = vmatprep.subr.msk.bf16.mxu0 %vm12990_vm1, %v10059_v53  ;;  %v10919_v20 = vpack.i.bf16 %v2290_v55, %v2284_v1  ;;  %v10019_v31 = vpack.c.bf16 %v2290_v55, %v2284_v1  ;;  %v13381_v62 = vpop.f32.mrb[87].mxu1 }
 0x303   : > { %16184 = vst [vmem:[#allocation107_spill] sm:$0xff] %v13377_v34  ;;  %16185 = vst [vmem:[#allocation108_spill] sm:$0xff] %v13381_v62  ;;  %10064 = vmatpush3.bf16.xpose.msk.msra.mxu0 %vm12990_vm1, %v10059_v53  ;;  %v13389_v3 = vpack.c.bf16 %v13374_v61, %v13377_v34  ;;  %v13395_v8 = vpack.c.bf16 %v13381_v62, %v13365_v52  ;;  %v8749_v1 = vpop.f32.mrb[120].mxu0 }
 0x304   : > { %v13398_v47 = vadd.f32 %v8749_v1, %v13302_v46  ;;  %v2618_v38 = vpop.f32.mrb[121].mxu0  ;;  %10020 = vmatprep.subr.bf16.mxu1 %v10019_v31  ;;  %10920 = vrot.lane.b32.xlu1 %v10919_v20, %s11885_s28 }
 0x305   : > { %16186 = vst [vmem:[#allocation109_spill] sm:$0xff] %v13389_v3  ;;  %v10891_v53 = vpop.permute.xlu1 %10890  ;;  %v13402_v55 = vadd.f32 %v13298_v56, %v2618_v38  ;;  %10022 = vmatpush3.bf16.msra.mxu1 %v10019_v31  ;;  %v13404_v43 = vpop.f32.mrb[88].mxu1 }
 0x306   : > { %16187 = vst [vmem:[#allocation110_spill] sm:$0xff] %v13398_v47  ;;  %v10893_v44 = vunpack.i.h.bf16 %v10891_v53  ;;  %v10892_v34 = vunpack.i.l.bf16 %v10891_v53  ;;  %v13406_v61 = vpop.f32.mrb[89].mxu1 }
 0x307   : > { %16188 = vst [vmem:[#allocation111_spill] sm:$0xff] %v13402_v55  ;;  %16189 = vst [vmem:[#allocation112_spill] sm:$0xff] %v13406_v61  ;;  %v13412_v46 = vpack.c.bf16 %v13398_v47, %v13402_v55  ;;  %v8752_v1 = vpop.f32.mrb[122].mxu0 }
 0x308   : > { %v10065_v20 = vpack.c.bf16 %v10893_v44, %v10892_v34  ;;  %v13415_v13 = vadd.f32 %v8752_v1, %v13306_v11  ;;  %v2628_v56 = vpop.f32.mrb[123].mxu0 }
 0x309   : > { %16190 = vst [vmem:[#allocation113_spill] sm:$0xff] %v13412_v46  ;;  %v13417_v31 = vpop.f32.mrb[90].mxu1  ;;  %v13420_v38 = vadd.f32 %v13304_v49, %v2628_v56 }
 0x30a   : > { %16191 = vst [vmem:[#allocation114_spill] sm:$0xff] %v13415_v13  ;;  %10067 = vmatprep.subr.msk.bf16.mxu0 %vm12990_vm1, %v10065_v20  ;;  %v10023_v39 = vpack.c.bf16 %v13417_v31, %v13404_v43  ;;  %v13428_v55 = vpop.f32.mrb[91].mxu1 }
 0x30b   : > { %16192 = vst [vmem:[#allocation115_spill] sm:$0xff] %v13420_v38  ;;  %16193 = vst [vmem:[#allocation116_spill] sm:$0xff] %v13428_v55  ;;  %10070 = vmatpush3.bf16.xpose.msk.msra.mxu0 %vm12990_vm1, %v10065_v20  ;;  %v13436_v49 = vpack.c.bf16 %v13428_v55, %v13406_v61  ;;  %v13442_v44 = vpack.c.bf16 %v13415_v13, %v13420_v38  ;;  %v8755_v1 = vpop.f32.mrb[124].mxu0 }
 0x30c   : > { %10024 = vmatprep.subr.bf16.mxu1 %v10023_v39  ;;  %v13445_v56 = vadd.f32 %v8755_v1, %v13310_v40  ;;  %v2638_v20 = vpop.f32.mrb[125].mxu0 }
 0x30d   : > { %16194 = vst [vmem:[#allocation117_spill] sm:$0xff] %v13442_v44  ;;  %v10896_v53 = vpop.permute.xlu0 %10895  ;;  %10026 = vmatpush3.bf16.msra.mxu1 %v10023_v39  ;;  %v13447_v11 = vpop.f32.mrb[92].mxu1  ;;  %v13450_v47 = vadd.f32 %v13308_v57, %v2638_v20 }
 0x30e   : > { %16195 = vst [vmem:[#allocation118_spill] sm:$0xff] %v13445_v56  ;;  %v10898_v24 = vunpack.i.h.bf16 %v10896_v53  ;;  %v10897_v48 = vunpack.i.l.bf16 %v10896_v53  ;;  %v13452_v34 = vpop.f32.mrb[93].mxu1 }
 0x30f   : > { %16196 = vst [vmem:[#allocation119_spill] sm:$0xff] %v13450_v47  ;;  %16197 = vst [vmem:[#allocation120_spill] sm:$0xff] %v13452_v34  ;;  %v13458_v13 = vpack.c.bf16 %v13445_v56, %v13450_v47  ;;  %v8758_v40 = vpop.f32.mrb[126].mxu0 }
 0x310   : > { %v10071_v1 = vpack.c.bf16 %v10898_v24, %v10897_v48  ;;  %v13461_v39 = vadd.f32 %v8758_v40, %v13314_v33  ;;  %v2648_v44 = vpop.f32.mrb[127].mxu0 }
 0x311   : > { %16198 = vst [vmem:[#allocation121_spill] sm:$0xff] %v13458_v13  ;;  %v13463_v46 = vpop.f32.mrb[94].mxu1  ;;  %v13466_v57 = vadd.f32 %v13312_v37, %v2648_v44 }
 0x312   : > { %16199 = vst [vmem:[#allocation122_spill] sm:$0xff] %v13461_v39  ;;  %10073 = vmatprep.subr.msk.bf16.mxu0 %vm12990_vm1, %v10071_v1  ;;  %v10027_v20 = vpack.c.bf16 %v13463_v46, %v13447_v11  ;;  %v13474_v38 = vpop.f32.mrb[95].mxu1 }
 0x313   : > { %16200 = vst [vmem:[#allocation123_spill] sm:$0xff] %v13466_v57  ;;  %16201 = vst [vmem:[#allocation124_spill] sm:$0xff] %v13474_v38  ;;  %10076 = vmatpush3.bf16.xpose.msk.msra.mxu0 %vm12990_vm1, %v10071_v1  ;;  %v13482_v24 = vpack.c.bf16 %v13474_v38, %v13452_v34  ;;  %v13488_v33 = vpack.c.bf16 %v13461_v39, %v13466_v57 }
 0x314   : > { %10028 = vmatprep.subr.bf16.mxu1 %v10027_v20 }
 0x315   : > { %16202 = vst [vmem:[#allocation125_spill] sm:$0xff] %v13488_v33  ;;  %v10901_v44 = vpop.permute.xlu1 %10900  ;;  %10030 = vmatpush3.bf16.msra.mxu1 %v10027_v20  ;;  %v13490_v40 = vpop.f32.mrb[96].mxu1 }
 0x316   : > { %v10903_v1 = vunpack.i.h.bf16 %v10901_v44  ;;  %v10902_v53 = vunpack.i.l.bf16 %v10901_v44  ;;  %v13492_v47 = vpop.f32.mrb[97].mxu1 }
 0x317   : > { %16203 = vst [vmem:[#allocation126_spill] sm:$0xff] %v13492_v47 }
 0x318   : > { %v10077_v48 = vpack.c.bf16 %v10903_v1, %v10902_v53 }
 0x319   : > { %v13494_v56 = vpop.f32.mrb[98].mxu1 }
 0x31a   : > { %10079 = vmatprep.subr.msk.bf16.mxu0 %vm12990_vm1, %v10077_v48  ;;  %v10031_v57 = vpack.c.bf16 %v13494_v56, %v13490_v40  ;;  %v13502_v39 = vpop.f32.mrb[99].mxu1 }
 0x31b   : > { %16204 = vst [vmem:[#allocation127_spill] sm:$0xff] %v13502_v39  ;;  %10082 = vmatpush3.bf16.xpose.msk.msra.mxu0 %vm12990_vm1, %v10077_v48  ;;  %v13510_v53 = vpack.c.bf16 %v13502_v39, %v13492_v47 }
 0x31c   : > { %10032 = vmatprep.subr.bf16.mxu1 %v10031_v57 }
 0x31d   : > { %v10906_v44 = vpop.permute.xlu0 %10905  ;;  %10034 = vmatpush3.bf16.msra.mxu1 %v10031_v57  ;;  %v13512_v1 = vpop.f32.mrb[100].mxu1 }
 0x31e   : > { %v10908_v37 = vunpack.i.h.bf16 %v10906_v44  ;;  %v10907_v34 = vunpack.i.l.bf16 %v10906_v44  ;;  %v13514_v38 = vpop.f32.mrb[101].mxu1 }
 0x31f   : > { %16205 = vst [vmem:[#allocation128_spill] sm:$0xff] %v13514_v38 }
 0x320   : > { %v10083_v33 = vpack.c.bf16 %v10908_v37, %v10907_v34 }
 0x321   : > { %v3256_v13 = vpop.permute.xlu0 %3255  ;;  %v13516_v3 = vpop.f32.mrb[102].mxu1 }
 0x322   : > { %10085 = vmatprep.subr.msk.bf16.mxu0 %vm12990_vm1, %v10083_v33  ;;  %8903 = vmatprep.mubr.msk.f32.mxu0 %vm15923_vm0, %v3256_v13  ;;  %v10035_v57 = vpack.c.bf16 %v13516_v3, %v13512_v1  ;;  %v13525_v20 = vpop.f32.mrb[103].mxu1 }
 0x323   : > { %16206 = vst [vmem:[#allocation129_spill] sm:$0xff] %v13525_v20  ;;  %10088 = vmatpush3.bf16.xpose.msk.msra.mxu0 %vm12990_vm1, %v10083_v33  ;;  %v13533_v37 = vpack.c.bf16 %v13525_v20, %v13514_v38 }
 0x324   : > { %10036 = vmatprep.subr.bf16.mxu1 %v10035_v57 }
 0x325   : > { %v10911_v13 = vpop.permute.xlu1 %10910  ;;  %10038 = vmatpush3.bf16.msra.mxu1 %v10035_v57  ;;  %v13535_v44 = vpop.f32.mrb[104].mxu1 }
 0x326   : > { %v10913_v48 = vunpack.i.h.bf16 %v10911_v13  ;;  %v10912_v47 = vunpack.i.l.bf16 %v10911_v13  ;;  %v3260_v39 = vpop.permute.xlu0 %3259  ;;  %v13537_v18 = vpop.f32.mrb[105].mxu1 }
 0x327   : > { %16207 = vst [vmem:[#allocation130_spill] sm:$0xff] %v13537_v18 }
 0x328   : > { %v10089_v28 = vpack.c.bf16 %v10913_v48, %v10912_v47 }
 0x329   : > { %v3258_v4 = vpop.permute.xlu1 %3257  ;;  %v13539_v33 = vpop.f32.mrb[106].mxu1 }
 0x32a   : > { %10091 = vmatprep.subr.msk.bf16.mxu0 %vm12990_vm1, %v10089_v28  ;;  %v10039_v57 = vpack.c.bf16 %v13539_v33, %v13535_v44  ;;  %v13547_v38 = vpop.f32.mrb[107].mxu1  ;;  %v3264_v13 = vpop.permute.xlu0 %3263 }
 0x32b   : > { %16208 = vst [vmem:[#allocation131_spill] sm:$0xff] %v13547_v38  ;;  %10094 = vmatpush3.bf16.xpose.msk.msra.mxu0 %vm12990_vm1, %v10089_v28  ;;  %v10199_v48 = vpack.c.bf16 %v13547_v38, %v13537_v18 }
 0x32c   : > { %10176 = vmatprep.subr.bf16.mxu0 %v13356_v59  ;;  %10040 = vmatprep.subr.bf16.mxu1 %v10039_v57 }
 0x32d   : > { %v3262_v20 = vpop.permute.xlu1 %3261  ;;  %10042 = vmatpush3.bf16.msra.mxu1 %v10039_v57  ;;  %v13556_v34 = vpop.f32.mrb[108].mxu1 }
 0x32e   : > { %v13558_v61 = vpop.f32.mrb[109].mxu1  ;;  %v3268_v28 = vpop.permute.xlu0 %3267 }
 0x32f   : > { %16209 = vst [vmem:[#allocation132_spill] sm:$0xff] %v13558_v61 }
 0x331   : > { %v3266_v55 = vpop.permute.xlu1 %3265  ;;  %v13560_v52 = vpop.f32.mrb[110].mxu1 }
 0x332   : > { %8904 = vmatmul.mubr.msk.f32.vlgmr.msra.gmra.mrb[144].mxu0 %vm15923_vm0, %v3258_v4  ;;  %v10043_v18 = vpack.c.bf16 %v13560_v52, %v13556_v34  ;;  %v13567_v38 = vpop.f32.mrb[111].mxu1 }
 0x333   : > { %16210 = vst [vmem:[#allocation133_spill] sm:$0xff] %v13567_v38  ;;  %8906 = vmatprep.mubr.msk.f32.mxu0 %vm15923_vm0, %v3260_v39  ;;  %10178 = vmatpush3.bf16.msra.mxu0 %v13356_v59  ;;  %v10203_v62 = vpack.c.bf16 %v13567_v38, %v13558_v61  ;;  %v3272_v39 = vpop.permute.xlu0 %3271 }
 0x334   : > { %10180 = vmatprep.subr.bf16.mxu0 %v13395_v8  ;;  %10044 = vmatprep.subr.bf16.mxu1 %v10043_v18 }
 0x335   : > { %v3270_v4 = vpop.permute.xlu1 %3269  ;;  %10046 = vmatpush3.bf16.msra.mxu1 %v10043_v18 }
 0x336   : > { %8907 = vmatmul.mubr.msk.f32.gmra.mrb[146].mxu0 %vm15923_vm0, %v3262_v20 }
 0x337   : > { %8909 = vmatprep.mubr.msk.f32.mxu0 %vm15923_vm0, %v3264_v13  ;;  %10182 = vmatpush3.bf16.msra.mxu0 %v13395_v8  ;;  %v3276_v57 = vpop.permute.xlu0 %3275 }
 0x338   : > { %10184 = vmatprep.subr.bf16.mxu0 %v13436_v49 }
 0x339   : > { %v3274_v59 = vpop.permute.xlu1 %3273 }
 0x33a   : > { %8910 = vmatmul.mubr.msk.f32.gmra.mrb[148].mxu0 %vm15923_vm0, %v3266_v55 }
 0x33b   : > { %8912 = vmatprep.mubr.msk.f32.mxu0 %vm15923_vm0, %v3268_v28  ;;  %10186 = vmatpush3.bf16.msra.mxu0 %v13436_v49  ;;  %v3280_v8 = vpop.permute.xlu0 %3279 }
 0x33c   : > { %10188 = vmatprep.subr.bf16.mxu0 %v13482_v24 }
 0x33d   : > { %v3278_v18 = vpop.permute.xlu1 %3277 }
 0x33e   : > { %8913 = vmatmul.mubr.msk.f32.gmra.mrb[150].mxu0 %vm15923_vm0, %v3270_v4 }
 0x33f   : > { %8915 = vmatprep.mubr.msk.f32.mxu0 %vm15923_vm0, %v3272_v39  ;;  %10190 = vmatpush3.bf16.msra.mxu0 %v13482_v24  ;;  %v3284_v49 = vpop.permute.xlu0 %3283 }
 0x340   : > { %10192 = vmatprep.subr.bf16.mxu0 %v13510_v53 }
 0x341   : > { %v3282_v55 = vpop.permute.xlu1 %3281 }
 0x342   : > { %8916 = vmatmul.mubr.msk.f32.gmra.mrb[152].mxu0 %vm15923_vm0, %v3274_v59  ;;  %v16212_v59 = vmov 0 }
 0x343   : > { %8918 = vmatprep.mubr.msk.f32.mxu0 %vm15923_vm0, %v3276_v57  ;;  %10194 = vmatpush3.bf16.msra.mxu0 %v13510_v53 }
 0x344   : > { %10196 = vmatprep.subr.bf16.mxu0 %v13533_v37 }
 0x345   : > { %v3286_v24 = vpop.permute.xlu1 %3285 }
 0x346   : > { %8919 = vmatmul.mubr.msk.f32.gmra.mrb[154].mxu0 %vm15923_vm0, %v3278_v18 }
 0x347   : > { %8921 = vmatprep.mubr.msk.f32.mxu0 %vm15923_vm0, %v3280_v8  ;;  %10198 = vmatpush3.bf16.msra.mxu0 %v13533_v37  ;;  %v2657_v37 = vlaneseq }
 0x348   : > { %10200 = vmatprep.subr.bf16.mxu0 %v10199_v48 }
 0x349   : > { %v13601_v57 = vshrl.u32 %v2657_v37, 7  ;;  %v13604_v39 = vand.u32 127, %v2657_v37 }
 0x34a   : > { %8922 = vmatmul.mubr.msk.f32.gmra.mrb[156].mxu0 %vm15923_vm0, %v3282_v55  ;;  %v16215_v55 = vmov 0 }
 0x34b   : > { %8924 = vmatprep.mubr.msk.f32.mxu0 %vm15923_vm0, %v3284_v49  ;;  %10202 = vmatpush3.bf16.msra.mxu0 %v10199_v48  ;;  %16211 = vst [vmem:[#allocation134_spill] sm:$0xff] %v13601_v57  ;;  %v2659_v4 = vadd.s32 8, %v13601_v57  ;;  %vm13614_vm3 = vcmp.le.s32.totalorder %v13604_v39, %v13601_v57  ;;  %v2660_v37 = vadd.s32 16, %v13601_v57  ;;  %v2664_v38 = vadd.s32 48, %v13601_v57 }
 0x34c   : > { %10204 = vmatprep.subr.bf16.mxu0 %v10203_v62  ;;  %v16216_v55 = vsel %vm13614_vm3, 4294967295, %v16215_v55 }
 0x34d   : > { %vm13607_vm2 = vcmp.le.s32.totalorder %v13604_v39, %v2659_v4  ;;  %16217 = vst [vmem:[#allocation136_spill] sm:$0xff] %v16216_v55  ;;  %vm13640_vm5 = vcmp.le.s32.totalorder %v13604_v39, %v2660_v37  ;;  %vm13669_vm8 = vcmp.le.s32.totalorder %v13604_v39, %v2664_v38  ;;  %v2667_v38 = vadd.s32 72, %v13601_v57 }
 0x34e   : > { %8925 = vmatmul.mubr.msk.f32.gmra.mrb[158].mxu0 %vm15923_vm0, %v3286_v24  ;;  %v16213_v59 = vsel %vm13607_vm2, 4294967295, %v16212_v59 }
 0x34f   : > { %10206 = vmatpush3.bf16.msra.mxu0 %v10203_v62  ;;  %16214 = vst [vmem:[#allocation135_spill] sm:$0xff] %v16213_v59  ;;  %v2661_v62 = vadd.s32 24, %v13601_v57  ;;  %vm13708_vm11 = vcmp.le.s32.totalorder %v13604_v39, %v2667_v38 }
 0x351   : > { %vm13628_vm4 = vcmp.le.s32.totalorder %v13604_v39, %v2661_v62  ;;  %v16221_v62 = vmov 0 }
 0x352   : > { %v16222_v62 = vsel %vm13640_vm5, 4294967295, %v16221_v62 }
 0x353   : > { %16223 = vst [vmem:[#allocation138_spill] sm:$0xff] %v16222_v62 }
 0x36e   : > { %v10916_v20 = vpop.permute.xlu0 %10915 }
 0x36f   : > { %v10918_v53 = vunpack.i.h.bf16 %v10916_v20  ;;  %v10917_v13 = vunpack.i.l.bf16 %v10916_v20 }
 0x371   : > { %v13598_v28 = vpack.c.bf16 %v10918_v53, %v10917_v13  ;;  %v16218_v13 = vmov 0 }
 0x372   : > { %v16219_v13 = vsel %vm13628_vm4, 4294967295, %v16218_v13 }
 0x373   : > { %10096 = vmatprep.subr.bf16.mxu1 %v13598_v28  ;;  %16220 = vst [vmem:[#allocation137_spill] sm:$0xff] %v16219_v13 }
 0x38e   : > { %v8793_v48 = vpop.f32.mrb[128].mxu0 }
 0x38f   : > { %v2935_v18 = vmul.f32 0.05103104, %v8793_v48  ;;  %v2855_v8 = vpop.f32.mrb[129].mxu0 }
 0x390   : > { %v2934_v49 = vmul.f32 0.05103104, %v2855_v8 }
 0x391   : > { %v13620_v24 = vsel %vm13607_vm2, %v2935_v18, -1e+30  ;;  %v2662_v18 = vadd.s32 32, %v13601_v57 }
 0x392   : > { %2968 = vmax.xlane.f32.xlu1 %v13620_v24  ;;  %v8796_v20 = vpop.f32.mrb[130].mxu0  ;;  %v13625_v53 = vsel %vm13614_vm3, %v2934_v49, -1e+30 }
 0x393   : > { %v2937_v4 = vmul.f32 0.05103104, %v8796_v20  ;;  %2966 = vmax.xlane.f32.xlu0 %v13625_v53  ;;  %v2865_v48 = vpop.f32.mrb[131].mxu0  ;;  %vm13646_vm6 = vcmp.le.s32.totalorder %v13604_v39, %v2662_v18  ;;  %v16224_v20 = vmov 0  ;;  %v2665_v18 = vadd.s32 56, %v13601_v57 }
 0x394   : > { %v2936_v8 = vmul.f32 0.05103104, %v2865_v48  ;;  %v16225_v20 = vsel %vm13646_vm6, 4294967295, %v16224_v20  ;;  %v2663_v48 = vadd.s32 40, %v13601_v57 }
 0x395   : > { %v13637_v47 = vsel %vm13628_vm4, %v2937_v4, -1e+30  ;;  %16226 = vst [vmem:[#allocation139_spill] sm:$0xff] %v16225_v20  ;;  %vm13683_vm9 = vcmp.le.s32.totalorder %v13604_v39, %v2665_v18 }
 0x396   : > { %v8799_v49 = vpop.f32.mrb[132].mxu0  ;;  %v13654_v14 = vsel %vm13640_vm5, %v2936_v8, -1e+30  ;;  %vm13664_vm7 = vcmp.le.s32.totalorder %v13604_v39, %v2663_v48  ;;  %v16230_v8 = vmov 0  ;;  %v16234_v32 = vsel %vm13683_vm9, 4294967295, %v16233_v32 }
 0x397   : > { %2972 = vmax.xlane.f32.xlu0 %v13637_v47  ;;  %v2875_v61 = vpop.f32.mrb[133].mxu0  ;;  %v2939_v37 = vmul.f32 0.05103104, %v8799_v49  ;;  %v16231_v8 = vsel %vm13669_vm8, 4294967295, %v16230_v8  ;;  %v2666_v49 = vadd.s32 64, %v13601_v57  ;;  %16235 = vst [vmem:[#allocation142_spill] sm:$0xff] %v16234_v32 }
 0x398   : > { %v2938_v4 = vmul.f32 0.05103104, %v2875_v61  ;;  %v16227_v61 = vmov 0  ;;  %16232 = vst [vmem:[#allocation141_spill] sm:$0xff] %v16231_v8 }
 0x399   : > { %v16228_v61 = vsel %vm13664_vm7, 4294967295, %v16227_v61  ;;  %v13676_v6 = vsel %vm13664_vm7, %v2939_v37, -1e+30  ;;  %vm13690_vm10 = vcmp.le.s32.totalorder %v13604_v39, %v2666_v49  ;;  %v2668_v37 = vadd.s32 80, %v13601_v57 }
 0x39a   : > { %v8802_v2 = vpop.f32.mrb[134].mxu0  ;;  %v13658_v63 = vsel %vm13646_vm6, %v2938_v4, -1e+30  ;;  %16229 = vst [vmem:[#allocation140_spill] sm:$0xff] %v16228_v61  ;;  %v2669_v49 = vadd.s32 88, %v13601_v57 }
 0x39b   : > { %2970 = vmax.xlane.f32.xlu0 %v13654_v14  ;;  %2974 = vmax.xlane.f32.xlu1 %v13658_v63  ;;  %v2885_v5 = vpop.f32.mrb[135].mxu0  ;;  %v2941_v22 = vmul.f32 0.05103104, %v8802_v2  ;;  %v16236_v2 = vmov 0  ;;  %vm13713_vm12 = vcmp.le.s32.totalorder %v13604_v39, %v2668_v37  ;;  %v2672_v37 = vadd.s32 112, %v13601_v57 }
 0x39c   : > { %v2940_v4 = vmul.f32 0.05103104, %v2885_v5  ;;  %v16237_v2 = vsel %vm13690_vm10, 4294967295, %v16236_v2  ;;  %vm13727_vm13 = vcmp.le.s32.totalorder %v13604_v39, %v2669_v49 }
 0x39d   : > { %16238 = vst [vmem:[#allocation143_spill] sm:$0xff] %v16237_v2  ;;  %v13698_v18 = vsel %vm13683_vm9, %v2941_v22, -1e+30  ;;  %v2670_v22 = vadd.s32 96, %v13601_v57  ;;  %v16246_v16 = vsel %vm13727_vm13, 4294967295, %v16245_v16  ;;  %vm13756_vm0 = vcmp.le.s32.totalorder %v13604_v39, %v2672_v37 }
 0x39e   : > { %v8805_v12 = vpop.f32.mrb[136].mxu0  ;;  %v13680_v48 = vsel %vm13669_vm8, %v2940_v4, -1e+30  ;;  %16247 = vst [vmem:[#allocation146_spill] sm:$0xff] %v16246_v16 }
 0x39f   : > { %2976 = vmax.xlane.f32.xlu0 %v13676_v6  ;;  %2978 = vmax.xlane.f32.xlu1 %v13680_v48  ;;  %v2895_v5 = vpop.f32.mrb[137].mxu0  ;;  %v2943_v58 = vmul.f32 0.05103104, %v8805_v12  ;;  %v16242_v12 = vmov 0  ;;  %vm13734_vm14 = vcmp.le.s32.totalorder %v13604_v39, %v2670_v22 }
 0x3a0   : > { %v2942_v4 = vmul.f32 0.05103104, %v2895_v5  ;;  %v16239_v5 = vmov 0  ;;  %v16243_v12 = vsel %vm13713_vm12, 4294967295, %v16242_v12 }
 0x3a1   : > { %v16240_v5 = vsel %vm13708_vm11, 4294967295, %v16239_v5  ;;  %16244 = vst [vmem:[#allocation145_spill] sm:$0xff] %v16243_v12  ;;  %v13720_v29 = vsel %vm13708_vm11, %v2943_v58, -1e+30  ;;  %v2671_v58 = vadd.s32 104, %v13601_v57 }
 0x3a2   : > { %v8808_v51 = vpop.f32.mrb[138].mxu0  ;;  %v13702_v21 = vsel %vm13690_vm10, %v2942_v4, -1e+30  ;;  %16241 = vst [vmem:[#allocation144_spill] sm:$0xff] %v16240_v5 }
 0x3a3   : > { %2980 = vmax.xlane.f32.xlu0 %v13698_v18  ;;  %2982 = vmax.xlane.f32.xlu1 %v13702_v21  ;;  %v2905_v35 = vpop.f32.mrb[139].mxu0  ;;  %v2945_v15 = vmul.f32 0.05103104, %v8808_v51  ;;  %v16248_v51 = vmov 0  ;;  %vm13751_vm15 = vcmp.le.s32.totalorder %v13604_v39, %v2671_v58  ;;  %v16257_v58 = vmov 0 }
 0x3a4   : > { %v2944_v4 = vmul.f32 0.05103104, %v2905_v35  ;;  %v16249_v51 = vsel %vm13734_vm14, 4294967295, %v16248_v51  ;;  %v16252_v54 = vsel %vm13751_vm15, 4294967295, %v16251_v54 }
 0x3a5   : > { %16250 = vst [vmem:[#allocation147_spill] sm:$0xff] %v16249_v51  ;;  %v13742_v49 = vsel %vm13727_vm13, %v2945_v15, -1e+30  ;;  %16253 = vst [vmem:[#allocation148_spill] sm:$0xff] %v16252_v54  ;;  %v16254_v15 = vmov 0 }
 0x3a6   : > { %v8811_v30 = vpop.f32.mrb[140].mxu0  ;;  %v13724_v38 = vsel %vm13713_vm12, %v2944_v4, -1e+30  ;;  %v16255_v15 = vsel %vm13756_vm0, 4294967295, %v16254_v15 }
 0x3a7   : > { %2984 = vmax.xlane.f32.xlu0 %v13720_v29  ;;  %2986 = vmax.xlane.f32.xlu1 %v13724_v38  ;;  %v2915_v35 = vpop.f32.mrb[141].mxu0  ;;  %v2947_v60 = vmul.f32 0.05103104, %v8811_v30  ;;  %16256 = vst [vmem:[#allocation149_spill] sm:$0xff] %v16255_v15  ;;  %v2673_v30 = vadd.s32 120, %v13601_v57 }
 0x3a8   : > { %v2946_v4 = vmul.f32 0.05103104, %v2915_v35 }
 0x3a9   : > { %v13763_v27 = vsel %vm13751_vm15, %v2947_v60, -1e+30  ;;  %vm13772_vm1 = vcmp.le.s32.totalorder %v13604_v39, %v2673_v30 }
 0x3aa   : > { %v8814_v9 = vpop.f32.mrb[142].mxu0  ;;  %v13746_v17 = vsel %vm13734_vm14, %v2946_v4, -1e+30  ;;  %v16258_v58 = vsel %vm13772_vm1, 4294967295, %v16257_v58 }
 0x3ab   : > { %2988 = vmax.xlane.f32.xlu0 %v13742_v49  ;;  %2990 = vmax.xlane.f32.xlu1 %v13746_v17  ;;  %v2925_v22 = vpop.f32.mrb[143].mxu0  ;;  %v2949_v4 = vmul.f32 0.05103104, %v8814_v9  ;;  %16259 = vst [vmem:[#allocation150_spill] sm:$0xff] %v16258_v58 }
 0x3ac   : > { %v2948_v35 = vmul.f32 0.05103104, %v2925_v22 }
 0x3ad   : > { %v13778_v9 = vsel %vm13772_vm1, %v2949_v4, -1e+30 }
 0x3ae   : > { %v13767_v50 = vsel %vm13756_vm0, %v2948_v35, -1e+30 }
 0x3af   : > { %2992 = vmax.xlane.f32.xlu0 %v13763_v27  ;;  %2994 = vmax.xlane.f32.xlu1 %v13767_v50 }
 0x3b3   : > { %2996 = vmax.xlane.f32.xlu0 %v13778_v9 }
 0x405   : > { %v8905_v60 = vpop.f32.mrb[144].mxu0 }
 0x406   : > { %v3529_v37 = vmul.f32 0.05103104, %v8905_v60  ;;  %v3449_v22 = vpop.f32.mrb[145].mxu0 }
 0x407   : > { %v3528_v35 = vmul.f32 0.05103104, %v3449_v22 }
 0x408   : > { %v13783_v57 = vsel %vm13607_vm2, %v3529_v37, -1e+30 }
 0x409   : > { %3562 = vmax.xlane.f32.xlu0 %v13783_v57  ;;  %v8908_v39 = vpop.f32.mrb[146].mxu0  ;;  %v13788_v30 = vsel %vm13614_vm3, %v3528_v35, -1e+30 }
 0x40a   : > { %v3531_v45 = vmul.f32 0.05103104, %v8908_v39  ;;  %v3459_v4 = vpop.f32.mrb[147].mxu0  ;;  %3560 = vmax.xlane.f32.xlu1 %v13788_v30 }
 0x40b   : > { %v3530_v41 = vmul.f32 0.05103104, %v3459_v4 }
 0x40c   : > { %v13793_v60 = vsel %vm13628_vm4, %v3531_v45, -1e+30 }
 0x40d   : > { %3566 = vmax.xlane.f32.xlu0 %v13793_v60  ;;  %v8911_v37 = vpop.f32.mrb[148].mxu0  ;;  %v13798_v22 = vsel %vm13640_vm5, %v3530_v41, -1e+30 }
 0x40e   : > { %v3533_v59 = vmul.f32 0.05103104, %v8911_v37  ;;  %v3469_v55 = vpop.f32.mrb[149].mxu0  ;;  %3564 = vmax.xlane.f32.xlu1 %v13798_v22 }
 0x40f   : > { %v3532_v35 = vmul.f32 0.05103104, %v3469_v55 }
 0x410   : > { %v13803_v39 = vsel %vm13664_vm7, %v3533_v59, -1e+30 }
 0x411   : > { %3570 = vmax.xlane.f32.xlu0 %v13803_v39  ;;  %v8914_v45 = vpop.f32.mrb[150].mxu0  ;;  %v13808_v4 = vsel %vm13646_vm6, %v3532_v35, -1e+30 }
 0x412   : > { %v3535_v13 = vmul.f32 0.05103104, %v8914_v45  ;;  %v3479_v62 = vpop.f32.mrb[151].mxu0  ;;  %3568 = vmax.xlane.f32.xlu1 %v13808_v4 }
 0x413   : > { %v3534_v41 = vmul.f32 0.05103104, %v3479_v62 }
 0x414   : > { %v13813_v37 = vsel %vm13683_vm9, %v3535_v13, -1e+30 }
 0x415   : > { %3574 = vmax.xlane.f32.xlu0 %v13813_v37  ;;  %v8917_v59 = vpop.f32.mrb[152].mxu0  ;;  %v13818_v55 = vsel %vm13669_vm8, %v3534_v41, -1e+30  ;;  %v13831_v41 = vpop.permute.xlu1 %10920 }
 0x416   : > { %v3537_v61 = vmul.f32 0.05103104, %v8917_v59  ;;  %v3489_v20 = vpop.f32.mrb[153].mxu0  ;;  %3572 = vmax.xlane.f32.xlu1 %v13818_v55 }
 0x417   : > { %v3536_v35 = vmul.f32 0.05103104, %v3489_v20 }
 0x418   : > { %v13823_v45 = vsel %vm13708_vm11, %v3537_v61, -1e+30 }
 0x419   : > { %3578 = vmax.xlane.f32.xlu0 %v13823_v45  ;;  %v8920_v13 = vpop.f32.mrb[154].mxu0  ;;  %v13828_v62 = vsel %vm13690_vm10, %v3536_v35, -1e+30 }
 0x41a   : > { %v3539_v32 = vmul.f32 0.05103104, %v8920_v13  ;;  %v3499_v8 = vpop.f32.mrb[155].mxu0  ;;  %3576 = vmax.xlane.f32.xlu1 %v13828_v62 }
 0x41b   : > { %v3538_v59 = vmul.f32 0.05103104, %v3499_v8 }
 0x41c   : > { %v13835_v20 = vsel %vm13727_vm13, %v3539_v32, -1e+30 }
 0x41d   : > { %3582 = vmax.xlane.f32.xlu0 %v13835_v20  ;;  %v8923_v61 = vpop.f32.mrb[156].mxu0  ;;  %v13840_v5 = vsel %vm13713_vm12, %v3538_v59, -1e+30 }
 0x41e   : > { %v3541_v35 = vmul.f32 0.05103104, %v8923_v61  ;;  %v3509_v2 = vpop.f32.mrb[157].mxu0  ;;  %3580 = vmax.xlane.f32.xlu1 %v13840_v5 }
 0x41f   : > { %v3540_v13 = vmul.f32 0.05103104, %v3509_v2  ;;  %v2969_v19 = vpop.xlane.xlu1 %2968 }
 0x420   : > { %v2999_v10 = vsub.f32 %v13620_v24, %v2969_v19  ;;  %v2967_v8 = vpop.xlane.xlu0 %2966  ;;  %v13846_v32 = vsel %vm13751_vm15, %v3541_v35, -1e+30 }
 0x421   : > { %v2998_v16 = vsub.f32 %v13625_v53, %v2967_v8  ;;  %3586 = vmax.xlane.f32.xlu0 %v13846_v32  ;;  %v8926_v12 = vpop.f32.mrb[158].mxu0  ;;  %v13852_v59 = vsel %vm13734_vm14, %v3540_v13, -1e+30 }
 0x422   : > { %v3016_v61 = vmul.f32 1.442695, %v2999_v10  ;;  %v3543_v42 = vmul.f32 0.05103104, %v8926_v12  ;;  %v3519_v2 = vpop.f32.mrb[159].mxu0  ;;  %3584 = vmax.xlane.f32.xlu1 %v13852_v59 }
 0x423   : > { %v3014_v19 = vmul.f32 1.442695, %v2998_v16  ;;  %v3542_v24 = vmul.f32 0.05103104, %v3519_v2 }
 0x424   : > { %11194 = vpow2.f32 %v3016_v61  ;;  %v2973_v54 = vpop.xlane.xlu0 %2972  ;;  %v13857_v35 = vsel %vm13772_vm1, %v3543_v42, -1e+30 }
 0x425   : > { %11196 = vpow2.f32 %v3014_v19  ;;  %v3001_v53 = vsub.f32 %v13637_v47, %v2973_v54  ;;  %3590 = vmax.xlane.f32.xlu0 %v13857_v35  ;;  %v13863_v12 = vsel %vm13756_vm0, %v3542_v24, -1e+30 }
 0x427   : > { %v3020_v13 = vmul.f32 1.442695, %v3001_v53 }
 0x428   : > { %v2971_v8 = vpop.xlane.xlu0 %2970  ;;  %v2975_v10 = vpop.xlane.xlu1 %2974 }
 0x429   : > { %11198 = vpow2.f32 %v3020_v13  ;;  %v3000_v16 = vsub.f32 %v13654_v14, %v2971_v8  ;;  %v3002_v61 = vsub.f32 %v13658_v63, %v2975_v10  ;;  %3588 = vmax.xlane.f32.xlu0 %v13863_v12 }
 0x42b   : > { %v3018_v42 = vmul.f32 1.442695, %v3000_v16  ;;  %v3022_v2 = vmul.f32 1.442695, %v3002_v61 }
 0x42c   : > { %v2977_v19 = vpop.xlane.xlu0 %2976  ;;  %v2979_v54 = vpop.xlane.xlu1 %2978 }
 0x42d   : > { %11200 = vpow2.f32 %v3018_v42  ;;  %v3003_v47 = vsub.f32 %v13676_v6, %v2977_v19  ;;  %v3004_v53 = vsub.f32 %v13680_v48, %v2979_v54 }
 0x42e   : > { %v13870_v58 = vpop.eup %11194  ;;  %11202 = vpow2.f32 %v3022_v2 }
 0x42f   : > { %v13872_v24 = vpop.eup %11196  ;;  %v3024_v13 = vmul.f32 1.442695, %v3003_v47  ;;  %3048 = vadd.xlane.f32.xlu0 %v13870_v58  ;;  %v3026_v63 = vmul.f32 1.442695, %v3004_v53 }
 0x430   : > { %v2981_v14 = vpop.xlane.xlu0 %2980  ;;  %v2983_v8 = vpop.xlane.xlu1 %2982  ;;  %3046 = vadd.xlane.f32.xlu1 %v13872_v24 }
 0x431   : > { %11204 = vpow2.f32 %v3024_v13  ;;  %v3005_v10 = vsub.f32 %v13698_v18, %v2981_v14  ;;  %v3006_v6 = vsub.f32 %v13702_v21, %v2983_v8 }
 0x432   : > { %11206 = vpow2.f32 %v3026_v63 }
 0x433   : > { %v13878_v16 = vpop.eup %11198  ;;  %v3028_v48 = vmul.f32 1.442695, %v3005_v10  ;;  %v3030_v61 = vmul.f32 1.442695, %v3006_v6 }
 0x434   : > { %v2985_v42 = vpop.xlane.xlu0 %2984  ;;  %3052 = vadd.xlane.f32.xlu1 %v13878_v16  ;;  %v2987_v19 = vpop.xlane.xlu1 %2986 }
 0x435   : > { %11208 = vpow2.f32 %v3028_v48  ;;  %v3007_v2 = vsub.f32 %v13720_v29, %v2985_v42  ;;  %v3008_v18 = vsub.f32 %v13724_v38, %v2987_v19  ;;  %v16260_v19 = vpack.i.bf16 %v13463_v46, %v13447_v11 }
 0x436   : > { %11210 = vpow2.f32 %v3030_v61 }
 0x437   : > { %v13882_v54 = vpop.eup %11200  ;;  %v3032_v47 = vmul.f32 1.442695, %v3007_v2  ;;  %v3034_v8 = vmul.f32 1.442695, %v3008_v18 }
 0x438   : > { %v2989_v53 = vpop.xlane.xlu0 %2988  ;;  %3050 = vadd.xlane.f32.xlu1 %v13882_v54  ;;  %v13887_v13 = vpop.eup %11202 }
 0x439   : > { %11212 = vpow2.f32 %v3032_v47  ;;  %v3009_v21 = vsub.f32 %v13742_v49, %v2989_v53  ;;  %v16261_v47 = vpack.i.bf16 %v13417_v31, %v13404_v43  ;;  %v2991_v18 = vpop.xlane.xlu1 %2990 }
 0x43a   : > { %v3010_v53 = vsub.f32 %v13746_v17, %v2991_v18 }
 0x43b   : > { %v13889_v63 = vpop.eup %11204  ;;  %v3036_v14 = vmul.f32 1.442695, %v3009_v21 }
 0x43c   : > { %v2993_v29 = vpop.xlane.xlu0 %2992  ;;  %3056 = vadd.xlane.f32.xlu0 %v13889_v63  ;;  %3054 = vadd.xlane.f32.xlu1 %v13887_v13  ;;  %v13894_v10 = vpop.eup %11206 }
 0x43d   : > { %11214 = vpow2.f32 %v3036_v14  ;;  %v3011_v38 = vsub.f32 %v13763_v27, %v2993_v29  ;;  %v3038_v14 = vmul.f32 1.442695, %v3010_v53  ;;  %v2995_v29 = vpop.xlane.xlu1 %2994 }
 0x43e   : > { %11216 = vpow2.f32 %v3034_v8 }
 0x43f   : > { %v13896_v6 = vpop.eup %11208  ;;  %v3040_v48 = vmul.f32 1.442695, %v3011_v38  ;;  %v3012_v38 = vsub.f32 %v13767_v50, %v2995_v29 }
 0x440   : > { %3060 = vadd.xlane.f32.xlu0 %v13896_v6  ;;  %3058 = vadd.xlane.f32.xlu1 %v13894_v10  ;;  %v13900_v49 = vpop.eup %11210  ;;  %v2997_v21 = vpop.xlane.xlu0 %2996 }
 0x441   : > { %11218 = vpow2.f32 %v3040_v48  ;;  %v3013_v8 = vsub.f32 %v13778_v9, %v2997_v21  ;;  %v3042_v15 = vmul.f32 1.442695, %v3012_v38 }
 0x442   : > { %11220 = vpow2.f32 %v3038_v14  ;;  %v16263_v14 = vpack.i.bf16 %v13516_v3, %v13512_v1 }
 0x443   : > { %v13902_v61 = vpop.eup %11212  ;;  %v3044_v48 = vmul.f32 1.442695, %v3013_v8 }
 0x444   : > { %3064 = vadd.xlane.f32.xlu0 %v13902_v61  ;;  %3062 = vadd.xlane.f32.xlu1 %v13900_v49 }
 0x445   : > { %11222 = vpow2.f32 %v3044_v48 }
 0x446   : > { %11224 = vpow2.f32 %v3042_v15  ;;  %v16262_v15 = vpack.i.bf16 %v13494_v56, %v13490_v40 }
 0x447   : > { %v13906_v27 = vpop.eup %11214 }
 0x448   : > { %3068 = vadd.xlane.f32.xlu1 %v13906_v27  ;;  %v13909_v42 = vpop.eup %11216 }
 0x44b   : > { %v13911_v2 = vpop.eup %11218 }
 0x44c   : > { %3072 = vadd.xlane.f32.xlu0 %v13911_v2  ;;  %3066 = vadd.xlane.f32.xlu1 %v13909_v42  ;;  %v13926_v46 = vpop.eup %11220 }
 0x44f   : > { %v13929_v43 = vpop.eup %11222 }
 0x450   : > { %v13932_v17 = vpop.eup %11224 }
 0x45d   : > { %10930 = vrot.lane.b32.xlu1 %v16260_v19, %s11885_s28 }
 0x462   : > { %10925 = vrot.lane.b32.xlu0 %v16261_v47, %s11885_s28 }
 0x481   : > { %3070 = vadd.xlane.f32.xlu1 %v13926_v46 }
 0x485   : > { %3076 = vadd.xlane.f32.xlu1 %v13929_v43 }
 0x489   : > { %3074 = vadd.xlane.f32.xlu1 %v13932_v17 }
 0x496   : > { %v3563_v31 = vpop.xlane.xlu0 %3562 }
 0x497   : > { %v3593_v11 = vsub.f32 %v13783_v57, %v3563_v31  ;;  %v3561_v50 = vpop.xlane.xlu1 %3560 }
 0x499   : > { %v3610_v9 = vmul.f32 1.442695, %v3593_v11 }
 0x49a   : > { %v3567_v19 = vpop.xlane.xlu0 %3566  ;;  %10935 = vrot.lane.b32.xlu1 %v16262_v15, %s11885_s28 }
 0x49b   : > { %11226 = vpow2.f32 %v3610_v9  ;;  %v3595_v47 = vsub.f32 %v13793_v60, %v3567_v19  ;;  %v13941_v18 = vpop.xlane.xlu1 %3564  ;;  %v16264_v60 = vpack.i.bf16 %v13539_v33, %v13535_v44 }
 0x49d   : > { %v3614_v53 = vmul.f32 1.442695, %v3595_v47 }
 0x49e   : > { %v3571_v21 = vpop.xlane.xlu0 %3570  ;;  %10940 = vrot.lane.b32.xlu1 %v16263_v14, %s11885_s28  ;;  %v3592_v14 = vsub.f32 %v13788_v30, %v3561_v50 }
 0x49f   : > { %11228 = vpow2.f32 %v3614_v53  ;;  %v3597_v57 = vsub.f32 %v13803_v39, %v3571_v21  ;;  %v3569_v8 = vpop.xlane.xlu1 %3568 }
 0x4a0   : > { %v3596_v29 = vsub.f32 %v13808_v4, %v3569_v8 }
 0x4a1   : > { %v3618_v56 = vmul.f32 1.442695, %v3597_v57 }
 0x4a2   : > { %v3575_v40 = vpop.xlane.xlu0 %3574  ;;  %10945 = vrot.lane.b32.xlu1 %v16264_v60, %s11885_s28  ;;  %v3616_v38 = vmul.f32 1.442695, %v3596_v29 }
 0x4a3   : > { %11230 = vpow2.f32 %v3618_v56  ;;  %v3599_v48 = vsub.f32 %v13813_v37, %v3575_v40  ;;  %v3573_v31 = vpop.xlane.xlu1 %3572  ;;  %v3608_v56 = vmul.f32 1.442695, %v3592_v14 }
 0x4a4   : > { %11232 = vpow2.f32 %v3616_v38  ;;  %v3598_v4 = vsub.f32 %v13818_v55, %v3573_v31 }
 0x4a5   : > { %v13954_v3 = vpop.eup %11226  ;;  %v3622_v39 = vmul.f32 1.442695, %v3599_v48 }
 0x4a6   : > { %v3579_v1 = vpop.xlane.xlu0 %3578  ;;  %3642 = vadd.xlane.f32.xlu0 %v13954_v3  ;;  %v3620_v44 = vmul.f32 1.442695, %v3598_v4 }
 0x4a7   : > { %v3577_v9 = vpop.xlane.xlu1 %3576  ;;  %11234 = vpow2.f32 %v3622_v39  ;;  %v3601_v33 = vsub.f32 %v13823_v45, %v3579_v1 }
 0x4a8   : > { %11236 = vpow2.f32 %v3620_v44  ;;  %v3600_v53 = vsub.f32 %v13828_v62, %v3577_v9 }
 0x4a9   : > { %v13958_v11 = vpop.eup %11228  ;;  %v3626_v47 = vmul.f32 1.442695, %v3601_v33 }
 0x4aa   : > { %v3583_v19 = vpop.xlane.xlu0 %3582  ;;  %3646 = vadd.xlane.f32.xlu0 %v13958_v11  ;;  %v3624_v8 = vmul.f32 1.442695, %v3600_v53  ;;  %v10922_v53 = vunpack.i.l.bf16 %v13831_v41 }
 0x4ab   : > { %v3581_v55 = vpop.xlane.xlu1 %3580  ;;  %11238 = vpow2.f32 %v3626_v47  ;;  %v3603_v62 = vsub.f32 %v13835_v20, %v3583_v19  ;;  %v10923_v47 = vunpack.i.h.bf16 %v13831_v41 }
 0x4ac   : > { %v3602_v45 = vsub.f32 %v13840_v5, %v3581_v55  ;;  %11240 = vpow2.f32 %v3624_v8 }
 0x4ad   : > { %v13962_v37 = vpop.eup %11230  ;;  %11242 = vpow2.f32 %v3608_v56  ;;  %v3630_v50 = vmul.f32 1.442695, %v3603_v62  ;;  %v10099_v56 = vpack.c.bf16 %v10923_v47, %v10922_v53 }
 0x4ae   : > { %v3587_v15 = vpop.xlane.xlu0 %3586  ;;  %3650 = vadd.xlane.f32.xlu0 %v13962_v37  ;;  %v13966_v21 = vpop.eup %11232  ;;  %v3628_v40 = vmul.f32 1.442695, %v3602_v45 }
 0x4af   : > { %v13979_v30 = vpop.xlane.xlu1 %3584  ;;  %v3605_v5 = vsub.f32 %v13846_v32, %v3587_v15 }
 0x4b0   : > { %11244 = vpow2.f32 %v3628_v40 }
 0x4b1   : > { %v13971_v29 = vpop.eup %11234  ;;  %v3634_v20 = vmul.f32 1.442695, %v3605_v5 }
 0x4b2   : > { %v3591_v57 = vpop.xlane.xlu0 %3590  ;;  %3648 = vadd.xlane.f32.xlu0 %v13966_v21  ;;  %v13977_v38 = vpop.eup %11236 }
 0x4b3   : > { %v3607_v39 = vsub.f32 %v13857_v35, %v3591_v57 }
 0x4b5   : > { %v13983_v31 = vpop.eup %11238  ;;  %v3638_v19 = vmul.f32 1.442695, %v3607_v39 }
 0x4b6   : > { %3654 = vadd.xlane.f32.xlu0 %v13971_v29  ;;  %v13975_v60 = vpop.xlane.xlu0 %3588  ;;  %v13987_v4 = vpop.eup %11240 }
 0x4b7   : > { %v13990_v32 = vpop.eup %11242 }
 0x4ba   : > { %3652 = vadd.xlane.f32.xlu0 %v13977_v38  ;;  %v13992_v44 = vpop.eup %11244 }
 0x4bc   : > { %v3049_v48 = vpop.xlane.xlu0 %3048 }
 0x4bd   : > { %11246 = vrcp.f32 %v3049_v48  ;;  %v3047_v1 = vpop.xlane.xlu1 %3046 }
 0x4be   : > { %11248 = vrcp.f32 %v3047_v1  ;;  %3658 = vadd.xlane.f32.xlu0 %v13983_v31 }
 0x4bf   : > { %11250 = vpow2.f32 %v3630_v50 }
 0x4c0   : > { %11252 = vpow2.f32 %v3634_v20 }
 0x4c1   : > { %v3053_v9 = vpop.xlane.xlu1 %3052 }
 0x4c2   : > { %3656 = vadd.xlane.f32.xlu0 %v13987_v4  ;;  %11254 = vrcp.f32 %v3053_v9 }
 0x4c5   : > { %v3051_v33 = vpop.xlane.xlu1 %3050 }
 0x4c6   : > { %11256 = vrcp.f32 %v3051_v33  ;;  %3640 = vadd.xlane.f32.xlu1 %v13990_v32  ;;  %3660 = vadd.xlane.f32.xlu0 %v13992_v44 }
 0x4c7   : > { %v11247_v15 = vpop.eup %11246  ;;  %11258 = vpow2.f32 %v3638_v19 }
 0x4c8   : > { %v11249_v35 = vpop.eup %11248  ;;  %v3081_v45 = vmul.f32 %v11247_v15, %v13870_v58  ;;  %v16265_v15 = vpack.i.bf16 %v13560_v52, %v13556_v34 }
 0x4c9   : > { %v13998_v55 = vpop.eup %11250  ;;  %v3057_v14 = vpop.xlane.xlu0 %3056  ;;  %v3079_v8 = vmul.f32 %v11249_v35, %v13872_v24 }
 0x4ca   : > { %v3055_v57 = vpop.xlane.xlu1 %3054  ;;  %11260 = vrcp.f32 %v3057_v14  ;;  %3662 = vadd.xlane.f32.xlu0 %v13998_v55  ;;  %v14003_v62 = vpop.eup %11252 }
 0x4cb   : > { %11262 = vrcp.f32 %v3055_v57  ;;  %8847 = vmatprep.mubr.f32.mxu1 %v3079_v8 }
 0x4cc   : > { %8848 = vmatmul.mubr.f32.vlgmr.msra.gmra.mrb[112].mxu1 %v3081_v45  ;;  %v11255_v24 = vpop.eup %11254 }
 0x4cd   : > { %10098 = vmatpush3.bf16.msra.mxu1 %v13598_v28  ;;  %v3061_v41 = vpop.xlane.xlu0 %3060  ;;  %v3085_v28 = vmul.f32 %v11255_v24, %v13878_v16 }
 0x4ce   : > { %v3059_v40 = vpop.xlane.xlu1 %3058  ;;  %11264 = vrcp.f32 %v3061_v41  ;;  %10100 = vmatprep.subr.bf16.mxu1 %v10099_v56  ;;  %3666 = vadd.xlane.f32.xlu0 %v14003_v62 }
 0x4cf   : > { %11266 = vrcp.f32 %v3059_v40 }
 0x4d0   : > { %v11257_v50 = vpop.eup %11256 }
 0x4d1   : > { %v14007_v5 = vpop.eup %11258  ;;  %10102 = vmatpush3.bf16.msra.mxu1 %v10099_v56  ;;  %v3065_v58 = vpop.xlane.xlu0 %3064  ;;  %v3083_v1 = vmul.f32 %v11257_v50, %v13882_v54 }
 0x4d2   : > { %v3063_v48 = vpop.xlane.xlu1 %3062  ;;  %11268 = vrcp.f32 %v3065_v58  ;;  %3670 = vadd.xlane.f32.xlu0 %v14007_v5 }
 0x4d3   : > { %11270 = vrcp.f32 %v3063_v48  ;;  %8850 = vmatprep.mubr.f32.mxu1 %v3083_v1  ;;  %v3594_v48 = vsub.f32 %v13798_v22, %v13941_v18  ;;  %v3604_v1 = vsub.f32 %v13852_v59, %v13979_v30 }
 0x4d4   : > { %v11261_v20 = vpop.eup %11260  ;;  %8851 = vmatmul.mubr.f32.gmra.mrb[114].mxu1 %v3085_v28 }
 0x4d5   : > { %v11263_v39 = vpop.eup %11262  ;;  %v3089_v19 = vmul.f32 %v11261_v20, %v13889_v63  ;;  %v3632_v28 = vmul.f32 1.442695, %v3604_v1  ;;  %v3606_v20 = vsub.f32 %v13863_v12, %v13975_v60  ;;  %v16266_v12 = vpack.i.bf16 %v12994_v26, %v12984_v0 }
 0x4d6   : > { %v3069_v9 = vpop.xlane.xlu1 %3068  ;;  %v3087_v33 = vmul.f32 %v11263_v39, %v13887_v13  ;;  %v16268_v0 = vpack.i.bf16 %v13051_v25, %v13047_v23 }
 0x4d7   : > { %10950 = vrot.lane.b32.xlu1 %v16265_v15, %s11885_s28  ;;  %11272 = vrcp.f32 %v3069_v9  ;;  %v3636_v39 = vmul.f32 1.442695, %v3606_v20  ;;  %v16267_v9 = vpack.i.bf16 %v13032_v36, %v13028_v7  ;;  %v16275_v20 = vld [vmem:[#allocation65_spill] sm:$0xff] }
 0x4d8   : > { %v11265_v54 = vpop.eup %11264  ;;  %8853 = vmatprep.mubr.f32.mxu1 %v3087_v33 }
 0x4d9   : > { %v11267_v35 = vpop.eup %11266  ;;  %8854 = vmatmul.mubr.f32.gmra.mrb[116].mxu1 %v3089_v19  ;;  %v3073_v16 = vpop.xlane.xlu0 %3072  ;;  %v3093_v53 = vmul.f32 %v11265_v54, %v13896_v6 }
 0x4da   : > { %v3067_v47 = vpop.xlane.xlu1 %3066  ;;  %v3091_v14 = vmul.f32 %v11267_v35, %v13894_v10 }
 0x4db   : > { %11274 = vrcp.f32 %v3067_v47 }
 0x4dc   : > { %v11269_v63 = vpop.eup %11268  ;;  %8856 = vmatprep.mubr.f32.mxu1 %v3091_v14 }
 0x4dd   : > { %v11271_v13 = vpop.eup %11270  ;;  %8857 = vmatmul.mubr.f32.gmra.mrb[118].mxu1 %v3093_v53  ;;  %v10926_v57 = vpop.permute.xlu0 %10925  ;;  %v3097_v52 = vmul.f32 %v11269_v63, %v13902_v61 }
 0x4de   : > { %v10931_v8 = vpop.permute.xlu1 %10930  ;;  %v10928_v34 = vunpack.i.h.bf16 %v10926_v57  ;;  %v10927_v45 = vunpack.i.l.bf16 %v10926_v57  ;;  %v3095_v40 = vmul.f32 %v11271_v13, %v13900_v49  ;;  %v3612_v49 = vmul.f32 1.442695, %v3594_v48 }
 0x4df   : > { %v10933_v56 = vunpack.i.h.bf16 %v10931_v8  ;;  %v10932_v41 = vunpack.i.l.bf16 %v10931_v8 }
 0x4e0   : > { %v10103_v24 = vpack.c.bf16 %v10928_v34, %v10927_v45  ;;  %8859 = vmatprep.mubr.f32.mxu1 %v3095_v40  ;;  %11276 = vpow2.f32 %v3612_v49  ;;  %v16269_v40 = vld [vmem:[#allocation34_spill] sm:$0xff]  ;;  %v16274_v49 = vld [vmem:[#allocation57_spill] sm:$0xff] }
 0x4e1   : > { %8860 = vmatmul.mubr.f32.gmra.mrb[120].mxu1 %v3097_v52  ;;  %v10107_v10 = vpack.c.bf16 %v10933_v56, %v10932_v41  ;;  %v11273_v6 = vpop.eup %11272  ;;  %11278 = vpow2.f32 %v3632_v28 }
 0x4e2   : > { %10104 = vmatprep.subr.bf16.mxu1 %v10103_v24  ;;  %v3101_v61 = vmul.f32 %v11273_v6, %v13906_v27  ;;  %11280 = vpow2.f32 %v3636_v39 }
 0x4e3   : > { %10106 = vmatpush3.bf16.msra.mxu1 %v10103_v24  ;;  %11282 = vrcp.f32 %v3073_v16  ;;  %v16270_v24 = vld [vmem:[#allocation33_spill] sm:$0xff] }
 0x4e4   : > { %10108 = vmatprep.subr.bf16.mxu1 %v10107_v10  ;;  %vm16271_vm1 = vnez %v16270_v24 }
 0x4e5   : > { %v11275_v50 = vpop.eup %11274 }
 0x4e6   : > { %v3099_v58 = vmul.f32 %v11275_v50, %v13909_v42 }
 0x4e7   : > { %10110 = vmatpush3.bf16.msra.mxu1 %v10107_v10 }
 0x4e8   : > { %8862 = vmatprep.mubr.f32.mxu1 %v3099_v58 }
 0x4e9   : > { %8863 = vmatmul.mubr.f32.gmra.mrb[122].mxu1 %v3101_v61  ;;  %v16272_v61 = vld [vmem:[#allocation55_spill] sm:$0xff] }
 0x4ea   : > { %v14030_v42 = vpop.eup %11276 }
 0x4eb   : > { %v14033_v27 = vpop.eup %11278 }
 0x4ec   : > { %v14036_v22 = vpop.eup %11280 }
 0x4ed   : > { %v11283_v30 = vpop.eup %11282 }
 0x4ee   : > { %v3105_v16 = vmul.f32 %v11283_v30, %v13911_v2  ;;  %v16277_v30 = vld [vmem:[#allocation83_spill] sm:$0xff] }
 0x4fb   : > { %3644 = vadd.xlane.f32.xlu1 %v14030_v42 }
 0x4ff   : > { %3664 = vadd.xlane.f32.xlu1 %v14033_v27 }
 0x503   : > { %3668 = vadd.xlane.f32.xlu1 %v14036_v22 }
 0x50e   : > { %v3071_v59 = vpop.xlane.xlu1 %3070 }
 0x50f   : > { %11284 = vrcp.f32 %v3071_v59  ;;  %v16276_v59 = vld [vmem:[#allocation74_spill] sm:$0xff] }
 0x512   : > { %v3077_v18 = vpop.xlane.xlu1 %3076 }
 0x513   : > { %11286 = vrcp.f32 %v3077_v18 }
 0x514   : > { %10955 = vrot.lane.b32.xlu1 %v16266_v12, %s11885_s28 }
 0x516   : > { %v3075_v60 = vpop.xlane.xlu1 %3074 }
 0x517   : > { %11288 = vrcp.f32 %v3075_v60 }
 0x518   : > { %10965 = vrot.lane.b32.xlu1 %v16267_v9, %s11885_s28 }
 0x519   : > { %v11285_v19 = vpop.eup %11284 }
 0x51a   : > { %v10936_v33 = vpop.permute.xlu1 %10935  ;;  %v3103_v15 = vmul.f32 %v11285_v19, %v13926_v46 }
 0x51b   : > { %v10938_v54 = vunpack.i.h.bf16 %v10936_v33  ;;  %v10937_v35 = vunpack.i.l.bf16 %v10936_v33 }
 0x51c   : > { %10970 = vrot.lane.b32.xlu1 %v16268_v0, %s11885_s28  ;;  %8865 = vmatprep.mubr.f32.mxu1 %v3103_v15 }
 0x51d   : > { %8866 = vmatmul.mubr.f32.gmra.mrb[124].mxu1 %v3105_v16  ;;  %v10111_v26 = vpack.c.bf16 %v10938_v54, %v10937_v35  ;;  %v11287_v7 = vpop.eup %11286 }
 0x51e   : > { %v10941_v47 = vpop.permute.xlu1 %10940  ;;  %v3109_v25 = vmul.f32 %v11287_v7, %v13929_v43 }
 0x51f   : > { %v10943_v53 = vunpack.i.h.bf16 %v10941_v47  ;;  %v10942_v36 = vunpack.i.l.bf16 %v10941_v47  ;;  %10112 = vmatprep.subr.bf16.mxu1 %v10111_v26 }
 0x520   : > { %10114 = vmatpush3.bf16.msra.mxu1 %v10111_v26 }
 0x521   : > { %v11289_v14 = vpop.eup %11288  ;;  %v10115_v46 = vpack.c.bf16 %v10943_v53, %v10942_v36 }
 0x522   : > { %v10946_v63 = vpop.permute.xlu1 %10945  ;;  %v3107_v13 = vmul.f32 %v11289_v14, %v13932_v17 }
 0x523   : > { %v10948_v2 = vunpack.i.h.bf16 %v10946_v63  ;;  %v10947_v57 = vunpack.i.l.bf16 %v10946_v63  ;;  %10116 = vmatprep.subr.bf16.mxu1 %v10115_v46  ;;  %v16278_v63 = vld [vmem:[#allocation92_spill] sm:$0xff] }
 0x524   : > { %8868 = vmatprep.mubr.f32.mxu1 %v3107_v13  ;;  %10118 = vmatpush3.bf16.msra.mxu1 %v10115_v46 }
 0x525   : > { %8869 = vmatmul.mubr.f32.gmra.mrb[126].mxu1 %v3109_v25  ;;  %v10119_v23 = vpack.c.bf16 %v10948_v2, %v10947_v57 }
 0x527   : > { %10120 = vmatprep.subr.bf16.mxu1 %v10119_v23 }
 0x528   : > { %10122 = vmatpush3.bf16.msra.mxu1 %v10119_v23 }
 0x533   : > { %v3643_v8 = vpop.xlane.xlu0 %3642 }
 0x534   : > { %11290 = vrcp.f32 %v3643_v8 }
 0x537   : > { %v3647_v6 = vpop.xlane.xlu0 %3646 }
 0x53b   : > { %v3651_v58 = vpop.xlane.xlu0 %3650 }
 0x53e   : > { %v11291_v17 = vpop.eup %11290 }
 0x53f   : > { %v3675_v50 = vmul.f32 %v11291_v17, %v13954_v3  ;;  %v3649_v48 = vpop.xlane.xlu0 %3648 }
 0x543   : > { %v3655_v3 = vpop.xlane.xlu0 %3654 }
 0x547   : > { %v3653_v1 = vpop.xlane.xlu0 %3652 }
 0x54b   : > { %v3659_v28 = vpop.xlane.xlu0 %3658 }
 0x54f   : > { %v3657_v39 = vpop.xlane.xlu0 %3656 }
 0x553   : > { %v3641_v52 = vpop.xlane.xlu1 %3640  ;;  %v3661_v12 = vpop.xlane.xlu0 %3660 }
 0x554   : > { %11292 = vrcp.f32 %v3641_v52 }
 0x555   : > { %11294 = vrcp.f32 %v3647_v6 }
 0x556   : > { %11296 = vrcp.f32 %v3649_v48 }
 0x557   : > { %v10951_v34 = vpop.permute.xlu1 %10950  ;;  %v3663_v33 = vpop.xlane.xlu0 %3662 }
 0x558   : > { %v10953_v45 = vunpack.i.h.bf16 %v10951_v34  ;;  %v10952_v56 = vunpack.i.l.bf16 %v10951_v34 }
 0x55a   : > { %v10123_v41 = vpack.c.bf16 %v10953_v45, %v10952_v56 }
 0x55b   : > { %v3667_v14 = vpop.xlane.xlu0 %3666 }
 0x55c   : > { %10124 = vmatprep.subr.bf16.mxu1 %v10123_v41 }
 0x55d   : > { %10126 = vmatpush3.bf16.msra.mxu1 %v10123_v41 }
 0x55e   : > { %10129 = vmatprep.subr.msk.bf16.mxu1 %vm16271_vm1, %v16269_v40  ;;  %v11293_v43 = vpop.eup %11292 }
 0x55f   : > { %v3673_v10 = vmul.f32 %v11293_v43, %v13990_v32  ;;  %v16273_v32 = vld [vmem:[#allocation56_spill] sm:$0xff]  ;;  %v11295_v19 = vpop.eup %11294  ;;  %v3671_v2 = vpop.xlane.xlu0 %3670 }
 0x560   : > { %v11297_v15 = vpop.eup %11296  ;;  %v3679_v47 = vmul.f32 %v11295_v19, %v13958_v11  ;;  %v16317_v19 = vld [vmem:[#allocation28_spill] sm:$0xff] }
 0x561   : > { %8959 = vmatprep.mubr.f32.mxu1 %v3673_v10  ;;  %v3681_v36 = vmul.f32 %v11297_v15, %v13966_v21 }
 0x562   : > { %8960 = vmatmul.mubr.f32.vlgmr.msra.gmra.mrb[128].mxu1 %v3675_v50 }
 0x566   : > { %10132 = vmatpush3.bf16.xpose.msk.msra.mxu1 %vm16271_vm1, %v16269_v40 }
 0x567   : > { %10135 = vmatprep.subr.msk.bf16.mxu1 %vm16271_vm1, %v16272_v61 }
 0x56e   : > { %10138 = vmatpush3.bf16.xpose.msk.msra.mxu1 %vm16271_vm1, %v16272_v61 }
 0x56f   : > { %10141 = vmatprep.subr.msk.bf16.mxu1 %vm16271_vm1, %v16273_v32 }
 0x576   : > { %10144 = vmatpush3.bf16.xpose.msk.msra.mxu1 %vm16271_vm1, %v16273_v32 }
 0x577   : > { %10147 = vmatprep.subr.msk.bf16.mxu1 %vm16271_vm1, %v16274_v49 }
 0x57e   : > { %10150 = vmatpush3.bf16.xpose.msk.msra.mxu1 %vm16271_vm1, %v16274_v49  ;;  %v16299_v49 = vld [vmem:[#allocation22_spill] sm:$0xff] }
 0x57f   : > { %10153 = vmatprep.subr.msk.bf16.mxu1 %vm16271_vm1, %v16275_v20 }
 0x586   : > { %10156 = vmatpush3.bf16.xpose.msk.msra.mxu1 %vm16271_vm1, %v16275_v20 }
 0x587   : > { %10159 = vmatprep.subr.msk.bf16.mxu1 %vm16271_vm1, %v16276_v59 }
 0x588   : > { %v3645_v18 = vpop.xlane.xlu1 %3644 }
 0x589   : > { %11298 = vrcp.f32 %v3645_v18  ;;  %v16308_v18 = vld [vmem:[#allocation27_spill] sm:$0xff] }
 0x58a   : > { %11300 = vrcp.f32 %v3651_v58  ;;  %v16286_v58 = vld [vmem:[#allocation51_spill] sm:$0xff] }
 0x58b   : > { %11302 = vrcp.f32 %v3653_v1 }
 0x58c   : > { %v3665_v60 = vpop.xlane.xlu1 %3664  ;;  %11304 = vrcp.f32 %v3655_v3  ;;  %v16295_v3 = vld [vmem:[#allocation20_spill] sm:$0xff] }
 0x58d   : > { %11306 = vrcp.f32 %v3657_v39  ;;  %v16304_v39 = vld [vmem:[#allocation24_spill] sm:$0xff] }
 0x58e   : > { %10162 = vmatpush3.bf16.xpose.msk.msra.mxu1 %vm16271_vm1, %v16276_v59  ;;  %11308 = vrcp.f32 %v3659_v28  ;;  %v16301_v28 = vld [vmem:[#allocation23_spill] sm:$0xff]  ;;  %v16306_v59 = vld [vmem:[#allocation26_spill] sm:$0xff] }
 0x58f   : > { %10165 = vmatprep.subr.msk.bf16.mxu1 %vm16271_vm1, %v16277_v30  ;;  %11310 = vrcp.f32 %v3661_v12  ;;  %v16310_v12 = vld [vmem:[#allocation29_spill] sm:$0xff] }
 0x590   : > { %v3669_v9 = vpop.xlane.xlu1 %3668  ;;  %11312 = vrcp.f32 %v3663_v33  ;;  %v16319_v33 = vld [vmem:[#allocation31_spill] sm:$0xff] }
 0x591   : > { %11314 = vrcp.f32 %v3665_v60  ;;  %v16312_v60 = vld [vmem:[#allocation30_spill] sm:$0xff] }
 0x592   : > { %11316 = vrcp.f32 %v3667_v14 }
 0x593   : > { %v11299_v54 = vpop.eup %11298  ;;  %11318 = vrcp.f32 %v3669_v9  ;;  %v16315_v9 = vld [vmem:[#allocation25_spill] sm:$0xff] }
 0x594   : > { %v10956_v35 = vpop.permute.xlu1 %10955  ;;  %v3677_v16 = vmul.f32 %v11299_v54, %v14030_v42  ;;  %v11301_v53 = vpop.eup %11300  ;;  %11320 = vrcp.f32 %v3671_v2 }
 0x595   : > { %v10958_v0 = vunpack.i.h.bf16 %v10956_v35  ;;  %v10957_v26 = vunpack.i.l.bf16 %v10956_v35  ;;  %v11303_v7 = vpop.eup %11302  ;;  %v3683_v11 = vmul.f32 %v11301_v53, %v13962_v37 }
 0x596   : > { %8962 = vmatprep.mubr.f32.mxu1 %v3677_v16  ;;  %10168 = vmatpush3.bf16.xpose.msk.msra.mxu1 %vm16271_vm1, %v16277_v30  ;;  %v11305_v42 = vpop.eup %11304  ;;  %v3685_v21 = vmul.f32 %v11303_v7, %v13977_v38  ;;  %v16313_v30 = vld [vmem:[#allocation32_spill] sm:$0xff] }
 0x597   : > { %v14102_v46 = vpack.c.bf16 %v10958_v0, %v10957_v26  ;;  %8963 = vmatmul.mubr.f32.gmra.mrb[130].mxu1 %v3679_v47  ;;  %10171 = vmatprep.subr.msk.bf16.mxu1 %vm16271_vm1, %v16278_v63  ;;  %v11307_v13 = vpop.eup %11306  ;;  %v3687_v57 = vmul.f32 %v11305_v42, %v13971_v29 }
 0x598   : > { %8965 = vmatprep.mubr.f32.mxu1 %v3681_v36  ;;  %v11309_v25 = vpop.eup %11308  ;;  %v3689_v23 = vmul.f32 %v11307_v13, %v13987_v4 }
 0x599   : > { %10209 = vmatprep.subr.msk.bf16.mxu0 %vm16271_vm1, %v14102_v46  ;;  %v11311_v8 = vpop.eup %11310  ;;  %v3691_v52 = vmul.f32 %v11309_v25, %v13983_v31 }
 0x59a   : > { %v11313_v34 = vpop.eup %11312  ;;  %v3693_v29 = vmul.f32 %v11311_v8, %v13992_v44 }
 0x59b   : > { %8966 = vmatmul.mubr.f32.gmra.mrb[132].mxu1 %v3683_v11  ;;  %v11315_v45 = vpop.eup %11314  ;;  %v3695_v56 = vmul.f32 %v11313_v34, %v13998_v55 }
 0x59c   : > { %8968 = vmatprep.mubr.f32.mxu1 %v3685_v21  ;;  %v11317_v41 = vpop.eup %11316  ;;  %v3697_v4 = vmul.f32 %v11315_v45, %v14033_v27 }
 0x59d   : > { %v11319_v17 = vpop.eup %11318  ;;  %v3699_v31 = vmul.f32 %v11317_v41, %v14003_v62  ;;  %v16289_v62 = vld [vmem:[#allocation52_spill] sm:$0xff] }
 0x59e   : > { %10174 = vmatpush3.bf16.xpose.msk.msra.mxu1 %vm16271_vm1, %v16278_v63  ;;  %v11321_v10 = vpop.eup %11320  ;;  %v3701_v44 = vmul.f32 %v11319_v17, %v14036_v22  ;;  %vm16287_vm1 = vcmask 523264   ;;  %v16291_v22 = vld [vmem:[#allocation19_spill] sm:$0xff] }
 0x59f   : > { %v14117_v37 = vpop.f32.mrb[112].mxu1  ;;  %8969 = vmatmul.mubr.f32.gmra.mrb[134].mxu1 %v3687_v57  ;;  %v3703_v27 = vmul.f32 %v11321_v10, %v14007_v5  ;;  %vm16290_vm15 = vmmov %vm16287_vm1  ;;  %v16297_v5 = vld [vmem:[#allocation21_spill] sm:$0xff] }
 0x5a0   : > { %16279 = vst [vmem:[#allocation34_spill] sm:$0xff] %v14117_v37  ;;  %v14119_v38 = vpop.f32.mrb[113].mxu1  ;;  %8971 = vmatprep.mubr.f32.mxu1 %v3689_v23  ;;  %vm16292_vm13 = vmmov %vm16287_vm1 }
 0x5a1   : > { %16280 = vst [vmem:[#allocation33_spill] sm:$0xff] %v14119_v38  ;;  %vm16296_vm11 = vmmov %vm16287_vm1 }
 0x5a2   : > { %vm16298_vm9 = vmmov %vm16287_vm1 }
 0x5a3   : > { %8972 = vmatmul.mubr.f32.gmra.mrb[136].mxu1 %v3691_v52  ;;  %vm16307_vm7 = vmmov %vm16287_vm1 }
 0x5a4   : > { %8974 = vmatprep.mubr.f32.mxu1 %v3693_v29  ;;  %vm16314_vm4 = vmmov %vm16287_vm1 }
 0x5a7   : > { %v14125_v40 = vpop.f32.mrb[114].mxu1  ;;  %8975 = vmatmul.mubr.f32.gmra.mrb[138].mxu1 %v3695_v56 }
 0x5a8   : > { %16281 = vst [vmem:[#allocation55_spill] sm:$0xff] %v14125_v40  ;;  %v14127_v43 = vpop.f32.mrb[115].mxu1  ;;  %8977 = vmatprep.mubr.f32.mxu1 %v3697_v4 }
 0x5a9   : > { %16282 = vst [vmem:[#allocation56_spill] sm:$0xff] %v14127_v43  ;;  %v16349_v43 = vld [vmem:[#allocation53_spill] sm:$0xff] }
 0x5ab   : > { %8978 = vmatmul.mubr.f32.gmra.mrb[140].mxu1 %v3699_v31 }
 0x5ac   : > { %v14131_v6 = vpop.f32.mrb[116].mxu1  ;;  %8980 = vmatprep.mubr.f32.mxu1 %v3701_v44 }
 0x5ad   : > { %16283 = vst [vmem:[#allocation57_spill] sm:$0xff] %v14131_v6  ;;  %v14133_v55 = vpop.f32.mrb[117].mxu1 }
 0x5ae   : > { %16284 = vst [vmem:[#allocation65_spill] sm:$0xff] %v14133_v55 }
 0x5af   : > { %8981 = vmatmul.mubr.f32.gmra.mrb[142].mxu1 %v3703_v27 }
 0x5b0   : > { %v14136_v50 = vpop.f32.mrb[118].mxu1  ;;  %9015 = vmatprep.mubr.msk.f32.mxu1 %vm16287_vm1, %v16286_v58 }
 0x5b1   : > { %16285 = vst [vmem:[#allocation74_spill] sm:$0xff] %v14136_v50  ;;  %v14140_v61 = vpop.f32.mrb[119].mxu1 }
 0x5b2   : > { %16288 = vst [vmem:[#allocation83_spill] sm:$0xff] %v14140_v61 }
 0x5b3   : > { %9016 = vmatmul.mubr.msk.f32.vlgmr.msra.gmra.mrb[144].mxu1 %vm16290_vm15, %v16289_v62  ;;  %vm16302_vm15 = vmmov %vm16287_vm1 }
 0x5b4   : > { %9018 = vmatprep.mubr.msk.f32.mxu1 %vm16292_vm13, %v16291_v22  ;;  %v14146_v48 = vpop.f32.mrb[120].mxu1  ;;  %vm16305_vm13 = vmmov %vm16287_vm1 }
 0x5b5   : > { %16293 = vst [vmem:[#allocation92_spill] sm:$0xff] %v14146_v48  ;;  %v14148_v32 = vpop.f32.mrb[121].mxu1 }
 0x5b6   : > { %16294 = vst [vmem:[#allocation51_spill] sm:$0xff] %v14148_v32 }
 0x5b7   : > { %9019 = vmatmul.mubr.msk.f32.gmra.mrb[146].mxu1 %vm16296_vm11, %v16295_v3  ;;  %vm16309_vm11 = vmmov %vm16287_vm1 }
 0x5b8   : > { %9021 = vmatprep.mubr.msk.f32.mxu1 %vm16298_vm9, %v16297_v5  ;;  %vm16311_vm9 = vmmov %vm16287_vm1 }
 0x5bb   : > { %9022 = vmatmul.mubr.msk.f32.gmra.mrb[148].mxu1 %vm16287_vm1, %v16299_v49 }
 0x5bc   : > { %v14156_v1 = vpop.f32.mrb[122].mxu1  ;;  %9024 = vmatprep.mubr.msk.f32.mxu1 %vm16302_vm15, %v16301_v28  ;;  %vm16316_vm15 = vmmov %vm16287_vm1 }
 0x5bd   : > { %16300 = vst [vmem:[#allocation52_spill] sm:$0xff] %v14156_v1  ;;  %v14160_v20 = vpop.f32.mrb[123].mxu1 }
 0x5be   : > { %16303 = vst [vmem:[#allocation19_spill] sm:$0xff] %v14160_v20 }
 0x5bf   : > { %9025 = vmatmul.mubr.msk.f32.gmra.mrb[150].mxu1 %vm16305_vm13, %v16304_v39  ;;  %vm16318_vm13 = vmmov %vm16287_vm1 }
 0x5c0   : > { %9027 = vmatprep.mubr.msk.f32.mxu1 %vm16307_vm7, %v16306_v59  ;;  %vm16320_vm7 = vmmov %vm16287_vm1 }
 0x5c3   : > { %9028 = vmatmul.mubr.msk.f32.gmra.mrb[152].mxu1 %vm16309_vm11, %v16308_v18 }
 0x5c4   : > { %9030 = vmatprep.mubr.msk.f32.mxu1 %vm16311_vm9, %v16310_v12 }
 0x5c7   : > { %9031 = vmatmul.mubr.msk.f32.gmra.mrb[154].mxu1 %vm16287_vm1, %v16312_v60 }
 0x5c8   : > { %9033 = vmatprep.mubr.msk.f32.mxu1 %vm16314_vm4, %v16313_v30 }
 0x5cb   : > { %9034 = vmatmul.mubr.msk.f32.gmra.mrb[156].mxu1 %vm16316_vm15, %v16315_v9 }
 0x5cc   : > { %9036 = vmatprep.mubr.msk.f32.mxu1 %vm16318_vm13, %v16317_v19 }
 0x5cf   : > { %9037 = vmatmul.mubr.msk.f32.gmra.mrb[158].mxu1 %vm16320_vm7, %v16319_v33 }
 0x5f0   : > { %v14180_v15 = vpop.f32.mrb[124].mxu1 }
 0x5f1   : > { %16321 = vst [vmem:[#allocation20_spill] sm:$0xff] %v14180_v15  ;;  %v14182_v54 = vpop.f32.mrb[125].mxu1 }
 0x5f2   : > { %16322 = vst [vmem:[#allocation21_spill] sm:$0xff] %v14182_v54 }
 0x5f8   : > { %v14184_v35 = vpop.f32.mrb[126].mxu1 }
 0x5f9   : > { %16323 = vst [vmem:[#allocation22_spill] sm:$0xff] %v14184_v35  ;;  %v14186_v16 = vpop.f32.mrb[127].mxu1 }
 0x5fa   : > { %16324 = vst [vmem:[#allocation23_spill] sm:$0xff] %v14186_v16 }
 0x635   : > { %v14188_v0 = vpop.f32.mrb[128].mxu1 }
 0x636   : > { %16325 = vst [vmem:[#allocation24_spill] sm:$0xff] %v14188_v0  ;;  %v14190_v26 = vpop.f32.mrb[129].mxu1 }
 0x637   : > { %16326 = vst [vmem:[#allocation26_spill] sm:$0xff] %v14190_v26 }
 0x66a   : > { %v14192_v47 = vpop.f32.mrb[130].mxu1 }
 0x66b   : > { %16327 = vst [vmem:[#allocation27_spill] sm:$0xff] %v14192_v47  ;;  %v14194_v53 = vpop.f32.mrb[131].mxu1 }
 0x66c   : > { %16328 = vst [vmem:[#allocation29_spill] sm:$0xff] %v14194_v53 }
 0x66e   : > { %v14196_v36 = vpop.f32.mrb[132].mxu1 }
 0x66f   : > { %16329 = vst [vmem:[#allocation30_spill] sm:$0xff] %v14196_v36  ;;  %v14198_v7 = vpop.f32.mrb[133].mxu1 }
 0x670   : > { %16330 = vst [vmem:[#allocation32_spill] sm:$0xff] %v14198_v7 }
 0x672   : > { %v14200_v14 = vpop.f32.mrb[134].mxu1 }
 0x673   : > { %16331 = vst [vmem:[#allocation25_spill] sm:$0xff] %v14200_v14  ;;  %v14202_v63 = vpop.f32.mrb[135].mxu1  ;;  %v16362_v14 = vld [vmem:[#allocation142_spill] sm:$0xff] }
 0x674   : > { %16332 = vst [vmem:[#allocation28_spill] sm:$0xff] %v14202_v63  ;;  %vm16363_vm9 = vnez %v16362_v14 }
 0x676   : > { %v14204_v11 = vpop.f32.mrb[136].mxu1 }
 0x677   : > { %16333 = vst [vmem:[#allocation31_spill] sm:$0xff] %v14204_v11  ;;  %v14206_v42 = vpop.f32.mrb[137].mxu1 }
 0x678   : > { %16334 = vst [vmem:[#allocation151_spill] sm:$0xff] %v14206_v42  ;;  %v16360_v42 = vld [vmem:[#allocation140_spill] sm:$0xff] }
 0x679   : > { %vm16361_vm11 = vnez %v16360_v42 }
 0x67a   : > { %v14208_v21 = vpop.f32.mrb[138].mxu1 }
 0x67b   : > { %16335 = vst [vmem:[#allocation152_spill] sm:$0xff] %v14208_v21  ;;  %v14210_v13 = vpop.f32.mrb[139].mxu1  ;;  %v16358_v21 = vld [vmem:[#allocation137_spill] sm:$0xff] }
 0x67c   : > { %16336 = vst [vmem:[#allocation153_spill] sm:$0xff] %v14210_v13  ;;  %vm16359_vm4 = vnez %v16358_v21 }
 0x67e   : > { %v14212_v2 = vpop.f32.mrb[140].mxu1 }
 0x67f   : > { %16337 = vst [vmem:[#allocation154_spill] sm:$0xff] %v14212_v2  ;;  %v14214_v57 = vpop.f32.mrb[141].mxu1 }
 0x680   : > { %16338 = vst [vmem:[#allocation155_spill] sm:$0xff] %v14214_v57  ;;  %v16353_v57 = vld [vmem:[#allocation68_spill] sm:$0xff] }
 0x682   : > { %v14216_v25 = vpop.f32.mrb[142].mxu1 }
 0x683   : > { %16339 = vst [vmem:[#allocation156_spill] sm:$0xff] %v14216_v25  ;;  %v14218_v23 = vpop.f32.mrb[143].mxu1 }
 0x684   : > { %16340 = vst [vmem:[#allocation157_spill] sm:$0xff] %v14218_v23 }
 0x686   : > { %v9017_v8 = vpop.f32.mrb[144].mxu1 }
 0x687   : > { %v4155_v52 = vmul.f32 0.05103104, %v9017_v8  ;;  %v4075_v34 = vpop.f32.mrb[145].mxu1 }
 0x688   : > { %v4154_v29 = vmul.f32 0.05103104, %v4075_v34 }
 0x689   : > { %v14222_v56 = vsel %vm13607_vm2, %v4155_v52, -1e+30 }
 0x68a   : > { %4188 = vmax.xlane.f32.xlu0 %v14222_v56  ;;  %v9020_v41 = vpop.f32.mrb[146].mxu1  ;;  %v14227_v17 = vsel %vm13614_vm3, %v4154_v29, -1e+30 }
 0x68b   : > { %4186 = vmax.xlane.f32.xlu1 %v14227_v17  ;;  %v4085_v31 = vpop.f32.mrb[147].mxu1 }
 0x68c   : > { %v4156_v10 = vmul.f32 0.05103104, %v4085_v31 }
 0x68e   : > { %v9023_v44 = vpop.f32.mrb[148].mxu1  ;;  %v14232_v8 = vsel %vm13640_vm5, %v4156_v10, -1e+30 }
 0x68f   : > { %4190 = vmax.xlane.f32.xlu1 %v14232_v8  ;;  %v4095_v52 = vpop.f32.mrb[149].mxu1  ;;  %v4159_v13 = vmul.f32 0.05103104, %v9023_v44  ;;  %v16366_v44 = vld [vmem:[#allocation146_spill] sm:$0xff] }
 0x690   : > { %v4158_v34 = vmul.f32 0.05103104, %v4095_v52  ;;  %vm16367_vm15 = vnez %v16366_v44  ;;  %v16583_v52 = vld [vmem:[#allocation111_spill] sm:$0xff] }
 0x691   : > { %v4175_v11 = vsel %vm16361_vm11, %v4159_v13, -1e+30  ;;  %v16368_v13 = vld [vmem:[#allocation148_spill] sm:$0xff] }
 0x692   : > { %v9026_v35 = vpop.f32.mrb[150].mxu1  ;;  %v14237_v15 = vsel %vm13646_vm6, %v4158_v34, -1e+30  ;;  %vm16369_vm13 = vnez %v16368_v13 }
 0x693   : > { %4194 = vmax.xlane.f32.xlu1 %v14237_v15  ;;  %v4105_v29 = vpop.f32.mrb[151].mxu1 }
 0x694   : > { %v4160_v54 = vmul.f32 0.05103104, %v4105_v29  ;;  %v16347_v29 = vld [vmem:[#allocation145_spill] sm:$0xff] }
 0x696   : > { %v9029_v1 = vpop.f32.mrb[152].mxu1  ;;  %v14242_v20 = vsel %vm13669_vm8, %v4160_v54, -1e+30 }
 0x697   : > { %4198 = vmax.xlane.f32.xlu1 %v14242_v20  ;;  %v4115_v10 = vpop.f32.mrb[153].mxu1  ;;  %v4163_v63 = vmul.f32 0.05103104, %v9029_v1 }
 0x698   : > { %v4162_v48 = vmul.f32 0.05103104, %v4115_v10  ;;  %v16348_v10 = vld [vmem:[#allocation54_spill] sm:$0xff] }
 0x699   : > { %v16350_v37 = vpack.i.bf16 %v16348_v10, %v16349_v43  ;;  %v16355_v10 = vld [vmem:[#allocation81_spill] sm:$0xff] }
 0x69a   : > { %v9032_v32 = vpop.f32.mrb[154].mxu1  ;;  %v14247_v50 = vsel %vm13690_vm10, %v4162_v48, -1e+30 }
 0x69b   : > { %4202 = vmax.xlane.f32.xlu1 %v14247_v50  ;;  %v4125_v34 = vpop.f32.mrb[155].mxu1 }
 0x69c   : > { %v4164_v61 = vmul.f32 0.05103104, %v4125_v34 }
 0x69e   : > { %v9035_v6 = vpop.f32.mrb[156].mxu1  ;;  %v14252_v55 = vsel %vm13713_vm12, %v4164_v61, -1e+30 }
 0x69f   : > { %4206 = vmax.xlane.f32.xlu1 %v14252_v55  ;;  %v4135_v54 = vpop.f32.mrb[157].mxu1 }
 0x6a0   : > { %v4166_v40 = vmul.f32 0.05103104, %v4135_v54  ;;  %10960 = vrot.lane.b32.xlu0 %v16350_v37, %s11885_s28  ;;  %v16352_v54 = vld [vmem:[#allocation72_spill] sm:$0xff]  ;;  %v4157_v37 = vmul.f32 0.05103104, %v9020_v41 }
 0x6a1   : > { %v16354_v43 = vpack.i.bf16 %v16352_v54, %v16353_v57  ;;  %v4165_v41 = vmul.f32 0.05103104, %v9032_v32  ;;  %v16364_v54 = vld [vmem:[#allocation144_spill] sm:$0xff] }
 0x6a2   : > { %v9038_v48 = vpop.f32.mrb[158].mxu1  ;;  %v14261_v38 = vsel %vm13734_vm14, %v4166_v40, -1e+30  ;;  %v16356_v40 = vld [vmem:[#allocation77_spill] sm:$0xff]  ;;  %vm16365_vm1 = vnez %v16364_v54 }
 0x6a3   : > { %4210 = vmax.xlane.f32.xlu1 %v14261_v38  ;;  %v4145_v34 = vpop.f32.mrb[159].mxu1  ;;  %v16357_v2 = vpack.i.bf16 %v16355_v10, %v16356_v40  ;;  %v16370_v10 = vld [vmem:[#allocation150_spill] sm:$0xff] }
 0x6a4   : > { %v4168_v23 = vmul.f32 0.05103104, %v4145_v34  ;;  %v4173_v34 = vsel %vm16359_vm4, %v4157_v37, -1e+30  ;;  %v14287_v37 = vsel %vm16367_vm15, %v4165_v41, -1e+30  ;;  %vm16371_vm7 = vnez %v16370_v10 }
 0x6a6   : > { %v14266_v25 = vsel %vm13756_vm0, %v4168_v23, -1e+30  ;;  %v4161_v23 = vmul.f32 0.05103104, %v9026_v35  ;;  %v4169_v35 = vmul.f32 0.05103104, %v9038_v48 }
 0x6a7   : > { %4214 = vmax.xlane.f32.xlu1 %v14266_v25 }
 0x6a8   : > { %v4177_v57 = vsel %vm16363_vm9, %v4161_v23, -1e+30  ;;  %v14297_v32 = vsel %vm16371_vm7, %v4169_v35, -1e+30  ;;  %vm16387_vm7 = vnez %v16270_v24 }
 0x6b8   : > { %10980 = vrot.lane.b32.xlu1 %v16354_v43, %s11885_s28  ;;  %v4179_v43 = vsel %vm16365_vm1, %v4163_v63, -1e+30 }
 0x6bc   : > { %10985 = vrot.lane.b32.xlu1 %v16357_v2, %s11885_s28  ;;  %v4167_v2 = vmul.f32 0.05103104, %v9035_v6  ;;  %v14300_v6 = vpop.permute.xlu1 %10965 }
 0x6be   : > { %v14292_v1 = vsel %vm16369_vm13, %v4167_v2, -1e+30 }
 0x6bf   : > { %4192 = vmax.xlane.f32.xlu0 %v4173_v34 }
 0x6c0   : > { %v14302_v63 = vpop.permute.xlu1 %10970 }
 0x6c3   : > { %4196 = vmax.xlane.f32.xlu0 %v4175_v11 }
 0x6c7   : > { %4200 = vmax.xlane.f32.xlu0 %v4177_v57 }
 0x6cb   : > { %4204 = vmax.xlane.f32.xlu0 %v4179_v43 }
 0x6cf   : > { %4208 = vmax.xlane.f32.xlu0 %v14287_v37 }
 0x6d3   : > { %4212 = vmax.xlane.f32.xlu0 %v14292_v1 }
 0x6d7   : > { %4216 = vmax.xlane.f32.xlu0 %v14297_v32 }
 0x717   : > { %v4189_v40 = vpop.xlane.xlu0 %4188 }
 0x718   : > { %v4219_v23 = vsub.f32 %v14222_v56, %v4189_v40  ;;  %v4187_v48 = vpop.xlane.xlu1 %4186 }
 0x719   : > { %v4218_v41 = vsub.f32 %v14227_v17, %v4187_v48 }
 0x71a   : > { %v4236_v2 = vmul.f32 1.442695, %v4219_v23 }
 0x71b   : > { %v4234_v7 = vmul.f32 1.442695, %v4218_v41 }
 0x71c   : > { %11322 = vpow2.f32 %v4236_v2  ;;  %v4191_v36 = vpop.xlane.xlu1 %4190 }
 0x71d   : > { %11324 = vpow2.f32 %v4234_v7  ;;  %v4220_v35 = vsub.f32 %v14232_v8, %v4191_v36  ;;  %v14328_v8 = vpop.permute.xlu0 %10960 }
 0x71f   : > { %v4238_v53 = vmul.f32 1.442695, %v4220_v35 }
 0x720   : > { %v4195_v47 = vpop.xlane.xlu1 %4194 }
 0x721   : > { %11326 = vpow2.f32 %v4238_v53  ;;  %v4222_v26 = vsub.f32 %v14237_v15, %v4195_v47  ;;  %v16372_v15 = vld [vmem:[#allocation63_spill] sm:$0xff]  ;;  %v16375_v47 = vld [vmem:[#allocation90_spill] sm:$0xff] }
 0x722   : > { %v16376_v53 = vld [vmem:[#allocation86_spill] sm:$0xff] }
 0x723   : > { %v4242_v0 = vmul.f32 1.442695, %v4222_v26  ;;  %v16373_v26 = vld [vmem:[#allocation59_spill] sm:$0xff]  ;;  %v16377_v7 = vpack.i.bf16 %v16375_v47, %v16376_v53 }
 0x724   : > { %v4199_v2 = vpop.xlane.xlu1 %4198 }
 0x725   : > { %11328 = vpow2.f32 %v4242_v0  ;;  %v16374_v0 = vpack.i.bf16 %v16372_v15, %v16373_v26  ;;  %v4224_v61 = vsub.f32 %v14242_v20, %v4199_v2 }
 0x726   : > { %v14308_v10 = vpop.eup %11322 }
 0x727   : > { %v14310_v56 = vpop.eup %11324  ;;  %4268 = vadd.xlane.f32.xlu0 %v14308_v10  ;;  %v4246_v47 = vmul.f32 1.442695, %v4224_v61 }
 0x728   : > { %4266 = vadd.xlane.f32.xlu1 %v14310_v56  ;;  %v4203_v26 = vpop.xlane.xlu1 %4202 }
 0x72b   : > { %v14314_v17 = vpop.eup %11326 }
 0x72c   : > { %4270 = vadd.xlane.f32.xlu1 %v14314_v17 }
 0x72f   : > { %v14317_v36 = vpop.eup %11328 }
 0x730   : > { %4274 = vadd.xlane.f32.xlu1 %v14317_v36 }
 0x73d   : > { %10975 = vrot.lane.b32.xlu0 %v16374_v0, %s11885_s28 }
 0x741   : > { %10990 = vrot.lane.b32.xlu1 %v16377_v7, %s11885_s28 }
 0x74c   : > { %v4193_v40 = vpop.xlane.xlu0 %4192 }
 0x74d   : > { %v4221_v23 = vsub.f32 %v4173_v34, %v4193_v40 }
 0x74f   : > { %v4240_v48 = vmul.f32 1.442695, %v4221_v23  ;;  %v4207_v23 = vpop.xlane.xlu1 %4206 }
 0x750   : > { %v4197_v41 = vpop.xlane.xlu0 %4196 }
 0x751   : > { %11330 = vpow2.f32 %v4240_v48  ;;  %v4223_v35 = vsub.f32 %v4175_v11, %v4197_v41  ;;  %v4226_v11 = vsub.f32 %v14247_v50, %v4203_v26 }
 0x753   : > { %v4244_v13 = vmul.f32 1.442695, %v4223_v35  ;;  %v4211_v41 = vpop.xlane.xlu1 %4210 }
 0x754   : > { %v4201_v44 = vpop.xlane.xlu0 %4200 }
 0x755   : > { %11332 = vpow2.f32 %v4244_v13  ;;  %v4225_v15 = vsub.f32 %v4177_v57, %v4201_v44  ;;  %v4228_v44 = vsub.f32 %v14252_v55, %v4207_v23 }
 0x757   : > { %v4248_v0 = vmul.f32 1.442695, %v4225_v15  ;;  %v4254_v48 = vmul.f32 1.442695, %v4228_v44  ;;  %v4230_v15 = vsub.f32 %v14261_v38, %v4211_v41  ;;  %v10962_v44 = vunpack.i.l.bf16 %v14328_v8 }
 0x758   : > { %v4205_v54 = vpop.xlane.xlu0 %4204 }
 0x759   : > { %11334 = vpow2.f32 %v4248_v0  ;;  %v4227_v53 = vsub.f32 %v4179_v43, %v4205_v54  ;;  %v4250_v54 = vmul.f32 1.442695, %v4226_v11 }
 0x75a   : > { %11336 = vpow2.f32 %v4246_v47  ;;  %v4215_v47 = vpop.xlane.xlu1 %4214 }
 0x75b   : > { %v14331_v7 = vpop.eup %11330  ;;  %v4252_v34 = vmul.f32 1.442695, %v4227_v53 }
 0x75c   : > { %v4209_v40 = vpop.xlane.xlu0 %4208  ;;  %4272 = vadd.xlane.f32.xlu0 %v14331_v7 }
 0x75d   : > { %v4229_v20 = vsub.f32 %v14287_v37, %v4209_v40  ;;  %11338 = vpow2.f32 %v4252_v34 }
 0x75f   : > { %v14336_v13 = vpop.eup %11332  ;;  %v4256_v57 = vmul.f32 1.442695, %v4229_v20 }
 0x760   : > { %v4213_v61 = vpop.xlane.xlu0 %4212  ;;  %4276 = vadd.xlane.f32.xlu0 %v14336_v13 }
 0x761   : > { %11340 = vpow2.f32 %v4256_v57  ;;  %v4231_v37 = vsub.f32 %v14292_v1, %v4213_v61  ;;  %v4258_v1 = vmul.f32 1.442695, %v4230_v15  ;;  %v10963_v57 = vunpack.i.h.bf16 %v14328_v8 }
 0x762   : > { %11342 = vpow2.f32 %v4250_v54  ;;  %v10968_v8 = vunpack.i.h.bf16 %v14300_v6 }
 0x763   : > { %v14340_v43 = vpop.eup %11334  ;;  %11344 = vpow2.f32 %v4254_v48  ;;  %v4260_v26 = vmul.f32 1.442695, %v4231_v37  ;;  %v10213_v41 = vpack.c.bf16 %v10963_v57, %v10962_v44 }
 0x764   : > { %4280 = vadd.xlane.f32.xlu0 %v14340_v43  ;;  %v4217_v50 = vpop.xlane.xlu0 %4216  ;;  %v14345_v35 = vpop.eup %11336 }
 0x765   : > { %v4233_v2 = vsub.f32 %v14297_v32, %v4217_v50  ;;  %v4232_v32 = vsub.f32 %v14266_v25, %v4215_v47 }
 0x767   : > { %v4264_v55 = vmul.f32 1.442695, %v4233_v2  ;;  %v14349_v0 = vpop.eup %11338  ;;  %v4262_v38 = vmul.f32 1.442695, %v4232_v32 }
 0x768   : > { %4278 = vadd.xlane.f32.xlu0 %v14345_v35 }
 0x769   : > { %11346 = vpow2.f32 %v4264_v55 }
 0x76a   : > { %11348 = vpow2.f32 %v4260_v26 }
 0x76b   : > { %v14351_v53 = vpop.eup %11340  ;;  %11350 = vpow2.f32 %v4258_v1 }
 0x76c   : > { %4284 = vadd.xlane.f32.xlu0 %v14349_v0  ;;  %4288 = vadd.xlane.f32.xlu1 %v14351_v53  ;;  %v14356_v34 = vpop.eup %11342  ;;  %11352 = vpow2.f32 %v4262_v38 }
 0x76d   : > { %v14359_v40 = vpop.eup %11344 }
 0x770   : > { %4282 = vadd.xlane.f32.xlu0 %v14356_v34 }
 0x773   : > { %v14361_v11 = vpop.eup %11346 }
 0x774   : > { %4286 = vadd.xlane.f32.xlu0 %v14359_v40  ;;  %4296 = vadd.xlane.f32.xlu1 %v14361_v11  ;;  %v14365_v23 = vpop.eup %11348 }
 0x775   : > { %v14368_v25 = vpop.eup %11350 }
 0x776   : > { %v14371_v20 = vpop.eup %11352 }
 0x778   : > { %4292 = vadd.xlane.f32.xlu0 %v14365_v23 }
 0x77c   : > { %4290 = vadd.xlane.f32.xlu0 %v14368_v25 }
 0x780   : > { %4294 = vadd.xlane.f32.xlu0 %v14371_v20 }
 0x785   : > { %4477 = vrot.lane.b32.xlu1 %v16289_v62, %s11885_s28  ;;  %v16378_v62 = vld [vmem:[#allocation100_spill] sm:$0xff] }
 0x789   : > { %4479 = vrot.lane.b32.xlu1 %v16291_v22, %s11885_s28  ;;  %v16379_v22 = vld [vmem:[#allocation96_spill] sm:$0xff] }
 0x78d   : > { %4481 = vrot.lane.b32.xlu1 %v16295_v3, %s11885_s28  ;;  %v16380_v3 = vpack.i.bf16 %v16378_v62, %v16379_v22 }
 0x791   : > { %4483 = vrot.lane.b32.xlu1 %v16297_v5, %s11885_s28  ;;  %v16381_v5 = vld [vmem:[#allocation108_spill] sm:$0xff] }
 0x795   : > { %4485 = vrot.lane.b32.xlu1 %v16299_v49, %s11885_s28  ;;  %v16382_v49 = vld [vmem:[#allocation104_spill] sm:$0xff] }
 0x796   : > { %4475 = vrot.lane.b32.xlu0 %v16286_v58, %s11885_s28  ;;  %v10981_v58 = vpop.permute.xlu1 %10980 }
 0x797   : > { %v10983_v26 = vunpack.i.h.bf16 %v10981_v58  ;;  %v10982_v47 = vunpack.i.l.bf16 %v10981_v58 }
 0x799   : > { %4489 = vrot.lane.b32.xlu1 %v16304_v39, %s11885_s28 }
 0x79a   : > { %4487 = vrot.lane.b32.xlu0 %v16301_v28, %s11885_s28  ;;  %v16383_v28 = vpack.i.bf16 %v16381_v5, %v16382_v49  ;;  %v10986_v39 = vpop.permute.xlu1 %10985 }
 0x79b   : > { %v10988_v32 = vunpack.i.h.bf16 %v10986_v39  ;;  %v10987_v38 = vunpack.i.l.bf16 %v10986_v39 }
 0x79d   : > { %4493 = vrot.lane.b32.xlu1 %v16308_v18, %s11885_s28  ;;  %v16385_v18 = vld [vmem:[#allocation112_spill] sm:$0xff]  ;;  %v10243_v22 = vpack.c.bf16 %v10988_v32, %v10987_v38 }
 0x79e   : > { %4491 = vrot.lane.b32.xlu0 %v16306_v59, %s11885_s28  ;;  %v16384_v59 = vld [vmem:[#allocation116_spill] sm:$0xff] }
 0x7a1   : > { %4497 = vrot.lane.b32.xlu1 %v16312_v60, %s11885_s28 }
 0x7a2   : > { %4495 = vrot.lane.b32.xlu0 %v16310_v12, %s11885_s28  ;;  %v16386_v12 = vpack.i.bf16 %v16384_v59, %v16385_v18 }
 0x7a5   : > { %4501 = vrot.lane.b32.xlu1 %v16315_v9, %s11885_s28 }
 0x7a6   : > { %4499 = vrot.lane.b32.xlu0 %v16313_v30, %s11885_s28 }
 0x7a9   : > { %4505 = vrot.lane.b32.xlu1 %v16319_v33, %s11885_s28 }
 0x7aa   : > { %4503 = vrot.lane.b32.xlu0 %v16317_v19, %s11885_s28 }
 0x7ad   : > { %10995 = vrot.lane.b32.xlu1 %v16380_v3, %s11885_s28 }
 0x7ae   : > { %11000 = vrot.lane.b32.xlu0 %v16383_v28, %s11885_s28 }
 0x7b1   : > { %11005 = vrot.lane.b32.xlu1 %v16386_v12, %s11885_s28 }
 0x7b4   : > { %v4269_v60 = vpop.xlane.xlu0 %4268 }
 0x7b5   : > { %11354 = vrcp.f32 %v4269_v60  ;;  %v4267_v30 = vpop.xlane.xlu1 %4266 }
 0x7b6   : > { %11356 = vrcp.f32 %v4267_v30 }
 0x7b8   : > { %v10976_v2 = vpop.permute.xlu0 %10975 }
 0x7b9   : > { %v4271_v9 = vpop.xlane.xlu1 %4270  ;;  %v10977_v55 = vunpack.i.l.bf16 %v10976_v2 }
 0x7ba   : > { %11358 = vrcp.f32 %v4271_v9 }
 0x7bd   : > { %v4275_v1 = vpop.xlane.xlu1 %4274 }
 0x7be   : > { %11360 = vrcp.f32 %v4275_v1 }
 0x7bf   : > { %v11355_v19 = vpop.eup %11354 }
 0x7c0   : > { %v11357_v33 = vpop.eup %11356  ;;  %v4301_v54 = vmul.f32 %v11355_v19, %v14308_v10  ;;  %v10973_v10 = vunpack.i.h.bf16 %v14302_v63 }
 0x7c1   : > { %v4299_v61 = vmul.f32 %v11357_v33, %v14310_v56  ;;  %v10967_v56 = vunpack.i.l.bf16 %v14300_v6  ;;  %v10978_v6 = vunpack.i.h.bf16 %v10976_v2  ;;  %v10991_v3 = vpop.permute.xlu1 %10990 }
 0x7c2   : > { %v10993_v58 = vunpack.i.h.bf16 %v10991_v3  ;;  %v10992_v49 = vunpack.i.l.bf16 %v10991_v3 }
 0x7c3   : > { %9071 = vmatprep.mubr.f32.mxu0 %v4299_v61  ;;  %v10219_v37 = vpack.c.bf16 %v10968_v8, %v10967_v56  ;;  %v10231_v15 = vpack.c.bf16 %v10978_v6, %v10977_v55 }
 0x7c4   : > { %v11359_v48 = vpop.eup %11358  ;;  %9072 = vmatmul.mubr.f32.vlgmr.msra.gmra.mrb[160].mxu0 %v4301_v54  ;;  %v10249_v12 = vpack.c.bf16 %v10993_v58, %v10992_v49 }
 0x7c5   : > { %10212 = vmatpush3.bf16.xpose.msk.msra.mxu0 %vm16387_vm7, %v14102_v46  ;;  %v4303_v50 = vmul.f32 %v11359_v48, %v14314_v17  ;;  %v10972_v46 = vunpack.i.l.bf16 %v14302_v63  ;;  %v10237_v63 = vpack.c.bf16 %v10983_v26, %v10982_v47 }
 0x7c6   : > { %10215 = vmatprep.subr.msk.bf16.mxu0 %vm16387_vm7, %v10213_v41 }
 0x7c7   : > { %9074 = vmatprep.mubr.f32.mxu0 %v4303_v50  ;;  %v10225_v17 = vpack.c.bf16 %v10973_v10, %v10972_v46 }
 0x7c8   : > { %v11361_v59 = vpop.eup %11360 }
 0x7c9   : > { %v4307_v30 = vmul.f32 %v11361_v59, %v14317_v36  ;;  %v16392_v59 = vld [vmem:[#allocation101_spill] sm:$0xff] }
 0x7cd   : > { %10218 = vmatpush3.bf16.xpose.msk.msra.mxu0 %vm16387_vm7, %v10213_v41 }
 0x7ce   : > { %10221 = vmatprep.subr.msk.bf16.mxu0 %vm16387_vm7, %v10219_v37 }
 0x7d5   : > { %10224 = vmatpush3.bf16.xpose.msk.msra.mxu0 %vm16387_vm7, %v10219_v37 }
 0x7d6   : > { %10227 = vmatprep.subr.msk.bf16.mxu0 %vm16387_vm7, %v10225_v17 }
 0x7dd   : > { %10230 = vmatpush3.bf16.xpose.msk.msra.mxu0 %vm16387_vm7, %v10225_v17 }
 0x7de   : > { %10233 = vmatprep.subr.msk.bf16.mxu0 %vm16387_vm7, %v10231_v15 }
 0x7e5   : > { %10236 = vmatpush3.bf16.xpose.msk.msra.mxu0 %vm16387_vm7, %v10231_v15 }
 0x7e6   : > { %10239 = vmatprep.subr.msk.bf16.mxu0 %vm16387_vm7, %v10237_v63 }
 0x7e9   : > { %v4273_v62 = vpop.xlane.xlu0 %4272 }
 0x7ea   : > { %11362 = vrcp.f32 %v4273_v62 }
 0x7ed   : > { %10242 = vmatpush3.bf16.xpose.msk.msra.mxu0 %vm16387_vm7, %v10237_v63  ;;  %v4277_v5 = vpop.xlane.xlu0 %4276 }
 0x7ee   : > { %11364 = vrcp.f32 %v4277_v5  ;;  %10245 = vmatprep.subr.msk.bf16.mxu0 %vm16387_vm7, %v10243_v22 }
 0x7f1   : > { %v4281_v28 = vpop.xlane.xlu0 %4280 }
 0x7f2   : > { %11366 = vrcp.f32 %v4281_v28 }
 0x7f4   : > { %v11363_v18 = vpop.eup %11362 }
 0x7f5   : > { %10248 = vmatpush3.bf16.xpose.msk.msra.mxu0 %vm16387_vm7, %v10243_v22  ;;  %v4279_v39 = vpop.xlane.xlu0 %4278  ;;  %v4305_v60 = vmul.f32 %v11363_v18, %v14331_v7  ;;  %v16388_v7 = vld [vmem:[#allocation97_spill] sm:$0xff] }
 0x7f6   : > { %11368 = vrcp.f32 %v4279_v39  ;;  %10251 = vmatprep.subr.msk.bf16.mxu0 %vm16387_vm7, %v10249_v12  ;;  %v16395_v18 = vld [vmem:[#allocation105_spill] sm:$0xff] }
 0x7f7   : > { %9075 = vmatmul.mubr.f32.gmra.mrb[162].mxu0 %v4305_v60  ;;  %v16398_v39 = vld [vmem:[#allocation109_spill] sm:$0xff] }
 0x7f8   : > { %v11365_v9 = vpop.eup %11364  ;;  %9077 = vmatprep.mubr.f32.mxu0 %v4307_v30 }
 0x7f9   : > { %v4285_v19 = vpop.xlane.xlu0 %4284  ;;  %v4309_v33 = vmul.f32 %v11365_v9, %v14336_v13  ;;  %v4289_v57 = vpop.xlane.xlu1 %4288 }
 0x7fa   : > { %11370 = vrcp.f32 %v4285_v19 }
 0x7fb   : > { %9078 = vmatmul.mubr.f32.gmra.mrb[164].mxu0 %v4309_v33 }
 0x7fc   : > { %v11367_v61 = vpop.eup %11366 }
 0x7fd   : > { %10254 = vmatpush3.bf16.xpose.msk.msra.mxu0 %vm16387_vm7, %v10249_v12  ;;  %v4283_v44 = vpop.xlane.xlu0 %4282  ;;  %v4313_v13 = vmul.f32 %v11367_v61, %v14340_v43  ;;  %vm16389_vm7 = vcmask 523264  }
 0x7fe   : > { %11372 = vrcp.f32 %v4283_v44  ;;  %10336 = vmatprep.subr.bf16.mxu0 %v16388_v7  ;;  %vm16390_vm13 = vmmov %vm16389_vm7  ;;  %v16400_v44 = vld [vmem:[#allocation113_spill] sm:$0xff] }
 0x7ff   : > { %11374 = vrcp.f32 %v4289_v57  ;;  %vm16391_vm15 = vmmov %vm16389_vm7 }
 0x800   : > { %v11369_v54 = vpop.eup %11368  ;;  %vm16393_vm0 = vmmov %vm16389_vm7 }
 0x801   : > { %v4287_v36 = vpop.xlane.xlu0 %4286  ;;  %v4297_v48 = vpop.xlane.xlu1 %4296  ;;  %v4311_v41 = vmul.f32 %v11369_v54, %v14345_v35  ;;  %vm16394_vm1 = vmmov %vm16393_vm0 }
 0x802   : > { %11376 = vrcp.f32 %v4287_v36 }
 0x803   : > { %9080 = vmatprep.mubr.f32.mxu0 %v4311_v41 }
 0x804   : > { %9081 = vmatmul.mubr.f32.gmra.mrb[166].mxu0 %v4313_v13  ;;  %v11371_v56 = vpop.eup %11370  ;;  %v16406_v13 = vld [vmem:[#allocation121_spill] sm:$0xff] }
 0x805   : > { %v4293_v50 = vpop.xlane.xlu0 %4292  ;;  %v4478_v8 = vpop.permute.xlu1 %4477  ;;  %v4317_v2 = vmul.f32 %v11371_v56, %v14349_v0 }
 0x806   : > { %11378 = vrcp.f32 %v4293_v50 }
 0x808   : > { %v11373_v37 = vpop.eup %11372 }
 0x809   : > { %v4291_v10 = vpop.xlane.xlu0 %4290  ;;  %v4480_v46 = vpop.permute.xlu1 %4479  ;;  %v4315_v17 = vmul.f32 %v11373_v37, %v14356_v34 }
 0x80a   : > { %11380 = vrcp.f32 %v4291_v10  ;;  %v11375_v6 = vpop.eup %11374 }
 0x80b   : > { %9083 = vmatprep.mubr.f32.mxu0 %v4315_v17  ;;  %11382 = vrcp.f32 %v4297_v48  ;;  %v4321_v26 = vmul.f32 %v11375_v6, %v14351_v53  ;;  %v16403_v48 = vld [vmem:[#allocation117_spill] sm:$0xff] }
 0x80c   : > { %v11377_v35 = vpop.eup %11376  ;;  %9084 = vmatmul.mubr.f32.gmra.mrb[168].mxu0 %v4317_v2 }
 0x80d   : > { %v4295_v43 = vpop.xlane.xlu0 %4294  ;;  %v4482_v55 = vpop.permute.xlu1 %4481  ;;  %v4319_v15 = vmul.f32 %v11377_v35, %v14359_v40 }
 0x80e   : > { %11384 = vrcp.f32 %v4295_v43 }
 0x80f   : > { %9086 = vmatprep.mubr.f32.mxu0 %v4319_v15 }
 0x810   : > { %9087 = vmatmul.mubr.f32.gmra.mrb[170].mxu0 %v4321_v26  ;;  %v11379_v34 = vpop.eup %11378 }
 0x811   : > { %v4476_v47 = vpop.permute.xlu0 %4475  ;;  %v4484_v63 = vpop.permute.xlu1 %4483  ;;  %v4325_v62 = vmul.f32 %v11379_v34, %v14365_v23 }
 0x814   : > { %v11381_v1 = vpop.eup %11380 }
 0x815   : > { %v4488_v32 = vpop.permute.xlu0 %4487  ;;  %v4486_v0 = vpop.permute.xlu1 %4485  ;;  %v4323_v38 = vmul.f32 %v11381_v1, %v14368_v25 }
 0x816   : > { %v11383_v22 = vpop.eup %11382 }
 0x817   : > { %9089 = vmatprep.mubr.f32.mxu0 %v4323_v38  ;;  %v4329_v58 = vmul.f32 %v11383_v22, %v14361_v11 }
 0x818   : > { %v11385_v3 = vpop.eup %11384  ;;  %9090 = vmatmul.mubr.f32.gmra.mrb[172].mxu0 %v4325_v62 }
 0x819   : > { %v4492_v40 = vpop.permute.xlu0 %4491  ;;  %v4490_v5 = vpop.permute.xlu1 %4489  ;;  %v4327_v53 = vmul.f32 %v11385_v3, %v14371_v20 }
 0x81b   : > { %9092 = vmatprep.mubr.f32.mxu0 %v4327_v53 }
 0x81c   : > { %9093 = vmatmul.mubr.f32.gmra.mrb[174].mxu0 %v4329_v58 }
 0x81d   : > { %v4496_v49 = vpop.permute.xlu0 %4495  ;;  %9127 = vmatprep.mubr.msk.f32.mxu0 %vm16389_vm7, %v4476_v47  ;;  %v4494_v28 = vpop.permute.xlu1 %4493  ;;  %vm16396_vm7 = vmmov %vm16393_vm0 }
 0x820   : > { %9128 = vmatmul.mubr.msk.f32.vlgmr.msra.gmra.mrb[176].mxu0 %vm16390_vm13, %v4478_v8  ;;  %vm16397_vm13 = vmmov %vm16393_vm0  ;;  %v16408_v8 = vld [vmem:[#allocation125_spill] sm:$0xff] }
 0x821   : > { %10338 = vmatpush3.bf16.msra.mxu0 %v16388_v7  ;;  %v4500_v23 = vpop.permute.xlu0 %4499  ;;  %v4498_v25 = vpop.permute.xlu1 %4497  ;;  %9130 = vmatprep.mubr.msk.f32.mxu0 %vm16391_vm15, %v4480_v46  ;;  %vm16399_vm15 = vmmov %vm16393_vm0 }
 0x822   : > { %10340 = vmatprep.subr.bf16.mxu0 %v16392_v59 }
 0x824   : > { %9131 = vmatmul.mubr.msk.f32.gmra.mrb[178].mxu0 %vm16393_vm0, %v4482_v55 }
 0x825   : > { %10342 = vmatpush3.bf16.msra.mxu0 %v16392_v59  ;;  %v4504_v11 = vpop.permute.xlu0 %4503  ;;  %v4502_v20 = vpop.permute.xlu1 %4501  ;;  %9133 = vmatprep.mubr.msk.f32.mxu0 %vm16394_vm1, %v4484_v63  ;;  %vm16401_vm1 = vmmov %vm16393_vm0 }
 0x826   : > { %10344 = vmatprep.subr.bf16.mxu0 %v16395_v18 }
 0x828   : > { %9134 = vmatmul.mubr.msk.f32.gmra.mrb[180].mxu0 %vm16396_vm7, %v4486_v0  ;;  %vm16402_vm7 = vmmov %vm16393_vm0 }
 0x829   : > { %10346 = vmatpush3.bf16.msra.mxu0 %v16395_v18  ;;  %v4506_v12 = vpop.permute.xlu1 %4505  ;;  %9136 = vmatprep.mubr.msk.f32.mxu0 %vm16397_vm13, %v4488_v32  ;;  %v11001_v60 = vpop.permute.xlu0 %11000  ;;  %vm16404_vm13 = vmmov %vm16393_vm0 }
 0x82a   : > { %10348 = vmatprep.subr.bf16.mxu0 %v16398_v39  ;;  %v11003_v9 = vunpack.i.h.bf16 %v11001_v60  ;;  %v11002_v19 = vunpack.i.l.bf16 %v11001_v60  ;;  %v16427_v60 = vld [vmem:[#allocation126_spill] sm:$0xff] }
 0x82c   : > { %9137 = vmatmul.mubr.msk.f32.gmra.mrb[182].mxu0 %vm16399_vm15, %v4490_v5  ;;  %v10259_v41 = vpack.c.bf16 %v11003_v9, %v11002_v19  ;;  %vm16405_vm15 = vmmov %vm16393_vm0 }
 0x82d   : > { %10350 = vmatpush3.bf16.msra.mxu0 %v16398_v39  ;;  %v10996_v30 = vpop.permute.xlu1 %10995  ;;  %9139 = vmatprep.mubr.msk.f32.mxu0 %vm16393_vm0, %v4492_v40  ;;  %v16426_v39 = vld [vmem:[#allocation127_spill] sm:$0xff] }
 0x82e   : > { %v10998_v33 = vunpack.i.h.bf16 %v10996_v30  ;;  %v10997_v57 = vunpack.i.l.bf16 %v10996_v30  ;;  %10352 = vmatprep.subr.bf16.mxu0 %v16400_v44  ;;  %v16428_v30 = vpack.i.bf16 %v16426_v39, %v16427_v60 }
 0x830   : > { %9140 = vmatmul.mubr.msk.f32.gmra.mrb[184].mxu0 %vm16401_vm1, %v4494_v28  ;;  %v10255_v7 = vpack.c.bf16 %v10998_v33, %v10997_v57  ;;  %vm16407_vm1 = vmmov %vm16393_vm0 }
 0x831   : > { %10354 = vmatpush3.bf16.msra.mxu0 %v16400_v44  ;;  %v11006_v61 = vpop.permute.xlu1 %11005  ;;  %9142 = vmatprep.mubr.msk.f32.mxu0 %vm16402_vm7, %v4496_v49  ;;  %vm16409_vm7 = vmmov %vm16393_vm0 }
 0x832   : > { %v11008_v54 = vunpack.i.h.bf16 %v11006_v61  ;;  %v11007_v36 = vunpack.i.l.bf16 %v11006_v61  ;;  %10356 = vmatprep.subr.bf16.mxu0 %v16403_v48  ;;  %10256 = vmatprep.subr.bf16.mxu1 %v10255_v7  ;;  %v16430_v61 = vld [vmem:[#allocation120_spill] sm:$0xff] }
 0x833   : > { %10258 = vmatpush3.bf16.msra.mxu1 %v10255_v7  ;;  %v16429_v7 = vld [vmem:[#allocation124_spill] sm:$0xff] }
 0x834   : > { %9143 = vmatmul.mubr.msk.f32.gmra.mrb[186].mxu0 %vm16404_vm13, %v4498_v25  ;;  %10260 = vmatprep.subr.bf16.mxu1 %v10259_v41  ;;  %v10263_v50 = vpack.c.bf16 %v11008_v54, %v11007_v36  ;;  %v16431_v54 = vpack.i.bf16 %v16429_v7, %v16430_v61  ;;  %v16440_v7 = vld [vmem:[#allocation150_spill] sm:$0xff] }
 0x835   : > { %10358 = vmatpush3.bf16.msra.mxu0 %v16403_v48  ;;  %9145 = vmatprep.mubr.msk.f32.mxu0 %vm16405_vm15, %v4500_v23 }
 0x836   : > { %10360 = vmatprep.subr.bf16.mxu0 %v16406_v13 }
 0x837   : > { %10262 = vmatpush3.bf16.msra.mxu1 %v10259_v41 }
 0x838   : > { %9146 = vmatmul.mubr.msk.f32.gmra.mrb[188].mxu0 %vm16393_vm0, %v4502_v20  ;;  %10264 = vmatprep.subr.bf16.mxu1 %v10263_v50 }
 0x839   : > { %10362 = vmatpush3.bf16.msra.mxu0 %v16406_v13  ;;  %9148 = vmatprep.mubr.msk.f32.mxu0 %vm16407_vm1, %v4504_v11 }
 0x83a   : > { %10364 = vmatprep.subr.bf16.mxu0 %v16408_v8 }
 0x83b   : > { %10266 = vmatpush3.bf16.msra.mxu1 %v10263_v50 }
 0x83c   : > { %9149 = vmatmul.mubr.msk.f32.gmra.mrb[190].mxu0 %vm16409_vm7, %v4506_v12  ;;  %vm16441_vm7 = vnez %v16440_v7 }
 0x83d   : > { %10366 = vmatpush3.bf16.msra.mxu0 %v16408_v8 }
 0x897   : > { %v14503_v56 = vpop.f32.mrb[160].mxu0 }
 0x898   : > { %16410 = vst [vmem:[#allocation135_spill] sm:$0xff] %v14503_v56  ;;  %v14505_v37 = vpop.f32.mrb[161].mxu0 }
 0x899   : > { %16411 = vst [vmem:[#allocation136_spill] sm:$0xff] %v14505_v37 }
 0x8ca   : > { %v14507_v10 = vpop.f32.mrb[162].mxu0 }
 0x8cb   : > { %16412 = vst [vmem:[#allocation138_spill] sm:$0xff] %v14507_v10  ;;  %v14509_v46 = vpop.f32.mrb[163].mxu0 }
 0x8cc   : > { %16413 = vst [vmem:[#allocation139_spill] sm:$0xff] %v14509_v46 }
 0x8ce   : > { %v14511_v17 = vpop.f32.mrb[164].mxu0 }
 0x8cf   : > { %16414 = vst [vmem:[#allocation141_spill] sm:$0xff] %v14511_v17  ;;  %v14513_v2 = vpop.f32.mrb[165].mxu0 }
 0x8d0   : > { %16415 = vst [vmem:[#allocation143_spill] sm:$0xff] %v14513_v2 }
 0x8d7   : > { %v14515_v6 = vpop.f32.mrb[166].mxu0 }
 0x8d8   : > { %16416 = vst [vmem:[#allocation145_spill] sm:$0xff] %v14515_v6  ;;  %v14517_v35 = vpop.f32.mrb[167].mxu0 }
 0x8d9   : > { %16417 = vst [vmem:[#allocation54_spill] sm:$0xff] %v14517_v35 }
 0x8df   : > { %v14519_v43 = vpop.f32.mrb[168].mxu0 }
 0x8e0   : > { %16418 = vst [vmem:[#allocation53_spill] sm:$0xff] %v14519_v43  ;;  %v14521_v55 = vpop.f32.mrb[169].mxu0 }
 0x8e1   : > { %16419 = vst [vmem:[#allocation72_spill] sm:$0xff] %v14521_v55 }
 0x8e3   : > { %v14523_v15 = vpop.f32.mrb[170].mxu0 }
 0x8e4   : > { %16420 = vst [vmem:[#allocation68_spill] sm:$0xff] %v14523_v15  ;;  %v14525_v26 = vpop.f32.mrb[171].mxu0 }
 0x8e5   : > { %16421 = vst [vmem:[#allocation81_spill] sm:$0xff] %v14525_v26 }
 0x8eb   : > { %v14527_v47 = vpop.f32.mrb[172].mxu0 }
 0x8ec   : > { %16422 = vst [vmem:[#allocation77_spill] sm:$0xff] %v14527_v47  ;;  %v14529_v63 = vpop.f32.mrb[173].mxu0 }
 0x8ed   : > { %16423 = vst [vmem:[#allocation137_spill] sm:$0xff] %v14529_v63 }
 0x8ef   : > { %v14531_v34 = vpop.f32.mrb[174].mxu0 }
 0x8f0   : > { %16424 = vst [vmem:[#allocation140_spill] sm:$0xff] %v14531_v34  ;;  %v14533_v1 = vpop.f32.mrb[175].mxu0 }
 0x8f1   : > { %16425 = vst [vmem:[#allocation142_spill] sm:$0xff] %v14533_v1 }
 0x8f3   : > { %v9129_v32 = vpop.f32.mrb[176].mxu0 }
 0x8f4   : > { %v4749_v0 = vmul.f32 0.05103104, %v9129_v32  ;;  %v4669_v38 = vpop.f32.mrb[177].mxu0 }
 0x8f5   : > { %v4748_v62 = vmul.f32 0.05103104, %v4669_v38 }
 0x8f6   : > { %v14537_v22 = vsel %vm13607_vm2, %v4749_v0, -1e+30 }
 0x8f7   : > { %4782 = vmax.xlane.f32.xlu1 %v14537_v22  ;;  %v9132_v3 = vpop.f32.mrb[178].mxu0  ;;  %v14542_v40 = vsel %vm13614_vm3, %v4748_v62, -1e+30 }
 0x8f8   : > { %v4751_v5 = vmul.f32 0.05103104, %v9132_v3  ;;  %4780 = vmax.xlane.f32.xlu0 %v14542_v40  ;;  %v4679_v53 = vpop.f32.mrb[179].mxu0 }
 0x8f9   : > { %v4750_v49 = vmul.f32 0.05103104, %v4679_v53 }
 0x8fa   : > { %v14547_v58 = vsel %vm16359_vm4, %v4751_v5, -1e+30 }
 0x8fb   : > { %v9135_v28 = vpop.f32.mrb[180].mxu0  ;;  %v14552_v59 = vsel %vm13640_vm5, %v4750_v49, -1e+30 }
 0x8fc   : > { %4786 = vmax.xlane.f32.xlu0 %v14547_v58  ;;  %v4689_v23 = vpop.f32.mrb[181].mxu0  ;;  %v4753_v8 = vmul.f32 0.05103104, %v9135_v28 }
 0x8fd   : > { %v4752_v36 = vmul.f32 0.05103104, %v4689_v23 }
 0x8fe   : > { %v14580_v62 = vsel %vm16361_vm11, %v4753_v8, -1e+30 }
 0x8ff   : > { %v9138_v25 = vpop.f32.mrb[182].mxu0  ;;  %v14565_v41 = vsel %vm13646_vm6, %v4752_v36, -1e+30 }
 0x900   : > { %4784 = vmax.xlane.f32.xlu0 %v14552_v59  ;;  %v4699_v11 = vpop.f32.mrb[183].mxu0  ;;  %v4755_v38 = vmul.f32 0.05103104, %v9138_v25 }
 0x901   : > { %v4754_v48 = vmul.f32 0.05103104, %v4699_v11  ;;  %v16432_v11 = vld [vmem:[#allocation144_spill] sm:$0xff] }
 0x902   : > { %v14590_v49 = vsel %vm16363_vm9, %v4755_v38, -1e+30  ;;  %vm16433_vm13 = vnez %v16432_v11 }
 0x903   : > { %v9141_v20 = vpop.f32.mrb[184].mxu0  ;;  %v14570_v50 = vsel %vm13669_vm8, %v4754_v48, -1e+30 }
 0x904   : > { %v4709_v18 = vpop.f32.mrb[185].mxu0  ;;  %v4757_v53 = vmul.f32 0.05103104, %v9141_v20  ;;  %v16434_v20 = vld [vmem:[#allocation149_spill] sm:$0xff] }
 0x905   : > { %v4756_v13 = vmul.f32 0.05103104, %v4709_v18  ;;  %vm16435_vm15 = vnez %v16434_v20 }
 0x906   : > { %v14600_v18 = vsel %vm16433_vm13, %v4757_v53, -1e+30 }
 0x907   : > { %v9144_v12 = vpop.f32.mrb[186].mxu0  ;;  %v14575_v0 = vsel %vm13690_vm10, %v4756_v13, -1e+30 }
 0x908   : > { %11015 = vrot.lane.b32.xlu1 %v16428_v30, %s11885_s28  ;;  %v4719_v9 = vpop.f32.mrb[187].mxu0  ;;  %v4759_v25 = vmul.f32 0.05103104, %v9144_v12  ;;  %v16436_v30 = vld [vmem:[#allocation146_spill] sm:$0xff] }
 0x909   : > { %v4758_v32 = vmul.f32 0.05103104, %v4719_v9  ;;  %vm16437_vm0 = vnez %v16436_v30 }
 0x90a   : > { %v14610_v9 = vsel %vm16437_vm0, %v4759_v25, -1e+30 }
 0x90b   : > { %v9147_v19 = vpop.f32.mrb[188].mxu0  ;;  %v14585_v5 = vsel %vm13713_vm12, %v4758_v32, -1e+30 }
 0x90c   : > { %v4729_v33 = vpop.f32.mrb[189].mxu0  ;;  %v4761_v60 = vmul.f32 0.05103104, %v9147_v19  ;;  %v16442_v19 = vld [vmem:[#allocation131_spill] sm:$0xff] }
 0x90d   : > { %v4760_v3 = vmul.f32 0.05103104, %v4729_v33  ;;  %v16438_v33 = vld [vmem:[#allocation148_spill] sm:$0xff] }
 0x90e   : > { %vm16439_vm1 = vnez %v16438_v33 }
 0x90f   : > { %v9150_v57 = vpop.f32.mrb[190].mxu0  ;;  %v14595_v23 = vsel %vm13734_vm14, %v4760_v3, -1e+30 }
 0x910   : > { %v4739_v44 = vpop.f32.mrb[191].mxu0  ;;  %v4763_v12 = vmul.f32 0.05103104, %v9150_v57 }
 0x911   : > { %v4762_v28 = vmul.f32 0.05103104, %v4739_v44  ;;  %v14615_v44 = vsel %vm16439_vm1, %v4761_v60, -1e+30 }
 0x912   : > { %v14620_v61 = vsel %vm16441_vm7, %v4763_v12, -1e+30  ;;  %vm16461_vm7 = vnez %v16270_v24 }
 0x913   : > { %v14605_v39 = vsel %vm16435_vm15, %v4762_v28, -1e+30 }
 0x916   : > { %11010 = vrot.lane.b32.xlu0 %v16431_v54, %s11885_s28  ;;  %v16443_v54 = vld [vmem:[#allocation130_spill] sm:$0xff] }
 0x917   : > { %v16444_v36 = vpack.i.bf16 %v16442_v19, %v16443_v54 }
 0x92c   : > { %4788 = vmax.xlane.f32.xlu1 %v14565_v41 }
 0x930   : > { %4792 = vmax.xlane.f32.xlu1 %v14570_v50 }
 0x934   : > { %4796 = vmax.xlane.f32.xlu1 %v14575_v0 }
 0x935   : > { %4790 = vmax.xlane.f32.xlu0 %v14580_v62 }
 0x938   : > { %4800 = vmax.xlane.f32.xlu1 %v14585_v5 }
 0x939   : > { %4794 = vmax.xlane.f32.xlu0 %v14590_v49 }
 0x93c   : > { %4804 = vmax.xlane.f32.xlu1 %v14595_v23 }
 0x93d   : > { %4798 = vmax.xlane.f32.xlu0 %v14600_v18 }
 0x940   : > { %4808 = vmax.xlane.f32.xlu1 %v14605_v39 }
 0x941   : > { %4802 = vmax.xlane.f32.xlu0 %v14610_v9 }
 0x945   : > { %4806 = vmax.xlane.f32.xlu0 %v14615_v44 }
 0x949   : > { %4810 = vmax.xlane.f32.xlu0 %v14620_v61 }
 0x951   : > { %11025 = vrot.lane.b32.xlu1 %v16444_v36, %s11885_s28  ;;  %v16445_v36 = vld [vmem:[#allocation133_spill] sm:$0xff] }
 0x984   : > { %v4783_v48 = vpop.xlane.xlu1 %4782 }
 0x985   : > { %v4813_v57 = vsub.f32 %v14537_v22, %v4783_v48  ;;  %v4781_v13 = vpop.xlane.xlu0 %4780  ;;  %v16446_v48 = vld [vmem:[#allocation132_spill] sm:$0xff] }
 0x986   : > { %v4812_v8 = vsub.f32 %v14542_v40, %v4781_v13  ;;  %v16448_v13 = vld [vmem:[#allocation129_spill] sm:$0xff] }
 0x987   : > { %v4830_v32 = vmul.f32 1.442695, %v4813_v57  ;;  %v16447_v57 = vpack.i.bf16 %v16445_v36, %v16446_v48 }
 0x988   : > { %v4828_v38 = vmul.f32 1.442695, %v4812_v8  ;;  %v11016_v28 = vpop.permute.xlu1 %11015  ;;  %v16449_v8 = vld [vmem:[#allocation128_spill] sm:$0xff] }
 0x989   : > { %11386 = vpow2.f32 %v4830_v32  ;;  %v4787_v3 = vpop.xlane.xlu0 %4786  ;;  %v11018_v60 = vunpack.i.h.bf16 %v11016_v28  ;;  %v11017_v12 = vunpack.i.l.bf16 %v11016_v28  ;;  %v16450_v32 = vpack.i.bf16 %v16448_v13, %v16449_v8 }
 0x98a   : > { %11388 = vpow2.f32 %v4828_v38 }
 0x98b   : > { %v10271_v40 = vpack.c.bf16 %v11018_v60, %v11017_v12 }
 0x98d   : > { %v4785_v53 = vpop.xlane.xlu0 %4784 }
 0x98e   : > { %v4814_v38 = vsub.f32 %v14552_v59, %v4785_v53 }
 0x990   : > { %v4832_v28 = vmul.f32 1.442695, %v4814_v38 }
 0x991   : > { %v11011_v25 = vpop.permute.xlu0 %11010 }
 0x992   : > { %v11013_v34 = vunpack.i.h.bf16 %v11011_v25  ;;  %v11012_v1 = vunpack.i.l.bf16 %v11011_v25  ;;  %11390 = vpow2.f32 %v4832_v28 }
 0x993   : > { %v14629_v19 = vpop.eup %11386 }
 0x994   : > { %v14631_v54 = vpop.eup %11388  ;;  %4862 = vadd.xlane.f32.xlu0 %v14629_v19  ;;  %v10267_v22 = vpack.c.bf16 %v11013_v34, %v11012_v1  ;;  %v4815_v34 = vsub.f32 %v14547_v58, %v4787_v3 }
 0x995   : > { %4860 = vadd.xlane.f32.xlu1 %v14631_v54 }
 0x996   : > { %10268 = vmatprep.subr.bf16.mxu1 %v10267_v22  ;;  %v4834_v60 = vmul.f32 1.442695, %v4815_v34 }
 0x997   : > { %10270 = vmatpush3.bf16.msra.mxu1 %v10267_v22 }
 0x998   : > { %10272 = vmatprep.subr.bf16.mxu1 %v10271_v40  ;;  %11392 = vpow2.f32 %v4834_v60 }
 0x99b   : > { %10274 = vmatpush3.bf16.msra.mxu1 %v10271_v40 }
 0x9a6   : > { %11030 = vrot.lane.b32.xlu1 %v16447_v57, %s11885_s28 }
 0x9aa   : > { %11020 = vrot.lane.b32.xlu0 %v16450_v32, %s11885_s28  ;;  %v14651_v32 = vpop.eup %11390 }
 0x9ab   : > { %v14653_v34 = vpop.eup %11392 }
 0x9b9   : > { %v4789_v1 = vpop.xlane.xlu1 %4788 }
 0x9ba   : > { %v4816_v25 = vsub.f32 %v14565_v41, %v4789_v1 }
 0x9bc   : > { %v4836_v12 = vmul.f32 1.442695, %v4816_v25 }
 0x9bd   : > { %v4793_v22 = vpop.xlane.xlu1 %4792 }
 0x9be   : > { %v4818_v40 = vsub.f32 %v14570_v50, %v4793_v22  ;;  %11394 = vpow2.f32 %v4836_v12 }
 0x9c0   : > { %v4840_v36 = vmul.f32 1.442695, %v4818_v40 }
 0x9c1   : > { %v4797_v48 = vpop.xlane.xlu1 %4796 }
 0x9c2   : > { %11396 = vpow2.f32 %v4840_v36  ;;  %v4820_v57 = vsub.f32 %v14575_v0, %v4797_v48  ;;  %v4791_v59 = vpop.xlane.xlu0 %4790 }
 0x9c3   : > { %v4817_v58 = vsub.f32 %v14580_v62, %v4791_v59 }
 0x9c4   : > { %v4844_v3 = vmul.f32 1.442695, %v4820_v57 }
 0x9c5   : > { %v4838_v53 = vmul.f32 1.442695, %v4817_v58  ;;  %v4801_v13 = vpop.xlane.xlu1 %4800 }
 0x9c6   : > { %11398 = vpow2.f32 %v4844_v3  ;;  %v4822_v41 = vsub.f32 %v14585_v5, %v4801_v13  ;;  %v4795_v8 = vpop.xlane.xlu0 %4794 }
 0x9c7   : > { %11400 = vpow2.f32 %v4838_v53  ;;  %v4819_v50 = vsub.f32 %v14590_v49, %v4795_v8 }
 0x9c8   : > { %v4848_v38 = vmul.f32 1.442695, %v4822_v41  ;;  %v14658_v5 = vpop.eup %11394 }
 0x9c9   : > { %v4842_v1 = vmul.f32 1.442695, %v4819_v50  ;;  %v4805_v0 = vpop.xlane.xlu1 %4804  ;;  %4864 = vadd.xlane.f32.xlu0 %v14651_v32 }
 0x9ca   : > { %11402 = vpow2.f32 %v4848_v38  ;;  %v4824_v62 = vsub.f32 %v14595_v23, %v4805_v0  ;;  %v4799_v28 = vpop.xlane.xlu0 %4798  ;;  %4866 = vadd.xlane.f32.xlu1 %v14653_v34 }
 0x9cb   : > { %11404 = vpow2.f32 %v4842_v1  ;;  %v4821_v49 = vsub.f32 %v14600_v18, %v4799_v28  ;;  %v16452_v28 = vld [vmem:[#allocation60_spill] sm:$0xff] }
 0x9cc   : > { %v14661_v25 = vpop.eup %11396  ;;  %v4852_v60 = vmul.f32 1.442695, %v4824_v62  ;;  %v16451_v62 = vld [vmem:[#allocation58_spill] sm:$0xff] }
 0x9cd   : > { %v4846_v12 = vmul.f32 1.442695, %v4821_v49  ;;  %4868 = vadd.xlane.f32.xlu0 %v14658_v5  ;;  %v4809_v22 = vpop.xlane.xlu1 %4808  ;;  %v16453_v49 = vpack.i.bf16 %v16451_v62, %v16452_v28 }
 0x9ce   : > { %11406 = vpow2.f32 %v4852_v60  ;;  %v4826_v40 = vsub.f32 %v14605_v39, %v4809_v22  ;;  %v4803_v36 = vpop.xlane.xlu0 %4802  ;;  %4872 = vadd.xlane.f32.xlu1 %v14661_v25  ;;  %v16454_v60 = vld [vmem:[#allocation67_spill] sm:$0xff] }
 0x9cf   : > { %11408 = vpow2.f32 %v4846_v12  ;;  %v4823_v23 = vsub.f32 %v14610_v9, %v4803_v36  ;;  %v16455_v12 = vld [vmem:[#allocation69_spill] sm:$0xff] }
 0x9d0   : > { %v14667_v48 = vpop.eup %11398  ;;  %v4856_v57 = vmul.f32 1.442695, %v4826_v40  ;;  %v16456_v22 = vpack.i.bf16 %v16454_v60, %v16455_v12  ;;  %v16457_v40 = vld [vmem:[#allocation71_spill] sm:$0xff]  ;;  %v16458_v36 = vld [vmem:[#allocation73_spill] sm:$0xff] }
 0x9d1   : > { %v14669_v18 = vpop.eup %11400  ;;  %v4850_v59 = vmul.f32 1.442695, %v4823_v23  ;;  %v16459_v23 = vpack.i.bf16 %v16457_v40, %v16458_v36 }
 0x9d2   : > { %11410 = vpow2.f32 %v4856_v57  ;;  %v4807_v58 = vpop.xlane.xlu0 %4806  ;;  %4870 = vadd.xlane.f32.xlu0 %v14669_v18  ;;  %4876 = vadd.xlane.f32.xlu1 %v14667_v48  ;;  %v11026_v57 = vpop.permute.xlu1 %11025 }
 0x9d3   : > { %11412 = vpow2.f32 %v4850_v59  ;;  %v4825_v39 = vsub.f32 %v14615_v44, %v4807_v58 }
 0x9d4   : > { %v14674_v3 = vpop.eup %11402 }
 0x9d5   : > { %v14676_v53 = vpop.eup %11404  ;;  %v4854_v9 = vmul.f32 1.442695, %v4825_v39 }
 0x9d6   : > { %4874 = vadd.xlane.f32.xlu0 %v14676_v53  ;;  %v4811_v13 = vpop.xlane.xlu0 %4810  ;;  %4880 = vadd.xlane.f32.xlu1 %v14674_v3 }
 0x9d7   : > { %11414 = vpow2.f32 %v4854_v9  ;;  %v4827_v41 = vsub.f32 %v14620_v61, %v4811_v13  ;;  %v11028_v9 = vunpack.i.h.bf16 %v11026_v57  ;;  %v11027_v13 = vunpack.i.l.bf16 %v11026_v57  ;;  %v16460_v57 = vld [vmem:[#allocation61_spill] sm:$0xff] }
 0x9d8   : > { %v14681_v8 = vpop.eup %11406 }
 0x9d9   : > { %v14683_v50 = vpop.eup %11408  ;;  %v4858_v38 = vmul.f32 1.442695, %v4827_v41  ;;  %v10279_v12 = vpack.c.bf16 %v11028_v9, %v11027_v13 }
 0x9da   : > { %4878 = vadd.xlane.f32.xlu0 %v14683_v50  ;;  %4884 = vadd.xlane.f32.xlu1 %v14681_v8 }
 0x9db   : > { %11416 = vpow2.f32 %v4858_v38 }
 0x9dc   : > { %v14687_v44 = vpop.eup %11410 }
 0x9dd   : > { %v14689_v1 = vpop.eup %11412 }
 0x9de   : > { %4882 = vadd.xlane.f32.xlu0 %v14689_v1  ;;  %4888 = vadd.xlane.f32.xlu1 %v14687_v44 }
 0x9e1   : > { %v14693_v0 = vpop.eup %11414 }
 0x9e2   : > { %4886 = vadd.xlane.f32.xlu0 %v14693_v0 }
 0x9e5   : > { %v14696_v61 = vpop.eup %11416 }
 0x9e6   : > { %4890 = vadd.xlane.f32.xlu0 %v14696_v61 }
 0x9ef   : > { %11035 = vrot.lane.b32.xlu1 %v16453_v49, %s11885_s28 }
 0x9f3   : > { %11045 = vrot.lane.b32.xlu1 %v16456_v22, %s11885_s28 }
 0x9f7   : > { %11050 = vrot.lane.b32.xlu1 %v16459_v23, %s11885_s28 }
 0xa21   : > { %v4863_v59 = vpop.xlane.xlu0 %4862 }
 0xa22   : > { %v4861_v58 = vpop.xlane.xlu1 %4860 }
 0xa23   : > { %11418 = vrcp.f32 %v4861_v58  ;;  %v16462_v58 = vld [vmem:[#allocation66_spill] sm:$0xff] }
 0xa24   : > { %11420 = vrcp.f32 %v4863_v59 }
 0xa25   : > { %v11021_v39 = vpop.permute.xlu0 %11020 }
 0xa26   : > { %v11023_v41 = vunpack.i.h.bf16 %v11021_v39  ;;  %v11022_v38 = vunpack.i.l.bf16 %v11021_v39  ;;  %v11031_v62 = vpop.permute.xlu1 %11030  ;;  %v16465_v39 = vld [vmem:[#allocation79_spill] sm:$0xff] }
 0xa27   : > { %v11033_v49 = vunpack.i.h.bf16 %v11031_v62  ;;  %v11032_v60 = vunpack.i.l.bf16 %v11031_v62  ;;  %v16466_v62 = vld [vmem:[#allocation84_spill] sm:$0xff] }
 0xa28   : > { %v10275_v28 = vpack.c.bf16 %v11023_v41, %v11022_v38 }
 0xa29   : > { %v10283_v40 = vpack.c.bf16 %v11033_v49, %v11032_v60 }
 0xa2a   : > { %10276 = vmatprep.subr.bf16.mxu1 %v10275_v28 }
 0xa2b   : > { %10278 = vmatpush3.bf16.msra.mxu1 %v10275_v28 }
 0xa2c   : > { %10280 = vmatprep.subr.bf16.mxu1 %v10279_v12 }
 0xa2d   : > { %v11419_v22 = vpop.eup %11418 }
 0xa2e   : > { %v4893_v36 = vmul.f32 %v11419_v22, %v14631_v54  ;;  %v11421_v23 = vpop.eup %11420  ;;  %v16463_v54 = vld [vmem:[#allocation70_spill] sm:$0xff] }
 0xa2f   : > { %10282 = vmatpush3.bf16.msra.mxu1 %v10279_v12  ;;  %v4895_v59 = vmul.f32 %v11421_v23, %v14629_v19  ;;  %v16464_v19 = vld [vmem:[#allocation75_spill] sm:$0xff] }
 0xa30   : > { %10284 = vmatprep.subr.bf16.mxu1 %v10283_v40  ;;  %9183 = vmatprep.mubr.f32.mxu1 %v4893_v36 }
 0xa33   : > { %10286 = vmatpush3.bf16.msra.mxu1 %v10283_v40 }
 0xa34   : > { %10289 = vmatprep.subr.msk.bf16.mxu1 %vm16461_vm7, %v16460_v57 }
 0xa36   : > { %9184 = vmatmul.mubr.f32.vlgmr.msra.gmra.mrb[160].mxu1 %v4895_v59  ;;  %v16467_v59 = vld [vmem:[#allocation88_spill] sm:$0xff] }
 0xa3c   : > { %10292 = vmatpush3.bf16.xpose.msk.msra.mxu1 %vm16461_vm7, %v16460_v57 }
 0xa3d   : > { %10295 = vmatprep.subr.msk.bf16.mxu1 %vm16461_vm7, %v16462_v58 }
 0xa44   : > { %10298 = vmatpush3.bf16.xpose.msk.msra.mxu1 %vm16461_vm7, %v16462_v58 }
 0xa45   : > { %10301 = vmatprep.subr.msk.bf16.mxu1 %vm16461_vm7, %v16463_v54 }
 0xa4c   : > { %10304 = vmatpush3.bf16.xpose.msk.msra.mxu1 %vm16461_vm7, %v16463_v54 }
 0xa4d   : > { %10307 = vmatprep.subr.msk.bf16.mxu1 %vm16461_vm7, %v16464_v19 }
 0xa54   : > { %10310 = vmatpush3.bf16.xpose.msk.msra.mxu1 %vm16461_vm7, %v16464_v19 }
 0xa55   : > { %10313 = vmatprep.subr.msk.bf16.mxu1 %vm16461_vm7, %v16465_v39 }
 0xa56   : > { %v4865_v9 = vpop.xlane.xlu0 %4864 }
 0xa57   : > { %11422 = vrcp.f32 %v4865_v9  ;;  %v4867_v13 = vpop.xlane.xlu1 %4866 }
 0xa58   : > { %11424 = vrcp.f32 %v4867_v13 }
 0xa5a   : > { %v4869_v41 = vpop.xlane.xlu0 %4868 }
 0xa5b   : > { %11426 = vrcp.f32 %v4869_v41  ;;  %v4873_v38 = vpop.xlane.xlu1 %4872 }
 0xa5c   : > { %10316 = vmatpush3.bf16.xpose.msk.msra.mxu1 %vm16461_vm7, %v16465_v39  ;;  %11428 = vrcp.f32 %v4873_v38  ;;  %v16468_v38 = vld [vmem:[#allocation93_spill] sm:$0xff] }
 0xa5d   : > { %10319 = vmatprep.subr.msk.bf16.mxu1 %vm16461_vm7, %v16466_v62 }
 0xa5f   : > { %v4871_v28 = vpop.xlane.xlu0 %4870  ;;  %v4877_v49 = vpop.xlane.xlu1 %4876 }
 0xa60   : > { %11430 = vrcp.f32 %v4871_v28 }
 0xa61   : > { %v11423_v60 = vpop.eup %11422  ;;  %11432 = vrcp.f32 %v4877_v49 }
 0xa62   : > { %v11425_v12 = vpop.eup %11424  ;;  %v4897_v22 = vmul.f32 %v11423_v60, %v14651_v32 }
 0xa63   : > { %v4875_v40 = vpop.xlane.xlu0 %4874  ;;  %v4881_v36 = vpop.xlane.xlu1 %4880  ;;  %v4899_v23 = vmul.f32 %v11425_v12, %v14653_v34 }
 0xa64   : > { %11434 = vrcp.f32 %v4875_v40  ;;  %9186 = vmatprep.mubr.f32.mxu1 %v4897_v22  ;;  %10322 = vmatpush3.bf16.xpose.msk.msra.mxu1 %vm16461_vm7, %v16466_v62 }
 0xa65   : > { %v11427_v57 = vpop.eup %11426  ;;  %9187 = vmatmul.mubr.f32.gmra.mrb[162].mxu1 %v4899_v23  ;;  %10325 = vmatprep.subr.msk.bf16.mxu1 %vm16461_vm7, %v16467_v59  ;;  %11436 = vrcp.f32 %v4881_v36 }
 0xa66   : > { %v4901_v58 = vmul.f32 %v11427_v57, %v14658_v5  ;;  %v11429_v34 = vpop.eup %11428 }
 0xa67   : > { %v4879_v32 = vpop.xlane.xlu0 %4878  ;;  %v4885_v54 = vpop.xlane.xlu1 %4884  ;;  %v4905_v41 = vmul.f32 %v11429_v34, %v14661_v25 }
 0xa68   : > { %11438 = vrcp.f32 %v4879_v32  ;;  %9189 = vmatprep.mubr.f32.mxu1 %v4901_v58 }
 0xa69   : > { %11440 = vrcp.f32 %v4885_v54 }
 0xa6a   : > { %v11431_v19 = vpop.eup %11430 }
 0xa6b   : > { %v4883_v39 = vpop.xlane.xlu0 %4882  ;;  %v4889_v9 = vpop.xlane.xlu1 %4888  ;;  %v4903_v13 = vmul.f32 %v11431_v19, %v14669_v18 }
 0xa6c   : > { %11442 = vrcp.f32 %v4883_v39  ;;  %10328 = vmatpush3.bf16.xpose.msk.msra.mxu1 %vm16461_vm7, %v16467_v59  ;;  %v11433_v5 = vpop.eup %11432 }
 0xa6d   : > { %9190 = vmatmul.mubr.f32.gmra.mrb[164].mxu1 %v4903_v13  ;;  %10331 = vmatprep.subr.msk.bf16.mxu1 %vm16461_vm7, %v16468_v38  ;;  %11444 = vrcp.f32 %v4889_v9  ;;  %v4909_v22 = vmul.f32 %v11433_v5, %v14667_v48  ;;  %v16469_v9 = vld [vmem:[#allocation36_spill] sm:$0xff]  ;;  %v16475_v13 = vld [vmem:[#allocation37_spill] sm:$0xff] }
 0xa6e   : > { %v11435_v62 = vpop.eup %11434  ;;  %9192 = vmatprep.mubr.f32.mxu1 %v4905_v41  ;;  %v16483_v41 = vld [vmem:[#allocation41_spill] sm:$0xff]  ;;  %v16485_v5 = vld [vmem:[#allocation44_spill] sm:$0xff] }
 0xa6f   : > { %v4887_v28 = vpop.xlane.xlu0 %4886  ;;  %v11036_v49 = vpop.permute.xlu1 %11035  ;;  %v4907_v18 = vmul.f32 %v11435_v62, %v14676_v53  ;;  %v16488_v62 = vld [vmem:[#allocation46_spill] sm:$0xff] }
 0xa70   : > { %11446 = vrcp.f32 %v4887_v28  ;;  %v11038_v60 = vunpack.i.h.bf16 %v11036_v49  ;;  %v11037_v12 = vunpack.i.l.bf16 %v11036_v49  ;;  %v11437_v40 = vpop.eup %11436  ;;  %v16490_v28 = vld [vmem:[#allocation45_spill] sm:$0xff]  ;;  %v16492_v49 = vld [vmem:[#allocation48_spill] sm:$0xff] }
 0xa71   : > { %9193 = vmatmul.mubr.f32.gmra.mrb[166].mxu1 %v4907_v18  ;;  %v4913_v48 = vmul.f32 %v11437_v40, %v14674_v3  ;;  %v16494_v18 = vld [vmem:[#allocation47_spill] sm:$0xff] }
 0xa72   : > { %v11439_v25 = vpop.eup %11438  ;;  %v14765_v36 = vpack.c.bf16 %v11038_v60, %v11037_v12  ;;  %9195 = vmatprep.mubr.f32.mxu1 %v4909_v22  ;;  %v16496_v60 = vld [vmem:[#allocation50_spill] sm:$0xff]  ;;  %v16498_v12 = vld [vmem:[#allocation49_spill] sm:$0xff] }
 0xa73   : > { %v4891_v23 = vpop.xlane.xlu0 %4890  ;;  %v4911_v57 = vmul.f32 %v11439_v25, %v14683_v50  ;;  %v11441_v53 = vpop.eup %11440 }
 0xa74   : > { %11448 = vrcp.f32 %v4891_v23  ;;  %10334 = vmatpush3.bf16.xpose.msk.msra.mxu1 %vm16461_vm7, %v16468_v38  ;;  %10369 = vmatprep.subr.msk.bf16.mxu0 %vm16461_vm7, %v14765_v36  ;;  %v4917_v32 = vmul.f32 %v11441_v53, %v14681_v8  ;;  %vm16470_vm7 = vcmask 523264   ;;  %v16473_v8 = vld [vmem:[#allocation38_spill] sm:$0xff]  ;;  %v16487_v38 = vld [vmem:[#allocation43_spill] sm:$0xff] }
 0xa75   : > { %9196 = vmatmul.mubr.f32.gmra.mrb[168].mxu1 %v4911_v57  ;;  %vm16472_vm1 = vmmov %vm16470_vm7 }
 0xa76   : > { %v11443_v59 = vpop.eup %11442  ;;  %9198 = vmatprep.mubr.f32.mxu1 %v4913_v48  ;;  %vm16474_vm0 = vmmov %vm16472_vm1 }
 0xa77   : > { %v4915_v58 = vmul.f32 %v11443_v59, %v14689_v1  ;;  %v11445_v50 = vpop.eup %11444  ;;  %v16471_v1 = vld [vmem:[#allocation35_spill] sm:$0xff]  ;;  %vm16476_vm13 = vmmov %vm16474_vm0  ;;  %v16536_v59 = vld [vmem:[#allocation82_spill] sm:$0xff] }
 0xa78   : > { %v4921_v19 = vmul.f32 %v11445_v50, %v14687_v44  ;;  %vm16478_vm9 = vmmov %vm16474_vm0  ;;  %v16479_v44 = vld [vmem:[#allocation39_spill] sm:$0xff] }
 0xa79   : > { %9199 = vmatmul.mubr.f32.gmra.mrb[170].mxu1 %v4915_v58  ;;  %vm16480_vm11 = vmmov %vm16474_vm0 }
 0xa7a   : > { %v11447_v54 = vpop.eup %11446  ;;  %9201 = vmatprep.mubr.f32.mxu1 %v4917_v32  ;;  %vm16482_vm4 = vmmov %vm16474_vm0 }
 0xa7b   : > { %v4919_v34 = vmul.f32 %v11447_v54, %v14693_v0  ;;  %v16477_v0 = vld [vmem:[#allocation40_spill] sm:$0xff] }
 0xa7d   : > { %9202 = vmatmul.mubr.f32.gmra.mrb[172].mxu1 %v4919_v34 }
 0xa7e   : > { %v11449_v39 = vpop.eup %11448  ;;  %9204 = vmatprep.mubr.f32.mxu1 %v4921_v19  ;;  %v16533_v19 = vld [vmem:[#allocation64_spill] sm:$0xff] }
 0xa7f   : > { %v4923_v3 = vmul.f32 %v11449_v39, %v14696_v61  ;;  %v16481_v61 = vld [vmem:[#allocation42_spill] sm:$0xff] }
 0xa81   : > { %9205 = vmatmul.mubr.f32.gmra.mrb[174].mxu1 %v4923_v3 }
 0xa82   : > { %9239 = vmatprep.mubr.msk.f32.mxu1 %vm16470_vm7, %v16469_v9  ;;  %vm16484_vm7 = vmmov %vm16474_vm0 }
 0xa85   : > { %9240 = vmatmul.mubr.msk.f32.vlgmr.msra.gmra.mrb[176].mxu1 %vm16472_vm1, %v16471_v1  ;;  %vm16486_vm1 = vmmov %vm16474_vm0 }
 0xa86   : > { %9242 = vmatprep.mubr.msk.f32.mxu1 %vm16474_vm0, %v16473_v8 }
 0xa89   : > { %9243 = vmatmul.mubr.msk.f32.gmra.mrb[178].mxu1 %vm16476_vm13, %v16475_v13  ;;  %vm16489_vm13 = vmmov %vm16474_vm0 }
 0xa8a   : > { %9245 = vmatprep.mubr.msk.f32.mxu1 %vm16478_vm9, %v16477_v0  ;;  %vm16491_vm9 = vmmov %vm16474_vm0 }
 0xa8d   : > { %9246 = vmatmul.mubr.msk.f32.gmra.mrb[180].mxu1 %vm16480_vm11, %v16479_v44  ;;  %vm16493_vm11 = vmmov %vm16474_vm0 }
 0xa8e   : > { %9248 = vmatprep.mubr.msk.f32.mxu1 %vm16482_vm4, %v16481_v61  ;;  %vm16495_vm4 = vmmov %vm16474_vm0 }
 0xa91   : > { %9249 = vmatmul.mubr.msk.f32.gmra.mrb[182].mxu1 %vm16484_vm7, %v16483_v41  ;;  %vm16497_vm7 = vmmov %vm16474_vm0 }
 0xa92   : > { %9251 = vmatprep.mubr.msk.f32.mxu1 %vm16486_vm1, %v16485_v5  ;;  %vm16499_vm1 = vmmov %vm16474_vm0 }
 0xa95   : > { %9252 = vmatmul.mubr.msk.f32.gmra.mrb[184].mxu1 %vm16474_vm0, %v16487_v38  ;;  %vm16541_vm0 = vnez %v16358_v21 }
 0xa96   : > { %9254 = vmatprep.mubr.msk.f32.mxu1 %vm16489_vm13, %v16488_v62  ;;  %vm16542_vm13 = vnez %v16360_v42 }
 0xa99   : > { %9255 = vmatmul.mubr.msk.f32.gmra.mrb[186].mxu1 %vm16491_vm9, %v16490_v28  ;;  %vm16543_vm9 = vnez %v16362_v14 }
 0xa9a   : > { %9257 = vmatprep.mubr.msk.f32.mxu1 %vm16493_vm11, %v16492_v49  ;;  %vm16544_vm11 = vnez %v16432_v11 }
 0xa9d   : > { %9258 = vmatmul.mubr.msk.f32.gmra.mrb[188].mxu1 %vm16495_vm4, %v16494_v18  ;;  %vm16545_vm4 = vnez %v16436_v30 }
 0xa9e   : > { %9260 = vmatprep.mubr.msk.f32.mxu1 %vm16497_vm7, %v16496_v60  ;;  %vm16546_vm7 = vnez %v16438_v33 }
 0xaa1   : > { %9261 = vmatmul.mubr.msk.f32.gmra.mrb[190].mxu1 %vm16499_vm1, %v16498_v12  ;;  %vm16547_vm1 = vnez %v16440_v7 }
 0xb09   : > { %v14812_v22 = vpop.f32.mrb[160].mxu1 }
 0xb0a   : > { %16500 = vst [vmem:[#allocation63_spill] sm:$0xff] %v14812_v22  ;;  %v14816_v23 = vpop.f32.mrb[161].mxu1 }
 0xb0b   : > { %16502 = vst [vmem:[#allocation59_spill] sm:$0xff] %v14816_v23 }
 0xb38   : > { %v14820_v53 = vpop.f32.mrb[162].mxu1 }
 0xb39   : > { %16504 = vst [vmem:[#allocation90_spill] sm:$0xff] %v14820_v53  ;;  %v14824_v32 = vpop.f32.mrb[163].mxu1 }
 0xb3a   : > { %16506 = vst [vmem:[#allocation86_spill] sm:$0xff] %v14824_v32 }
 0xb40   : > { %v14828_v34 = vpop.f32.mrb[164].mxu1 }
 0xb41   : > { %16508 = vst [vmem:[#allocation100_spill] sm:$0xff] %v14828_v34  ;;  %v14832_v3 = vpop.f32.mrb[165].mxu1 }
 0xb42   : > { %16510 = vst [vmem:[#allocation96_spill] sm:$0xff] %v14832_v3 }
 0xb44   : > { %v14836_v47 = vpop.f32.mrb[166].mxu1 }
 0xb45   : > { %16512 = vst [vmem:[#allocation108_spill] sm:$0xff] %v14836_v47  ;;  %v14840_v15 = vpop.f32.mrb[167].mxu1 }
 0xb46   : > { %16514 = vst [vmem:[#allocation104_spill] sm:$0xff] %v14840_v15 }
 0xb48   : > { %v14844_v43 = vpop.f32.mrb[168].mxu1 }
 0xb49   : > { %16516 = vst [vmem:[#allocation116_spill] sm:$0xff] %v14844_v43  ;;  %v14848_v6 = vpop.f32.mrb[169].mxu1 }
 0xb4a   : > { %16518 = vst [vmem:[#allocation112_spill] sm:$0xff] %v14848_v6 }
 0xb4c   : > { %v14852_v17 = vpop.f32.mrb[170].mxu1 }
 0xb4d   : > { %16520 = vst [vmem:[#allocation97_spill] sm:$0xff] %v14852_v17  ;;  %v14856_v10 = vpop.f32.mrb[171].mxu1 }
 0xb4e   : > { %16522 = vst [vmem:[#allocation101_spill] sm:$0xff] %v14856_v10 }
 0xb50   : > { %v14860_v56 = vpop.f32.mrb[172].mxu1 }
 0xb51   : > { %16524 = vst [vmem:[#allocation105_spill] sm:$0xff] %v14860_v56  ;;  %v14864_v43 = vpop.f32.mrb[173].mxu1 }
 0xb52   : > { %16526 = vst [vmem:[#allocation109_spill] sm:$0xff] %v14864_v43 }
 0xb54   : > { %v14868_v6 = vpop.f32.mrb[174].mxu1 }
 0xb55   : > { %16528 = vst [vmem:[#allocation113_spill] sm:$0xff] %v14868_v6  ;;  %v14872_v17 = vpop.f32.mrb[175].mxu1 }
 0xb56   : > { %16530 = vst [vmem:[#allocation117_spill] sm:$0xff] %v14872_v17 }
 0xb58   : > { %v9241_v10 = vpop.f32.mrb[176].mxu1 }
 0xb59   : > { %v5375_v46 = vmul.f32 0.05103104, %v9241_v10  ;;  %v5295_v47 = vpop.f32.mrb[177].mxu1 }
 0xb5a   : > { %v5374_v63 = vmul.f32 0.05103104, %v5295_v47 }
 0xb5b   : > { %v14878_v39 = vsel %vm13607_vm2, %v5375_v46, -1e+30 }
 0xb5c   : > { %5408 = vmax.xlane.f32.xlu0 %v14878_v39  ;;  %v9244_v48 = vpop.f32.mrb[178].mxu1  ;;  %v14883_v56 = vsel %vm13614_vm3, %v5374_v63, -1e+30 }
 0xb5d   : > { %5406 = vmax.xlane.f32.xlu1 %v14883_v56  ;;  %v5305_v58 = vpop.f32.mrb[179].mxu1 }
 0xb5e   : > { %v5376_v6 = vmul.f32 0.05103104, %v5305_v58 }
 0xb60   : > { %v9247_v54 = vpop.f32.mrb[180].mxu1  ;;  %v14888_v10 = vsel %vm13640_vm5, %v5376_v6, -1e+30 }
 0xb61   : > { %5410 = vmax.xlane.f32.xlu1 %v14888_v10  ;;  %v5315_v46 = vpop.f32.mrb[181].mxu1  ;;  %v5379_v40 = vmul.f32 0.05103104, %v9247_v54 }
 0xb62   : > { %v5378_v47 = vmul.f32 0.05103104, %v5315_v46 }
 0xb63   : > { %v5395_v32 = vsel %vm16542_vm13, %v5379_v40, -1e+30 }
 0xb64   : > { %v9250_v35 = vpop.f32.mrb[182].mxu1  ;;  %v14893_v17 = vsel %vm13646_vm6, %v5378_v47, -1e+30 }
 0xb65   : > { %5414 = vmax.xlane.f32.xlu1 %v14893_v17  ;;  %v5325_v63 = vpop.f32.mrb[183].mxu1 }
 0xb66   : > { %v5380_v2 = vmul.f32 0.05103104, %v5325_v63 }
 0xb68   : > { %v9253_v37 = vpop.f32.mrb[184].mxu1  ;;  %v14898_v58 = vsel %vm13669_vm8, %v5380_v2, -1e+30 }
 0xb69   : > { %5418 = vmax.xlane.f32.xlu1 %v14898_v58  ;;  %v5335_v6 = vpop.f32.mrb[185].mxu1  ;;  %v5383_v50 = vmul.f32 0.05103104, %v9253_v37 }
 0xb6a   : > { %v5382_v43 = vmul.f32 0.05103104, %v5335_v6  ;;  %v16532_v6 = vld [vmem:[#allocation62_spill] sm:$0xff] }
 0xb6b   : > { %v16534_v3 = vpack.i.bf16 %v16532_v6, %v16533_v19  ;;  %v16538_v6 = vld [vmem:[#allocation85_spill] sm:$0xff] }
 0xb6c   : > { %v9256_v55 = vpop.f32.mrb[186].mxu1  ;;  %v14903_v46 = vsel %vm13690_vm10, %v5382_v43, -1e+30 }
 0xb6d   : > { %5422 = vmax.xlane.f32.xlu1 %v14903_v46  ;;  %v5345_v47 = vpop.f32.mrb[187].mxu1 }
 0xb6e   : > { %v5384_v15 = vmul.f32 0.05103104, %v5345_v47 }
 0xb70   : > { %v9259_v26 = vpop.f32.mrb[188].mxu1  ;;  %v14908_v63 = vsel %vm13713_vm12, %v5384_v15, -1e+30 }
 0xb71   : > { %5426 = vmax.xlane.f32.xlu1 %v14908_v63  ;;  %v5355_v2 = vpop.f32.mrb[189].mxu1 }
 0xb72   : > { %v5386_v34 = vmul.f32 0.05103104, %v5355_v2  ;;  %11040 = vrot.lane.b32.xlu0 %v16534_v3, %s11885_s28  ;;  %v16535_v2 = vld [vmem:[#allocation80_spill] sm:$0xff]  ;;  %v5377_v3 = vmul.f32 0.05103104, %v9244_v48 }
 0xb73   : > { %v16537_v19 = vpack.i.bf16 %v16535_v2, %v16536_v59  ;;  %v5385_v48 = vmul.f32 0.05103104, %v9256_v55  ;;  %v5399_v2 = vsel %vm16544_vm11, %v5383_v50, -1e+30 }
 0xb74   : > { %v9262_v43 = vpop.f32.mrb[190].mxu1  ;;  %v14917_v25 = vsel %vm13734_vm14, %v5386_v34, -1e+30  ;;  %v16539_v34 = vld [vmem:[#allocation87_spill] sm:$0xff] }
 0xb75   : > { %5430 = vmax.xlane.f32.xlu1 %v14917_v25  ;;  %v5365_v47 = vpop.f32.mrb[191].mxu1  ;;  %v16540_v22 = vpack.i.bf16 %v16538_v6, %v16539_v34  ;;  %v14943_v54 = vsel %vm16545_vm4, %v5385_v48, -1e+30 }
 0xb76   : > { %v5388_v53 = vmul.f32 0.05103104, %v5365_v47  ;;  %v5393_v47 = vsel %vm16541_vm0, %v5377_v3, -1e+30 }
 0xb78   : > { %v14922_v15 = vsel %vm16435_vm15, %v5388_v53, -1e+30  ;;  %v5381_v53 = vmul.f32 0.05103104, %v9250_v35  ;;  %v5389_v35 = vmul.f32 0.05103104, %v9262_v43 }
 0xb79   : > { %5434 = vmax.xlane.f32.xlu1 %v14922_v15 }
 0xb7a   : > { %v5397_v59 = vsel %vm16543_vm9, %v5381_v53, -1e+30  ;;  %v14953_v55 = vsel %vm16547_vm1, %v5389_v35, -1e+30  ;;  %vm16566_vm1 = vnez %v16270_v24 }
 0xb8a   : > { %11060 = vrot.lane.b32.xlu1 %v16537_v19, %s11885_s28 }
 0xb8e   : > { %11065 = vrot.lane.b32.xlu1 %v16540_v22, %s11885_s28  ;;  %v5387_v22 = vmul.f32 0.05103104, %v9259_v26  ;;  %v14956_v26 = vpop.permute.xlu1 %11045 }
 0xb90   : > { %v14948_v37 = vsel %vm16546_vm7, %v5387_v22, -1e+30 }
 0xb91   : > { %5412 = vmax.xlane.f32.xlu0 %v5393_v47 }
 0xb92   : > { %v14958_v40 = vpop.permute.xlu1 %11050 }
 0xb95   : > { %5416 = vmax.xlane.f32.xlu0 %v5395_v32 }
 0xb99   : > { %5420 = vmax.xlane.f32.xlu0 %v5397_v59 }
 0xb9d   : > { %5424 = vmax.xlane.f32.xlu0 %v5399_v2 }
 0xba1   : > { %5428 = vmax.xlane.f32.xlu0 %v14943_v54 }
 0xba5   : > { %5432 = vmax.xlane.f32.xlu0 %v14948_v37 }
 0xba9   : > { %5436 = vmax.xlane.f32.xlu0 %v14953_v55 }
 0xbe9   : > { %v5409_v50 = vpop.xlane.xlu0 %5408 }
 0xbea   : > { %v5439_v19 = vsub.f32 %v14878_v39, %v5409_v50  ;;  %v5407_v43 = vpop.xlane.xlu1 %5406  ;;  %v16551_v50 = vld [vmem:[#allocation89_spill] sm:$0xff] }
 0xbeb   : > { %v5438_v3 = vsub.f32 %v14883_v56, %v5407_v43 }
 0xbec   : > { %v5456_v6 = vmul.f32 1.442695, %v5439_v19  ;;  %v16552_v19 = vld [vmem:[#allocation91_spill] sm:$0xff] }
 0xbed   : > { %v5454_v34 = vmul.f32 1.442695, %v5438_v3  ;;  %v16553_v43 = vpack.i.bf16 %v16551_v50, %v16552_v19  ;;  %v14984_v3 = vpop.permute.xlu0 %11040 }
 0xbee   : > { %11450 = vpow2.f32 %v5456_v6  ;;  %v5411_v53 = vpop.xlane.xlu1 %5410 }
 0xbef   : > { %11452 = vpow2.f32 %v5454_v34  ;;  %v5440_v48 = vsub.f32 %v14888_v10, %v5411_v53 }
 0xbf1   : > { %v5458_v22 = vmul.f32 1.442695, %v5440_v48 }
 0xbf2   : > { %v5415_v35 = vpop.xlane.xlu1 %5414 }
 0xbf3   : > { %11454 = vpow2.f32 %v5458_v22  ;;  %v5442_v23 = vsub.f32 %v14893_v17, %v5415_v35  ;;  %v16548_v17 = vld [vmem:[#allocation76_spill] sm:$0xff] }
 0xbf5   : > { %v5462_v57 = vmul.f32 1.442695, %v5442_v23  ;;  %v16549_v23 = vld [vmem:[#allocation78_spill] sm:$0xff] }
 0xbf6   : > { %v5419_v22 = vpop.xlane.xlu1 %5418 }
 0xbf7   : > { %11456 = vpow2.f32 %v5462_v57  ;;  %v16550_v57 = vpack.i.bf16 %v16548_v17, %v16549_v23  ;;  %v5444_v51 = vsub.f32 %v14898_v58, %v5419_v22 }
 0xbf8   : > { %v14964_v7 = vpop.eup %11450 }
 0xbf9   : > { %v14966_v39 = vpop.eup %11452  ;;  %5488 = vadd.xlane.f32.xlu0 %v14964_v7  ;;  %v5466_v50 = vmul.f32 1.442695, %v5444_v51 }
 0xbfa   : > { %5486 = vadd.xlane.f32.xlu1 %v14966_v39  ;;  %v5423_v23 = vpop.xlane.xlu1 %5422 }
 0xbfd   : > { %v14970_v56 = vpop.eup %11454 }
 0xbfe   : > { %5490 = vadd.xlane.f32.xlu1 %v14970_v56 }
 0xc01   : > { %v14973_v10 = vpop.eup %11456 }
 0xc02   : > { %5494 = vadd.xlane.f32.xlu1 %v14973_v10 }
 0xc0f   : > { %11055 = vrot.lane.b32.xlu0 %v16550_v57, %s11885_s28 }
 0xc13   : > { %11070 = vrot.lane.b32.xlu1 %v16553_v43, %s11885_s28 }
 0xc1e   : > { %v5413_v6 = vpop.xlane.xlu0 %5412 }
 0xc1f   : > { %v5441_v34 = vsub.f32 %v5393_v47, %v5413_v6 }
 0xc21   : > { %v5460_v53 = vmul.f32 1.442695, %v5441_v34  ;;  %v5427_v34 = vpop.xlane.xlu1 %5426 }
 0xc22   : > { %v5417_v48 = vpop.xlane.xlu0 %5416 }
 0xc23   : > { %11458 = vpow2.f32 %v5460_v53  ;;  %v5443_v35 = vsub.f32 %v5395_v32, %v5417_v48  ;;  %v5446_v32 = vsub.f32 %v14903_v46, %v5423_v23 }
 0xc25   : > { %v5464_v20 = vmul.f32 1.442695, %v5443_v35  ;;  %v5431_v48 = vpop.xlane.xlu1 %5430 }
 0xc26   : > { %v5421_v33 = vpop.xlane.xlu0 %5420 }
 0xc27   : > { %11460 = vpow2.f32 %v5464_v20  ;;  %v5445_v17 = vsub.f32 %v5397_v59, %v5421_v33  ;;  %v5448_v59 = vsub.f32 %v14908_v63, %v5427_v34 }
 0xc29   : > { %v5468_v57 = vmul.f32 1.442695, %v5445_v17  ;;  %v5474_v53 = vmul.f32 1.442695, %v5448_v59  ;;  %v5450_v17 = vsub.f32 %v14917_v25, %v5431_v48 }
 0xc2a   : > { %v5425_v30 = vpop.xlane.xlu0 %5424 }
 0xc2b   : > { %11462 = vpow2.f32 %v5468_v57  ;;  %v5447_v19 = vsub.f32 %v5399_v2, %v5425_v30  ;;  %v5470_v30 = vmul.f32 1.442695, %v5446_v32 }
 0xc2c   : > { %11464 = vpow2.f32 %v5466_v50  ;;  %v5435_v50 = vpop.xlane.xlu1 %5434 }
 0xc2d   : > { %v14987_v43 = vpop.eup %11458  ;;  %v5472_v47 = vmul.f32 1.442695, %v5447_v19 }
 0xc2e   : > { %v5429_v6 = vpop.xlane.xlu0 %5428  ;;  %5492 = vadd.xlane.f32.xlu0 %v14987_v43 }
 0xc2f   : > { %v5449_v58 = vsub.f32 %v14943_v54, %v5429_v6  ;;  %11466 = vpow2.f32 %v5472_v47 }
 0xc31   : > { %v14992_v20 = vpop.eup %11460  ;;  %v5476_v33 = vmul.f32 1.442695, %v5449_v58 }
 0xc32   : > { %v5433_v51 = vpop.xlane.xlu0 %5432  ;;  %5496 = vadd.xlane.f32.xlu0 %v14992_v20 }
 0xc33   : > { %11468 = vpow2.f32 %v5476_v33  ;;  %v5451_v54 = vsub.f32 %v14948_v37, %v5433_v51  ;;  %v5478_v37 = vmul.f32 1.442695, %v5450_v17 }
 0xc34   : > { %11470 = vpow2.f32 %v5470_v30  ;;  %v11043_v30 = vunpack.i.h.bf16 %v14984_v3 }
 0xc35   : > { %v14996_v2 = vpop.eup %11462  ;;  %11472 = vpow2.f32 %v5474_v53  ;;  %v5480_v23 = vmul.f32 1.442695, %v5451_v54  ;;  %v11042_v53 = vunpack.i.l.bf16 %v14984_v3  ;;  %v11048_v3 = vunpack.i.h.bf16 %v14956_v26 }
 0xc36   : > { %5500 = vadd.xlane.f32.xlu0 %v14996_v2  ;;  %v5437_v46 = vpop.xlane.xlu0 %5436  ;;  %v15001_v35 = vpop.eup %11464 }
 0xc37   : > { %v5453_v22 = vsub.f32 %v14953_v55, %v5437_v46  ;;  %v5452_v55 = vsub.f32 %v14922_v15, %v5435_v50 }
 0xc39   : > { %v5484_v63 = vmul.f32 1.442695, %v5453_v22  ;;  %v15005_v57 = vpop.eup %11466  ;;  %v5482_v25 = vmul.f32 1.442695, %v5452_v55  ;;  %v10373_v22 = vpack.c.bf16 %v11043_v30, %v11042_v53 }
 0xc3a   : > { %5498 = vadd.xlane.f32.xlu0 %v15001_v35 }
 0xc3b   : > { %11474 = vpow2.f32 %v5484_v63 }
 0xc3c   : > { %11476 = vpow2.f32 %v5480_v23 }
 0xc3d   : > { %v15007_v19 = vpop.eup %11468  ;;  %11478 = vpow2.f32 %v5478_v37 }
 0xc3e   : > { %5504 = vadd.xlane.f32.xlu0 %v15005_v57  ;;  %5508 = vadd.xlane.f32.xlu1 %v15007_v19  ;;  %v15012_v47 = vpop.eup %11470  ;;  %11480 = vpow2.f32 %v5482_v25 }
 0xc3f   : > { %v15015_v6 = vpop.eup %11472 }
 0xc42   : > { %5502 = vadd.xlane.f32.xlu0 %v15012_v47 }
 0xc45   : > { %v15017_v32 = vpop.eup %11474 }
 0xc46   : > { %5506 = vadd.xlane.f32.xlu0 %v15015_v6  ;;  %5516 = vadd.xlane.f32.xlu1 %v15017_v32  ;;  %v15021_v34 = vpop.eup %11476 }
 0xc47   : > { %v15024_v15 = vpop.eup %11478 }
 0xc48   : > { %v15027_v58 = vpop.eup %11480 }
 0xc4a   : > { %5512 = vadd.xlane.f32.xlu0 %v15021_v34 }
 0xc4e   : > { %5510 = vadd.xlane.f32.xlu0 %v15024_v15 }
 0xc52   : > { %5514 = vadd.xlane.f32.xlu0 %v15027_v58 }
 0xc57   : > { %5697 = vrot.lane.b32.xlu1 %v16471_v1, %s11885_s28  ;;  %v16554_v1 = vld [vmem:[#allocation94_spill] sm:$0xff] }
 0xc5b   : > { %5699 = vrot.lane.b32.xlu1 %v16473_v8, %s11885_s28  ;;  %v16555_v8 = vld [vmem:[#allocation95_spill] sm:$0xff] }
 0xc5f   : > { %5701 = vrot.lane.b32.xlu1 %v16475_v13, %s11885_s28  ;;  %v16556_v13 = vpack.i.bf16 %v16554_v1, %v16555_v8 }
 0xc63   : > { %5703 = vrot.lane.b32.xlu1 %v16477_v0, %s11885_s28  ;;  %v16557_v0 = vld [vmem:[#allocation98_spill] sm:$0xff] }
 0xc67   : > { %5705 = vrot.lane.b32.xlu1 %v16479_v44, %s11885_s28  ;;  %v16558_v44 = vld [vmem:[#allocation99_spill] sm:$0xff] }
 0xc68   : > { %5695 = vrot.lane.b32.xlu0 %v16469_v9, %s11885_s28  ;;  %v11061_v9 = vpop.permute.xlu1 %11060 }
 0xc69   : > { %v11063_v55 = vunpack.i.h.bf16 %v11061_v9  ;;  %v11062_v25 = vunpack.i.l.bf16 %v11061_v9 }
 0xc6b   : > { %5709 = vrot.lane.b32.xlu1 %v16483_v41, %s11885_s28 }
 0xc6c   : > { %5707 = vrot.lane.b32.xlu0 %v16481_v61, %s11885_s28  ;;  %v16559_v61 = vpack.i.bf16 %v16557_v0, %v16558_v44  ;;  %v11066_v41 = vpop.permute.xlu1 %11065 }
 0xc6d   : > { %v11068_v8 = vunpack.i.h.bf16 %v11066_v41 }
 0xc6f   : > { %5713 = vrot.lane.b32.xlu1 %v16487_v38, %s11885_s28  ;;  %v16561_v38 = vld [vmem:[#allocation103_spill] sm:$0xff] }
 0xc70   : > { %5711 = vrot.lane.b32.xlu0 %v16485_v5, %s11885_s28  ;;  %v16560_v5 = vld [vmem:[#allocation102_spill] sm:$0xff] }
 0xc73   : > { %5717 = vrot.lane.b32.xlu1 %v16490_v28, %s11885_s28  ;;  %v16563_v28 = vld [vmem:[#allocation106_spill] sm:$0xff] }
 0xc74   : > { %5715 = vrot.lane.b32.xlu0 %v16488_v62, %s11885_s28  ;;  %v16562_v62 = vpack.i.bf16 %v16560_v5, %v16561_v38 }
 0xc77   : > { %5721 = vrot.lane.b32.xlu1 %v16494_v18, %s11885_s28 }
 0xc78   : > { %5719 = vrot.lane.b32.xlu0 %v16492_v49, %s11885_s28  ;;  %v16564_v49 = vld [vmem:[#allocation107_spill] sm:$0xff] }
 0xc79   : > { %v16565_v18 = vpack.i.bf16 %v16563_v28, %v16564_v49 }
 0xc7b   : > { %5725 = vrot.lane.b32.xlu1 %v16498_v12, %s11885_s28 }
 0xc7c   : > { %5723 = vrot.lane.b32.xlu0 %v16496_v60, %s11885_s28 }
 0xc7f   : > { %11075 = vrot.lane.b32.xlu1 %v16556_v13, %s11885_s28  ;;  %v11067_v13 = vunpack.i.l.bf16 %v11066_v41 }
 0xc80   : > { %11080 = vrot.lane.b32.xlu0 %v16559_v61, %s11885_s28 }
 0xc81   : > { %v10403_v44 = vpack.c.bf16 %v11068_v8, %v11067_v13 }
 0xc83   : > { %11085 = vrot.lane.b32.xlu1 %v16562_v62, %s11885_s28 }
 0xc84   : > { %11090 = vrot.lane.b32.xlu0 %v16565_v18, %s11885_s28 }
 0xc86   : > { %v5489_v60 = vpop.xlane.xlu0 %5488 }
 0xc87   : > { %11482 = vrcp.f32 %v5489_v60  ;;  %v5487_v12 = vpop.xlane.xlu1 %5486 }
 0xc88   : > { %11484 = vrcp.f32 %v5487_v12 }
 0xc8a   : > { %v11056_v23 = vpop.permute.xlu0 %11055 }
 0xc8b   : > { %v5491_v33 = vpop.xlane.xlu1 %5490  ;;  %v11057_v50 = vunpack.i.l.bf16 %v11056_v23 }
 0xc8c   : > { %11486 = vrcp.f32 %v5491_v33 }
 0xc8f   : > { %v5495_v1 = vpop.xlane.xlu1 %5494 }
 0xc90   : > { %11488 = vrcp.f32 %v5495_v1 }
 0xc91   : > { %v11483_v59 = vpop.eup %11482 }
 0xc92   : > { %v11485_v51 = vpop.eup %11484  ;;  %v5521_v46 = vmul.f32 %v11483_v59, %v14964_v7  ;;  %v11053_v7 = vunpack.i.h.bf16 %v14958_v40 }
 0xc93   : > { %v5519_v48 = vmul.f32 %v11485_v51, %v14966_v39  ;;  %v11047_v39 = vunpack.i.l.bf16 %v14956_v26  ;;  %v11058_v26 = vunpack.i.h.bf16 %v11056_v23  ;;  %v11071_v61 = vpop.permute.xlu1 %11070 }
 0xc94   : > { %v11073_v9 = vunpack.i.h.bf16 %v11071_v61  ;;  %v11072_v38 = vunpack.i.l.bf16 %v11071_v61 }
 0xc95   : > { %9295 = vmatprep.mubr.f32.mxu0 %v5519_v48  ;;  %v10379_v17 = vpack.c.bf16 %v11048_v3, %v11047_v39  ;;  %v10391_v37 = vpack.c.bf16 %v11058_v26, %v11057_v50 }
 0xc96   : > { %v11487_v54 = vpop.eup %11486  ;;  %9296 = vmatmul.mubr.f32.vlgmr.msra.gmra.mrb[192].mxu0 %v5521_v46  ;;  %v10409_v18 = vpack.c.bf16 %v11073_v9, %v11072_v38 }
 0xc97   : > { %10372 = vmatpush3.bf16.xpose.msk.msra.mxu0 %vm16566_vm1, %v14765_v36  ;;  %v5523_v63 = vmul.f32 %v11487_v54, %v14970_v56  ;;  %v11052_v36 = vunpack.i.l.bf16 %v14958_v40  ;;  %v10397_v40 = vpack.c.bf16 %v11063_v55, %v11062_v25 }
 0xc98   : > { %10375 = vmatprep.subr.msk.bf16.mxu0 %vm16566_vm1, %v10373_v22 }
 0xc99   : > { %9298 = vmatprep.mubr.f32.mxu0 %v5523_v63  ;;  %v10385_v56 = vpack.c.bf16 %v11053_v7, %v11052_v36 }
 0xc9a   : > { %v11489_v28 = vpop.eup %11488 }
 0xc9b   : > { %v5527_v12 = vmul.f32 %v11489_v28, %v14973_v10 }
 0xc9f   : > { %10378 = vmatpush3.bf16.xpose.msk.msra.mxu0 %vm16566_vm1, %v10373_v22 }
 0xca0   : > { %10381 = vmatprep.subr.msk.bf16.mxu0 %vm16566_vm1, %v10379_v17 }
 0xca7   : > { %10384 = vmatpush3.bf16.xpose.msk.msra.mxu0 %vm16566_vm1, %v10379_v17 }
 0xca8   : > { %10387 = vmatprep.subr.msk.bf16.mxu0 %vm16566_vm1, %v10385_v56 }
 0xcaf   : > { %10390 = vmatpush3.bf16.xpose.msk.msra.mxu0 %vm16566_vm1, %v10385_v56 }
 0xcb0   : > { %10393 = vmatprep.subr.msk.bf16.mxu0 %vm16566_vm1, %v10391_v37 }
 0xcb7   : > { %10396 = vmatpush3.bf16.xpose.msk.msra.mxu0 %vm16566_vm1, %v10391_v37 }
 0xcb8   : > { %10399 = vmatprep.subr.msk.bf16.mxu0 %vm16566_vm1, %v10397_v40 }
 0xcbb   : > { %v5493_v0 = vpop.xlane.xlu0 %5492 }
 0xcbc   : > { %11490 = vrcp.f32 %v5493_v0 }
 0xcbf   : > { %10402 = vmatpush3.bf16.xpose.msk.msra.mxu0 %vm16566_vm1, %v10397_v40  ;;  %v5497_v5 = vpop.xlane.xlu0 %5496 }
 0xcc0   : > { %11492 = vrcp.f32 %v5497_v5  ;;  %10405 = vmatprep.subr.msk.bf16.mxu0 %vm16566_vm1, %v10403_v44 }
 0xcc3   : > { %v5501_v62 = vpop.xlane.xlu0 %5500 }
 0xcc4   : > { %11494 = vrcp.f32 %v5501_v62 }
 0xcc6   : > { %v11491_v49 = vpop.eup %11490 }
 0xcc7   : > { %10408 = vmatpush3.bf16.xpose.msk.msra.mxu0 %vm16566_vm1, %v10403_v44  ;;  %v5499_v41 = vpop.xlane.xlu0 %5498  ;;  %v5525_v60 = vmul.f32 %v11491_v49, %v14987_v43 }
 0xcc8   : > { %11496 = vrcp.f32 %v5499_v41  ;;  %10411 = vmatprep.subr.msk.bf16.mxu0 %vm16566_vm1, %v10409_v18 }
 0xcc9   : > { %9299 = vmatmul.mubr.f32.gmra.mrb[194].mxu0 %v5525_v60 }
 0xcca   : > { %v11493_v33 = vpop.eup %11492  ;;  %9301 = vmatprep.mubr.f32.mxu0 %v5527_v12 }
 0xccb   : > { %v5505_v59 = vpop.xlane.xlu0 %5504  ;;  %v5529_v51 = vmul.f32 %v11493_v33, %v14992_v20  ;;  %v5509_v30 = vpop.xlane.xlu1 %5508 }
 0xccc   : > { %11498 = vrcp.f32 %v5505_v59 }
 0xccd   : > { %9302 = vmatmul.mubr.f32.gmra.mrb[196].mxu0 %v5529_v51 }
 0xcce   : > { %v11495_v43 = vpop.eup %11494 }
 0xccf   : > { %10414 = vmatpush3.bf16.xpose.msk.msra.mxu0 %vm16566_vm1, %v10409_v18  ;;  %v5503_v53 = vpop.xlane.xlu0 %5502  ;;  %v5533_v22 = vmul.f32 %v11495_v43, %v14996_v2  ;;  %vm16567_vm1 = vcmask 523264  }
 0xcd0   : > { %11500 = vrcp.f32 %v5503_v53  ;;  %vm16568_vm15 = vmmov %vm16567_vm1 }
 0xcd1   : > { %11502 = vrcp.f32 %v5509_v30  ;;  %vm16569_vm7 = vmmov %vm16567_vm1 }
 0xcd2   : > { %v11497_v48 = vpop.eup %11496  ;;  %vm16570_vm14 = vmmov %vm16567_vm1 }
 0xcd3   : > { %v5507_v46 = vpop.xlane.xlu0 %5506  ;;  %v5517_v54 = vpop.xlane.xlu1 %5516  ;;  %v5531_v10 = vmul.f32 %v11497_v48, %v15001_v35  ;;  %vm16571_vm4 = vmmov %vm16567_vm1 }
 0xcd4   : > { %11504 = vrcp.f32 %v5507_v46  ;;  %vm16572_vm12 = vmmov %vm16567_vm1 }
 0xcd5   : > { %9304 = vmatprep.mubr.f32.mxu0 %v5531_v10  ;;  %vm16573_vm11 = vmmov %vm16567_vm1 }
 0xcd6   : > { %9305 = vmatmul.mubr.f32.gmra.mrb[198].mxu0 %v5533_v22  ;;  %v11499_v3 = vpop.eup %11498 }
 0xcd7   : > { %v5513_v20 = vpop.xlane.xlu0 %5512  ;;  %v5698_v63 = vpop.permute.xlu1 %5697  ;;  %v5537_v36 = vmul.f32 %v11499_v3, %v15005_v57 }
 0xcd8   : > { %11506 = vrcp.f32 %v5513_v20 }
 0xcda   : > { %v11501_v39 = vpop.eup %11500 }
 0xcdb   : > { %v5511_v24 = vpop.xlane.xlu0 %5510  ;;  %v5700_v17 = vpop.permute.xlu1 %5699  ;;  %v5535_v7 = vmul.f32 %v11501_v39, %v15012_v47 }
 0xcdc   : > { %11508 = vrcp.f32 %v5511_v24  ;;  %v11503_v56 = vpop.eup %11502 }
 0xcdd   : > { %9307 = vmatprep.mubr.f32.mxu0 %v5535_v7  ;;  %11510 = vrcp.f32 %v5517_v54  ;;  %v5541_v50 = vmul.f32 %v11503_v56, %v15007_v19 }
 0xcde   : > { %v11505_v35 = vpop.eup %11504  ;;  %9308 = vmatmul.mubr.f32.gmra.mrb[200].mxu0 %v5537_v36 }
 0xcdf   : > { %v5515_v2 = vpop.xlane.xlu0 %5514  ;;  %v5702_v23 = vpop.permute.xlu1 %5701  ;;  %v5539_v26 = vmul.f32 %v11505_v35, %v15015_v6 }
 0xce0   : > { %11512 = vrcp.f32 %v5515_v2 }
 0xce1   : > { %9310 = vmatprep.mubr.f32.mxu0 %v5539_v26 }
 0xce2   : > { %9311 = vmatmul.mubr.f32.gmra.mrb[202].mxu0 %v5541_v50  ;;  %v11507_v47 = vpop.eup %11506 }
 0xce3   : > { %v5696_v37 = vpop.permute.xlu0 %5695  ;;  %v5704_v55 = vpop.permute.xlu1 %5703  ;;  %v5545_v8 = vmul.f32 %v11507_v47, %v15021_v34 }
 0xce6   : > { %v11509_v25 = vpop.eup %11508 }
 0xce7   : > { %v5708_v40 = vpop.permute.xlu0 %5707  ;;  %v5706_v57 = vpop.permute.xlu1 %5705  ;;  %v5543_v1 = vmul.f32 %v11509_v25, %v15024_v15 }
 0xce8   : > { %v11511_v13 = vpop.eup %11510 }
 0xce9   : > { %9313 = vmatprep.mubr.f32.mxu0 %v5543_v1  ;;  %v5549_v61 = vmul.f32 %v11511_v13, %v15017_v32 }
 0xcea   : > { %v11513_v0 = vpop.eup %11512  ;;  %9314 = vmatmul.mubr.f32.gmra.mrb[204].mxu0 %v5545_v8 }
 0xceb   : > { %v5712_v6 = vpop.permute.xlu0 %5711  ;;  %v5710_v44 = vpop.permute.xlu1 %5709  ;;  %v5547_v19 = vmul.f32 %v11513_v0, %v15027_v58 }
 0xced   : > { %9316 = vmatprep.mubr.f32.mxu0 %v5547_v19 }
 0xcee   : > { %9317 = vmatmul.mubr.f32.gmra.mrb[206].mxu0 %v5549_v61 }
 0xcef   : > { %v5716_v5 = vpop.permute.xlu0 %5715  ;;  %9351 = vmatprep.mubr.msk.f32.mxu0 %vm16567_vm1, %v5696_v37  ;;  %v5714_v9 = vpop.permute.xlu1 %5713 }
 0xcf2   : > { %9352 = vmatmul.mubr.msk.f32.vlgmr.msra.gmra.mrb[208].mxu0 %vm16568_vm15, %v5698_v63  ;;  %vm16574_vm15 = vmmov %vm16567_vm1 }
 0xcf3   : > { %v5720_v15 = vpop.permute.xlu0 %5719  ;;  %v5718_v34 = vpop.permute.xlu1 %5717  ;;  %9354 = vmatprep.mubr.msk.f32.mxu0 %vm16569_vm7, %v5700_v17  ;;  %vm16579_vm7 = vmmov %vm16567_vm1 }
 0xcf6   : > { %9355 = vmatmul.mubr.msk.f32.gmra.mrb[210].mxu0 %vm16570_vm14, %v5702_v23  ;;  %vm16575_vm14 = vmmov %vm16567_vm1 }
 0xcf7   : > { %v5724_v38 = vpop.permute.xlu0 %5723  ;;  %v5722_v62 = vpop.permute.xlu1 %5721  ;;  %9357 = vmatprep.mubr.msk.f32.mxu0 %vm16571_vm4, %v5704_v55  ;;  %vm16576_vm4 = vmmov %vm16567_vm1 }
 0xcfa   : > { %9358 = vmatmul.mubr.msk.f32.gmra.mrb[212].mxu0 %vm16572_vm12, %v5706_v57  ;;  %vm16577_vm12 = vmmov %vm16567_vm1 }
 0xcfb   : > { %v5726_v32 = vpop.permute.xlu1 %5725  ;;  %9360 = vmatprep.mubr.msk.f32.mxu0 %vm16573_vm11, %v5708_v40  ;;  %v11081_v58 = vpop.permute.xlu0 %11080  ;;  %vm16578_vm11 = vmmov %vm16567_vm1 }
 0xcfc   : > { %v11083_v49 = vunpack.i.h.bf16 %v11081_v58  ;;  %v11082_v18 = vunpack.i.l.bf16 %v11081_v58 }
 0xcfe   : > { %9361 = vmatmul.mubr.msk.f32.gmra.mrb[214].mxu0 %vm16567_vm1, %v5710_v44  ;;  %v10419_v59 = vpack.c.bf16 %v11083_v49, %v11082_v18 }
 0xcff   : > { %v11076_v28 = vpop.permute.xlu1 %11075  ;;  %9363 = vmatprep.mubr.msk.f32.mxu0 %vm16574_vm15, %v5712_v6  ;;  %v11091_v53 = vpop.permute.xlu0 %11090  ;;  %vm16580_vm15 = vmmov %vm16567_vm1 }
 0xd00   : > { %v11078_v41 = vunpack.i.h.bf16 %v11076_v28  ;;  %v11077_v60 = vunpack.i.l.bf16 %v11076_v28  ;;  %v11093_v43 = vunpack.i.h.bf16 %v11091_v53  ;;  %v11092_v48 = vunpack.i.l.bf16 %v11091_v53 }
 0xd02   : > { %v10415_v12 = vpack.c.bf16 %v11078_v41, %v11077_v60  ;;  %9364 = vmatmul.mubr.msk.f32.gmra.mrb[216].mxu0 %vm16575_vm14, %v5714_v9  ;;  %v10427_v54 = vpack.c.bf16 %v11093_v43, %v11092_v48  ;;  %vm16658_vm14 = vmmov %vm16567_vm1 }
 0xd03   : > { %v11086_v33 = vpop.permute.xlu1 %11085  ;;  %9366 = vmatprep.mubr.msk.f32.mxu0 %vm16576_vm4, %v5716_v5  ;;  %vm16660_vm4 = vmmov %vm16567_vm1 }
 0xd04   : > { %v11088_v51 = vunpack.i.h.bf16 %v11086_v33  ;;  %v11087_v30 = vunpack.i.l.bf16 %v11086_v33  ;;  %10416 = vmatprep.subr.bf16.mxu1 %v10415_v12  ;;  %v16582_v33 = vld [vmem:[#allocation110_spill] sm:$0xff] }
 0xd05   : > { %10418 = vmatpush3.bf16.msra.mxu1 %v10415_v12 }
 0xd06   : > { %9367 = vmatmul.mubr.msk.f32.gmra.mrb[218].mxu0 %vm16577_vm12, %v5718_v34  ;;  %10420 = vmatprep.subr.bf16.mxu1 %v10419_v59  ;;  %v10423_v46 = vpack.c.bf16 %v11088_v51, %v11087_v30  ;;  %v16585_v51 = vld [vmem:[#allocation114_spill] sm:$0xff]  ;;  %v16586_v30 = vld [vmem:[#allocation115_spill] sm:$0xff]  ;;  %vm16662_vm12 = vmmov %vm16567_vm1 }
 0xd07   : > { %9369 = vmatprep.mubr.msk.f32.mxu0 %vm16578_vm11, %v5720_v15  ;;  %v16587_v53 = vpack.i.bf16 %v16585_v51, %v16586_v30  ;;  %vm16664_vm11 = vmmov %vm16567_vm1 }
 0xd09   : > { %10422 = vmatpush3.bf16.msra.mxu1 %v10419_v59  ;;  %v16584_v59 = vpack.i.bf16 %v16582_v33, %v16583_v52 }
 0xd0a   : > { %9370 = vmatmul.mubr.msk.f32.gmra.mrb[220].mxu0 %vm16579_vm7, %v5722_v62  ;;  %10424 = vmatprep.subr.bf16.mxu1 %v10423_v46  ;;  %vm16666_vm7 = vmmov %vm16567_vm1 }
 0xd0b   : > { %9372 = vmatprep.mubr.msk.f32.mxu0 %vm16567_vm1, %v5724_v38 }
 0xd0d   : > { %10426 = vmatpush3.bf16.msra.mxu1 %v10423_v46 }
 0xd0e   : > { %9373 = vmatmul.mubr.msk.f32.gmra.mrb[222].mxu0 %vm16580_vm15, %v5726_v32  ;;  %10428 = vmatprep.subr.bf16.mxu1 %v10427_v54  ;;  %vm16669_vm15 = vmmov %vm16567_vm1 }
 0xd11   : > { %10430 = vmatpush3.bf16.msra.mxu1 %v10427_v54  ;;  %v16589_v54 = vld [vmem:[#allocation146_spill] sm:$0xff] }
 0xd69   : > { %v15147_v10 = vpop.f32.mrb[192].mxu0 }
 0xd6a   : > { %v15149_v22 = vpop.f32.mrb[193].mxu0 }
 0xd9c   : > { %v15151_v20 = vpop.f32.mrb[194].mxu0 }
 0xd9d   : > { %v15153_v63 = vpop.f32.mrb[195].mxu0 }
 0xda0   : > { %v15155_v3 = vpop.f32.mrb[196].mxu0 }
 0xda1   : > { %v15157_v39 = vpop.f32.mrb[197].mxu0 }
 0xda9   : > { %v15159_v24 = vpop.f32.mrb[198].mxu0 }
 0xdaa   : > { %v15161_v17 = vpop.f32.mrb[199].mxu0 }
 0xdb1   : > { %v15163_v7 = vpop.f32.mrb[200].mxu0 }
 0xdb2   : > { %v15165_v36 = vpop.f32.mrb[201].mxu0 }
 0xdb5   : > { %v15167_v56 = vpop.f32.mrb[202].mxu0 }
 0xdb6   : > { %v15169_v35 = vpop.f32.mrb[203].mxu0 }
 0xdbd   : > { %v15171_v2 = vpop.f32.mrb[204].mxu0 }
 0xdbe   : > { %v15173_v23 = vpop.f32.mrb[205].mxu0 }
 0xdc1   : > { %v15175_v26 = vpop.f32.mrb[206].mxu0 }
 0xdc2   : > { %v15177_v50 = vpop.f32.mrb[207].mxu0 }
 0xdc5   : > { %v9353_v37 = vpop.f32.mrb[208].mxu0 }
 0xdc6   : > { %v5969_v55 = vmul.f32 0.05103104, %v9353_v37  ;;  %v5889_v47 = vpop.f32.mrb[209].mxu0 }
 0xdc7   : > { %v5968_v25 = vmul.f32 0.05103104, %v5889_v47 }
 0xdc8   : > { %v15181_v40 = vsel %vm13607_vm2, %v5969_v55, -1e+30  ;;  %vm16581_vm2 = vnez %v16432_v11 }
 0xdc9   : > { %6002 = vmax.xlane.f32.xlu1 %v15181_v40  ;;  %v9356_v57 = vpop.f32.mrb[210].mxu0  ;;  %v15186_v1 = vsel %vm13614_vm3, %v5968_v25, -1e+30  ;;  %vm16588_vm3 = vnez %v16347_v29  ;;  %v16591_v25 = vld [vmem:[#allocation147_spill] sm:$0xff]  ;;  %v16593_v29 = vld [vmem:[#allocation148_spill] sm:$0xff] }
 0xdca   : > { %v5971_v8 = vmul.f32 0.05103104, %v9356_v57  ;;  %6000 = vmax.xlane.f32.xlu0 %v15186_v1  ;;  %v5899_v13 = vpop.f32.mrb[211].mxu0 }
 0xdcb   : > { %v5970_v0 = vmul.f32 0.05103104, %v5899_v13 }
 0xdcc   : > { %v15191_v6 = vsel %vm16541_vm0, %v5971_v8, -1e+30 }
 0xdcd   : > { %v9359_v44 = vpop.f32.mrb[212].mxu0  ;;  %v15196_v61 = vsel %vm13640_vm5, %v5970_v0, -1e+30  ;;  %vm16590_vm5 = vnez %v16589_v54  ;;  %v16595_v0 = vld [vmem:[#allocation149_spill] sm:$0xff] }
 0xdce   : > { %6006 = vmax.xlane.f32.xlu0 %v15191_v6  ;;  %v5909_v45 = vpop.f32.mrb[213].mxu0  ;;  %v5973_v4 = vmul.f32 0.05103104, %v9359_v44 }
 0xdcf   : > { %v5972_v19 = vmul.f32 0.05103104, %v5909_v45  ;;  %v16597_v45 = vld [vmem:[#allocation150_spill] sm:$0xff] }
 0xdd0   : > { %v15206_v62 = vsel %vm16542_vm13, %v5973_v4, -1e+30  ;;  %vm16598_vm0 = vnez %v16597_v45  ;;  %v16600_v45 = vld [vmem:[#allocation119_spill] sm:$0xff]  ;;  %vm16654_vm13 = vmmov %vm16567_vm1 }
 0xdd1   : > { %v9362_v5 = vpop.f32.mrb[214].mxu0  ;;  %v15200_v9 = vsel %vm13646_vm6, %v5972_v19, -1e+30  ;;  %vm16592_vm6 = vnez %v16591_v25 }
 0xdd2   : > { %6004 = vmax.xlane.f32.xlu0 %v15196_v61  ;;  %6008 = vmax.xlane.f32.xlu1 %v15200_v9  ;;  %v5919_v21 = vpop.f32.mrb[215].mxu0  ;;  %v5975_v34 = vmul.f32 0.05103104, %v9362_v5 }
 0xdd3   : > { %v5974_v15 = vmul.f32 0.05103104, %v5919_v21 }
 0xdd4   : > { %v15216_v58 = vsel %vm16543_vm9, %v5975_v34, -1e+30  ;;  %vm16656_vm9 = vmmov %vm16567_vm1 }
 0xdd5   : > { %v9365_v38 = vpop.f32.mrb[216].mxu0  ;;  %v15210_v27 = vsel %vm13669_vm8, %v5974_v15, -1e+30  ;;  %vm16594_vm8 = vnez %v16593_v29 }
 0xdd6   : > { %6010 = vmax.xlane.f32.xlu0 %v15206_v62  ;;  %6012 = vmax.xlane.f32.xlu1 %v15210_v27  ;;  %v5929_v16 = vpop.f32.mrb[217].mxu0  ;;  %v5977_v28 = vmul.f32 0.05103104, %v9365_v38 }
 0xdd7   : > { %v5976_v32 = vmul.f32 0.05103104, %v5929_v16 }
 0xdd8   : > { %v15226_v41 = vsel %vm16581_vm2, %v5977_v28, -1e+30  ;;  %vm16671_vm2 = vmmov %vm16567_vm1 }
 0xdd9   : > { %v9368_v49 = vpop.f32.mrb[218].mxu0  ;;  %v15220_v42 = vsel %vm13690_vm10, %v5976_v32, -1e+30  ;;  %vm16596_vm10 = vnez %v16595_v0  ;;  %v16599_v0 = vld [vmem:[#allocation118_spill] sm:$0xff] }
 0xdda   : > { %6014 = vmax.xlane.f32.xlu0 %v15216_v58  ;;  %6016 = vmax.xlane.f32.xlu1 %v15220_v42  ;;  %v5939_v31 = vpop.f32.mrb[219].mxu0  ;;  %v5979_v48 = vmul.f32 0.05103104, %v9368_v49 }
 0xddb   : > { %v5978_v43 = vmul.f32 0.05103104, %v5939_v31 }
 0xddc   : > { %v15244_v37 = vsel %vm16590_vm5, %v5979_v48, -1e+30  ;;  %vm16675_vm5 = vmmov %vm16567_vm1 }
 0xddd   : > { %v9371_v18 = vpop.f32.mrb[220].mxu0  ;;  %v15239_v46 = vsel %vm16588_vm3, %v5978_v43, -1e+30  ;;  %vm16673_vm3 = vmmov %vm16567_vm1 }
 0xdde   : > { %6018 = vmax.xlane.f32.xlu0 %v15226_v41  ;;  %v5949_v14 = vpop.f32.mrb[221].mxu0  ;;  %v5981_v55 = vmul.f32 0.05103104, %v9371_v18 }
 0xddf   : > { %v5980_v11 = vmul.f32 0.05103104, %v5949_v14 }
 0xde0   : > { %v15254_v13 = vsel %vm16594_vm8, %v5981_v55, -1e+30  ;;  %vm16679_vm8 = vmmov %vm16567_vm1 }
 0xde1   : > { %v9374_v60 = vpop.f32.mrb[222].mxu0  ;;  %v15248_v57 = vsel %vm16592_vm6, %v5980_v11, -1e+30  ;;  %vm16677_vm6 = vmmov %vm16567_vm1 }
 0xde2   : > { %v5959_v12 = vpop.f32.mrb[223].mxu0  ;;  %v5983_v8 = vmul.f32 0.05103104, %v9374_v60 }
 0xde3   : > { %v5982_v47 = vmul.f32 0.05103104, %v5959_v12 }
 0xde4   : > { %v15264_v19 = vsel %vm16598_vm0, %v5983_v8, -1e+30  ;;  %vm16683_vm0 = vmmov %vm16567_vm1 }
 0xde5   : > { %v15258_v44 = vsel %vm16596_vm10, %v5982_v47, -1e+30  ;;  %vm16681_vm10 = vmmov %vm16567_vm1 }
 0xdeb   : > { %11095 = vrot.lane.b32.xlu1 %v16584_v59, %s11885_s28 }
 0xdf4   : > { %11100 = vrot.lane.b32.xlu0 %v16587_v53, %s11885_s28 }
 0xe0f   : > { %6020 = vmax.xlane.f32.xlu1 %v15239_v46 }
 0xe13   : > { %6022 = vmax.xlane.f32.xlu0 %v15244_v37  ;;  %6024 = vmax.xlane.f32.xlu1 %v15248_v57 }
 0xe17   : > { %6026 = vmax.xlane.f32.xlu0 %v15254_v13  ;;  %6028 = vmax.xlane.f32.xlu1 %v15258_v44 }
 0xe1b   : > { %6030 = vmax.xlane.f32.xlu0 %v15264_v19 }
 0xe56   : > { %v6003_v4 = vpop.xlane.xlu1 %6002 }
 0xe57   : > { %v6033_v5 = vsub.f32 %v15181_v40, %v6003_v4  ;;  %v6001_v21 = vpop.xlane.xlu0 %6000  ;;  %v16601_v4 = vpack.i.bf16 %v16599_v0, %v16600_v45  ;;  %v6652_v0 = vld [vmem:[#allocation10 + $0x1d8] sm:$0xff]  ;;  %v6601_v45 = vld [vmem:[#allocation10 + $0x40] sm:$0xff] }
 0xe58   : > { %v6032_v15 = vsub.f32 %v15186_v1, %v6001_v21  ;;  %v16603_v21 = vld [vmem:[#allocation123_spill] sm:$0xff] }
 0xe59   : > { %v6050_v34 = vmul.f32 1.442695, %v6033_v5  ;;  %v16602_v5 = vld [vmem:[#allocation122_spill] sm:$0xff] }
 0xe5a   : > { %v6048_v38 = vmul.f32 1.442695, %v6032_v15  ;;  %v16604_v15 = vpack.i.bf16 %v16602_v5, %v16603_v21 }
 0xe5b   : > { %11514 = vpow2.f32 %v6050_v34  ;;  %v6007_v16 = vpop.xlane.xlu0 %6006 }
 0xe5c   : > { %11516 = vpow2.f32 %v6048_v38  ;;  %v6035_v32 = vsub.f32 %v15191_v6, %v6007_v16 }
 0xe5e   : > { %v6054_v28 = vmul.f32 1.442695, %v6035_v32 }
 0xe5f   : > { %v6005_v49 = vpop.xlane.xlu0 %6004  ;;  %v6009_v31 = vpop.xlane.xlu1 %6008 }
 0xe60   : > { %11518 = vpow2.f32 %v6054_v28  ;;  %v6034_v18 = vsub.f32 %v15196_v61, %v6005_v49  ;;  %v6036_v14 = vsub.f32 %v15200_v9, %v6009_v31 }
 0xe62   : > { %v6052_v60 = vmul.f32 1.442695, %v6034_v18  ;;  %v6056_v40 = vmul.f32 1.442695, %v6036_v14 }
 0xe63   : > { %v6011_v12 = vpop.xlane.xlu0 %6010  ;;  %v6013_v33 = vpop.xlane.xlu1 %6012 }
 0xe64   : > { %11520 = vpow2.f32 %v6052_v60  ;;  %v6037_v1 = vsub.f32 %v15206_v62, %v6011_v12  ;;  %v6038_v34 = vsub.f32 %v15210_v27, %v6013_v33 }
 0xe65   : > { %v15273_v52 = vpop.eup %11514  ;;  %11522 = vpow2.f32 %v6056_v40 }
 0xe66   : > { %v15275_v59 = vpop.eup %11516  ;;  %v6058_v6 = vmul.f32 1.442695, %v6037_v1  ;;  %6082 = vadd.xlane.f32.xlu0 %v15273_v52  ;;  %v6060_v16 = vmul.f32 1.442695, %v6038_v34 }
 0xe67   : > { %v6015_v51 = vpop.xlane.xlu0 %6014  ;;  %v6017_v30 = vpop.xlane.xlu1 %6016  ;;  %6080 = vadd.xlane.f32.xlu1 %v15275_v59 }
 0xe68   : > { %11524 = vpow2.f32 %v6058_v6  ;;  %v6039_v38 = vsub.f32 %v15216_v58, %v6015_v51  ;;  %v6040_v32 = vsub.f32 %v15220_v42, %v6017_v30 }
 0xe69   : > { %11526 = vpow2.f32 %v6060_v16 }
 0xe6a   : > { %v15279_v61 = vpop.eup %11518  ;;  %v6062_v28 = vmul.f32 1.442695, %v6039_v38  ;;  %v6064_v31 = vmul.f32 1.442695, %v6040_v32 }
 0xe6b   : > { %v6019_v9 = vpop.xlane.xlu0 %6018  ;;  %v11096_v53 = vpop.permute.xlu1 %11095  ;;  %6086 = vadd.xlane.f32.xlu0 %v15279_v61 }
 0xe6c   : > { %v11098_v62 = vunpack.i.h.bf16 %v11096_v53  ;;  %v11097_v43 = vunpack.i.l.bf16 %v11096_v53  ;;  %v6041_v49 = vsub.f32 %v15226_v41, %v6019_v9  ;;  %11528 = vpow2.f32 %v6062_v28  ;;  %v6643_v9 = vld [vmem:[#allocation10 + $0x190] sm:$0xff]  ;;  %v6646_v53 = vld [vmem:[#allocation10 + $0x1a8] sm:$0xff] }
 0xe6d   : > { %11530 = vpow2.f32 %v6064_v31  ;;  %v6655_v28 = vld [vmem:[#allocation10 + $0x1f0] sm:$0xff] }
 0xe6e   : > { %v15282_v48 = vpop.eup %11520  ;;  %v10431_v11 = vpack.c.bf16 %v11098_v62, %v11097_v43  ;;  %v6066_v14 = vmul.f32 1.442695, %v6041_v49  ;;  %v6595_v62 = vld [vmem:[#allocation10 + $0x10] sm:$0xff]  ;;  %v6658_v49 = vld [vmem:[#allocation10 + $0x208] sm:$0xff] }
 0xe6f   : > { %v11101_v54 = vpop.permute.xlu0 %11100  ;;  %6084 = vadd.xlane.f32.xlu1 %v15282_v48  ;;  %v15285_v25 = vpop.eup %11522 }
 0xe70   : > { %v11103_v55 = vunpack.i.h.bf16 %v11101_v54  ;;  %v11102_v47 = vunpack.i.l.bf16 %v11101_v54  ;;  %10432 = vmatprep.subr.bf16.mxu1 %v10431_v11  ;;  %11532 = vpow2.f32 %v6066_v14  ;;  %v6607_v14 = vld [vmem:[#allocation10 + $0x70] sm:$0xff] }
 0xe71   : > { %10434 = vmatpush3.bf16.msra.mxu1 %v10431_v11  ;;  %v10543_v11 = vpack.c.bf16 %v6646_v53, %v6643_v9  ;;  %v6619_v9 = vld [vmem:[#allocation10 + $0xd0] sm:$0xff]  ;;  %v6622_v53 = vld [vmem:[#allocation10 + $0xe8] sm:$0xff] }
 0xe72   : > { %v15287_v8 = vpop.eup %11524  ;;  %v10435_v29 = vpack.c.bf16 %v11103_v55, %v11102_v47 }
 0xe73   : > { %6090 = vadd.xlane.f32.xlu0 %v15287_v8  ;;  %6088 = vadd.xlane.f32.xlu1 %v15285_v25 }
 0xe74   : > { %10436 = vmatprep.subr.bf16.mxu1 %v10435_v29  ;;  %10544 = vmatprep.subr.bf16.mxu0 %v10543_v11  ;;  %v6676_v11 = vld [vmem:[#allocation10 + $0x298] sm:$0xff] }
 0xe75   : > { %10438 = vmatpush3.bf16.msra.mxu1 %v10435_v29  ;;  %v6649_v29 = vld [vmem:[#allocation10 + $0x1c0] sm:$0xff] }
 0xe76   : > { %v10547_v21 = vpack.c.bf16 %v6652_v0, %v6649_v29  ;;  %v6682_v29 = vld [vmem:[#allocation10 + $0x2c8] sm:$0xff] }
 0xe84   : > { %11105 = vrot.lane.b32.xlu1 %v16601_v4, %s11885_s28 }
 0xe89   : > { %11110 = vrot.lane.b32.xlu0 %v16604_v15, %s11885_s28  ;;  %v6604_v15 = vld [vmem:[#allocation10 + $0x58] sm:$0xff] }
 0xe8a   : > { %v10549_v34 = vpack.c.bf16 %v6604_v15, %v6601_v45  ;;  %v6631_v45 = vld [vmem:[#allocation10 + $0x130] sm:$0xff]  ;;  %v16605_v15 = vld [vmem:[#allocation26_spill] sm:$0xff] }
 0xe9c   : > { %v6021_v18 = vpop.xlane.xlu1 %6020 }
 0xe9d   : > { %v6042_v60 = vsub.f32 %v15239_v46, %v6021_v18  ;;  %v15308_v46 = vpop.eup %11526  ;;  %v10551_v18 = vpack.c.bf16 %v6658_v49, %v6655_v28  ;;  %v6685_v49 = vld [vmem:[#allocation10 + $0x2e0] sm:$0xff] }
 0xe9e   : > { %v15310_v43 = vpop.eup %11528 }
 0xe9f   : > { %v6068_v40 = vmul.f32 1.442695, %v6042_v60  ;;  %v15315_v47 = vpop.eup %11530  ;;  %v6610_v60 = vld [vmem:[#allocation10 + $0x88] sm:$0xff] }
 0xea0   : > { %v6023_v12 = vpop.xlane.xlu0 %6022  ;;  %v6025_v1 = vpop.xlane.xlu1 %6024 }
 0xea1   : > { %v6043_v27 = vsub.f32 %v15244_v37, %v6023_v12  ;;  %v6044_v58 = vsub.f32 %v15248_v57, %v6025_v1  ;;  %11534 = vpow2.f32 %v6068_v40  ;;  %v6598_v57 = vld [vmem:[#allocation10 + $0x28] sm:$0xff]  ;;  %v15317_v4 = vpop.eup %11532  ;;  %v10553_v12 = vpack.c.bf16 %v6610_v60, %v6607_v14  ;;  %v6661_v1 = vld [vmem:[#allocation10 + $0x220] sm:$0xff] }
 0xea2   : > { %v6637_v60 = vld [vmem:[#allocation10 + $0x160] sm:$0xff] }
 0xea3   : > { %v6070_v42 = vmul.f32 1.442695, %v6043_v27  ;;  %v6072_v33 = vmul.f32 1.442695, %v6044_v58  ;;  %v6664_v27 = vld [vmem:[#allocation10 + $0x238] sm:$0xff] }
 0xea4   : > { %v6027_v41 = vpop.xlane.xlu0 %6026  ;;  %v6029_v6 = vpop.xlane.xlu1 %6028  ;;  %v10555_v58 = vpack.c.bf16 %v6664_v27, %v6661_v1  ;;  %v16608_v27 = vld [vmem:[#allocation29_spill] sm:$0xff] }
 0xea5   : > { %11536 = vpow2.f32 %v6070_v42  ;;  %v6045_v51 = vsub.f32 %v15254_v13, %v6027_v41  ;;  %v6046_v30 = vsub.f32 %v15258_v44, %v6029_v6  ;;  %v10545_v13 = vpack.c.bf16 %v6598_v57, %v6595_v62  ;;  %v6613_v42 = vld [vmem:[#allocation10 + $0xa0] sm:$0xff]  ;;  %v6667_v6 = vld [vmem:[#allocation10 + $0x250] sm:$0xff] }
 0xea6   : > { %11538 = vpow2.f32 %v6072_v33  ;;  %v6616_v33 = vld [vmem:[#allocation10 + $0xb8] sm:$0xff]  ;;  %v10561_v62 = vpack.c.bf16 %v6622_v53, %v6619_v9  ;;  %v16617_v53 = vld [vmem:[#allocation32_spill] sm:$0xff] }
 0xea7   : > { %v6074_v37 = vmul.f32 1.442695, %v6045_v51  ;;  %v6076_v54 = vmul.f32 1.442695, %v6046_v30  ;;  %10546 = vmatpush3.bf16.msra.mxu0 %v10545_v13  ;;  %v10557_v41 = vpack.c.bf16 %v6616_v33, %v6613_v42  ;;  %v6670_v51 = vld [vmem:[#allocation10 + $0x268] sm:$0xff] }
 0xea8   : > { %6094 = vadd.xlane.f32.xlu0 %v15310_v43  ;;  %v6031_v55 = vpop.xlane.xlu0 %6030  ;;  %6092 = vadd.xlane.f32.xlu1 %v15308_v46  ;;  %v10559_v30 = vpack.c.bf16 %v6670_v51, %v6667_v6  ;;  %v16611_v33 = vld [vmem:[#allocation24_spill] sm:$0xff]  ;;  %v16614_v51 = vld [vmem:[#allocation27_spill] sm:$0xff] }
 0xea9   : > { %11540 = vpow2.f32 %v6074_v37  ;;  %v6047_v44 = vsub.f32 %v15264_v19, %v6031_v55  ;;  %10548 = vmatprep.subr.bf16.mxu0 %v10547_v21  ;;  %v6673_v37 = vld [vmem:[#allocation10 + $0x280] sm:$0xff]  ;;  %v6628_v55 = vld [vmem:[#allocation10 + $0x118] sm:$0xff] }
 0xeaa   : > { %11542 = vpow2.f32 %v6076_v54  ;;  %v10563_v57 = vpack.c.bf16 %v6676_v11, %v6673_v37  ;;  %v6625_v54 = vld [vmem:[#allocation10 + $0x100] sm:$0xff] }
 0xeab   : > { %v6078_v5 = vmul.f32 1.442695, %v6047_v44  ;;  %v15321_v19 = vpop.eup %11534  ;;  %10550 = vmatpush3.bf16.msra.mxu0 %v10549_v34  ;;  %v10565_v13 = vpack.c.bf16 %v6628_v55, %v6625_v54  ;;  %v6679_v44 = vld [vmem:[#allocation10 + $0x2b0] sm:$0xff]  ;;  %v16606_v34 = vld [vmem:[#allocation59_spill] sm:$0xff]  ;;  %v16620_v11 = vld [vmem:[#allocation30_spill] sm:$0xff] }
 0xeac   : > { %6098 = vadd.xlane.f32.xlu0 %v15317_v4  ;;  %6096 = vadd.xlane.f32.xlu1 %v15315_v47  ;;  %v10567_v0 = vpack.c.bf16 %v6682_v29, %v6679_v44  ;;  %v16607_v28 = vpack.i.bf16 %v16605_v15, %v16606_v34  ;;  %v16623_v55 = vld [vmem:[#allocation28_spill] sm:$0xff]  ;;  %v16626_v29 = vld [vmem:[#allocation25_spill] sm:$0xff]  ;;  %v16632_v34 = vld [vmem:[#allocation31_spill] sm:$0xff] }
 0xead   : > { %11544 = vpow2.f32 %v6078_v5  ;;  %10552 = vmatprep.subr.bf16.mxu0 %v10551_v18  ;;  %v6634_v5 = vld [vmem:[#allocation10 + $0x148] sm:$0xff]  ;;  %v6688_v18 = vld [vmem:[#allocation10 + $0x2f8] sm:$0xff] }
 0xeae   : > { %v10569_v21 = vpack.c.bf16 %v6634_v5, %v6631_v45  ;;  %v10571_v14 = vpack.c.bf16 %v6688_v18, %v6685_v49  ;;  %v16629_v5 = vld [vmem:[#allocation151_spill] sm:$0xff]  ;;  %v16635_v18 = vld [vmem:[#allocation153_spill] sm:$0xff] }
 0xeaf   : > { %v15323_v38 = vpop.eup %11536  ;;  %10554 = vmatpush3.bf16.msra.mxu0 %v10553_v12  ;;  %v6640_v12 = vld [vmem:[#allocation10 + $0x178] sm:$0xff] }
 0xeb0   : > { %6102 = vadd.xlane.f32.xlu0 %v15323_v38  ;;  %6100 = vadd.xlane.f32.xlu1 %v15321_v19  ;;  %v15327_v16 = vpop.eup %11538  ;;  %v10573_v1 = vpack.c.bf16 %v6640_v12, %v6637_v60  ;;  %v16638_v12 = vld [vmem:[#allocation152_spill] sm:$0xff] }
 0xeb1   : > { %10556 = vmatprep.subr.bf16.mxu0 %v10555_v58  ;;  %v16609_v58 = vld [vmem:[#allocation86_spill] sm:$0xff] }
 0xeb2   : > { %v16610_v42 = vpack.i.bf16 %v16608_v27, %v16609_v58  ;;  %v16641_v58 = vld [vmem:[#allocation155_spill] sm:$0xff] }
 0xeb3   : > { %v15329_v32 = vpop.eup %11540  ;;  %10558 = vmatpush3.bf16.msra.mxu0 %v10557_v41  ;;  %v16612_v41 = vld [vmem:[#allocation63_spill] sm:$0xff] }
 0xeb4   : > { %6106 = vadd.xlane.f32.xlu0 %v15329_v32  ;;  %6104 = vadd.xlane.f32.xlu1 %v15327_v16  ;;  %v15333_v31 = vpop.eup %11542  ;;  %v16613_v6 = vpack.i.bf16 %v16611_v33, %v16612_v41  ;;  %v16644_v41 = vld [vmem:[#allocation154_spill] sm:$0xff] }
 0xeb5   : > { %10560 = vmatprep.subr.bf16.mxu0 %v10559_v30  ;;  %v16615_v30 = vld [vmem:[#allocation90_spill] sm:$0xff] }
 0xeb6   : > { %v16616_v9 = vpack.i.bf16 %v16614_v51, %v16615_v30  ;;  %v16647_v30 = vld [vmem:[#allocation157_spill] sm:$0xff] }
 0xeb7   : > { %v15335_v40 = vpop.eup %11544  ;;  %10562 = vmatpush3.bf16.msra.mxu0 %v10561_v62  ;;  %v16618_v62 = vld [vmem:[#allocation96_spill] sm:$0xff] }
 0xeb8   : > { %6110 = vadd.xlane.f32.xlu0 %v15335_v40  ;;  %6108 = vadd.xlane.f32.xlu1 %v15333_v31  ;;  %v16619_v37 = vpack.i.bf16 %v16617_v53, %v16618_v62  ;;  %v16650_v62 = vld [vmem:[#allocation156_spill] sm:$0xff] }
 0xeb9   : > { %10564 = vmatprep.subr.bf16.mxu0 %v10563_v57  ;;  %v16621_v57 = vld [vmem:[#allocation100_spill] sm:$0xff] }
 0xeba   : > { %v16622_v54 = vpack.i.bf16 %v16620_v11, %v16621_v57 }
 0xebb   : > { %10566 = vmatpush3.bf16.msra.mxu0 %v10565_v13  ;;  %v16624_v13 = vld [vmem:[#allocation104_spill] sm:$0xff] }
 0xebc   : > { %10568 = vmatprep.subr.bf16.mxu0 %v10567_v0  ;;  %v16625_v44 = vpack.i.bf16 %v16623_v55, %v16624_v13  ;;  %v16627_v0 = vld [vmem:[#allocation108_spill] sm:$0xff] }
 0xebd   : > { %v16628_v45 = vpack.i.bf16 %v16626_v29, %v16627_v0 }
 0xebf   : > { %10570 = vmatpush3.bf16.msra.mxu0 %v10569_v21  ;;  %v16630_v21 = vld [vmem:[#allocation112_spill] sm:$0xff] }
 0xec0   : > { %10572 = vmatprep.subr.bf16.mxu0 %v10571_v14  ;;  %v16631_v15 = vpack.i.bf16 %v16629_v5, %v16630_v21  ;;  %v16636_v14 = vld [vmem:[#allocation101_spill] sm:$0xff] }
 0xec1   : > { %v16637_v60 = vpack.i.bf16 %v16635_v18, %v16636_v14  ;;  %v6594_v14 = vld [vmem:[#allocation10 + $0x8] sm:$0xff] }
 0xec3   : > { %10574 = vmatpush3.bf16.msra.mxu0 %v10573_v1  ;;  %v16639_v1 = vld [vmem:[#allocation97_spill] sm:$0xff] }
 0xec4   : > { %v16640_v27 = vpack.i.bf16 %v16638_v12, %v16639_v1  ;;  %v6593_v1 = vld [vmem:[#allocation10] sm:$0xff] }
 0xec9   : > { %11115 = vrot.lane.b32.xlu1 %v16607_v28, %s11885_s28  ;;  %v16633_v28 = vld [vmem:[#allocation116_spill] sm:$0xff] }
 0xeca   : > { %v16634_v49 = vpack.i.bf16 %v16632_v34, %v16633_v28 }
 0xecd   : > { %11125 = vrot.lane.b32.xlu1 %v16610_v42, %s11885_s28  ;;  %v16642_v42 = vld [vmem:[#allocation109_spill] sm:$0xff] }
 0xece   : > { %11120 = vrot.lane.b32.xlu0 %v16613_v6, %s11885_s28  ;;  %v16643_v33 = vpack.i.bf16 %v16641_v58, %v16642_v42  ;;  %v16645_v6 = vld [vmem:[#allocation105_spill] sm:$0xff] }
 0xecf   : > { %v16646_v51 = vpack.i.bf16 %v16644_v41, %v16645_v6  ;;  %v6600_v42 = vld [vmem:[#allocation10 + $0x38] sm:$0xff] }
 0xed1   : > { %11130 = vrot.lane.b32.xlu1 %v16616_v9, %s11885_s28  ;;  %v16648_v9 = vld [vmem:[#allocation117_spill] sm:$0xff] }
 0xed2   : > { %11135 = vrot.lane.b32.xlu0 %v16619_v37, %s11885_s28  ;;  %v16649_v53 = vpack.i.bf16 %v16647_v30, %v16648_v9  ;;  %v16651_v37 = vld [vmem:[#allocation113_spill] sm:$0xff] }
 0xed3   : > { %v16652_v11 = vpack.i.bf16 %v16650_v62, %v16651_v37  ;;  %v6599_v9 = vld [vmem:[#allocation10 + $0x30] sm:$0xff] }
 0xed5   : > { %11140 = vrot.lane.b32.xlu1 %v16622_v54, %s11885_s28 }
 0xed6   : > { %11145 = vrot.lane.b32.xlu0 %v16625_v44, %s11885_s28 }
 0xed9   : > { %11150 = vrot.lane.b32.xlu1 %v16628_v45, %s11885_s28 }
 0xeda   : > { %11155 = vrot.lane.b32.xlu0 %v16631_v15, %s11885_s28 }
 0xedd   : > { %11160 = vrot.lane.b32.xlu1 %v16634_v49, %s11885_s28 }
 0xede   : > { %11165 = vrot.lane.b32.xlu0 %v16637_v60, %s11885_s28  ;;  %v6597_v60 = vld [vmem:[#allocation10 + $0x20] sm:$0xff] }
 0xee1   : > { %11170 = vrot.lane.b32.xlu1 %v16640_v27, %s11885_s28  ;;  %v6596_v27 = vld [vmem:[#allocation10 + $0x18] sm:$0xff] }
 0xee2   : > { %11175 = vrot.lane.b32.xlu0 %v16643_v33, %s11885_s28  ;;  %v6603_v33 = vld [vmem:[#allocation10 + $0x50] sm:$0xff]  ;;  %v10449_v6 = vpack.c.bf16 %v6596_v27, %v6593_v1 }
 0xee3   : > { %v10451_v30 = vpack.c.bf16 %v6603_v33, %v6600_v42  ;;  %v6627_v1 = vld [vmem:[#allocation10 + $0x110] sm:$0xff]  ;;  %v6626_v42 = vld [vmem:[#allocation10 + $0x108] sm:$0xff] }
 0xee4   : > { %v6630_v33 = vld [vmem:[#allocation10 + $0x128] sm:$0xff] }
 0xee5   : > { %11180 = vrot.lane.b32.xlu1 %v16646_v51, %s11885_s28 }
 0xee6   : > { %11185 = vrot.lane.b32.xlu0 %v16649_v53, %s11885_s28  ;;  %v6602_v53 = vld [vmem:[#allocation10 + $0x48] sm:$0xff] }
 0xee9   : > { %11190 = vrot.lane.b32.xlu1 %v16652_v11, %s11885_s28  ;;  %v6606_v11 = vld [vmem:[#allocation10 + $0x68] sm:$0xff] }
 0xef3   : > { %v6083_v54 = vpop.xlane.xlu0 %6082 }
 0xef4   : > { %v6081_v57 = vpop.xlane.xlu1 %6080 }
 0xef5   : > { %11546 = vrcp.f32 %v6081_v57  ;;  %v6609_v57 = vld [vmem:[#allocation10 + $0x80] sm:$0xff] }
 0xef6   : > { %11548 = vrcp.f32 %v6083_v54 }
 0xef8   : > { %v6087_v55 = vpop.xlane.xlu0 %6086 }
 0xefc   : > { %v6085_v13 = vpop.xlane.xlu1 %6084 }
 0xefd   : > { %11550 = vrcp.f32 %v6085_v13 }
 0xefe   : > { %11552 = vrcp.f32 %v6087_v55  ;;  %v10453_v55 = vpack.c.bf16 %v6602_v53, %v6599_v9  ;;  %v6632_v9 = vld [vmem:[#allocation10 + $0x138] sm:$0xff] }
 0xeff   : > { %v11547_v44 = vpop.eup %11546  ;;  %v6636_v53 = vld [vmem:[#allocation10 + $0x158] sm:$0xff] }
 0xf00   : > { %v6091_v29 = vpop.xlane.xlu0 %6090  ;;  %v6089_v0 = vpop.xlane.xlu1 %6088  ;;  %v6113_v45 = vmul.f32 %v11547_v44, %v15275_v59  ;;  %v10447_v59 = vpack.c.bf16 %v6597_v60, %v6594_v14  ;;  %v10455_v44 = vpack.c.bf16 %v6609_v57, %v6606_v11  ;;  %v6635_v57 = vld [vmem:[#allocation10 + $0x150] sm:$0xff] }
 0xf01   : > { %11554 = vrcp.f32 %v6089_v0  ;;  %v11549_v58 = vpop.eup %11548 }
 0xf02   : > { %9407 = vmatprep.mubr.f32.mxu1 %v6113_v45  ;;  %11556 = vrcp.f32 %v6091_v29  ;;  %v6115_v51 = vmul.f32 %v11549_v58, %v15273_v52  ;;  %v6605_v29 = vld [vmem:[#allocation10 + $0x60] sm:$0xff]  ;;  %v6608_v52 = vld [vmem:[#allocation10 + $0x78] sm:$0xff] }
 0xf04   : > { %v11111_v5 = vpop.permute.xlu0 %11110  ;;  %v11106_v21 = vpop.permute.xlu1 %11105 }
 0xf05   : > { %v11113_v15 = vunpack.i.h.bf16 %v11111_v5  ;;  %v11112_v34 = vunpack.i.l.bf16 %v11111_v5  ;;  %v11108_v28 = vunpack.i.h.bf16 %v11106_v21  ;;  %v11107_v49 = vunpack.i.l.bf16 %v11106_v21  ;;  %v6612_v5 = vld [vmem:[#allocation10 + $0x98] sm:$0xff]  ;;  %v6615_v21 = vld [vmem:[#allocation10 + $0xb0] sm:$0xff] }
 0xf07   : > { %v10439_v18 = vpack.c.bf16 %v11108_v28, %v11107_v49  ;;  %v10443_v12 = vpack.c.bf16 %v11113_v15, %v11112_v34  ;;  %v11551_v41 = vpop.eup %11550  ;;  %v10459_v34 = vpack.c.bf16 %v6615_v21, %v6612_v5  ;;  %v6611_v28 = vld [vmem:[#allocation10 + $0x90] sm:$0xff]  ;;  %v6614_v49 = vld [vmem:[#allocation10 + $0xa8] sm:$0xff] }
 0xf08   : > { %v11553_v62 = vpop.eup %11552  ;;  %v6117_v37 = vmul.f32 %v11551_v41, %v15282_v48  ;;  %v10457_v48 = vpack.c.bf16 %v6608_v52, %v6605_v29  ;;  %v10461_v14 = vpack.c.bf16 %v6614_v49, %v6611_v28  ;;  %v6633_v41 = vld [vmem:[#allocation10 + $0x140] sm:$0xff]  ;;  %v6651_v5 = vld [vmem:[#allocation10 + $0x1d0] sm:$0xff]  ;;  %v6654_v28 = vld [vmem:[#allocation10 + $0x1e8] sm:$0xff] }
 0xf09   : > { %10440 = vmatprep.subr.bf16.mxu1 %v10439_v18  ;;  %v6119_v13 = vmul.f32 %v11553_v62, %v15279_v61  ;;  %v6618_v61 = vld [vmem:[#allocation10 + $0xc8] sm:$0xff]  ;;  %v6639_v62 = vld [vmem:[#allocation10 + $0x170] sm:$0xff]  ;;  %v6641_v52 = vld [vmem:[#allocation10 + $0x180] sm:$0xff] }
 0xf0a   : > { %10442 = vmatpush3.bf16.msra.mxu1 %v10439_v18  ;;  %v6621_v18 = vld [vmem:[#allocation10 + $0xe0] sm:$0xff]  ;;  %v10475_v11 = vpack.c.bf16 %v6639_v62, %v6636_v53  ;;  %v6668_v62 = vld [vmem:[#allocation10 + $0x258] sm:$0xff] }
 0xf0b   : > { %10444 = vmatprep.subr.bf16.mxu1 %v10443_v12  ;;  %v11555_v54 = vpop.eup %11554  ;;  %v10463_v60 = vpack.c.bf16 %v6621_v18, %v6618_v61  ;;  %v6657_v49 = vld [vmem:[#allocation10 + $0x200] sm:$0xff] }
 0xf0c   : > { %v11557_v0 = vpop.eup %11556  ;;  %v6121_v45 = vmul.f32 %v11555_v54, %v15285_v25  ;;  %v6617_v25 = vld [vmem:[#allocation10 + $0xc0] sm:$0xff]  ;;  %v6638_v54 = vld [vmem:[#allocation10 + $0x168] sm:$0xff]  ;;  %v10487_v18 = vpack.c.bf16 %v6657_v49, %v6654_v28 }
 0xf0d   : > { %v6123_v15 = vmul.f32 %v11557_v0, %v15287_v8  ;;  %v6623_v8 = vld [vmem:[#allocation10 + $0xf0] sm:$0xff]  ;;  %v6644_v0 = vld [vmem:[#allocation10 + $0x198] sm:$0xff]  ;;  %v6665_v53 = vld [vmem:[#allocation10 + $0x240] sm:$0xff] }
 0xf0e   : > { %10446 = vmatpush3.bf16.msra.mxu1 %v10443_v12  ;;  %v6620_v12 = vld [vmem:[#allocation10 + $0xd8] sm:$0xff]  ;;  %v10481_v21 = vpack.c.bf16 %v6644_v0, %v6641_v52  ;;  %v6678_v0 = vld [vmem:[#allocation10 + $0x2a8] sm:$0xff] }
 0xf0f   : > { %10448 = vmatprep.subr.bf16.mxu1 %v10447_v59  ;;  %v6624_v59 = vld [vmem:[#allocation10 + $0xf8] sm:$0xff]  ;;  %v10465_v27 = vpack.c.bf16 %v6620_v12, %v6617_v25  ;;  %v6663_v12 = vld [vmem:[#allocation10 + $0x230] sm:$0xff] }
 0xf10   : > { %v10467_v58 = vpack.c.bf16 %v6627_v1, %v6624_v59  ;;  %v6660_v25 = vld [vmem:[#allocation10 + $0x218] sm:$0xff] }
 0xf11   : > { %9408 = vmatmul.mubr.f32.vlgmr.msra.gmra.mrb[192].mxu1 %v6115_v51  ;;  %v10471_v51 = vpack.c.bf16 %v6633_v41, %v6630_v33  ;;  %v6666_v33 = vld [vmem:[#allocation10 + $0x248] sm:$0xff]  ;;  %v6669_v41 = vld [vmem:[#allocation10 + $0x260] sm:$0xff] }
 0xf12   : > { %9410 = vmatprep.mubr.f32.mxu1 %v6117_v37  ;;  %10450 = vmatpush1.bf16.msra.mxu1 %v10449_v6  ;;  %v10469_v6 = vpack.c.bf16 %v6626_v42, %v6623_v8  ;;  %v6659_v8 = vld [vmem:[#allocation10 + $0x210] sm:$0xff]  ;;  %v6662_v42 = vld [vmem:[#allocation10 + $0x228] sm:$0xff] }
 0xf13   : > { %10452 = vmatprep.subr.bf16.mxu1 %v10451_v30  ;;  %v6629_v30 = vld [vmem:[#allocation10 + $0x120] sm:$0xff] }
 0xf14   : > { %v10473_v37 = vpack.c.bf16 %v6632_v9, %v6629_v30  ;;  %v10493_v30 = vpack.c.bf16 %v6662_v42, %v6659_v8  ;;  %v10495_v9 = vpack.c.bf16 %v6669_v41, %v6666_v33  ;;  %v6683_v42 = vld [vmem:[#allocation10 + $0x2d0] sm:$0xff]  ;;  %v6686_v33 = vld [vmem:[#allocation10 + $0x2e8] sm:$0xff] }
 0xf15   : > { %9411 = vmatmul.mubr.f32.gmra.mrb[194].mxu1 %v6119_v13  ;;  %v6645_v13 = vld [vmem:[#allocation10 + $0x1a0] sm:$0xff] }
 0xf16   : > { %9413 = vmatprep.mubr.f32.mxu1 %v6121_v45  ;;  %10454 = vmatpush1.bf16.msra.mxu1 %v10453_v55  ;;  %v6642_v55 = vld [vmem:[#allocation10 + $0x188] sm:$0xff]  ;;  %v6648_v45 = vld [vmem:[#allocation10 + $0x1b8] sm:$0xff] }
 0xf17   : > { %10456 = vmatprep.subr.bf16.mxu1 %v10455_v44  ;;  %v10477_v44 = vpack.c.bf16 %v6638_v54, %v6635_v57  ;;  %v10479_v29 = vpack.c.bf16 %v6645_v13, %v6642_v55  ;;  %v10497_v55 = vpack.c.bf16 %v6668_v62, %v6665_v53  ;;  %v10509_v62 = vpack.c.bf16 %v6686_v33, %v6683_v42 }
 0xf19   : > { %9414 = vmatmul.mubr.f32.gmra.mrb[196].mxu1 %v6123_v15  ;;  %v6647_v15 = vld [vmem:[#allocation10 + $0x1b0] sm:$0xff] }
 0xf1a   : > { %10458 = vmatpush1.bf16.msra.mxu1 %v10457_v48  ;;  %v10483_v48 = vpack.c.bf16 %v6651_v5, %v6648_v45  ;;  %v6681_v45 = vld [vmem:[#allocation10 + $0x2c0] sm:$0xff] }
 0xf1b   : > { %10460 = vmatprep.subr.bf16.mxu1 %v10459_v34  ;;  %v6650_v34 = vld [vmem:[#allocation10 + $0x1c8] sm:$0xff]  ;;  %v10503_v49 = vpack.c.bf16 %v6681_v45, %v6678_v0 }
 0xf1c   : > { %v10485_v61 = vpack.c.bf16 %v6650_v34, %v6647_v15 }
 0xf1e   : > { %10462 = vmatpush1.bf16.msra.mxu1 %v10461_v14  ;;  %v6653_v14 = vld [vmem:[#allocation10 + $0x1e0] sm:$0xff] }
 0xf1f   : > { %10464 = vmatprep.subr.bf16.mxu1 %v10463_v60  ;;  %v6656_v60 = vld [vmem:[#allocation10 + $0x1f8] sm:$0xff] }
 0xf22   : > { %10466 = vmatpush1.bf16.msra.mxu1 %v10465_v27  ;;  %v10489_v27 = vpack.c.bf16 %v6656_v60, %v6653_v14  ;;  %v6684_v60 = vld [vmem:[#allocation10 + $0x2d8] sm:$0xff] }
 0xf23   : > { %10468 = vmatprep.subr.bf16.mxu1 %v10467_v58  ;;  %v10491_v58 = vpack.c.bf16 %v6663_v12, %v6660_v25  ;;  %v6687_v25 = vld [vmem:[#allocation10 + $0x2f0] sm:$0xff] }
 0xf26   : > { %10470 = vmatpush1.bf16.msra.mxu1 %v10469_v6 }
 0xf27   : > { %10472 = vmatprep.subr.bf16.mxu1 %v10471_v51 }
 0xf2a   : > { %10474 = vmatpush1.bf16.msra.mxu1 %v10473_v37  ;;  %v6672_v37 = vld [vmem:[#allocation10 + $0x278] sm:$0xff] }
 0xf2b   : > { %10476 = vmatprep.subr.bf16.mxu1 %v10475_v11  ;;  %v6675_v11 = vld [vmem:[#allocation10 + $0x290] sm:$0xff] }
 0xf2c   : > { %v10499_v13 = vpack.c.bf16 %v6675_v11, %v6672_v37  ;;  %v16653_v11 = vld [vmem:[#allocation136_spill] sm:$0xff] }
 0xf2e   : > { %10478 = vmatpush1.bf16.msra.mxu1 %v10477_v44  ;;  %v6671_v44 = vld [vmem:[#allocation10 + $0x270] sm:$0xff] }
 0xf2f   : > { %10480 = vmatprep.subr.bf16.mxu1 %v10479_v29  ;;  %v6674_v29 = vld [vmem:[#allocation10 + $0x288] sm:$0xff] }
 0xf30   : > { %v10501_v28 = vpack.c.bf16 %v6674_v29, %v6671_v44 }
 0xf32   : > { %10482 = vmatpush1.bf16.msra.mxu1 %v10481_v21 }
 0xf33   : > { %10484 = vmatprep.subr.bf16.mxu1 %v10483_v48 }
 0xf35   : > { %v6095_v59 = vpop.xlane.xlu0 %6094  ;;  %v6093_v1 = vpop.xlane.xlu1 %6092 }
 0xf36   : > { %11558 = vrcp.f32 %v6095_v59  ;;  %10486 = vmatpush1.bf16.msra.mxu1 %v10485_v61  ;;  %v6677_v61 = vld [vmem:[#allocation10 + $0x2a0] sm:$0xff] }
 0xf37   : > { %11560 = vrcp.f32 %v6093_v1  ;;  %10488 = vmatprep.subr.bf16.mxu1 %v10487_v18  ;;  %v6680_v18 = vld [vmem:[#allocation10 + $0x2b8] sm:$0xff] }
 0xf39   : > { %v6099_v6 = vpop.xlane.xlu0 %6098  ;;  %v6097_v51 = vpop.xlane.xlu1 %6096 }
 0xf3a   : > { %11562 = vrcp.f32 %v6099_v6  ;;  %10490 = vmatpush1.bf16.msra.mxu1 %v10489_v27  ;;  %v10505_v27 = vpack.c.bf16 %v6680_v18, %v6677_v61  ;;  %v16661_v61 = vld [vmem:[#allocation139_spill] sm:$0xff] }
 0xf3b   : > { %11564 = vrcp.f32 %v6097_v51  ;;  %10492 = vmatprep.subr.bf16.mxu1 %v10491_v58  ;;  %v10507_v58 = vpack.c.bf16 %v6687_v25, %v6684_v60  ;;  %v16663_v25 = vld [vmem:[#allocation56_spill] sm:$0xff] }
 0xf3d   : > { %v6103_v57 = vpop.xlane.xlu0 %6102  ;;  %v6101_v54 = vpop.xlane.xlu1 %6100 }
 0xf3e   : > { %11566 = vrcp.f32 %v6103_v57  ;;  %10494 = vmatpush1.bf16.msra.mxu1 %v10493_v30 }
 0xf3f   : > { %11568 = vrcp.f32 %v6101_v54  ;;  %10496 = vmatprep.subr.bf16.mxu1 %v10495_v9  ;;  %v16655_v54 = vld [vmem:[#allocation33_spill] sm:$0xff] }
 0xf40   : > { %v11559_v52 = vpop.eup %11558 }
 0xf41   : > { %v11561_v5 = vpop.eup %11560  ;;  %v6107_v21 = vpop.xlane.xlu0 %6106  ;;  %v6127_v15 = vmul.f32 %v11559_v52, %v15310_v43 }
 0xf42   : > { %v6105_v48 = vpop.xlane.xlu1 %6104  ;;  %11570 = vrcp.f32 %v6107_v21  ;;  %v6125_v34 = vmul.f32 %v11561_v5, %v15308_v46  ;;  %10498 = vmatpush1.bf16.msra.mxu1 %v10497_v55 }
 0xf43   : > { %11572 = vrcp.f32 %v6105_v48  ;;  %10500 = vmatprep.subr.bf16.mxu1 %v10499_v13 }
 0xf44   : > { %v11563_v14 = vpop.eup %11562  ;;  %9416 = vmatprep.mubr.f32.mxu1 %v6125_v34  ;;  %v16659_v34 = vld [vmem:[#allocation34_spill] sm:$0xff] }
 0xf45   : > { %v11565_v12 = vpop.eup %11564  ;;  %9417 = vmatmul.mubr.f32.gmra.mrb[198].mxu1 %v6127_v15  ;;  %v6111_v59 = vpop.xlane.xlu0 %6110  ;;  %v6131_v43 = vmul.f32 %v11563_v14, %v15317_v4 }
 0xf46   : > { %v6109_v1 = vpop.xlane.xlu1 %6108  ;;  %11574 = vrcp.f32 %v6111_v59  ;;  %v6129_v46 = vmul.f32 %v11565_v12, %v15315_v47  ;;  %10502 = vmatpush1.bf16.msra.mxu1 %v10501_v28 }
 0xf47   : > { %11576 = vrcp.f32 %v6109_v1  ;;  %10504 = vmatprep.subr.bf16.mxu1 %v10503_v49  ;;  %v16665_v1 = vld [vmem:[#allocation138_spill] sm:$0xff] }
 0xf48   : > { %v11567_v8 = vpop.eup %11566  ;;  %9419 = vmatprep.mubr.f32.mxu1 %v6129_v46 }
 0xf49   : > { %v11569_v41 = vpop.eup %11568  ;;  %9420 = vmatmul.mubr.f32.gmra.mrb[200].mxu1 %v6131_v43  ;;  %v11121_v6 = vpop.permute.xlu0 %11120  ;;  %v6135_v4 = vmul.f32 %v11567_v8, %v15323_v38  ;;  %v16657_v38 = vld [vmem:[#allocation135_spill] sm:$0xff] }
 0xf4a   : > { %v11116_v51 = vpop.permute.xlu1 %11115  ;;  %v11122_v30 = vunpack.i.l.bf16 %v11121_v6  ;;  %10506 = vmatpush1.bf16.msra.mxu1 %v10505_v27  ;;  %v6133_v47 = vmul.f32 %v11569_v41, %v15321_v19  ;;  %v11123_v44 = vunpack.i.h.bf16 %v11121_v6  ;;  %v16668_v8 = vld [vmem:[#allocation143_spill] sm:$0xff]  ;;  %v16670_v6 = vld [vmem:[#allocation65_spill] sm:$0xff] }
 0xf4b   : > { %v11118_v9 = vunpack.i.h.bf16 %v11116_v51  ;;  %v11117_v53 = vunpack.i.l.bf16 %v11116_v51  ;;  %10508 = vmatprep.subr.bf16.mxu1 %v10507_v58 }
 0xf4c   : > { %v11571_v37 = vpop.eup %11570  ;;  %9422 = vmatprep.mubr.f32.mxu1 %v6133_v47  ;;  %v6562_v19 = vsel %vm16658_vm14, %v16657_v38, %v11122_v30  ;;  %v6546_v28 = vsel %vm16660_vm4, %v16659_v34, %v11123_v44  ;;  %v16678_v44 = vld [vmem:[#allocation83_spill] sm:$0xff]  ;;  %v16680_v38 = vld [vmem:[#allocation145_spill] sm:$0xff]  ;;  %vm16689_vm14 = vmmov %vm16683_vm0 }
 0xf4d   : > { %v6561_v57 = vsel %vm16654_vm13, %v16653_v11, %v11117_v53  ;;  %v6545_v55 = vsel %vm16656_vm9, %v16655_v54, %v11118_v9  ;;  %v11573_v13 = vpop.eup %11572  ;;  %9423 = vmatmul.mubr.f32.gmra.mrb[202].mxu1 %v6135_v4  ;;  %v6139_v0 = vmul.f32 %v11571_v37, %v15329_v32  ;;  %v11136_v14 = vpop.permute.xlu0 %11135  ;;  %v16672_v9 = vld [vmem:[#allocation141_spill] sm:$0xff]  ;;  %vm16685_vm13 = vmmov %vm16683_vm0 }
 0xf4e   : > { %v11126_v29 = vpop.permute.xlu1 %11125  ;;  %7140 = vmatprep.mubr.f32.mxu0 %v6561_v57  ;;  %v6137_v45 = vmul.f32 %v11573_v13, %v15327_v16  ;;  %10510 = vmatpush1.bf16.msra.mxu1 %v10509_v62  ;;  %v11137_v59 = vunpack.i.l.bf16 %v11136_v14  ;;  %v11138_v27 = vunpack.i.h.bf16 %v11136_v14  ;;  %v16674_v62 = vld [vmem:[#allocation57_spill] sm:$0xff]  ;;  %vm16687_vm9 = vmmov %vm16683_vm0 }
 0xf4f   : > { %v11127_v52 = vunpack.i.l.bf16 %v11126_v29  ;;  %7141 = vmatmul.mubr.f32.vlgmr.msra.gmra.mrb[224].mxu0 %v6545_v55  ;;  %v11128_v48 = vunpack.i.h.bf16 %v11126_v29  ;;  %v16688_v14 = vld [vmem:[#allocation53_spill] sm:$0xff]  ;;  %vm16691_vm4 = vmmov %vm16683_vm0 }
 0xf50   : > { %7145 = vmatprep.mubr.f32.mxu0 %v6562_v19  ;;  %v11575_v5 = vpop.eup %11574  ;;  %9425 = vmatprep.mubr.f32.mxu1 %v6137_v45  ;;  %v6565_v42 = vsel %vm16669_vm15, %v16668_v8, %v11137_v59  ;;  %v6549_v51 = vsel %vm16671_vm2, %v16670_v6, %v11138_v27  ;;  %vm16701_vm15 = vmmov %vm16683_vm0 }
 0xf51   : > { %v11577_v21 = vpop.eup %11576  ;;  %9426 = vmatmul.mubr.f32.gmra.mrb[204].mxu1 %v6139_v0  ;;  %v6563_v18 = vsel %vm16662_vm12, %v16661_v61, %v11127_v52  ;;  %v6143_v32 = vmul.f32 %v11575_v5, %v15335_v40  ;;  %v6547_v12 = vsel %vm16664_vm11, %v16663_v25, %v11128_v48  ;;  %v16667_v40 = vld [vmem:[#allocation55_spill] sm:$0xff]  ;;  %v11146_v33 = vpop.permute.xlu0 %11145  ;;  %v16682_v5 = vld [vmem:[#allocation74_spill] sm:$0xff]  ;;  %vm16693_vm12 = vmmov %vm16683_vm0 }
 0xf52   : > { %v11131_v15 = vpop.permute.xlu1 %11130  ;;  %v6141_v16 = vmul.f32 %v11577_v21, %v15333_v31  ;;  %v11147_v30 = vunpack.i.l.bf16 %v11146_v33  ;;  %v11148_v47 = vunpack.i.h.bf16 %v11146_v33  ;;  %v16686_v61 = vld [vmem:[#allocation51_spill] sm:$0xff]  ;;  %vm16695_vm11 = vmmov %vm16683_vm0 }
 0xf53   : > { %v11132_v49 = vunpack.i.l.bf16 %v11131_v15  ;;  %7146 = vmatmul.mubr.f32.gmra.mrb[226].mxu0 %v6546_v28  ;;  %v11133_v60 = vunpack.i.h.bf16 %v11131_v15  ;;  %v16684_v15 = vld [vmem:[#allocation72_spill] sm:$0xff]  ;;  %vm16703_vm2 = vmmov %vm16683_vm0 }
 0xf54   : > { %7150 = vmatprep.mubr.f32.mxu0 %v6563_v18  ;;  %9428 = vmatprep.mubr.f32.mxu1 %v6141_v16  ;;  %v6551_v29 = vsel %vm16679_vm8, %v16678_v44, %v11148_v47  ;;  %vm16711_vm8 = vmmov %vm16683_vm0 }
 0xf55   : > { %9429 = vmatmul.mubr.f32.gmra.mrb[206].mxu1 %v6143_v32  ;;  %v6564_v43 = vsel %vm16666_vm7, %v16665_v1, %v11132_v49  ;;  %v6548_v58 = vsel %vm16567_vm1, %v16667_v40, %v11133_v60  ;;  %vm16697_vm7 = vmmov %vm16683_vm0 }
 0xf56   : > { %v11141_v46 = vpop.permute.xlu1 %11140  ;;  %6818 = vmatprep.mubr.f32.mxu1 %v6561_v57  ;;  %v16676_v57 = vld [vmem:[#allocation54_spill] sm:$0xff]  ;;  %vm16699_vm1 = vmmov %vm16683_vm0 }
 0xf57   : > { %7151 = vmatmul.mubr.f32.gmra.mrb[228].mxu0 %v6547_v12  ;;  %v11142_v31 = vunpack.i.l.bf16 %v11141_v46  ;;  %v11143_v41 = vunpack.i.h.bf16 %v11141_v46  ;;  %v6567_v54 = vsel %vm16677_vm6, %v16676_v57, %v11147_v30  ;;  %vm16709_vm6 = vmmov %vm16683_vm0 }
 0xf58   : > { %7155 = vmatprep.mubr.f32.mxu0 %v6564_v43 }
 0xf59   : > { %6819 = vmatmul.mubr.f32.vlgmr.msra.gmra.mrb[208].mxu1 %v6545_v55  ;;  %v6566_v53 = vsel %vm16673_vm3, %v16672_v9, %v11142_v31  ;;  %v6550_v37 = vsel %vm16675_vm5, %v16674_v62, %v11143_v41  ;;  %v11156_v55 = vpop.permute.xlu0 %11155  ;;  %vm16705_vm3 = vmmov %vm16683_vm0 }
 0xf5a   : > { %6824 = vmatprep.mubr.f32.mxu1 %v6562_v19  ;;  %v11151_v4 = vpop.permute.xlu1 %11150  ;;  %v11157_v52 = vunpack.i.l.bf16 %v11156_v55  ;;  %v11158_v45 = vunpack.i.h.bf16 %v11156_v55  ;;  %vm16707_vm5 = vmmov %vm16683_vm0 }
 0xf5b   : > { %7156 = vmatmul.mubr.f32.gmra.mrb[230].mxu0 %v6548_v58  ;;  %v11152_v11 = vunpack.i.l.bf16 %v11151_v4  ;;  %v11153_v13 = vunpack.i.h.bf16 %v11151_v4 }
 0xf5c   : > { %7160 = vmatprep.mubr.f32.mxu0 %v6565_v42  ;;  %v6569_v34 = vsel %vm16685_vm13, %v16684_v15, %v11157_v52  ;;  %vm16717_vm13 = vmmov %vm16683_vm0 }
 0xf5d   : > { %6825 = vmatmul.mubr.f32.gmra.mrb[210].mxu1 %v6546_v28  ;;  %v6568_v19 = vsel %vm16681_vm10, %v16680_v38, %v11152_v11  ;;  %v6552_v21 = vsel %vm16683_vm0, %v16682_v5, %v11153_v13  ;;  %v11166_v28 = vpop.permute.xlu0 %11165  ;;  %v16710_v5 = vld [vmem:[#allocation23_spill] sm:$0xff]  ;;  %vm16713_vm10 = vmmov %vm16683_vm0 }
 0xf5e   : > { %6830 = vmatprep.mubr.f32.mxu1 %v6563_v18  ;;  %v11161_v0 = vpop.permute.xlu1 %11160  ;;  %v6553_v18 = vsel %vm16687_vm9, %v16686_v61, %v11158_v45  ;;  %v11167_v32 = vunpack.i.l.bf16 %v11166_v28  ;;  %v11168_v25 = vunpack.i.h.bf16 %v11166_v28  ;;  %v6690_v61 = vld [vmem:[#allocation10 + $0x308] sm:$0xff]  ;;  %vm16718_vm9 = vmmov %vm16683_vm0 }
 0xf5f   : > { %7161 = vmatmul.mubr.f32.gmra.mrb[232].mxu0 %v6549_v51  ;;  %v11162_v48 = vunpack.i.l.bf16 %v11161_v0  ;;  %v11163_v49 = vunpack.i.h.bf16 %v11161_v0 }
 0xf60   : > { %7165 = vmatprep.mubr.f32.mxu0 %v6566_v53 }
 0xf61   : > { %6831 = vmatmul.mubr.f32.gmra.mrb[212].mxu1 %v6547_v12  ;;  %v6570_v16 = vsel %vm16689_vm14, %v16688_v14, %v11162_v48  ;;  %v16690_v12 = vld [vmem:[#allocation92_spill] sm:$0xff]  ;;  %v11176_v27 = vpop.permute.xlu0 %11175  ;;  %v6689_v14 = vld [vmem:[#allocation10 + $0x300] sm:$0xff]  ;;  %vm16719_vm14 = vmmov %vm16683_vm0 }
 0xf62   : > { %6836 = vmatprep.mubr.f32.mxu1 %v6564_v43  ;;  %v11171_v60 = vpop.permute.xlu1 %11170  ;;  %v6554_v59 = vsel %vm16691_vm4, %v16690_v12, %v11163_v49  ;;  %v16692_v43 = vld [vmem:[#allocation81_spill] sm:$0xff]  ;;  %v11177_v8 = vunpack.i.l.bf16 %v11176_v27  ;;  %v11178_v6 = vunpack.i.h.bf16 %v11176_v27  ;;  %v16712_v48 = vld [vmem:[#allocation140_spill] sm:$0xff]  ;;  %v16715_v49 = vmov 0.0   ;;  %vm16720_vm4 = vmmov %vm16683_vm0 }
 0xf63   : > { %7166 = vmatmul.mubr.f32.gmra.mrb[234].mxu0 %v6550_v37  ;;  %v11172_v1 = vunpack.i.l.bf16 %v11171_v60  ;;  %v6571_v46 = vsel %vm16693_vm12, %v16692_v43, %v11167_v32  ;;  %v11173_v40 = vunpack.i.h.bf16 %v11171_v60  ;;  %v6694_v12 = vld [vmem:[#allocation10 + $0x328] sm:$0xff]  ;;  %v6699_v43 = vld [vmem:[#allocation10 + $0x350] sm:$0xff]  ;;  %vm16721_vm12 = vmmov %vm16683_vm0 }
 0xf64   : > { %7170 = vmatprep.mubr.f32.mxu0 %v6567_v54  ;;  %v6695_v27 = vld [vmem:[#allocation10 + $0x330] sm:$0xff] }
 0xf65   : > { %6837 = vmatmul.mubr.f32.gmra.mrb[214].mxu1 %v6548_v58  ;;  %v16694_v58 = vld [vmem:[#allocation19_spill] sm:$0xff]  ;;  %v11186_v47 = vpop.permute.xlu0 %11185 }
 0xf66   : > { %6842 = vmatprep.mubr.f32.mxu1 %v6565_v42  ;;  %v6555_v31 = vsel %vm16695_vm11, %v16694_v58, %v11168_v25  ;;  %v16696_v42 = vld [vmem:[#allocation68_spill] sm:$0xff]  ;;  %v11181_v41 = vpop.permute.xlu1 %11180  ;;  %v11187_v57 = vunpack.i.l.bf16 %v11186_v47  ;;  %v11188_v44 = vunpack.i.h.bf16 %v11186_v47  ;;  %vm16722_vm11 = vmmov %vm16683_vm0 }
 0xf67   : > { %7171 = vmatmul.mubr.f32.gmra.mrb[236].mxu0 %v6551_v29  ;;  %v6572_v33 = vsel %vm16697_vm7, %v16696_v42, %v11172_v1  ;;  %v11182_v9 = vunpack.i.l.bf16 %v11181_v41  ;;  %v11183_v62 = vunpack.i.h.bf16 %v11181_v41  ;;  %v6691_v25 = vld [vmem:[#allocation10 + $0x310] sm:$0xff]  ;;  %v6696_v1 = vld [vmem:[#allocation10 + $0x338] sm:$0xff]  ;;  %v6705_v41 = vld [vmem:[#allocation10 + $0x380] sm:$0xff] }
 0xf68   : > { %7175 = vmatprep.mubr.f32.mxu0 %v6568_v19  ;;  %vm16723_vm7 = vmmov %vm16683_vm0 }
 0xf69   : > { %6843 = vmatmul.mubr.f32.gmra.mrb[216].mxu1 %v6549_v51  ;;  %v16698_v51 = vld [vmem:[#allocation52_spill] sm:$0xff] }
 0xf6a   : > { %6848 = vmatprep.mubr.f32.mxu1 %v6566_v53  ;;  %v6556_v30 = vsel %vm16699_vm1, %v16698_v51, %v11173_v40  ;;  %v16700_v53 = vld [vmem:[#allocation137_spill] sm:$0xff]  ;;  %v11191_v13 = vpop.permute.xlu1 %11190  ;;  %v6698_v40 = vld [vmem:[#allocation10 + $0x348] sm:$0xff]  ;;  %v6701_v51 = vld [vmem:[#allocation10 + $0x360] sm:$0xff] }
 0xf6b   : > { %7176 = vmatmul.mubr.f32.gmra.mrb[238].mxu0 %v6552_v21  ;;  %v6573_v4 = vsel %vm16701_vm15, %v16700_v53, %v11177_v8  ;;  %v11192_v38 = vunpack.i.l.bf16 %v11191_v13  ;;  %v11193_v45 = vunpack.i.h.bf16 %v11191_v13  ;;  %v10517_v58 = vpack.c.bf16 %v6698_v40, %v6695_v27  ;;  %v6700_v8 = vld [vmem:[#allocation10 + $0x358] sm:$0xff]  ;;  %v6727_v27 = vld [vmem:[#allocation10 + $0x430] sm:$0xff]  ;;  %vm16724_vm1 = vmmov %vm16683_vm0 }
 0xf6c   : > { %7180 = vmatprep.mubr.f32.mxu0 %v6569_v34  ;;  %vm16725_vm15 = vmmov %vm16683_vm0 }
 0xf6d   : > { %6849 = vmatmul.mubr.f32.gmra.mrb[218].mxu1 %v6550_v37  ;;  %v16702_v37 = vld [vmem:[#allocation21_spill] sm:$0xff]  ;;  %v6576_v15 = vsel %vm16713_vm10, %v16712_v48, %v11192_v38  ;;  %v6717_v38 = vld [vmem:[#allocation10 + $0x3e0] sm:$0xff]  ;;  %v6718_v48 = vld [vmem:[#allocation10 + $0x3e8] sm:$0xff] }
 0xf6e   : > { %6854 = vmatprep.mubr.f32.mxu1 %v6567_v54  ;;  %v6557_v11 = vsel %vm16703_vm2, %v16702_v37, %v11178_v6  ;;  %v16704_v54 = vld [vmem:[#allocation77_spill] sm:$0xff]  ;;  %vm16726_vm2 = vmmov %vm16683_vm0 }
 0xf6f   : > { %7181 = vmatmul.mubr.f32.gmra.mrb[240].mxu0 %v6553_v18  ;;  %v6574_v55 = vsel %vm16705_vm3, %v16704_v54, %v11182_v9  ;;  %v6703_v9 = vld [vmem:[#allocation10 + $0x370] sm:$0xff]  ;;  %v6710_v54 = vld [vmem:[#allocation10 + $0x3a8] sm:$0xff]  ;;  %vm16727_vm3 = vmmov %vm16683_vm0 }
 0xf70   : > { %7185 = vmatprep.mubr.f32.mxu0 %v6570_v16  ;;  %v6711_v37 = vld [vmem:[#allocation10 + $0x3b0] sm:$0xff]  ;;  %vm16731_vm10 = vmmov %vm16683_vm0 }
 0xf71   : > { %6855 = vmatmul.mubr.f32.gmra.mrb[220].mxu1 %v6551_v29  ;;  %v16706_v29 = vld [vmem:[#allocation20_spill] sm:$0xff] }
 0xf72   : > { %6860 = vmatprep.mubr.f32.mxu1 %v6568_v19  ;;  %v6558_v52 = vsel %vm16707_vm5, %v16706_v29, %v11183_v62  ;;  %v16708_v19 = vld [vmem:[#allocation142_spill] sm:$0xff]  ;;  %vm16728_vm5 = vmmov %vm16683_vm0 }
 0xf73   : > { %7186 = vmatmul.mubr.f32.gmra.mrb[242].mxu0 %v6554_v59  ;;  %v6575_v0 = vsel %vm16709_vm6, %v16708_v19, %v11187_v57  ;;  %v6708_v62 = vld [vmem:[#allocation10 + $0x398] sm:$0xff]  ;;  %v6707_v57 = vld [vmem:[#allocation10 + $0x390] sm:$0xff]  ;;  %vm16729_vm6 = vmmov %vm16683_vm0 }
 0xf74   : > { %7190 = vmatprep.mubr.f32.mxu0 %v6571_v46  ;;  %v10525_v13 = vpack.c.bf16 %v6710_v54, %v6707_v57 }
 0xf75   : > { %6861 = vmatmul.mubr.f32.gmra.mrb[222].mxu1 %v6552_v21  ;;  %v6559_v21 = vsel %vm16711_vm8, %v16710_v5, %v11188_v44  ;;  %v6712_v44 = vld [vmem:[#allocation10 + $0x3b8] sm:$0xff]  ;;  %v6715_v5 = vld [vmem:[#allocation10 + $0x3d0] sm:$0xff]  ;;  %vm16730_vm8 = vmmov %vm16683_vm0 }
 0xf76   : > { %6866 = vmatprep.mubr.f32.mxu1 %v6569_v34  ;;  %v16714_v34 = vld [vmem:[#allocation22_spill] sm:$0xff] }
 0xf77   : > { %7191 = vmatmul.mubr.f32.gmra.mrb[244].mxu0 %v6555_v31  ;;  %v6560_v28 = vsel %vm16683_vm0, %v16714_v34, %v11193_v45  ;;  %v6716_v45 = vld [vmem:[#allocation10 + $0x3d8] sm:$0xff] }
 0xf78   : > { %7195 = vmatprep.mubr.f32.mxu0 %v6572_v33  ;;  %v6720_v34 = vld [vmem:[#allocation10 + $0x3f8] sm:$0xff] }
 0xf79   : > { %6867 = vmatmul.mubr.f32.gmra.mrb[224].mxu1 %v6553_v18  ;;  %v6693_v18 = vld [vmem:[#allocation10 + $0x320] sm:$0xff] }
 0xf7a   : > { %6872 = vmatprep.mubr.f32.mxu1 %v6570_v16  ;;  %v10511_v32 = vpack.c.bf16 %v6693_v18, %v6690_v61  ;;  %v6692_v16 = vld [vmem:[#allocation10 + $0x318] sm:$0xff]  ;;  %v6719_v18 = vld [vmem:[#allocation10 + $0x3f0] sm:$0xff] }
 0xf7b   : > { %7196 = vmatmul.mubr.f32.gmra.mrb[246].mxu0 %v6556_v30  ;;  %v10513_v60 = vpack.c.bf16 %v6692_v16, %v6689_v14  ;;  %v6721_v14 = vld [vmem:[#allocation10 + $0x400] sm:$0xff] }
 0xf7c   : > { %7200 = vmatprep.mubr.f32.mxu0 %v6573_v4  ;;  %10512 = vmatprep.subr.bf16.mxu1 %v10511_v32  ;;  %v6722_v32 = vld [vmem:[#allocation10 + $0x408] sm:$0xff] }
 0xf7d   : > { %6873 = vmatmul.mubr.f32.gmra.mrb[226].mxu1 %v6554_v59  ;;  %v10575_v59 = vpack.c.bf16 %v6694_v12, %v6691_v25  ;;  %v10533_v16 = vpack.c.bf16 %v6722_v32, %v6719_v18  ;;  %v6726_v12 = vld [vmem:[#allocation10 + $0x428] sm:$0xff] }
 0xf7e   : > { %6878 = vmatprep.mubr.f32.mxu1 %v6571_v46  ;;  %10514 = vmatpush1.bf16.msra.mxu1 %v10513_v60  ;;  %v10515_v46 = vpack.c.bf16 %v6699_v43, %v6696_v1  ;;  %v6724_v60 = vld [vmem:[#allocation10 + $0x418] sm:$0xff]  ;;  %v6725_v43 = vld [vmem:[#allocation10 + $0x420] sm:$0xff] }
 0xf7f   : > { %7201 = vmatmul.mubr.f32.gmra.mrb[248].mxu0 %v6557_v11  ;;  %10576 = vmatprep.subr.bf16.mxu0 %v10575_v59  ;;  %v10595_v25 = vpack.c.bf16 %v6724_v60, %v6721_v14 }
 0xf80   : > { %7205 = vmatprep.mubr.f32.mxu0 %v6574_v55  ;;  %10578 = vmatpush3.bf16.msra.mxu0 %v10575_v59  ;;  %v6729_v59 = vld [vmem:[#allocation10 + $0x440] sm:$0xff] }
 0xf81   : > { %6879 = vmatmul.mubr.f32.gmra.mrb[228].mxu1 %v6555_v31  ;;  %10516 = vmatprep.subr.bf16.mxu1 %v10515_v46  ;;  %v6697_v31 = vld [vmem:[#allocation10 + $0x340] sm:$0xff]  ;;  %v10535_v1 = vpack.c.bf16 %v6729_v59, %v6726_v12  ;;  %v6728_v46 = vld [vmem:[#allocation10 + $0x438] sm:$0xff] }
 0xf82   : > { %6884 = vmatprep.mubr.f32.mxu1 %v6572_v33  ;;  %v10579_v42 = vpack.c.bf16 %v6700_v8, %v6697_v31  ;;  %10518 = vmatpush1.bf16.msra.mxu1 %v10517_v58  ;;  %v6702_v33 = vld [vmem:[#allocation10 + $0x368] sm:$0xff]  ;;  %v10537_v40 = vpack.c.bf16 %v6728_v46, %v6725_v43  ;;  %v6732_v8 = vld [vmem:[#allocation10 + $0x458] sm:$0xff] }
 0xf83   : > { %7206 = vmatmul.mubr.f32.gmra.mrb[250].mxu0 %v6558_v52  ;;  %v10519_v6 = vpack.c.bf16 %v6705_v41, %v6702_v33  ;;  %v6730_v58 = vld [vmem:[#allocation10 + $0x448] sm:$0xff]  ;;  %v6731_v41 = vld [vmem:[#allocation10 + $0x450] sm:$0xff] }
 0xf84   : > { %7210 = vmatprep.mubr.f32.mxu0 %v6575_v0  ;;  %10580 = vmatprep.subr.bf16.mxu0 %v10579_v42  ;;  %v10599_v31 = vpack.c.bf16 %v6730_v58, %v6727_v27 }
 0xf85   : > { %6885 = vmatmul.mubr.f32.gmra.mrb[230].mxu1 %v6556_v30  ;;  %10582 = vmatpush3.bf16.msra.mxu0 %v10579_v42  ;;  %v6704_v30 = vld [vmem:[#allocation10 + $0x378] sm:$0xff]  ;;  %v6735_v42 = vld [vmem:[#allocation10 + $0x470] sm:$0xff] }
 0xf86   : > { %6890 = vmatprep.mubr.f32.mxu1 %v6573_v4  ;;  %v10521_v53 = vpack.c.bf16 %v6704_v30, %v6701_v51  ;;  %v6706_v4 = vld [vmem:[#allocation10 + $0x388] sm:$0xff]  ;;  %10520 = vmatprep.subr.bf16.mxu1 %v10519_v6  ;;  %v10539_v33 = vpack.c.bf16 %v6735_v42, %v6732_v8  ;;  %v6733_v51 = vld [vmem:[#allocation10 + $0x460] sm:$0xff] }
 0xf87   : > { %7211 = vmatmul.mubr.f32.gmra.mrb[252].mxu0 %v6559_v21  ;;  %v10583_v47 = vpack.c.bf16 %v6706_v4, %v6703_v9  ;;  %v6734_v6 = vld [vmem:[#allocation10 + $0x468] sm:$0xff]  ;;  %v6736_v9 = vld [vmem:[#allocation10 + $0x478] sm:$0xff] }
 0xf88   : > { %7215 = vmatprep.mubr.f32.mxu0 %v6576_v15  ;;  %10522 = vmatpush1.bf16.msra.mxu1 %v10521_v53  ;;  %v10541_v30 = vpack.c.bf16 %v6734_v6, %v6731_v41  ;;  %v10603_v53 = vpack.c.bf16 %v6736_v9, %v6733_v51 }
 0xf89   : > { %6891 = vmatmul.mubr.f32.gmra.mrb[232].mxu1 %v6557_v11  ;;  %10584 = vmatprep.subr.bf16.mxu0 %v10583_v47  ;;  %v10523_v11 = vpack.c.bf16 %v6711_v37, %v6708_v62 }
 0xf8a   : > { %6896 = vmatprep.mubr.f32.mxu1 %v6574_v55  ;;  %v6709_v55 = vld [vmem:[#allocation10 + $0x3a0] sm:$0xff]  ;;  %10586 = vmatpush3.bf16.msra.mxu0 %v10583_v47 }
 0xf8b   : > { %7216 = vmatmul.mubr.f32.gmra.mrb[254].mxu0 %v6560_v28  ;;  %10524 = vmatprep.subr.bf16.mxu1 %v10523_v11  ;;  %v10587_v29 = vpack.c.bf16 %v6712_v44, %v6709_v55 }
 0xf8c   : > { %10526 = vmatpush1.bf16.msra.mxu1 %v10525_v13 }
 0xf8d   : > { %6897 = vmatmul.mubr.f32.gmra.mrb[234].mxu1 %v6558_v52  ;;  %v6714_v52 = vld [vmem:[#allocation10 + $0x3c8] sm:$0xff]  ;;  %10588 = vmatprep.subr.bf16.mxu0 %v10587_v29 }
 0xf8e   : > { %6902 = vmatprep.mubr.f32.mxu1 %v6575_v0  ;;  %v10527_v19 = vpack.c.bf16 %v6717_v38, %v6714_v52  ;;  %v6713_v0 = vld [vmem:[#allocation10 + $0x3c0] sm:$0xff]  ;;  %10590 = vmatpush3.bf16.msra.mxu0 %v10587_v29 }
 0xf90   : > { %10528 = vmatprep.subr.bf16.mxu1 %v10527_v19 }
 0xf91   : > { %6903 = vmatmul.mubr.f32.gmra.mrb[236].mxu1 %v6559_v21  ;;  %v10529_v21 = vpack.c.bf16 %v6716_v45, %v6713_v0 }
 0xf92   : > { %6908 = vmatprep.mubr.f32.mxu1 %v6576_v15  ;;  %v10591_v15 = vpack.c.bf16 %v6718_v48, %v6715_v5 }
 0xf93   : > { %10530 = vmatpush1.bf16.msra.mxu1 %v10529_v21 }
 0xf94   : > { %10592 = vmatprep.subr.bf16.mxu0 %v10591_v15 }
 0xf95   : > { %6909 = vmatmul.mubr.f32.gmra.mrb[238].mxu1 %v6560_v28  ;;  %v6723_v28 = vld [vmem:[#allocation10 + $0x410] sm:$0xff]  ;;  %10594 = vmatpush3.bf16.msra.mxu0 %v10591_v15 }
 0xf96   : > { %6979 = vmatprep.mubr.f32.mxu1 %v16715_v49  ;;  %v10531_v61 = vpack.c.bf16 %v6723_v28, %v6720_v34  ;;  %10596 = vmatprep.subr.bf16.mxu0 %v10595_v25 }
 0xf98   : > { %10532 = vmatprep.subr.bf16.mxu1 %v10531_v61 }
 0xf99   : > { %10534 = vmatpush1.bf16.msra.mxu1 %v10533_v16  ;;  %10598 = vmatpush3.bf16.msra.mxu0 %v10595_v25 }
 0xf9a   : > { %10536 = vmatprep.subr.bf16.mxu1 %v10535_v1  ;;  %10600 = vmatprep.subr.bf16.mxu0 %v10599_v31 }
 0xf9d   : > { %10538 = vmatpush1.bf16.msra.mxu1 %v10537_v40  ;;  %10602 = vmatpush3.bf16.msra.mxu0 %v10599_v31 }
 0xf9e   : > { %10540 = vmatprep.subr.bf16.mxu1 %v10539_v33  ;;  %10604 = vmatprep.subr.bf16.mxu0 %v10603_v53 }
 0xfa1   : > { %10542 = vmatpush1.bf16.msra.mxu1 %v10541_v30  ;;  %10606 = vmatpush3.bf16.msra.mxu0 %v10603_v53 }
 0xfe4   : > { %v9409_v4 = vpop.f32.mrb[192].mxu1 }
 0xfe5   : > { %6499 = vrot.lane.b32.xlu1 %v9409_v4, %s11885_s28  ;;  %v6274_v47 = vpop.f32.mrb[193].mxu1 }
 0xfe6   : > { %6497 = vrot.lane.b32.xlu0 %v6274_v47, %s11885_s28 }
 0xfe8   : > { %v9412_v62 = vpop.f32.mrb[194].mxu1 }
 0xfe9   : > { %6503 = vrot.lane.b32.xlu1 %v9412_v62, %s11885_s28  ;;  %v6284_v37 = vpop.f32.mrb[195].mxu1 }
 0xfea   : > { %6501 = vrot.lane.b32.xlu0 %v6284_v37, %s11885_s28 }
 0xfec   : > { %v9415_v11 = vpop.f32.mrb[196].mxu1 }
 0xfed   : > { %6507 = vrot.lane.b32.xlu1 %v9415_v11, %s11885_s28  ;;  %v6294_v57 = vpop.f32.mrb[197].mxu1 }
 0xfee   : > { %6505 = vrot.lane.b32.xlu0 %v6294_v57, %s11885_s28  ;;  %v16716_v57 = vld [vmem:[#allocation134_spill] sm:$0xff] }
0x1018   : > { %v9418_v54 = vpop.f32.mrb[198].mxu1 }
0x1019   : > { %6511 = vrot.lane.b32.xlu1 %v9418_v54, %s11885_s28  ;;  %v6304_v55 = vpop.f32.mrb[199].mxu1  ;;  %v6749_v54 = vsub.s32 2, %v16716_v57 }
0x101a   : > { %6509 = vrot.lane.b32.xlu0 %v6304_v55, %s11885_s28  ;;  %v15525_v55 = vld [vmem:[#allocation11] sm:$0x7] }
0x101c   : > { %v9421_v13 = vpop.f32.mrb[200].mxu1 }
0x101d   : > { %6515 = vrot.lane.b32.xlu1 %v9421_v13, %s11885_s28  ;;  %v6314_v44 = vpop.f32.mrb[201].mxu1 }
0x101e   : > { %6513 = vrot.lane.b32.xlu0 %v6314_v44, %s11885_s28 }
0x1020   : > { %v9424_v29 = vpop.f32.mrb[202].mxu1 }
0x1021   : > { %6519 = vrot.lane.b32.xlu1 %v9424_v29, %s11885_s28  ;;  %v6324_v38 = vpop.f32.mrb[203].mxu1 }
0x1022   : > { %v8511_v52 = vpop.f32.mrb[224].mxu0  ;;  %6517 = vrot.lane.b32.xlu0 %v6324_v38, %s11885_s28 }
0x1023   : > { %v8512_v19 = vpop.f32.mrb[225].mxu0 }
0x1024   : > { %v15496_v0 = vadd.f32 %v8512_v19, %v8511_v52  ;;  %v9427_v45 = vpop.f32.mrb[204].mxu1  ;;  %v15528_v52 = vrot.slane %v15525_v55, %v6749_v54 }
0x1025   : > { %6523 = vrot.lane.b32.xlu1 %v9427_v45, %s11885_s28  ;;  %v6334_v21 = vpop.f32.mrb[205].mxu1 }
0x1026   : > { %v8514_v5 = vpop.f32.mrb[226].mxu0  ;;  %6521 = vrot.lane.b32.xlu0 %v6334_v21, %s11885_s28 }
0x1027   : > { %v8515_v48 = vpop.f32.mrb[227].mxu0 }
0x1028   : > { %v15500_v15 = vadd.f32 %v8515_v48, %v8514_v5  ;;  %v9430_v34 = vpop.f32.mrb[206].mxu1 }
0x1029   : > { %6527 = vrot.lane.b32.xlu1 %v9430_v34, %s11885_s28  ;;  %v6344_v61 = vpop.f32.mrb[207].mxu1 }
0x102a   : > { %v8517_v28 = vpop.f32.mrb[228].mxu0  ;;  %6525 = vrot.lane.b32.xlu0 %v6344_v61, %s11885_s28 }
0x102b   : > { %v8518_v18 = vpop.f32.mrb[229].mxu0 }
0x102c   : > { %v15504_v32 = vadd.f32 %v8518_v18, %v8517_v28 }
0x102e   : > { %v8520_v14 = vpop.f32.mrb[230].mxu0 }
0x102f   : > { %v8521_v16 = vpop.f32.mrb[231].mxu0 }
0x1030   : > { %v15506_v60 = vadd.f32 %v8521_v16, %v8520_v14 }
0x1032   : > { %v8523_v25 = vpop.f32.mrb[232].mxu0 }
0x1033   : > { %v8524_v12 = vpop.f32.mrb[233].mxu0 }
0x1034   : > { %v15508_v59 = vadd.f32 %v8524_v12, %v8523_v25 }
0x1036   : > { %v8526_v1 = vpop.f32.mrb[234].mxu0 }
0x1037   : > { %v8527_v43 = vpop.f32.mrb[235].mxu0 }
0x1038   : > { %v15510_v46 = vadd.f32 %v8527_v43, %v8526_v1 }
0x103a   : > { %v8529_v27 = vpop.f32.mrb[236].mxu0 }
0x103b   : > { %v8530_v40 = vpop.f32.mrb[237].mxu0 }
0x103c   : > { %v15512_v58 = vadd.f32 %v8530_v40, %v8529_v27 }
0x103e   : > { %v8532_v31 = vpop.f32.mrb[238].mxu0 }
0x103f   : > { %v8533_v8 = vpop.f32.mrb[239].mxu0 }
0x1040   : > { %v15514_v42 = vadd.f32 %v8533_v8, %v8532_v31 }
0x1042   : > { %v8535_v33 = vpop.f32.mrb[240].mxu0 }
0x1043   : > { %v8536_v41 = vpop.f32.mrb[241].mxu0 }
0x1044   : > { %v15516_v6 = vadd.f32 %v8536_v41, %v8535_v33 }
0x1046   : > { %v8538_v51 = vpop.f32.mrb[242].mxu0 }
0x1047   : > { %v8539_v30 = vpop.f32.mrb[243].mxu0 }
0x1048   : > { %v15518_v9 = vadd.f32 %v8539_v30, %v8538_v51 }
0x104a   : > { %v8541_v53 = vpop.f32.mrb[244].mxu0 }
0x104b   : > { %v8542_v4 = vpop.f32.mrb[245].mxu0 }
0x104c   : > { %v15520_v47 = vadd.f32 %v8542_v4, %v8541_v53 }
0x104e   : > { %v8544_v62 = vpop.f32.mrb[246].mxu0 }
0x104f   : > { %v8545_v37 = vpop.f32.mrb[247].mxu0 }
0x1050   : > { %v15522_v11 = vadd.f32 %v8545_v37, %v8544_v62 }
0x1052   : > { %v8547_v13 = vpop.f32.mrb[248].mxu0 }
0x1053   : > { %v8548_v44 = vpop.f32.mrb[249].mxu0 }
0x1054   : > { %v8549_v29 = vadd.f32 %v8548_v44, %v8547_v13 }
0x1056   : > { %v8550_v38 = vpop.f32.mrb[250].mxu0  ;;  %v15531_v19 = vadd.f32 %v8549_v29, %v15528_v52 }
0x1057   : > { %v8551_v45 = vpop.f32.mrb[251].mxu0  ;;  %v6500_v21 = vpop.permute.xlu1 %6499 }
0x1058   : > { %v8552_v5 = vadd.f32 %v8551_v45, %v8550_v38  ;;  %v6498_v48 = vpop.permute.xlu0 %6497  ;;  %v6578_v18 = vsel %vm16718_vm9, %v15147_v10, %v6500_v21 }
0x1059   : > { %v6577_v34 = vsel %vm16717_vm13, %v15149_v22, %v6498_v48 }
0x105a   : > { %v8553_v28 = vpop.f32.mrb[252].mxu0  ;;  %v15536_v61 = vadd.f32 %v8552_v5, %v15528_v52  ;;  %6980 = vmatmul.mubr.f32.vlgmr.msra.gmra.mrb[208].mxu1 %v6577_v34  ;;  %9463 = vmatprep.mubr.f32.mxu0 %v6577_v34  ;;  %v7148_v5 = vadd.f32 %v15500_v15, %v15528_v52 }
0x105b   : > { %v8554_v14 = vpop.f32.mrb[253].mxu0  ;;  %9464 = vmatmul.mubr.f32.vlgmr.msra.gmra.mrb[0].mxu0 %v6578_v18  ;;  %v6504_v25 = vpop.permute.xlu1 %6503  ;;  %6985 = vmatprep.mubr.f32.mxu1 %v16715_v49 }
0x105c   : > { %v8555_v16 = vadd.f32 %v8554_v14, %v8553_v28  ;;  %v6502_v12 = vpop.permute.xlu0 %6501  ;;  %v6580_v27 = vsel %vm16720_vm4, %v15151_v20, %v6504_v25 }
0x105d   : > { %v6579_v22 = vsel %vm16719_vm14, %v15153_v63, %v6502_v12  ;;  %v7153_v12 = vadd.f32 %v15504_v32, %v15528_v52 }
0x105e   : > { %v8556_v1 = vpop.f32.mrb[254].mxu0  ;;  %v15544_v43 = vadd.f32 %v8555_v16, %v15528_v52  ;;  %6986 = vmatmul.mubr.f32.gmra.mrb[210].mxu1 %v6578_v18  ;;  %9466 = vmatprep.mubr.f32.mxu0 %v6579_v22 }
0x105f   : > { %v8557_v10 = vpop.f32.mrb[255].mxu0  ;;  %9467 = vmatmul.mubr.f32.gmra.mrb[2].mxu0 %v6580_v27  ;;  %v6508_v31 = vpop.permute.xlu1 %6507  ;;  %6991 = vmatprep.mubr.f32.mxu1 %v16715_v49 }
0x1060   : > { %v8558_v40 = vadd.f32 %v8557_v10, %v8556_v1  ;;  %v6506_v8 = vpop.permute.xlu0 %6505  ;;  %v6582_v41 = vsel %vm16722_vm11, %v15155_v3, %v6508_v31 }
0x1061   : > { %v6581_v33 = vsel %vm16721_vm12, %v15157_v39, %v6506_v8 }
0x1062   : > { %v15552_v63 = vadd.f32 %v8558_v40, %v15528_v52  ;;  %6992 = vmatmul.mubr.f32.gmra.mrb[212].mxu1 %v6579_v22  ;;  %9469 = vmatprep.mubr.f32.mxu0 %v6581_v33  ;;  %v7168_v40 = vadd.f32 %v15510_v46, %v15528_v52 }
0x1063   : > { %9470 = vmatmul.mubr.f32.gmra.mrb[4].mxu0 %v6582_v41  ;;  %6997 = vmatprep.mubr.f32.mxu1 %v16715_v49 }
0x1066   : > { %6998 = vmatmul.mubr.f32.gmra.mrb[214].mxu1 %v6580_v27 }
0x1067   : > { %7003 = vmatprep.mubr.f32.mxu1 %v16715_v49 }
0x106a   : > { %7004 = vmatmul.mubr.f32.gmra.mrb[216].mxu1 %v6581_v33  ;;  %v7163_v33 = vadd.f32 %v15508_v59, %v15528_v52 }
0x106b   : > { %7009 = vmatprep.mubr.f32.mxu1 %v16715_v49 }
0x106e   : > { %7010 = vmatmul.mubr.f32.gmra.mrb[218].mxu1 %v6582_v41 }
0x106f   : > { %7015 = vmatprep.mubr.f32.mxu1 %v16715_v49 }
0x108b   : > { %v6512_v20 = vpop.permute.xlu1 %6511 }
0x108c   : > { %v6510_v39 = vpop.permute.xlu0 %6509  ;;  %v6584_v3 = vsel %vm16724_vm1, %v15159_v24, %v6512_v20 }
0x108d   : > { %v6583_v51 = vsel %vm16723_vm7, %v15161_v17, %v6510_v39 }
0x108e   : > { %7016 = vmatmul.mubr.f32.gmra.mrb[220].mxu1 %v6583_v51  ;;  %9472 = vmatprep.mubr.f32.mxu0 %v6583_v51 }
0x108f   : > { %9473 = vmatmul.mubr.f32.gmra.mrb[6].mxu0 %v6584_v3  ;;  %v6516_v30 = vpop.permute.xlu1 %6515  ;;  %7021 = vmatprep.mubr.f32.mxu1 %v16715_v49 }
0x1090   : > { %v6514_v53 = vpop.permute.xlu0 %6513  ;;  %v6586_v62 = vsel %vm16726_vm2, %v15163_v7, %v6516_v30 }
0x1091   : > { %v6585_v4 = vsel %vm16725_vm15, %v15165_v36, %v6514_v53 }
0x1092   : > { %7022 = vmatmul.mubr.f32.gmra.mrb[222].mxu1 %v6584_v3  ;;  %9475 = vmatprep.mubr.f32.mxu0 %v6585_v4 }
0x1093   : > { %9476 = vmatmul.mubr.f32.gmra.mrb[8].mxu0 %v6586_v62  ;;  %7027 = vmatprep.mubr.f32.mxu1 %v16715_v49  ;;  %v6520_v17 = vpop.permute.xlu1 %6519 }
0x1094   : > { %v6518_v24 = vpop.permute.xlu0 %6517  ;;  %v6588_v54 = vsel %vm16728_vm5, %v15167_v56, %v6520_v17 }
0x1095   : > { %v6587_v37 = vsel %vm16727_vm3, %v15169_v35, %v6518_v24 }
0x1096   : > { %7028 = vmatmul.mubr.f32.gmra.mrb[224].mxu1 %v6585_v4  ;;  %9478 = vmatprep.mubr.f32.mxu0 %v6587_v37 }
0x1097   : > { %7033 = vmatprep.mubr.f32.mxu1 %v16715_v49  ;;  %9479 = vmatmul.mubr.f32.gmra.mrb[10].mxu0 %v6588_v54  ;;  %v6524_v36 = vpop.permute.xlu1 %6523 }
0x1098   : > { %v6522_v7 = vpop.permute.xlu0 %6521  ;;  %v6590_v44 = vsel %vm16730_vm8, %v15171_v2, %v6524_v36  ;;  %v6741_v2 = vsub.s32 0, %v16716_v57 }
0x1099   : > { %v6589_v13 = vsel %vm16729_vm6, %v15173_v23, %v6522_v7  ;;  %v6745_v23 = vsub.s32 1, %v16716_v57 }
0x109a   : > { %7034 = vmatmul.mubr.f32.gmra.mrb[226].mxu1 %v6586_v62  ;;  %9481 = vmatprep.mubr.f32.mxu0 %v6589_v13 }
0x109b   : > { %7039 = vmatprep.mubr.f32.mxu1 %v16715_v49  ;;  %9482 = vmatmul.mubr.f32.gmra.mrb[12].mxu0 %v6590_v44  ;;  %v6528_v35 = vpop.permute.xlu1 %6527 }
0x109c   : > { %v6526_v29 = vpop.permute.xlu0 %6525  ;;  %v6592_v38 = vsel %vm16683_vm0, %v15175_v26, %v6528_v35  ;;  %v15592_v26 = vrot.slane %v15525_v55, %v6741_v2 }
0x109d   : > { %v6591_v56 = vsel %vm16731_vm10, %v15177_v50, %v6526_v29  ;;  %v15595_v50 = vrot.slane %v15525_v55, %v6745_v23 }
0x109e   : > { %7040 = vmatmul.mubr.f32.gmra.mrb[228].mxu1 %v6587_v37  ;;  %9484 = vmatprep.mubr.f32.mxu0 %v6591_v56 }
0x109f   : > { %7045 = vmatprep.mubr.f32.mxu1 %v16715_v49  ;;  %9485 = vmatmul.mubr.f32.gmra.mrb[14].mxu0 %v6592_v38 }
0x10a2   : > { %7046 = vmatmul.mubr.f32.gmra.mrb[230].mxu1 %v6588_v54 }
0x10a3   : > { %7051 = vmatprep.mubr.f32.mxu1 %v16715_v49 }
0x10a6   : > { %7052 = vmatmul.mubr.f32.gmra.mrb[232].mxu1 %v6589_v13  ;;  %v7178_v13 = vadd.f32 %v15514_v42, %v15528_v52 }
0x10a7   : > { %7057 = vmatprep.mubr.f32.mxu1 %v16715_v49 }
0x10aa   : > { %7058 = vmatmul.mubr.f32.gmra.mrb[234].mxu1 %v6590_v44 }
0x10ab   : > { %7063 = vmatprep.mubr.f32.mxu1 %v16715_v49 }
0x10ae   : > { %7064 = vmatmul.mubr.f32.gmra.mrb[236].mxu1 %v6591_v56  ;;  %v7173_v56 = vadd.f32 %v15512_v58, %v15528_v52 }
0x10af   : > { %7069 = vmatprep.mubr.f32.mxu1 %v16715_v49  ;;  %v7143_v49 = vadd.f32 %v15496_v0, %v15528_v52  ;;  %v7158_v0 = vadd.f32 %v15506_v60, %v15528_v52 }
0x10b2   : > { %7070 = vmatmul.mubr.f32.gmra.mrb[238].mxu1 %v6592_v38 }
0x112d   : > { %v6981_v45 = vpop.f32.mrb[208].mxu1 }
0x112e   : > { %v10607_v21 = vadd.f32 %v6981_v45, %v15592_v26  ;;  %v6983_v48 = vpop.f32.mrb[209].mxu1  ;;  %v9465_v34 = vpop.f32.mrb[0].mxu0 }
0x112f   : > { %v10608_v28 = vadd.f32 %v6983_v48, %v15595_v50  ;;  %v7293_v57 = vadd.f32 %v9465_v34, %v7148_v5  ;;  %v7287_v18 = vpop.f32.mrb[1].mxu0  ;;  %v7188_v5 = vadd.f32 %v15518_v9, %v15528_v52  ;;  %v7183_v34 = vadd.f32 %v15516_v6, %v15528_v52 }
0x1130   : > { %7366 = vst [vmem:[%s15605_s18] sm:$0xff] %v10607_v21  ;;  %v7288_v15 = vadd.f32 %v7287_v18, %v7143_v49  ;;  %v7198_v6 = vadd.f32 %v15522_v11, %v15528_v52 }
0x1131   : > { %7367 = vst [vmem:[%s15605_s18 + $0x8] sm:$0xff] %v10608_v28  ;;  %7371 = vst [vmem:[%s15605_s18 + $0x28] sm:$0xff] %v7293_v57  ;;  %v6987_v55 = vpop.f32.mrb[210].mxu1 }
0x1132   : > { %7368 = vst [vmem:[%s15605_s18 + $0x10] sm:$0xff] %v7288_v15  ;;  %v10609_v14 = vadd.f32 %v6987_v55, %v15592_v26  ;;  %v6989_v16 = vpop.f32.mrb[211].mxu1  ;;  %v9468_v25 = vpop.f32.mrb[2].mxu0 }
0x1133   : > { %v10610_v1 = vadd.f32 %v6989_v16, %v15595_v50  ;;  %v7303_v22 = vadd.f32 %v9468_v25, %v7158_v0  ;;  %v7297_v27 = vpop.f32.mrb[3].mxu0  ;;  %v7193_v16 = vadd.f32 %v15520_v47, %v15528_v52 }
0x1134   : > { %7369 = vst [vmem:[%s15605_s18 + $0x18] sm:$0xff] %v10609_v14  ;;  %v7298_v10 = vadd.f32 %v7297_v27, %v7153_v12 }
0x1135   : > { %7370 = vst [vmem:[%s15605_s18 + $0x20] sm:$0xff] %v10610_v1  ;;  %7377 = vst [vmem:[%s15605_s18 + $0x58] sm:$0xff] %v7303_v22  ;;  %v6993_v60 = vpop.f32.mrb[212].mxu1 }
0x1136   : > { %7374 = vst [vmem:[%s15605_s18 + $0x40] sm:$0xff] %v7298_v10  ;;  %v10611_v31 = vadd.f32 %v6993_v60, %v15592_v26  ;;  %v6995_v32 = vpop.f32.mrb[213].mxu1  ;;  %v9471_v8 = vpop.f32.mrb[4].mxu0 }
0x1137   : > { %v10612_v41 = vadd.f32 %v6995_v32, %v15595_v50  ;;  %v7313_v20 = vadd.f32 %v9471_v8, %v7168_v40  ;;  %v7307_v39 = vpop.f32.mrb[5].mxu0 }
0x1138   : > { %7372 = vst [vmem:[%s15605_s18 + $0x30] sm:$0xff] %v10611_v31  ;;  %v7308_v51 = vadd.f32 %v7307_v39, %v7163_v33 }
0x1139   : > { %7373 = vst [vmem:[%s15605_s18 + $0x38] sm:$0xff] %v10612_v41  ;;  %7383 = vst [vmem:[%s15605_s18 + $0x88] sm:$0xff] %v7313_v20  ;;  %v6999_v46 = vpop.f32.mrb[214].mxu1 }
0x113a   : > { %7380 = vst [vmem:[%s15605_s18 + $0x70] sm:$0xff] %v7308_v51  ;;  %v10613_v3 = vadd.f32 %v6999_v46, %v15592_v26  ;;  %v7001_v30 = vpop.f32.mrb[215].mxu1 }
0x113b   : > { %v10614_v53 = vadd.f32 %v7001_v30, %v15595_v50 }
0x113c   : > { %7375 = vst [vmem:[%s15605_s18 + $0x48] sm:$0xff] %v10613_v3 }
0x113d   : > { %7376 = vst [vmem:[%s15605_s18 + $0x50] sm:$0xff] %v10614_v53  ;;  %v7005_v59 = vpop.f32.mrb[216].mxu1 }
0x113e   : > { %v10615_v4 = vadd.f32 %v7005_v59, %v15592_v26  ;;  %v7007_v62 = vpop.f32.mrb[217].mxu1 }
0x113f   : > { %v10616_v17 = vadd.f32 %v7007_v62, %v15595_v50 }
0x1140   : > { %7378 = vst [vmem:[%s15605_s18 + $0x60] sm:$0xff] %v10615_v4 }
0x1141   : > { %7379 = vst [vmem:[%s15605_s18 + $0x68] sm:$0xff] %v10616_v17  ;;  %v7011_v24 = vpop.f32.mrb[218].mxu1 }
0x1142   : > { %v10617_v37 = vadd.f32 %v7011_v24, %v15592_v26  ;;  %v7013_v54 = vpop.f32.mrb[219].mxu1 }
0x1143   : > { %v10618_v36 = vadd.f32 %v7013_v54, %v15595_v50 }
0x1144   : > { %7381 = vst [vmem:[%s15605_s18 + $0x78] sm:$0xff] %v10617_v37 }
0x1145   : > { %7382 = vst [vmem:[%s15605_s18 + $0x80] sm:$0xff] %v10618_v36 }
0x1161   : > { %v7017_v7 = vpop.f32.mrb[220].mxu1 }
0x1162   : > { %v10619_v44 = vadd.f32 %v7017_v7, %v15592_v26  ;;  %v7019_v35 = vpop.f32.mrb[221].mxu1  ;;  %v9474_v29 = vpop.f32.mrb[6].mxu0 }
0x1163   : > { %v10620_v38 = vadd.f32 %v7019_v35, %v15595_v50  ;;  %v7323_v2 = vadd.f32 %v9474_v29, %v7178_v13  ;;  %v7317_v23 = vpop.f32.mrb[7].mxu0 }
0x1164   : > { %7384 = vst [vmem:[%s15605_s18 + $0x90] sm:$0xff] %v10619_v44  ;;  %v7318_v45 = vadd.f32 %v7317_v23, %v7173_v56 }
0x1165   : > { %7385 = vst [vmem:[%s15605_s18 + $0x98] sm:$0xff] %v10620_v38  ;;  %7389 = vst [vmem:[%s15605_s18 + $0xb8] sm:$0xff] %v7323_v2  ;;  %v7023_v42 = vpop.f32.mrb[222].mxu1 }
0x1166   : > { %7386 = vst [vmem:[%s15605_s18 + $0xa0] sm:$0xff] %v7318_v45  ;;  %v10621_v21 = vadd.f32 %v7023_v42, %v15592_v26  ;;  %v7025_v58 = vpop.f32.mrb[223].mxu1  ;;  %v9477_v48 = vpop.f32.mrb[8].mxu0 }
0x1167   : > { %v10622_v49 = vadd.f32 %v7025_v58, %v15595_v50  ;;  %v7333_v28 = vadd.f32 %v9477_v48, %v7188_v5  ;;  %v7327_v57 = vpop.f32.mrb[9].mxu0 }
0x1168   : > { %7387 = vst [vmem:[%s15605_s18 + $0xa8] sm:$0xff] %v10621_v21  ;;  %v7328_v18 = vadd.f32 %v7327_v57, %v7183_v34 }
0x1169   : > { %7388 = vst [vmem:[%s15605_s18 + $0xb0] sm:$0xff] %v10622_v49  ;;  %7395 = vst [vmem:[%s15605_s18 + $0xe8] sm:$0xff] %v7333_v28  ;;  %v7029_v9 = vpop.f32.mrb[224].mxu1 }
0x116a   : > { %7392 = vst [vmem:[%s15605_s18 + $0xd0] sm:$0xff] %v7328_v18  ;;  %v10623_v15 = vadd.f32 %v7029_v9, %v15592_v26  ;;  %v7031_v55 = vpop.f32.mrb[225].mxu1  ;;  %v9480_v14 = vpop.f32.mrb[10].mxu0 }
0x116b   : > { %v10624_v0 = vadd.f32 %v7031_v55, %v15595_v50  ;;  %v7343_v25 = vadd.f32 %v9480_v14, %v7198_v6  ;;  %v7337_v12 = vpop.f32.mrb[11].mxu0 }
0x116c   : > { %7390 = vst [vmem:[%s15605_s18 + $0xc0] sm:$0xff] %v10623_v15  ;;  %v7338_v1 = vadd.f32 %v7337_v12, %v7193_v16 }
0x116d   : > { %7391 = vst [vmem:[%s15605_s18 + $0xc8] sm:$0xff] %v10624_v0  ;;  %v7035_v22 = vpop.f32.mrb[226].mxu1  ;;  %7401 = vst [vmem:[%s15605_s18 + $0x118] sm:$0xff] %v7343_v25 }
0x116e   : > { %v10625_v27 = vadd.f32 %v7035_v22, %v15592_v26  ;;  %v7037_v11 = vpop.f32.mrb[227].mxu1  ;;  %7398 = vst [vmem:[%s15605_s18 + $0x100] sm:$0xff] %v7338_v1  ;;  %v9483_v60 = vpop.f32.mrb[12].mxu0 }
0x116f   : > { %v10626_v10 = vadd.f32 %v7037_v11, %v15595_v50  ;;  %v7353_v47 = vadd.f32 %v9483_v60, %v15536_v61  ;;  %v7347_v52 = vpop.f32.mrb[13].mxu0 }
0x1170   : > { %7393 = vst [vmem:[%s15605_s18 + $0xd8] sm:$0xff] %v10625_v27  ;;  %v7348_v40 = vadd.f32 %v7347_v52, %v15531_v19 }
0x1171   : > { %7394 = vst [vmem:[%s15605_s18 + $0xe0] sm:$0xff] %v10626_v10  ;;  %v7041_v31 = vpop.f32.mrb[228].mxu1  ;;  %7407 = vst [vmem:[%s15605_s18 + $0x148] sm:$0xff] %v7353_v47 }
0x1172   : > { %v10627_v32 = vadd.f32 %v7041_v31, %v15592_v26  ;;  %v7043_v8 = vpop.f32.mrb[229].mxu1  ;;  %7404 = vst [vmem:[%s15605_s18 + $0x130] sm:$0xff] %v7348_v40  ;;  %v9486_v41 = vpop.f32.mrb[14].mxu0 }
0x1173   : > { %v10628_v33 = vadd.f32 %v7043_v8, %v15595_v50  ;;  %v7363_v61 = vadd.f32 %v9486_v41, %v15552_v63  ;;  %v7357_v20 = vpop.f32.mrb[15].mxu0 }
0x1174   : > { %7396 = vst [vmem:[%s15605_s18 + $0xf0] sm:$0xff] %v10627_v32  ;;  %v7358_v19 = vadd.f32 %v7357_v20, %v15544_v43 }
0x1175   : > { %7397 = vst [vmem:[%s15605_s18 + $0xf8] sm:$0xff] %v10628_v33  ;;  %v7047_v39 = vpop.f32.mrb[230].mxu1  ;;  %7413 = vst [vmem:[%s15605_s18 + $0x178] sm:$0xff] %v7363_v61 }
0x1176   : > { %v10629_v51 = vadd.f32 %v7047_v39, %v15592_v26  ;;  %v7049_v46 = vpop.f32.mrb[231].mxu1  ;;  %7410 = vst [vmem:[%s15605_s18 + $0x160] sm:$0xff] %v7358_v19 }
0x1177   : > { %v10630_v3 = vadd.f32 %v7049_v46, %v15595_v50 }
0x1178   : > { %7399 = vst [vmem:[%s15605_s18 + $0x108] sm:$0xff] %v10629_v51 }
0x1179   : > { %7400 = vst [vmem:[%s15605_s18 + $0x110] sm:$0xff] %v10630_v3  ;;  %v7053_v63 = vpop.f32.mrb[232].mxu1 }
0x117a   : > { %v10631_v30 = vadd.f32 %v7053_v63, %v15592_v26  ;;  %v7055_v53 = vpop.f32.mrb[233].mxu1 }
0x117b   : > { %v10632_v43 = vadd.f32 %v7055_v53, %v15595_v50 }
0x117c   : > { %7402 = vst [vmem:[%s15605_s18 + $0x120] sm:$0xff] %v10631_v30 }
0x117d   : > { %7403 = vst [vmem:[%s15605_s18 + $0x128] sm:$0xff] %v10632_v43  ;;  %v7059_v59 = vpop.f32.mrb[234].mxu1 }
0x117e   : > { %v10633_v4 = vadd.f32 %v7059_v59, %v15592_v26  ;;  %v7061_v62 = vpop.f32.mrb[235].mxu1 }
0x117f   : > { %v10634_v17 = vadd.f32 %v7061_v62, %v15595_v50 }
0x1180   : > { %7405 = vst [vmem:[%s15605_s18 + $0x138] sm:$0xff] %v10633_v4 }
0x1181   : > { %7406 = vst [vmem:[%s15605_s18 + $0x140] sm:$0xff] %v10634_v17  ;;  %v7065_v24 = vpop.f32.mrb[236].mxu1 }
0x1182   : > { %v10635_v37 = vadd.f32 %v7065_v24, %v15592_v26  ;;  %v7067_v54 = vpop.f32.mrb[237].mxu1 }
0x1183   : > { %v10636_v36 = vadd.f32 %v7067_v54, %v15595_v50 }
0x1184   : > { %7408 = vst [vmem:[%s15605_s18 + $0x150] sm:$0xff] %v10635_v37 }
0x1185   : > { %7409 = vst [vmem:[%s15605_s18 + $0x158] sm:$0xff] %v10636_v36  ;;  %v7071_v7 = vpop.f32.mrb[238].mxu1 }
0x1186   : > { %v10637_v13 = vadd.f32 %v7071_v7, %v15592_v26  ;;  %v7073_v44 = vpop.f32.mrb[239].mxu1 }
0x1187   : > { %v10638_v35 = vadd.f32 %v7073_v44, %v15595_v50 }
0x1188   : > { %7411 = vst [vmem:[%s15605_s18 + $0x168] sm:$0xff] %v10637_v13 }
0x1189   : > { %7412 = vst [vmem:[%s15605_s18 + $0x170] sm:$0xff] %v10638_v35 }
0x118a   : > { %11809 = shalt.err (!%p11806_p8)
}
0x118b   : > { %s11810_s13 = scalar_lea.hbm %s15711_s10, 6144  ;;  %s11814_s28 = scalar_lea.hbm %s15766_s6, 12288 }
0x118c   : > { %p11811_p6 = scmp.ne.s32.totalorder %s15711_s10, %s11810_s13  ;;  %p11815_p3 = scmp.lt.u32.totalorder %s15711_s10, %s15766_s6 }
0x118d   : > { %p11816_p5 = scmp.lt.u32.totalorder %s11814_s28, %s11810_s13  ;;  %p11818_p7 = scmp.lt.u32.totalorder %s11810_s13, %s15711_s10 }
0x118e   : > { %p11812_p10 = pnand %p11811_p6, %p16732_p4 }
0x118f   : > { %p11817_p9 = por %p11816_p5, %p11815_p3 }
0x1190   : > { %p11813_p11 = pneg %p11812_p10 }
0x1191   : > { %p11819_p12 = por %p11818_p7, %p11817_p9 }
0x1193   : > { %p11820_p1 = pnand %p11819_p12, %p11813_p11 }
0x1195   : > { %11823 = shalt.err (!%p11820_p1)
}
0x1196   : > { %s11887_s14 = smov 384   ;;  %s11888_s29 = smov 24  }
0x1197   : > { %10793 = dma.vmem_to_hbm [thread:$0]  (%p16732_p4), %s15713_s15, 6144, %s15711_s10, %s7415_s27, %s11887_s14, %s11887_s14, %s11888_s29  }
0x1198 PF: > { %s7443_s9 = sand.u32 1, %s11862_s21   ;;  %p16733_p13 = scmp.ne.s32.totalorder %s16034_s8, 0 }
0x1199   : > { %p16734_p0 = scmp.ge.s32.totalorder %s11874_s24, 2  ;;  %s7444_s19 = scalar_lea.sflag [#allocation4], %s7443_s9 }
0x119b   : > { %p10816_p2 = pnand %p16734_p0, %p16733_p13 }
0x119d   : > { %11857 = dma.done.wait (!%p10816_p2), %s7444_s19, 6144  }
0x119e   : > { %11859 = vsyncadd (!%p10816_p2), %s7444_s19, 4294961152  ;;  %p22_p8 = scmp.ge.s32.totalorder %s12094_s7, 4   ;;  %s16735_s21 = smov %s11866_s22 }
0x119f   : > { %s16736_s22 = smov %s11870_s23  ;;  %s16737_s23 = smov %s12106_s26 }
0x11a0   : > { %s16738_s24 = smov %s12094_s7  ;;  %24 = sbr.rel (!%p22_p8) target bundleno = 8 (0x8), region = 109 }
0x11a7   :  { %7449 = vsyncpa [#allocation3], 1 }
0x11a8   :  { %7451 = vsyncpa [#allocation3 + $0x1], 1 }
0x11a9   :  { %7452 = vsyncpa [#allocation6], 1 }
0x11aa   :  { %7453 = vsyncpa [#allocation9], 1 }
0x11ab   :  { %7454 = vsyncpa [#allocation12], 1 }
0x11ac   :  { %7455 = vsyncpa [#allocation4], 1 }
0x11ad   :  { %7457 = vsyncpa [#allocation4 + $0x1], 1 }

</bundles_post_ra>
